<compile_context>
chip_gen: v5e
topology: v5e:2x2
jax: 0.10.0
libtpu: 0.0.40
codegen_flags: <defaults>
</compile_context>

<pallas_src>
import functools

import numpy as np
import jax
import jax.numpy as jnp
from jax.experimental import pallas as pl
from jax.experimental.pallas import tpu as pltpu


LANE = 128          # channel padding target (TPU lane width)
TN = 128            # output-channel tile


def _rup(x, m):
    return (x + m - 1) // m * m


def _row_tile(l):
    return 256 if l > 512 else 128


# ----------------------------------------------------------------------------
# Pallas kernel: fused 3x3 "valid" conv over the flattened padded image,
# folded-BN scale/bias, optional ReLU, exact zeroing of border/tail rows, and
# zero-fill of the slack row-tiles.
#
#   x_ref : (tot, Cin_p)   f32  whole canvas (resident across cout/row axes)
#   w_ref : (9*Cin_p, TN)  bf16 taps in (kh, kw) row-major order
#   s_ref : (1, TN)        f32  folded-BN scale (ones for deconv)
#   b_ref : (1, TN)        f32  folded-BN bias / deconv bias
#   m_ref : (R_TILE, 1)    f32  interior mask for this row tile
#   o_ref : (R_TILE, TN)   f32  output rows (same canvas layout)
# ----------------------------------------------------------------------------
def _conv3x3_kernel(x_ref, w_ref, s_ref, b_ref, m_ref, o_ref, *,
                    wp, r_tile, apply_relu):
    r = pl.program_id(2)
    last = pl.num_programs(2) - 1
    is_slack = jnp.logical_or(r == 0, r == last)

    @pl.when(is_slack)
    def _():
        # Pure slack tiles: just write exact zeros (they are the next layer's
        # out-of-image slack); no tap reads (they would go out of range).
        o_ref[...] = jnp.zeros_like(o_ref)

    @pl.when(jnp.logical_not(is_slack))
    def _():
        base = pl.multiple_of(r * r_tile, r_tile)
        # Gather the 9 shifted taps with sliced loads and merge them into one
        # (R_TILE, 9*Cin_p) im2col operand -> a single wide MXU contraction.
        taps = []
        for dy in (-1, 0, 1):
            for dx in (-1, 0, 1):
                off = dy * wp + dx
                taps.append(
                    x_ref[pl.ds(base + off, r_tile), :].astype(jnp.bfloat16))
        patch = jnp.concatenate(taps, axis=-1)                 # (R, 9*Cin_p) bf16

        acc = jnp.dot(patch, w_ref[...], preferred_element_type=jnp.float32)

        y = acc * s_ref[...] + b_ref[...]                      # f32 epilogue
        if apply_relu:
            y = jnp.maximum(y, 0.0)
        # Exact zeros on the 1-px border / tail rows: they become the next
        # layer's zero padding.
        y = jnp.where(m_ref[...] > 0.5, y, 0.0)
        o_ref[...] = y.astype(o_ref.dtype)


def conv3x3_canvas(x_canvas, hp, wp, w9p, scale_p, bias_p, *, relu):
    """Fused 3x3 valid conv over a slack-padded flattened image ("canvas").

    x_canvas : (N, tot, Cin_p) f32 with tot = r_tile + lp + r_tile where
               lp = round_up(hp*wp, r_tile).  Rows [r_tile, r_tile + hp*wp)
               hold the padded image row-major; everything else is zero.
    Returns an (N, tot, Cout_p) f32 canvas in the SAME layout: interior pixels
    hold the conv result, the 1-px border, tail and slack rows are exact zeros
    -> directly the next 3x3(pad=1) conv's input.
    """
    n, tot, cin_p = x_canvas.shape
    k_p, cout_p = w9p.shape
    assert k_p == 9 * cin_p and cout_p % TN == 0

    l = hp * wp
    r_tile = _row_tile(l)
    lp = _rup(l, r_tile)
    assert tot == lp + 2 * r_tile
    assert r_tile > wp + 1          # slack tile always covers the tap reach

    # Interior mask over the canvas rows (border + tail + slack rows -> 0).
    ii = np.arange(tot) - r_tile
    yy, xx = ii // wp, ii % wp
    interior = ((ii >= 0) & (ii < l) &
                (yy >= 1) & (yy <= hp - 2) & (xx >= 1) & (xx <= wp - 2))
    mask = jnp.asarray(interior.astype(np.float32).reshape(tot, 1))

    kern = functools.partial(_conv3x3_kernel, wp=wp, r_tile=r_tile,
                             apply_relu=relu)
    grid = (n, cout_p // TN, tot // r_tile)

    return pl.pallas_call(
        kern,
        out_shape=jax.ShapeDtypeStruct((n, tot, cout_p), jnp.float32),
        grid=grid,
        in_specs=[
            pl.BlockSpec((None, tot, cin_p), lambda b, j, r: (b, 0, 0)),
            pl.BlockSpec((k_p, TN), lambda b, j, r: (0, j)),
            pl.BlockSpec((1, TN), lambda b, j, r: (0, j)),
            pl.BlockSpec((1, TN), lambda b, j, r: (0, j)),
            pl.BlockSpec((r_tile, 1), lambda b, j, r: (r, 0)),
        ],
        out_specs=pl.BlockSpec((None, r_tile, TN), lambda b, j, r: (b, r, j)),
        compiler_params=pltpu.CompilerParams(
            dimension_semantics=("parallel", "parallel", "parallel")),
    )(x_canvas, w9p, scale_p, bias_p, mask)


# ----------------------------------------------------------------------------
# Layer glue (wrapper-side reshuffles only, at geometry changes)
# ----------------------------------------------------------------------------
def _canvas_from_image(img_padded, hp, wp):
    """(N, hp, wp, C) padded image -> (N, tot, C) slack canvas."""
    n, _, _, c = img_padded.shape
    l = hp * wp
    r_tile = _row_tile(l)
    lp = _rup(l, r_tile)
    flat = img_padded.reshape(n, l, c)
    return jnp.pad(flat, ((0, 0), (r_tile, lp - l + r_tile), (0, 0)))


def _canvas_to_image(canvas, hp, wp):
    """(N, tot, C) canvas -> (N, hp-2, wp-2, C) valid (un-padded) image."""
    n, _, c = canvas.shape
    l = hp * wp
    r_tile = _row_tile(l)
    img = canvas[:, r_tile:r_tile + l, :].reshape(n, hp, wp, c)
    return img[:, 1:hp - 1, 1:wp - 1, :]


def conv_transpose_stage(x_img, w9p, bias_p):
    """ConvTranspose2d(k=3, s=2, p=0): zero-insert upsample + pad-2 + flipped
    3x3 conv.  x_img: (N, H, W, Cin_p) valid image.  Returns the output as an
    (N, tot, Cout_p) canvas with hp = 2H+3, wp = 2W+3 (interior (2H+1)x(2W+1))."""
    n, h, w, c = x_img.shape
    # TODO(synk): fuse the stride-2 zero-insert + pad into the kernel.
    xu = jnp.zeros((n, 2 * h - 1, 2 * w - 1, c), x_img.dtype)
    xu = xu.at[:, ::2, ::2, :].set(x_img)
    xp = jnp.pad(xu, ((0, 0), (2, 2), (2, 2), (0, 0)))
    hp, wp = 2 * h + 3, 2 * w + 3
    canvas = _canvas_from_image(xp, hp, wp)
    cout_p = w9p.shape[1]
    ones = jnp.ones((1, cout_p), jnp.float32)
    out = conv3x3_canvas(canvas, hp, wp, w9p, ones, bias_p, relu=False)
    return out, hp, wp


def double_conv_stage(canvas, hp, wp, stages):
    for w9p, s_p, b_p in stages:
        canvas = conv3x3_canvas(canvas, hp, wp, w9p, s_p, b_p, relu=True)
    return canvas


# ----------------------------------------------------------------------------
# Parameter packing: PyTorch layout -> channel-padded, tap-major bf16 weights
# ----------------------------------------------------------------------------
def _pack_conv_w(w_pt):            # (Co, Ci, 3, 3) -> (9*Cip, Cop) bf16
    co, ci = w_pt.shape[0], w_pt.shape[1]
    cip, cop = _rup(ci, LANE), _rup(co, LANE)
    w = jnp.transpose(w_pt, (2, 3, 1, 0)).reshape(9, ci, co)
    w = jnp.pad(w, ((0, 0), (0, cip - ci), (0, cop - co)))
    return w.reshape(9 * cip, cop).astype(jnp.bfloat16)


def _pack_deconv_w(wt_pt):         # (Ci, Co, 3, 3) -> flipped, (9*Cip, Cop) bf16
    ci, co = wt_pt.shape[0], wt_pt.shape[1]
    cip, cop = _rup(ci, LANE), _rup(co, LANE)
    w = jnp.transpose(wt_pt[:, :, ::-1, ::-1], (2, 3, 0, 1)).reshape(9, ci, co)
    w = jnp.pad(w, ((0, 0), (0, cip - ci), (0, cop - co)))
    return w.reshape(9 * cip, cop).astype(jnp.bfloat16)


def _pack_vec(v):                  # (C,) -> (1, Cp) f32, zero padded
    c = v.shape[0]
    cp = _rup(c, LANE)
    return jnp.pad(v, (0, cp - c)).reshape(1, cp).astype(jnp.float32)


def prepare_params(p):
    def pack_stage(stages):
        return [(_pack_conv_w(w), _pack_vec(s), _pack_vec(b)) for w, s, b in stages]
    return dict(
        deconv1=(_pack_deconv_w(p["deconv1"][0]), _pack_vec(p["deconv1"][1])),
        conv1=pack_stage(p["conv1"]),
        deconv2=(_pack_deconv_w(p["deconv2"][0]), _pack_vec(p["deconv2"][1])),
        conv2=pack_stage(p["conv2"]),
        conv3=pack_stage(p["conv3"]),
    )


# ----------------------------------------------------------------------------
# Full forward (Pallas path)
# ----------------------------------------------------------------------------
def hm_decoder_pallas(x_nchw, packed, out_channels):
    n, c = x_nchw.shape[0], x_nchw.shape[1]
    cp = _rup(c, LANE)
    x = jnp.transpose(x_nchw, (0, 2, 3, 1)).astype(jnp.float32)    # NCHW -> NHWC
    x = jnp.pad(x, ((0, 0), (0, 0), (0, 0), (0, cp - c)))          # lane-pad C

    canvas, hp, wp = conv_transpose_stage(x, *packed["deconv1"])
    canvas = double_conv_stage(canvas, hp, wp, packed["conv1"])

    x_img = _canvas_to_image(canvas, hp, wp)                       # valid image
    canvas, hp, wp = conv_transpose_stage(x_img, *packed["deconv2"])
    canvas = double_conv_stage(canvas, hp, wp, packed["conv2"])
    canvas = double_conv_stage(canvas, hp, wp, packed["conv3"])

    y = _canvas_to_image(canvas, hp, wp)[..., :out_channels]
    return jnp.transpose(y, (0, 3, 1, 2))                          # back to NCHW


# ----------------------------------------------------------------------------
# Deterministic synthetic parameters (BN folded to scale/bias, eval mode)
# ----------------------------------------------------------------------------
def init_params(key, feature_size=32, out_channels=6):
    keys = iter(jax.random.split(key, 64))

    def normal(shape, std):
        return std * jax.random.normal(next(keys), shape, jnp.float32)

    def bn(c):
        gamma = 1.0 + normal((c,), 0.1)
        beta = normal((c,), 0.1)
        mean = normal((c,), 0.1)
        var = 0.5 + jnp.abs(normal((c,), 0.3))
        s = gamma / jnp.sqrt(var + 1e-5)
        return s, beta - mean * s

    def dconv(ci, co):
        mid = co
        w_a = normal((mid, ci, 3, 3), 0.1); s_a, b_a = bn(mid)
        w_b = normal((co, mid, 3, 3), 0.1); s_b, b_b = bn(co)
        return [(w_a, s_a, b_a), (w_b, s_b, b_b)]

    c0, c1, c2, c3 = (feature_size, feature_size // 2,
                      feature_size // 4, feature_size // 8)
    return dict(
        deconv1=(normal((c0, c1, 3, 3), 0.1), normal((c1,), 0.1)),
        conv1=dconv(c1, c1),
        deconv2=(normal((c1, c2, 3, 3), 0.1), normal((c2,), 0.1)),
        conv2=dconv(c2, c3),
        conv3=dconv(c3, out_channels),
    )


# ----------------------------------------------------------------------------
# Pure-JAX reference of the same forward at the same compute precision
# (bf16 conv operands, f32 accumulation / epilogue, inference-mode BN).
# ----------------------------------------------------------------------------
def hm_decoder_ref(x_nchw, p):
    dn = ("NHWC", "HWIO", "NHWC")
    x = jnp.transpose(x_nchw, (0, 2, 3, 1)).astype(jnp.float32)

    def conv(x, w_pt, s, b):
        w = jnp.transpose(w_pt, (2, 3, 1, 0)).astype(jnp.bfloat16)
        y = jax.lax.conv_general_dilated(
            x.astype(jnp.bfloat16), w, (1, 1), ((1, 1), (1, 1)),
            dimension_numbers=dn, preferred_element_type=jnp.float32)
        return jax.nn.relu(y * s + b)

    def deconv(x, wt_pt, b):
        w = jnp.transpose(wt_pt[:, :, ::-1, ::-1], (2, 3, 0, 1)).astype(jnp.bfloat16)
        y = jax.lax.conv_general_dilated(
            x.astype(jnp.bfloat16), w, (1, 1), ((2, 2), (2, 2)),
            lhs_dilation=(2, 2), dimension_numbers=dn,
            preferred_element_type=jnp.float32)
        return y + b

    x = deconv(x, *p["deconv1"])
    for w, s, b in p["conv1"]:
        x = conv(x, w, s, b)
    x = deconv(x, *p["deconv2"])
    for w, s, b in p["conv2"]:
        x = conv(x, w, s, b)
    for w, s, b in p["conv3"]:
        x = conv(x, w, s, b)
    return jnp.transpose(x, (0, 3, 1, 2))


if __name__ == "__main__":
    key = jax.random.PRNGKey(0)
    kp, kx = jax.random.split(key)

    feature_size, out_channels = 32, 6           # scaled-down stand-in for 2048
    params = init_params(kp, feature_size, out_channels)
    packed = prepare_params(params)
    x = jax.random.normal(kx, (2, feature_size, 8, 8), jnp.float32)   # NCHW

    fwd = jax.jit(functools.partial(hm_decoder_pallas, out_channels=out_channels))
    out = jax.block_until_ready(fwd(x, packed))

    assert out.shape == (2, out_channels, 35, 35), out.shape          # 8 -> 17 -> 35
    ref = jax.block_until_ready(jax.jit(hm_decoder_ref)(x, params))
    np.testing.assert_allclose(np.asarray(out), np.asarray(ref),
                               rtol=2e-2, atol=2e-2)
    print("KERNEL_OK")
</pallas_src>

<mosaic_0001>
module attributes {stable_mosaic.version = 11 : i64} {
  func.func @_conv3x3_kernel(%arg0: i32, %arg1: i32, %arg2: i32, %arg3: memref<1x640x128xf32, #tpu.memory_space<vmem>>, %arg4: memref<1152x128xbf16, #tpu.memory_space<vmem>>, %arg5: memref<1x128xf32, #tpu.memory_space<vmem>>, %arg6: memref<1x128xf32, #tpu.memory_space<vmem>>, %arg7: memref<128x1xf32, #tpu.memory_space<vmem>>, %arg8: memref<1x128x128xf32, #tpu.memory_space<vmem>>) attributes {dimension_semantics = [#tpu.dimension_semantics<parallel>, #tpu.dimension_semantics<parallel>, #tpu.dimension_semantics<parallel>], iteration_bounds = array<i64: 2, 1, 5>, scalar_prefetch = 0 : i64, scratch_operands = 0 : i64, tpu.core_type = #tpu.core_type<tc>, window_params = [{transform_indices = @transform_0, window_bounds = array<i64: 1, 640, 128>}, {transform_indices = @transform_1, window_bounds = array<i64: 1152, 128>}, {transform_indices = @transform_2, window_bounds = array<i64: 1, 128>}, {transform_indices = @transform_3, window_bounds = array<i64: 1, 128>}, {transform_indices = @transform_4, window_bounds = array<i64: 128, 1>}, {transform_indices = @transform_5, window_bounds = array<i64: 1, 128, 128>}]} {
    %c0_i32 = arith.constant 0 : i32
    %0 = arith.cmpi eq, %arg2, %c0_i32 : i32
    %c4_i32 = arith.constant 4 : i32
    %1 = arith.cmpi eq, %arg2, %c4_i32 : i32
    %2 = arith.ori %0, %1 : i1
    %3 = arith.extui %2 : i1 to i32
    %c0_i32_0 = arith.constant 0 : i32
    %4 = arith.cmpi ne, %3, %c0_i32_0 : i32
    scf.if %4 {
      %cst = arith.constant 0.000000e+00 : f32
      %8 = vector.broadcast %cst : f32 to vector<128x128xf32>
      %c0 = arith.constant 0 : index
      %c0_2 = arith.constant 0 : index
      %c0_3 = arith.constant 0 : index
      %9 = vector.load %arg8[%c0, %c0_2, %c0_3] : memref<1x128x128xf32, #tpu.memory_space<vmem>>, vector<1x128x128xf32>
      %10 = vector.shape_cast %9 : vector<1x128x128xf32> to vector<128x128xf32>
      %11 = vector.shape_cast %8 : vector<128x128xf32> to vector<1x128x128xf32>
      tpu.vector_store %arg8[%c0, %c0_2, %c0_3], %11 {strides = array<i32>} : memref<1x128x128xf32, #tpu.memory_space<vmem>>, vector<1x128x128xf32>,
    } else {
    }
    %true = arith.constant true
    %5 = arith.xori %2, %true : i1
    %6 = arith.extui %5 : i1 to i32
    %c0_i32_1 = arith.constant 0 : i32
    %7 = arith.cmpi ne, %6, %c0_i32_1 : i32
    scf.if %7 {
      %c128_i32 = arith.constant 128 : i32
      %8 = arith.muli %arg2, %c128_i32 : i32
      %9 = tpu.assume_multiple %8, 128 : i32
      %c-20_i32 = arith.constant -20 : i32
      %10 = arith.addi %9, %c-20_i32 : i32
      %c0 = arith.constant 0 : index
      %11 = arith.index_cast %10 : i32 to index
      %c0_2 = arith.constant 0 : index
      %12 = vector.load %arg3[%c0, %11, %c0_2] : memref<1x640x128xf32, #tpu.memory_space<vmem>>, vector<1x128x128xf32>
      %13 = vector.shape_cast %12 : vector<1x128x128xf32> to vector<128x128xf32>
      %14 = arith.truncf %13 : vector<128x128xf32> to vector<128x128xbf16>
      %c-19_i32 = arith.constant -19 : i32
      %15 = arith.addi %9, %c-19_i32 : i32
      %c0_3 = arith.constant 0 : index
      %16 = arith.index_cast %15 : i32 to index
      %c0_4 = arith.constant 0 : index
      %17 = vector.load %arg3[%c0_3, %16, %c0_4] : memref<1x640x128xf32, #tpu.memory_space<vmem>>, vector<1x128x128xf32>
      %18 = vector.shape_cast %17 : vector<1x128x128xf32> to vector<128x128xf32>
      %19 = arith.truncf %18 : vector<128x128xf32> to vector<128x128xbf16>
      %c-18_i32 = arith.constant -18 : i32
      %20 = arith.addi %9, %c-18_i32 : i32
      %c0_5 = arith.constant 0 : index
      %21 = arith.index_cast %20 : i32 to index
      %c0_6 = arith.constant 0 : index
      %22 = vector.load %arg3[%c0_5, %21, %c0_6] : memref<1x640x128xf32, #tpu.memory_space<vmem>>, vector<1x128x128xf32>
      %23 = vector.shape_cast %22 : vector<1x128x128xf32> to vector<128x128xf32>
      %24 = arith.truncf %23 : vector<128x128xf32> to vector<128x128xbf16>
      %c-1_i32 = arith.constant -1 : i32
      %25 = arith.addi %9, %c-1_i32 : i32
      %c0_7 = arith.constant 0 : index
      %26 = arith.index_cast %25 : i32 to index
      %c0_8 = arith.constant 0 : index
      %27 = vector.load %arg3[%c0_7, %26, %c0_8] : memref<1x640x128xf32, #tpu.memory_space<vmem>>, vector<1x128x128xf32>
      %28 = vector.shape_cast %27 : vector<1x128x128xf32> to vector<128x128xf32>
      %29 = arith.truncf %28 : vector<128x128xf32> to vector<128x128xbf16>
      %c0_i32_9 = arith.constant 0 : i32
      %30 = arith.addi %9, %c0_i32_9 : i32
      %c0_10 = arith.constant 0 : index
      %31 = arith.index_cast %30 : i32 to index
      %c0_11 = arith.constant 0 : index
      %32 = vector.load %arg3[%c0_10, %31, %c0_11] : memref<1x640x128xf32, #tpu.memory_space<vmem>>, vector<1x128x128xf32>
      %33 = vector.shape_cast %32 : vector<1x128x128xf32> to vector<128x128xf32>
      %34 = arith.truncf %33 : vector<128x128xf32> to vector<128x128xbf16>
      %c1_i32 = arith.constant 1 : i32
      %35 = arith.addi %9, %c1_i32 : i32
      %c0_12 = arith.constant 0 : index
      %36 = arith.index_cast %35 : i32 to index
      %c0_13 = arith.constant 0 : index
      %37 = vector.load %arg3[%c0_12, %36, %c0_13] : memref<1x640x128xf32, #tpu.memory_space<vmem>>, vector<1x128x128xf32>
      %38 = vector.shape_cast %37 : vector<1x128x128xf32> to vector<128x128xf32>
      %39 = arith.truncf %38 : vector<128x128xf32> to vector<128x128xbf16>
      %c18_i32 = arith.constant 18 : i32
      %40 = arith.addi %9, %c18_i32 : i32
      %c0_14 = arith.constant 0 : index
      %41 = arith.index_cast %40 : i32 to index
      %c0_15 = arith.constant 0 : index
      %42 = vector.load %arg3[%c0_14, %41, %c0_15] : memref<1x640x128xf32, #tpu.memory_space<vmem>>, vector<1x128x128xf32>
      %43 = vector.shape_cast %42 : vector<1x128x128xf32> to vector<128x128xf32>
      %44 = arith.truncf %43 : vector<128x128xf32> to vector<128x128xbf16>
      %c19_i32 = arith.constant 19 : i32
      %45 = arith.addi %9, %c19_i32 : i32
      %c0_16 = arith.constant 0 : index
      %46 = arith.index_cast %45 : i32 to index
      %c0_17 = arith.constant 0 : index
      %47 = vector.load %arg3[%c0_16, %46, %c0_17] : memref<1x640x128xf32, #tpu.memory_space<vmem>>, vector<1x128x128xf32>
      %48 = vector.shape_cast %47 : vector<1x128x128xf32> to vector<128x128xf32>
      %49 = arith.truncf %48 : vector<128x128xf32> to vector<128x128xbf16>
      %c20_i32 = arith.constant 20 : i32
      %50 = arith.addi %9, %c20_i32 : i32
      %c0_18 = arith.constant 0 : index
      %51 = arith.index_cast %50 : i32 to index
      %c0_19 = arith.constant 0 : index
      %52 = vector.load %arg3[%c0_18, %51, %c0_19] : memref<1x640x128xf32, #tpu.memory_space<vmem>>, vector<1x128x128xf32>
      %53 = vector.shape_cast %52 : vector<1x128x128xf32> to vector<128x128xf32>
      %54 = arith.truncf %53 : vector<128x128xf32> to vector<128x128xbf16>
      %55 = tpu.concatenate %14, %19, %24, %29, %34, %39, %44, %49, %54 in 1 : vector<128x128xbf16>, vector<128x128xbf16>, vector<128x128xbf16>, vector<128x128xbf16>, vector<128x128xbf16>, vector<128x128xbf16>, vector<128x128xbf16>, vector<128x128xbf16>, vector<128x128xbf16> -> vector<128x1152xbf16>
      %c0_20 = arith.constant 0 : index
      %c0_21 = arith.constant 0 : index
      %56 = vector.load %arg4[%c0_20, %c0_21] : memref<1152x128xbf16, #tpu.memory_space<vmem>>, vector<1152x128xbf16>
      %cst = arith.constant dense<0.000000e+00> : vector<128x128xf32>
      %57 = tpu.matmul %55, %56, %cst {dimension_numbers = #tpu.dot_dimension_numbers<[1], [0], [0], [1], [0, 0, 1, 1], [], []>} : vector<128x1152xbf16>, vector<1152x128xbf16>, vector<128x128xf32> -> vector<128x128xf32>
      %c0_22 = arith.constant 0 : index
      %c0_23 = arith.constant 0 : index
      %58 = vector.load %arg5[%c0_22, %c0_23] : memref<1x128xf32, #tpu.memory_space<vmem>>, vector<1x128xf32>
      %59 = vector.broadcast %58 : vector<1x128xf32> to vector<128x128xf32>
      %60 = arith.mulf %57, %59 : vector<128x128xf32>
      %c0_24 = arith.constant 0 : index
      %c0_25 = arith.constant 0 : index
      %61 = vector.load %arg6[%c0_24, %c0_25] : memref<1x128xf32, #tpu.memory_space<vmem>>, vector<1x128xf32>
      %62 = vector.broadcast %61 : vector<1x128xf32> to vector<128x128xf32>
      %63 = arith.addf %60, %62 : vector<128x128xf32>
      %cst_26 = arith.constant 0.000000e+00 : f32
      %64 = vector.broadcast %cst_26 : f32 to vector<128x128xf32>
      %65 = arith.maximumf %63, %64 : vector<128x128xf32>
      %c0_27 = arith.constant 0 : index
      %c0_28 = arith.constant 0 : index
      %66 = vector.load %arg7[%c0_27, %c0_28] : memref<128x1xf32, #tpu.memory_space<vmem>>, vector<128x1xf32>
      %cst_29 = arith.constant 5.000000e-01 : f32
      %67 = vector.broadcast %cst_29 : f32 to vector<128x1xf32>
      %68 = arith.cmpf ogt, %66, %67 : vector<128x1xf32>
      %cst_30 = arith.constant 0.000000e+00 : f32
      %69 = vector.shape_cast %68 : vector<128x1xi1> to vector<128x1xi1>
      %70 = vector.broadcast %69 : vector<128x1xi1> to vector<128x128xi1>
      %71 = vector.broadcast %cst_30 : f32 to vector<128x128xf32>
      %72 = arith.select %70, %65, %71 : vector<128x128xi1>, vector<128x128xf32>
      %c0_31 = arith.constant 0 : index
      %c0_32 = arith.constant 0 : index
      %c0_33 = arith.constant 0 : index
      %73 = vector.load %arg8[%c0_31, %c0_32, %c0_33] : memref<1x128x128xf32, #tpu.memory_space<vmem>>, vector<1x128x128xf32>
      %74 = vector.shape_cast %73 : vector<1x128x128xf32> to vector<128x128xf32>
      %75 = vector.shape_cast %72 : vector<128x128xf32> to vector<1x128x128xf32>
      tpu.vector_store %arg8[%c0_31, %c0_32, %c0_33], %75 {strides = array<i32>} : memref<1x128x128xf32, #tpu.memory_space<vmem>>, vector<1x128x128xf32>,
    } else {
    }
    return
  }
  func.func @transform_0(%arg0: i32, %arg1: i32, %arg2: i32) -> (i32, i32, i32) {
    %c0_i32 = arith.constant 0 : i32
    %c0_i32_0 = arith.constant 0 : i32
    %c0_i32_1 = arith.constant 0 : i32
    return %arg0, %c0_i32, %c0_i32_0 : i32, i32, i32
  }
  func.func @transform_1(%arg0: i32, %arg1: i32, %arg2: i32) -> (i32, i32) {
    %c0_i32 = arith.constant 0 : i32
    %c0_i32_0 = arith.constant 0 : i32
    return %c0_i32, %arg1 : i32, i32
  }
  func.func @transform_2(%arg0: i32, %arg1: i32, %arg2: i32) -> (i32, i32) {
    %c0_i32 = arith.constant 0 : i32
    %c0_i32_0 = arith.constant 0 : i32
    return %c0_i32, %arg1 : i32, i32
  }
  func.func @transform_3(%arg0: i32, %arg1: i32, %arg2: i32) -> (i32, i32) {
    %c0_i32 = arith.constant 0 : i32
    %c0_i32_0 = arith.constant 0 : i32
    return %c0_i32, %arg1 : i32, i32
  }
  func.func @transform_4(%arg0: i32, %arg1: i32, %arg2: i32) -> (i32, i32) {
    %c0_i32 = arith.constant 0 : i32
    %c0_i32_0 = arith.constant 0 : i32
    return %arg2, %c0_i32 : i32, i32
  }
  func.func @transform_5(%arg0: i32, %arg1: i32, %arg2: i32) -> (i32, i32, i32) {
    %c0_i32 = arith.constant 0 : i32
    return %arg0, %arg2, %arg1 : i32, i32, i32
  }
}

module attributes {stable_mosaic.version = 11 : i64} {
  func.func @_conv3x3_kernel(%arg0: i32, %arg1: i32, %arg2: i32, %arg3: memref<1x640x128xf32, #tpu.memory_space<vmem>>, %arg4: memref<1152x128xbf16, #tpu.memory_space<vmem>>, %arg5: memref<1x128xf32, #tpu.memory_space<vmem>>, %arg6: memref<1x128xf32, #tpu.memory_space<vmem>>, %arg7: memref<128x1xf32, #tpu.memory_space<vmem>>, %arg8: memref<1x128x128xf32, #tpu.memory_space<vmem>>) attributes {dimension_semantics = [#tpu.dimension_semantics<parallel>, #tpu.dimension_semantics<parallel>, #tpu.dimension_semantics<parallel>], iteration_bounds = array<i64: 2, 1, 5>, scalar_prefetch = 0 : i64, scratch_operands = 0 : i64, tpu.core_type = #tpu.core_type<tc>, window_params = [{transform_indices = @transform_0, window_bounds = array<i64: 1, 640, 128>}, {transform_indices = @transform_1, window_bounds = array<i64: 1152, 128>}, {transform_indices = @transform_2, window_bounds = array<i64: 1, 128>}, {transform_indices = @transform_3, window_bounds = array<i64: 1, 128>}, {transform_indices = @transform_4, window_bounds = array<i64: 128, 1>}, {transform_indices = @transform_5, window_bounds = array<i64: 1, 128, 128>}]} {
    %c0_i32 = arith.constant 0 : i32
    %0 = arith.cmpi eq, %arg2, %c0_i32 : i32
    %c4_i32 = arith.constant 4 : i32
    %1 = arith.cmpi eq, %arg2, %c4_i32 : i32
    %2 = arith.ori %0, %1 : i1
    %3 = arith.extui %2 : i1 to i32
    %c0_i32_0 = arith.constant 0 : i32
    %4 = arith.cmpi ne, %3, %c0_i32_0 : i32
    scf.if %4 {
      %cst = arith.constant 0.000000e+00 : f32
      %8 = vector.broadcast %cst : f32 to vector<128x128xf32>
      %c0 = arith.constant 0 : index
      %c0_2 = arith.constant 0 : index
      %c0_3 = arith.constant 0 : index
      %9 = vector.load %arg8[%c0, %c0_2, %c0_3] : memref<1x128x128xf32, #tpu.memory_space<vmem>>, vector<1x128x128xf32>
      %10 = vector.shape_cast %9 : vector<1x128x128xf32> to vector<128x128xf32>
      %11 = vector.shape_cast %8 : vector<128x128xf32> to vector<1x128x128xf32>
      tpu.vector_store %arg8[%c0, %c0_2, %c0_3], %11 {strides = array<i32>} : memref<1x128x128xf32, #tpu.memory_space<vmem>>, vector<1x128x128xf32>,
    } else {
    }
    %true = arith.constant true
    %5 = arith.xori %2, %true : i1
    %6 = arith.extui %5 : i1 to i32
    %c0_i32_1 = arith.constant 0 : i32
    %7 = arith.cmpi ne, %6, %c0_i32_1 : i32
    scf.if %7 {
      %c128_i32 = arith.constant 128 : i32
      %8 = arith.muli %arg2, %c128_i32 : i32
      %9 = tpu.assume_multiple %8, 128 : i32
      %c-20_i32 = arith.constant -20 : i32
      %10 = arith.addi %9, %c-20_i32 : i32
      %c0 = arith.constant 0 : index
      %11 = arith.index_cast %10 : i32 to index
      %c0_2 = arith.constant 0 : index
      %12 = vector.load %arg3[%c0, %11, %c0_2] : memref<1x640x128xf32, #tpu.memory_space<vmem>>, vector<1x128x128xf32>
      %13 = vector.shape_cast %12 : vector<1x128x128xf32> to vector<128x128xf32>
      %14 = arith.truncf %13 : vector<128x128xf32> to vector<128x128xbf16>
      %c-19_i32 = arith.constant -19 : i32
      %15 = arith.addi %9, %c-19_i32 : i32
      %c0_3 = arith.constant 0 : index
      %16 = arith.index_cast %15 : i32 to index
      %c0_4 = arith.constant 0 : index
      %17 = vector.load %arg3[%c0_3, %16, %c0_4] : memref<1x640x128xf32, #tpu.memory_space<vmem>>, vector<1x128x128xf32>
      %18 = vector.shape_cast %17 : vector<1x128x128xf32> to vector<128x128xf32>
      %19 = arith.truncf %18 : vector<128x128xf32> to vector<128x128xbf16>
      %c-18_i32 = arith.constant -18 : i32
      %20 = arith.addi %9, %c-18_i32 : i32
      %c0_5 = arith.constant 0 : index
      %21 = arith.index_cast %20 : i32 to index
      %c0_6 = arith.constant 0 : index
      %22 = vector.load %arg3[%c0_5, %21, %c0_6] : memref<1x640x128xf32, #tpu.memory_space<vmem>>, vector<1x128x128xf32>
      %23 = vector.shape_cast %22 : vector<1x128x128xf32> to vector<128x128xf32>
      %24 = arith.truncf %23 : vector<128x128xf32> to vector<128x128xbf16>
      %c-1_i32 = arith.constant -1 : i32
      %25 = arith.addi %9, %c-1_i32 : i32
      %c0_7 = arith.constant 0 : index
      %26 = arith.index_cast %25 : i32 to index
      %c0_8 = arith.constant 0 : index
      %27 = vector.load %arg3[%c0_7, %26, %c0_8] : memref<1x640x128xf32, #tpu.memory_space<vmem>>, vector<1x128x128xf32>
      %28 = vector.shape_cast %27 : vector<1x128x128xf32> to vector<128x128xf32>
      %29 = arith.truncf %28 : vector<128x128xf32> to vector<128x128xbf16>
      %c0_i32_9 = arith.constant 0 : i32
      %30 = arith.addi %9, %c0_i32_9 : i32
      %c0_10 = arith.constant 0 : index
      %31 = arith.index_cast %30 : i32 to index
      %c0_11 = arith.constant 0 : index
      %32 = vector.load %arg3[%c0_10, %31, %c0_11] : memref<1x640x128xf32, #tpu.memory_space<vmem>>, vector<1x128x128xf32>
      %33 = vector.shape_cast %32 : vector<1x128x128xf32> to vector<128x128xf32>
      %34 = arith.truncf %33 : vector<128x128xf32> to vector<128x128xbf16>
      %c1_i32 = arith.constant 1 : i32
      %35 = arith.addi %9, %c1_i32 : i32
      %c0_12 = arith.constant 0 : index
      %36 = arith.index_cast %35 : i32 to index
      %c0_13 = arith.constant 0 : index
      %37 = vector.load %arg3[%c0_12, %36, %c0_13] : memref<1x640x128xf32, #tpu.memory_space<vmem>>, vector<1x128x128xf32>
      %38 = vector.shape_cast %37 : vector<1x128x128xf32> to vector<128x128xf32>
      %39 = arith.truncf %38 : vector<128x128xf32> to vector<128x128xbf16>
      %c18_i32 = arith.constant 18 : i32
      %40 = arith.addi %9, %c18_i32 : i32
      %c0_14 = arith.constant 0 : index
      %41 = arith.index_cast %40 : i32 to index
      %c0_15 = arith.constant 0 : index
      %42 = vector.load %arg3[%c0_14, %41, %c0_15] : memref<1x640x128xf32, #tpu.memory_space<vmem>>, vector<1x128x128xf32>
      %43 = vector.shape_cast %42 : vector<1x128x128xf32> to vector<128x128xf32>
      %44 = arith.truncf %43 : vector<128x128xf32> to vector<128x128xbf16>
      %c19_i32 = arith.constant 19 : i32
      %45 = arith.addi %9, %c19_i32 : i32
      %c0_16 = arith.constant 0 : index
      %46 = arith.index_cast %45 : i32 to index
      %c0_17 = arith.constant 0 : index
      %47 = vector.load %arg3[%c0_16, %46, %c0_17] : memref<1x640x128xf32, #tpu.memory_space<vmem>>, vector<1x128x128xf32>
      %48 = vector.shape_cast %47 : vector<1x128x128xf32> to vector<128x128xf32>
      %49 = arith.truncf %48 : vector<128x128xf32> to vector<128x128xbf16>
      %c20_i32 = arith.constant 20 : i32
      %50 = arith.addi %9, %c20_i32 : i32
      %c0_18 = arith.constant 0 : index
      %51 = arith.index_cast %50 : i32 to index
      %c0_19 = arith.constant 0 : index
      %52 = vector.load %arg3[%c0_18, %51, %c0_19] : memref<1x640x128xf32, #tpu.memory_space<vmem>>, vector<1x128x128xf32>
      %53 = vector.shape_cast %52 : vector<1x128x128xf32> to vector<128x128xf32>
      %54 = arith.truncf %53 : vector<128x128xf32> to vector<128x128xbf16>
      %55 = tpu.concatenate %14, %19, %24, %29, %34, %39, %44, %49, %54 in 1 : vector<128x128xbf16>, vector<128x128xbf16>, vector<128x128xbf16>, vector<128x128xbf16>, vector<128x128xbf16>, vector<128x128xbf16>, vector<128x128xbf16>, vector<128x128xbf16>, vector<128x128xbf16> -> vector<128x1152xbf16>
      %c0_20 = arith.constant 0 : index
      %c0_21 = arith.constant 0 : index
      %56 = vector.load %arg4[%c0_20, %c0_21] : memref<1152x128xbf16, #tpu.memory_space<vmem>>, vector<1152x128xbf16>
      %cst = arith.constant dense<0.000000e+00> : vector<128x128xf32>
      %57 = tpu.matmul %55, %56, %cst {dimension_numbers = #tpu.dot_dimension_numbers<[1], [0], [0], [1], [0, 0, 1, 1], [], []>} : vector<128x1152xbf16>, vector<1152x128xbf16>, vector<128x128xf32> -> vector<128x128xf32>
      %c0_22 = arith.constant 0 : index
      %c0_23 = arith.constant 0 : index
      %58 = vector.load %arg5[%c0_22, %c0_23] : memref<1x128xf32, #tpu.memory_space<vmem>>, vector<1x128xf32>
      %59 = vector.broadcast %58 : vector<1x128xf32> to vector<128x128xf32>
      %60 = arith.mulf %57, %59 : vector<128x128xf32>
      %c0_24 = arith.constant 0 : index
      %c0_25 = arith.constant 0 : index
      %61 = vector.load %arg6[%c0_24, %c0_25] : memref<1x128xf32, #tpu.memory_space<vmem>>, vector<1x128xf32>
      %62 = vector.broadcast %61 : vector<1x128xf32> to vector<128x128xf32>
      %63 = arith.addf %60, %62 : vector<128x128xf32>
      %c0_26 = arith.constant 0 : index
      %c0_27 = arith.constant 0 : index
      %64 = vector.load %arg7[%c0_26, %c0_27] : memref<128x1xf32, #tpu.memory_space<vmem>>, vector<128x1xf32>
      %cst_28 = arith.constant 5.000000e-01 : f32
      %65 = vector.broadcast %cst_28 : f32 to vector<128x1xf32>
      %66 = arith.cmpf ogt, %64, %65 : vector<128x1xf32>
      %cst_29 = arith.constant 0.000000e+00 : f32
      %67 = vector.shape_cast %66 : vector<128x1xi1> to vector<128x1xi1>
      %68 = vector.broadcast %67 : vector<128x1xi1> to vector<128x128xi1>
      %69 = vector.broadcast %cst_29 : f32 to vector<128x128xf32>
      %70 = arith.select %68, %63, %69 : vector<128x128xi1>, vector<128x128xf32>
      %c0_30 = arith.constant 0 : index
      %c0_31 = arith.constant 0 : index
      %c0_32 = arith.constant 0 : index
      %71 = vector.load %arg8[%c0_30, %c0_31, %c0_32] : memref<1x128x128xf32, #tpu.memory_space<vmem>>, vector<1x128x128xf32>
      %72 = vector.shape_cast %71 : vector<1x128x128xf32> to vector<128x128xf32>
      %73 = vector.shape_cast %70 : vector<128x128xf32> to vector<1x128x128xf32>
      tpu.vector_store %arg8[%c0_30, %c0_31, %c0_32], %73 {strides = array<i32>} : memref<1x128x128xf32, #tpu.memory_space<vmem>>, vector<1x128x128xf32>,
    } else {
    }
    return
  }
  func.func @transform_0(%arg0: i32, %arg1: i32, %arg2: i32) -> (i32, i32, i32) {
    %c0_i32 = arith.constant 0 : i32
    %c0_i32_0 = arith.constant 0 : i32
    %c0_i32_1 = arith.constant 0 : i32
    return %arg0, %c0_i32, %c0_i32_0 : i32, i32, i32
  }
  func.func @transform_1(%arg0: i32, %arg1: i32, %arg2: i32) -> (i32, i32) {
    %c0_i32 = arith.constant 0 : i32
    %c0_i32_0 = arith.constant 0 : i32
    return %c0_i32, %arg1 : i32, i32
  }
  func.func @transform_2(%arg0: i32, %arg1: i32, %arg2: i32) -> (i32, i32) {
    %c0_i32 = arith.constant 0 : i32
    %c0_i32_0 = arith.constant 0 : i32
    return %c0_i32, %arg1 : i32, i32
  }
  func.func @transform_3(%arg0: i32, %arg1: i32, %arg2: i32) -> (i32, i32) {
    %c0_i32 = arith.constant 0 : i32
    %c0_i32_0 = arith.constant 0 : i32
    return %c0_i32, %arg1 : i32, i32
  }
  func.func @transform_4(%arg0: i32, %arg1: i32, %arg2: i32) -> (i32, i32) {
    %c0_i32 = arith.constant 0 : i32
    %c0_i32_0 = arith.constant 0 : i32
    return %arg2, %c0_i32 : i32, i32
  }
  func.func @transform_5(%arg0: i32, %arg1: i32, %arg2: i32) -> (i32, i32, i32) {
    %c0_i32 = arith.constant 0 : i32
    return %arg0, %arg2, %arg1 : i32, i32, i32
  }
}

module attributes {stable_mosaic.version = 11 : i64} {
  func.func @_conv3x3_kernel(%arg0: i32, %arg1: i32, %arg2: i32, %arg3: memref<1x2048x128xf32, #tpu.memory_space<vmem>>, %arg4: memref<1152x128xbf16, #tpu.memory_space<vmem>>, %arg5: memref<1x128xf32, #tpu.memory_space<vmem>>, %arg6: memref<1x128xf32, #tpu.memory_space<vmem>>, %arg7: memref<256x1xf32, #tpu.memory_space<vmem>>, %arg8: memref<1x256x128xf32, #tpu.memory_space<vmem>>) attributes {dimension_semantics = [#tpu.dimension_semantics<parallel>, #tpu.dimension_semantics<parallel>, #tpu.dimension_semantics<parallel>], iteration_bounds = array<i64: 2, 1, 8>, scalar_prefetch = 0 : i64, scratch_operands = 0 : i64, tpu.core_type = #tpu.core_type<tc>, window_params = [{transform_indices = @transform_0, window_bounds = array<i64: 1, 2048, 128>}, {transform_indices = @transform_1, window_bounds = array<i64: 1152, 128>}, {transform_indices = @transform_2, window_bounds = array<i64: 1, 128>}, {transform_indices = @transform_3, window_bounds = array<i64: 1, 128>}, {transform_indices = @transform_4, window_bounds = array<i64: 256, 1>}, {transform_indices = @transform_5, window_bounds = array<i64: 1, 256, 128>}]} {
    %c0_i32 = arith.constant 0 : i32
    %0 = arith.cmpi eq, %arg2, %c0_i32 : i32
    %c7_i32 = arith.constant 7 : i32
    %1 = arith.cmpi eq, %arg2, %c7_i32 : i32
    %2 = arith.ori %0, %1 : i1
    %3 = arith.extui %2 : i1 to i32
    %c0_i32_0 = arith.constant 0 : i32
    %4 = arith.cmpi ne, %3, %c0_i32_0 : i32
    scf.if %4 {
      %cst = arith.constant 0.000000e+00 : f32
      %8 = vector.broadcast %cst : f32 to vector<256x128xf32>
      %c0 = arith.constant 0 : index
      %c0_2 = arith.constant 0 : index
      %c0_3 = arith.constant 0 : index
      %9 = vector.load %arg8[%c0, %c0_2, %c0_3] : memref<1x256x128xf32, #tpu.memory_space<vmem>>, vector<1x256x128xf32>
      %10 = vector.shape_cast %9 : vector<1x256x128xf32> to vector<256x128xf32>
      %11 = vector.shape_cast %8 : vector<256x128xf32> to vector<1x256x128xf32>
      tpu.vector_store %arg8[%c0, %c0_2, %c0_3], %11 {strides = array<i32>} : memref<1x256x128xf32, #tpu.memory_space<vmem>>, vector<1x256x128xf32>,
    } else {
    }
    %true = arith.constant true
    %5 = arith.xori %2, %true : i1
    %6 = arith.extui %5 : i1 to i32
    %c0_i32_1 = arith.constant 0 : i32
    %7 = arith.cmpi ne, %6, %c0_i32_1 : i32
    scf.if %7 {
      %c256_i32 = arith.constant 256 : i32
      %8 = arith.muli %arg2, %c256_i32 : i32
      %9 = tpu.assume_multiple %8, 256 : i32
      %c-38_i32 = arith.constant -38 : i32
      %10 = arith.addi %9, %c-38_i32 : i32
      %c0 = arith.constant 0 : index
      %11 = arith.index_cast %10 : i32 to index
      %c0_2 = arith.constant 0 : index
      %12 = vector.load %arg3[%c0, %11, %c0_2] : memref<1x2048x128xf32, #tpu.memory_space<vmem>>, vector<1x256x128xf32>
      %13 = vector.shape_cast %12 : vector<1x256x128xf32> to vector<256x128xf32>
      %14 = arith.truncf %13 : vector<256x128xf32> to vector<256x128xbf16>
      %c-37_i32 = arith.constant -37 : i32
      %15 = arith.addi %9, %c-37_i32 : i32
      %c0_3 = arith.constant 0 : index
      %16 = arith.index_cast %15 : i32 to index
      %c0_4 = arith.constant 0 : index
      %17 = vector.load %arg3[%c0_3, %16, %c0_4] : memref<1x2048x128xf32, #tpu.memory_space<vmem>>, vector<1x256x128xf32>
      %18 = vector.shape_cast %17 : vector<1x256x128xf32> to vector<256x128xf32>
      %19 = arith.truncf %18 : vector<256x128xf32> to vector<256x128xbf16>
      %c-36_i32 = arith.constant -36 : i32
      %20 = arith.addi %9, %c-36_i32 : i32
      %c0_5 = arith.constant 0 : index
      %21 = arith.index_cast %20 : i32 to index
      %c0_6 = arith.constant 0 : index
      %22 = vector.load %arg3[%c0_5, %21, %c0_6] : memref<1x2048x128xf32, #tpu.memory_space<vmem>>, vector<1x256x128xf32>
      %23 = vector.shape_cast %22 : vector<1x256x128xf32> to vector<256x128xf32>
      %24 = arith.truncf %23 : vector<256x128xf32> to vector<256x128xbf16>
      %c-1_i32 = arith.constant -1 : i32
      %25 = arith.addi %9, %c-1_i32 : i32
      %c0_7 = arith.constant 0 : index
      %26 = arith.index_cast %25 : i32 to index
      %c0_8 = arith.constant 0 : index
      %27 = vector.load %arg3[%c0_7, %26, %c0_8] : memref<1x2048x128xf32, #tpu.memory_space<vmem>>, vector<1x256x128xf32>
      %28 = vector.shape_cast %27 : vector<1x256x128xf32> to vector<256x128xf32>
      %29 = arith.truncf %28 : vector<256x128xf32> to vector<256x128xbf16>
      %c0_i32_9 = arith.constant 0 : i32
      %30 = arith.addi %9, %c0_i32_9 : i32
      %c0_10 = arith.constant 0 : index
      %31 = arith.index_cast %30 : i32 to index
      %c0_11 = arith.constant 0 : index
      %32 = vector.load %arg3[%c0_10, %31, %c0_11] : memref<1x2048x128xf32, #tpu.memory_space<vmem>>, vector<1x256x128xf32>
      %33 = vector.shape_cast %32 : vector<1x256x128xf32> to vector<256x128xf32>
      %34 = arith.truncf %33 : vector<256x128xf32> to vector<256x128xbf16>
      %c1_i32 = arith.constant 1 : i32
      %35 = arith.addi %9, %c1_i32 : i32
      %c0_12 = arith.constant 0 : index
      %36 = arith.index_cast %35 : i32 to index
      %c0_13 = arith.constant 0 : index
      %37 = vector.load %arg3[%c0_12, %36, %c0_13] : memref<1x2048x128xf32, #tpu.memory_space<vmem>>, vector<1x256x128xf32>
      %38 = vector.shape_cast %37 : vector<1x256x128xf32> to vector<256x128xf32>
      %39 = arith.truncf %38 : vector<256x128xf32> to vector<256x128xbf16>
      %c36_i32 = arith.constant 36 : i32
      %40 = arith.addi %9, %c36_i32 : i32
      %c0_14 = arith.constant 0 : index
      %41 = arith.index_cast %40 : i32 to index
      %c0_15 = arith.constant 0 : index
      %42 = vector.load %arg3[%c0_14, %41, %c0_15] : memref<1x2048x128xf32, #tpu.memory_space<vmem>>, vector<1x256x128xf32>
      %43 = vector.shape_cast %42 : vector<1x256x128xf32> to vector<256x128xf32>
      %44 = arith.truncf %43 : vector<256x128xf32> to vector<256x128xbf16>
      %c37_i32 = arith.constant 37 : i32
      %45 = arith.addi %9, %c37_i32 : i32
      %c0_16 = arith.constant 0 : index
      %46 = arith.index_cast %45 : i32 to index
      %c0_17 = arith.constant 0 : index
      %47 = vector.load %arg3[%c0_16, %46, %c0_17] : memref<1x2048x128xf32, #tpu.memory_space<vmem>>, vector<1x256x128xf32>
      %48 = vector.shape_cast %47 : vector<1x256x128xf32> to vector<256x128xf32>
      %49 = arith.truncf %48 : vector<256x128xf32> to vector<256x128xbf16>
      %c38_i32 = arith.constant 38 : i32
      %50 = arith.addi %9, %c38_i32 : i32
      %c0_18 = arith.constant 0 : index
      %51 = arith.index_cast %50 : i32 to index
      %c0_19 = arith.constant 0 : index
      %52 = vector.load %arg3[%c0_18, %51, %c0_19] : memref<1x2048x128xf32, #tpu.memory_space<vmem>>, vector<1x256x128xf32>
      %53 = vector.shape_cast %52 : vector<1x256x128xf32> to vector<256x128xf32>
      %54 = arith.truncf %53 : vector<256x128xf32> to vector<256x128xbf16>
      %55 = tpu.concatenate %14, %19, %24, %29, %34, %39, %44, %49, %54 in 1 : vector<256x128xbf16>, vector<256x128xbf16>, vector<256x128xbf16>, vector<256x128xbf16>, vector<256x128xbf16>, vector<256x128xbf16>, vector<256x128xbf16>, vector<256x128xbf16>, vector<256x128xbf16> -> vector<256x1152xbf16>
      %c0_20 = arith.constant 0 : index
      %c0_21 = arith.constant 0 : index
      %56 = vector.load %arg4[%c0_20, %c0_21] : memref<1152x128xbf16, #tpu.memory_space<vmem>>, vector<1152x128xbf16>
      %cst = arith.constant dense<0.000000e+00> : vector<256x128xf32>
      %57 = tpu.matmul %55, %56, %cst {dimension_numbers = #tpu.dot_dimension_numbers<[1], [0], [0], [1], [0, 0, 1, 1], [], []>} : vector<256x1152xbf16>, vector<1152x128xbf16>, vector<256x128xf32> -> vector<256x128xf32>
      %c0_22 = arith.constant 0 : index
      %c0_23 = arith.constant 0 : index
      %58 = vector.load %arg5[%c0_22, %c0_23] : memref<1x128xf32, #tpu.memory_space<vmem>>, vector<1x128xf32>
      %59 = vector.broadcast %58 : vector<1x128xf32> to vector<256x128xf32>
      %60 = arith.mulf %57, %59 : vector<256x128xf32>
      %c0_24 = arith.constant 0 : index
      %c0_25 = arith.constant 0 : index
      %61 = vector.load %arg6[%c0_24, %c0_25] : memref<1x128xf32, #tpu.memory_space<vmem>>, vector<1x128xf32>
      %62 = vector.broadcast %61 : vector<1x128xf32> to vector<256x128xf32>
      %63 = arith.addf %60, %62 : vector<256x128xf32>
      %c0_26 = arith.constant 0 : index
      %c0_27 = arith.constant 0 : index
      %64 = vector.load %arg7[%c0_26, %c0_27] : memref<256x1xf32, #tpu.memory_space<vmem>>, vector<256x1xf32>
      %cst_28 = arith.constant 5.000000e-01 : f32
      %65 = vector.broadcast %cst_28 : f32 to vector<256x1xf32>
      %66 = arith.cmpf ogt, %64, %65 : vector<256x1xf32>
      %cst_29 = arith.constant 0.000000e+00 : f32
      %67 = vector.shape_cast %66 : vector<256x1xi1> to vector<256x1xi1>
      %68 = vector.broadcast %67 : vector<256x1xi1> to vector<256x128xi1>
      %69 = vector.broadcast %cst_29 : f32 to vector<256x128xf32>
      %70 = arith.select %68, %63, %69 : vector<256x128xi1>, vector<256x128xf32>
      %c0_30 = arith.constant 0 : index
      %c0_31 = arith.constant 0 : index
      %c0_32 = arith.constant 0 : index
      %71 = vector.load %arg8[%c0_30, %c0_31, %c0_32] : memref<1x256x128xf32, #tpu.memory_space<vmem>>, vector<1x256x128xf32>
      %72 = vector.shape_cast %71 : vector<1x256x128xf32> to vector<256x128xf32>
      %73 = vector.shape_cast %70 : vector<256x128xf32> to vector<1x256x128xf32>
      tpu.vector_store %arg8[%c0_30, %c0_31, %c0_32], %73 {strides = array<i32>} : memref<1x256x128xf32, #tpu.memory_space<vmem>>, vector<1x256x128xf32>,
    } else {
    }
    return
  }
  func.func @transform_0(%arg0: i32, %arg1: i32, %arg2: i32) -> (i32, i32, i32) {
    %c0_i32 = arith.constant 0 : i32
    %c0_i32_0 = arith.constant 0 : i32
    %c0_i32_1 = arith.constant 0 : i32
    return %arg0, %c0_i32, %c0_i32_0 : i32, i32, i32
  }
  func.func @transform_1(%arg0: i32, %arg1: i32, %arg2: i32) -> (i32, i32) {
    %c0_i32 = arith.constant 0 : i32
    %c0_i32_0 = arith.constant 0 : i32
    return %c0_i32, %arg1 : i32, i32
  }
  func.func @transform_2(%arg0: i32, %arg1: i32, %arg2: i32) -> (i32, i32) {
    %c0_i32 = arith.constant 0 : i32
    %c0_i32_0 = arith.constant 0 : i32
    return %c0_i32, %arg1 : i32, i32
  }
  func.func @transform_3(%arg0: i32, %arg1: i32, %arg2: i32) -> (i32, i32) {
    %c0_i32 = arith.constant 0 : i32
    %c0_i32_0 = arith.constant 0 : i32
    return %c0_i32, %arg1 : i32, i32
  }
  func.func @transform_4(%arg0: i32, %arg1: i32, %arg2: i32) -> (i32, i32) {
    %c0_i32 = arith.constant 0 : i32
    %c0_i32_0 = arith.constant 0 : i32
    return %arg2, %c0_i32 : i32, i32
  }
  func.func @transform_5(%arg0: i32, %arg1: i32, %arg2: i32) -> (i32, i32, i32) {
    %c0_i32 = arith.constant 0 : i32
    return %arg0, %arg2, %arg1 : i32, i32, i32
  }
}

module attributes {stable_mosaic.version = 11 : i64} {
  func.func @_conv3x3_kernel(%arg0: i32, %arg1: i32, %arg2: i32, %arg3: memref<1x2048x128xf32, #tpu.memory_space<vmem>>, %arg4: memref<1152x128xbf16, #tpu.memory_space<vmem>>, %arg5: memref<1x128xf32, #tpu.memory_space<vmem>>, %arg6: memref<1x128xf32, #tpu.memory_space<vmem>>, %arg7: memref<256x1xf32, #tpu.memory_space<vmem>>, %arg8: memref<1x256x128xf32, #tpu.memory_space<vmem>>) attributes {dimension_semantics = [#tpu.dimension_semantics<parallel>, #tpu.dimension_semantics<parallel>, #tpu.dimension_semantics<parallel>], iteration_bounds = array<i64: 2, 1, 8>, scalar_prefetch = 0 : i64, scratch_operands = 0 : i64, tpu.core_type = #tpu.core_type<tc>, window_params = [{transform_indices = @transform_0, window_bounds = array<i64: 1, 2048, 128>}, {transform_indices = @transform_1, window_bounds = array<i64: 1152, 128>}, {transform_indices = @transform_2, window_bounds = array<i64: 1, 128>}, {transform_indices = @transform_3, window_bounds = array<i64: 1, 128>}, {transform_indices = @transform_4, window_bounds = array<i64: 256, 1>}, {transform_indices = @transform_5, window_bounds = array<i64: 1, 256, 128>}]} {
    %c0_i32 = arith.constant 0 : i32
    %0 = arith.cmpi eq, %arg2, %c0_i32 : i32
    %c7_i32 = arith.constant 7 : i32
    %1 = arith.cmpi eq, %arg2, %c7_i32 : i32
    %2 = arith.ori %0, %1 : i1
    %3 = arith.extui %2 : i1 to i32
    %c0_i32_0 = arith.constant 0 : i32
    %4 = arith.cmpi ne, %3, %c0_i32_0 : i32
    scf.if %4 {
      %cst = arith.constant 0.000000e+00 : f32
      %8 = vector.broadcast %cst : f32 to vector<256x128xf32>
      %c0 = arith.constant 0 : index
      %c0_2 = arith.constant 0 : index
      %c0_3 = arith.constant 0 : index
      %9 = vector.load %arg8[%c0, %c0_2, %c0_3] : memref<1x256x128xf32, #tpu.memory_space<vmem>>, vector<1x256x128xf32>
      %10 = vector.shape_cast %9 : vector<1x256x128xf32> to vector<256x128xf32>
      %11 = vector.shape_cast %8 : vector<256x128xf32> to vector<1x256x128xf32>
      tpu.vector_store %arg8[%c0, %c0_2, %c0_3], %11 {strides = array<i32>} : memref<1x256x128xf32, #tpu.memory_space<vmem>>, vector<1x256x128xf32>,
    } else {
    }
    %true = arith.constant true
    %5 = arith.xori %2, %true : i1
    %6 = arith.extui %5 : i1 to i32
    %c0_i32_1 = arith.constant 0 : i32
    %7 = arith.cmpi ne, %6, %c0_i32_1 : i32
    scf.if %7 {
      %c256_i32 = arith.constant 256 : i32
      %8 = arith.muli %arg2, %c256_i32 : i32
      %9 = tpu.assume_multiple %8, 256 : i32
      %c-38_i32 = arith.constant -38 : i32
      %10 = arith.addi %9, %c-38_i32 : i32
      %c0 = arith.constant 0 : index
      %11 = arith.index_cast %10 : i32 to index
      %c0_2 = arith.constant 0 : index
      %12 = vector.load %arg3[%c0, %11, %c0_2] : memref<1x2048x128xf32, #tpu.memory_space<vmem>>, vector<1x256x128xf32>
      %13 = vector.shape_cast %12 : vector<1x256x128xf32> to vector<256x128xf32>
      %14 = arith.truncf %13 : vector<256x128xf32> to vector<256x128xbf16>
      %c-37_i32 = arith.constant -37 : i32
      %15 = arith.addi %9, %c-37_i32 : i32
      %c0_3 = arith.constant 0 : index
      %16 = arith.index_cast %15 : i32 to index
      %c0_4 = arith.constant 0 : index
      %17 = vector.load %arg3[%c0_3, %16, %c0_4] : memref<1x2048x128xf32, #tpu.memory_space<vmem>>, vector<1x256x128xf32>
      %18 = vector.shape_cast %17 : vector<1x256x128xf32> to vector<256x128xf32>
      %19 = arith.truncf %18 : vector<256x128xf32> to vector<256x128xbf16>
      %c-36_i32 = arith.constant -36 : i32
      %20 = arith.addi %9, %c-36_i32 : i32
      %c0_5 = arith.constant 0 : index
      %21 = arith.index_cast %20 : i32 to index
      %c0_6 = arith.constant 0 : index
      %22 = vector.load %arg3[%c0_5, %21, %c0_6] : memref<1x2048x128xf32, #tpu.memory_space<vmem>>, vector<1x256x128xf32>
      %23 = vector.shape_cast %22 : vector<1x256x128xf32> to vector<256x128xf32>
      %24 = arith.truncf %23 : vector<256x128xf32> to vector<256x128xbf16>
      %c-1_i32 = arith.constant -1 : i32
      %25 = arith.addi %9, %c-1_i32 : i32
      %c0_7 = arith.constant 0 : index
      %26 = arith.index_cast %25 : i32 to index
      %c0_8 = arith.constant 0 : index
      %27 = vector.load %arg3[%c0_7, %26, %c0_8] : memref<1x2048x128xf32, #tpu.memory_space<vmem>>, vector<1x256x128xf32>
      %28 = vector.shape_cast %27 : vector<1x256x128xf32> to vector<256x128xf32>
      %29 = arith.truncf %28 : vector<256x128xf32> to vector<256x128xbf16>
      %c0_i32_9 = arith.constant 0 : i32
      %30 = arith.addi %9, %c0_i32_9 : i32
      %c0_10 = arith.constant 0 : index
      %31 = arith.index_cast %30 : i32 to index
      %c0_11 = arith.constant 0 : index
      %32 = vector.load %arg3[%c0_10, %31, %c0_11] : memref<1x2048x128xf32, #tpu.memory_space<vmem>>, vector<1x256x128xf32>
      %33 = vector.shape_cast %32 : vector<1x256x128xf32> to vector<256x128xf32>
      %34 = arith.truncf %33 : vector<256x128xf32> to vector<256x128xbf16>
      %c1_i32 = arith.constant 1 : i32
      %35 = arith.addi %9, %c1_i32 : i32
      %c0_12 = arith.constant 0 : index
      %36 = arith.index_cast %35 : i32 to index
      %c0_13 = arith.constant 0 : index
      %37 = vector.load %arg3[%c0_12, %36, %c0_13] : memref<1x2048x128xf32, #tpu.memory_space<vmem>>, vector<1x256x128xf32>
      %38 = vector.shape_cast %37 : vector<1x256x128xf32> to vector<256x128xf32>
      %39 = arith.truncf %38 : vector<256x128xf32> to vector<256x128xbf16>
      %c36_i32 = arith.constant 36 : i32
      %40 = arith.addi %9, %c36_i32 : i32
      %c0_14 = arith.constant 0 : index
      %41 = arith.index_cast %40 : i32 to index
      %c0_15 = arith.constant 0 : index
      %42 = vector.load %arg3[%c0_14, %41, %c0_15] : memref<1x2048x128xf32, #tpu.memory_space<vmem>>, vector<1x256x128xf32>
      %43 = vector.shape_cast %42 : vector<1x256x128xf32> to vector<256x128xf32>
      %44 = arith.truncf %43 : vector<256x128xf32> to vector<256x128xbf16>
      %c37_i32 = arith.constant 37 : i32
      %45 = arith.addi %9, %c37_i32 : i32
      %c0_16 = arith.constant 0 : index
      %46 = arith.index_cast %45 : i32 to index
      %c0_17 = arith.constant 0 : index
      %47 = vector.load %arg3[%c0_16, %46, %c0_17] : memref<1x2048x128xf32, #tpu.memory_space<vmem>>, vector<1x256x128xf32>
      %48 = vector.shape_cast %47 : vector<1x256x128xf32> to vector<256x128xf32>
      %49 = arith.truncf %48 : vector<256x128xf32> to vector<256x128xbf16>
      %c38_i32 = arith.constant 38 : i32
      %50 = arith.addi %9, %c38_i32 : i32
      %c0_18 = arith.constant 0 : index
      %51 = arith.index_cast %50 : i32 to index
      %c0_19 = arith.constant 0 : index
      %52 = vector.load %arg3[%c0_18, %51, %c0_19] : memref<1x2048x128xf32, #tpu.memory_space<vmem>>, vector<1x256x128xf32>
      %53 = vector.shape_cast %52 : vector<1x256x128xf32> to vector<256x128xf32>
      %54 = arith.truncf %53 : vector<256x128xf32> to vector<256x128xbf16>
      %55 = tpu.concatenate %14, %19, %24, %29, %34, %39, %44, %49, %54 in 1 : vector<256x128xbf16>, vector<256x128xbf16>, vector<256x128xbf16>, vector<256x128xbf16>, vector<256x128xbf16>, vector<256x128xbf16>, vector<256x128xbf16>, vector<256x128xbf16>, vector<256x128xbf16> -> vector<256x1152xbf16>
      %c0_20 = arith.constant 0 : index
      %c0_21 = arith.constant 0 : index
      %56 = vector.load %arg4[%c0_20, %c0_21] : memref<1152x128xbf16, #tpu.memory_space<vmem>>, vector<1152x128xbf16>
      %cst = arith.constant dense<0.000000e+00> : vector<256x128xf32>
      %57 = tpu.matmul %55, %56, %cst {dimension_numbers = #tpu.dot_dimension_numbers<[1], [0], [0], [1], [0, 0, 1, 1], [], []>} : vector<256x1152xbf16>, vector<1152x128xbf16>, vector<256x128xf32> -> vector<256x128xf32>
      %c0_22 = arith.constant 0 : index
      %c0_23 = arith.constant 0 : index
      %58 = vector.load %arg5[%c0_22, %c0_23] : memref<1x128xf32, #tpu.memory_space<vmem>>, vector<1x128xf32>
      %59 = vector.broadcast %58 : vector<1x128xf32> to vector<256x128xf32>
      %60 = arith.mulf %57, %59 : vector<256x128xf32>
      %c0_24 = arith.constant 0 : index
      %c0_25 = arith.constant 0 : index
      %61 = vector.load %arg6[%c0_24, %c0_25] : memref<1x128xf32, #tpu.memory_space<vmem>>, vector<1x128xf32>
      %62 = vector.broadcast %61 : vector<1x128xf32> to vector<256x128xf32>
      %63 = arith.addf %60, %62 : vector<256x128xf32>
      %cst_26 = arith.constant 0.000000e+00 : f32
      %64 = vector.broadcast %cst_26 : f32 to vector<256x128xf32>
      %65 = arith.maximumf %63, %64 : vector<256x128xf32>
      %c0_27 = arith.constant 0 : index
      %c0_28 = arith.constant 0 : index
      %66 = vector.load %arg7[%c0_27, %c0_28] : memref<256x1xf32, #tpu.memory_space<vmem>>, vector<256x1xf32>
      %cst_29 = arith.constant 5.000000e-01 : f32
      %67 = vector.broadcast %cst_29 : f32 to vector<256x1xf32>
      %68 = arith.cmpf ogt, %66, %67 : vector<256x1xf32>
      %cst_30 = arith.constant 0.000000e+00 : f32
      %69 = vector.shape_cast %68 : vector<256x1xi1> to vector<256x1xi1>
      %70 = vector.broadcast %69 : vector<256x1xi1> to vector<256x128xi1>
      %71 = vector.broadcast %cst_30 : f32 to vector<256x128xf32>
      %72 = arith.select %70, %65, %71 : vector<256x128xi1>, vector<256x128xf32>
      %c0_31 = arith.constant 0 : index
      %c0_32 = arith.constant 0 : index
      %c0_33 = arith.constant 0 : index
      %73 = vector.load %arg8[%c0_31, %c0_32, %c0_33] : memref<1x256x128xf32, #tpu.memory_space<vmem>>, vector<1x256x128xf32>
      %74 = vector.shape_cast %73 : vector<1x256x128xf32> to vector<256x128xf32>
      %75 = vector.shape_cast %72 : vector<256x128xf32> to vector<1x256x128xf32>
      tpu.vector_store %arg8[%c0_31, %c0_32, %c0_33], %75 {strides = array<i32>} : memref<1x256x128xf32, #tpu.memory_space<vmem>>, vector<1x256x128xf32>,
    } else {
    }
    return
  }
  func.func @transform_0(%arg0: i32, %arg1: i32, %arg2: i32) -> (i32, i32, i32) {
    %c0_i32 = arith.constant 0 : i32
    %c0_i32_0 = arith.constant 0 : i32
    %c0_i32_1 = arith.constant 0 : i32
    return %arg0, %c0_i32, %c0_i32_0 : i32, i32, i32
  }
  func.func @transform_1(%arg0: i32, %arg1: i32, %arg2: i32) -> (i32, i32) {
    %c0_i32 = arith.constant 0 : i32
    %c0_i32_0 = arith.constant 0 : i32
    return %c0_i32, %arg1 : i32, i32
  }
  func.func @transform_2(%arg0: i32, %arg1: i32, %arg2: i32) -> (i32, i32) {
    %c0_i32 = arith.constant 0 : i32
    %c0_i32_0 = arith.constant 0 : i32
    return %c0_i32, %arg1 : i32, i32
  }
  func.func @transform_3(%arg0: i32, %arg1: i32, %arg2: i32) -> (i32, i32) {
    %c0_i32 = arith.constant 0 : i32
    %c0_i32_0 = arith.constant 0 : i32
    return %c0_i32, %arg1 : i32, i32
  }
  func.func @transform_4(%arg0: i32, %arg1: i32, %arg2: i32) -> (i32, i32) {
    %c0_i32 = arith.constant 0 : i32
    %c0_i32_0 = arith.constant 0 : i32
    return %arg2, %c0_i32 : i32, i32
  }
  func.func @transform_5(%arg0: i32, %arg1: i32, %arg2: i32) -> (i32, i32, i32) {
    %c0_i32 = arith.constant 0 : i32
    return %arg0, %arg2, %arg1 : i32, i32, i32
  }
}

</mosaic_0001>

<bundles_post_ra>
// kernel: hm_decoder_pallas.9
= control target key start
LH: loop header
LB: loop body
LE: loop exit
PB: predicated region body
PF: predicated region fallthrough
CT: control target
= control target key end

     0   :  { %s3141_s18 = smov 0   ;;  %s3143_s19 = smov 0   ;;  %s3783_s0 = inlined_call_operand.vmem [shape: f32[2,640,128], index: 0, kind: input, shape index: {}]   ;;  %s3784_s1 = inlined_call_operand.vmem [shape: bf16[1152,128], index: 1, kind: input, shape index: {}]   ;;  %s3785_s2 = inlined_call_operand.vmem [shape: f32[1,128], index: 2, kind: input, shape index: {}]   ;;  %s3786_s3 = inlined_call_operand.vmem [shape: f32[1,128], index: 3, kind: input, shape index: {}]   ;;  %s3787_s4 = inlined_call_operand.vmem [shape: f32[640,1], index: 4, kind: input, shape index: {}]   ;;  %s3788_s5 = inlined_call_operand.vmem [shape: f32[2,640,128], index: 5, kind: output, shape index: {}]  }
   0x1   :  { %s3145_s20 = smov 0   ;;  %s3147_s21 = smov 0  }
   0x2   :  { %s3149_s22 = smov 0  }
   0x3 LB: > { %s27_s23 = sadd.s32 1, %s3099_s20  ;;  %s34_s24 = sadd.s32 1, %s3103_s21  ;;  %s3107_s22 = sphi %s3149_s22, %s15_s22   ;;  %s3103_s21 = sphi %s3147_s21, %s3793_s21   ;;  %s3099_s20 = sphi %s3145_s20, %s3792_s20   ;;  %s3095_s19 = sphi %s3143_s19, %s3791_s19   ;;  %s3091_s18 = sphi %s3141_s18, %s3790_s18  }
   0x4   : > { %p28_p0 = scmp.ge.s32.totalorder %s27_s23, 5  ;;  %p2491_p1 = scmp.ge.s32.totalorder %s3107_s22, 1 }
   0x5   : > { %p246_p2 = scmp.lt.s32.totalorder %s3107_s22, 11 }
   0x6   : > { %s3795_s23 = smov (%p28_p0, %s27_s23), 0  ;;  %s3797_s24 = smov (!%p28_p0, %s34_s24), %s3103_s21 }
   0x7   : > { %p247_p3 = pnand %p2491_p1, %p246_p2  ;;  %p36_p4 = scmp.ge.s32.totalorder %s3797_s24, 2 }
   0x8   : > { %p296_p5 = scmp.lt.s32.totalorder (!%p247_p3), %s3095_s19, 1  ;;  %s2493_s25 = sshll.u32 (!%p247_p3), %s3091_s18, 4 }
   0x9   : > { %s3799_s24 = smov (%p36_p4, %s3797_s24), 0  ;;  %250 = sbr.rel (%p247_p3) target bundleno = 500 (0x1f4), region = 40 }
   0xa   : > { %p312_p6 = scmp.lt.s32.totalorder (!%p247_p3), %s2493_s25, 79  ;;  %p330_p7 = scmp.eq.s32.totalorder (!%p247_p3), %s3091_s18, 0 }
   0xb   : > { %p331_p8 = scmp.eq.s32.totalorder (!%p247_p3), %s3091_s18, 4 }
   0xd   : > { %p3186_p9 = por (!%p247_p3), %p331_p8, %p330_p7 }
   0xe   : > { %s3801_s19 = smov (!%p296_p5, %s3095_s19), 1  ;;  %s3803_s25 = smov (!%p312_p6, %s2493_s25), 79  ;;  %v3109_v0 = vmov (%p3186_p9), 0.0  }
   0xf   : > { %s3020_s26 = smul.u32 640, %s3801_s19  ;;  %s2494_s27 = sshll.u32 %s3803_s25, 3 }
  0x10   : > { %s3021_s28 = smul.u32 80, %s3801_s19  ;;  %s3184_s9 = scalar_lea.vmem %s3787_s4, %s2494_s27 }
  0x11   : > { %s3179_s6 = scalar_lea.vmem %s3783_s0, %s3020_s26  ;;  %335 = sbr.rel (!%p3186_p9) target bundleno = 37 (0x25), region = 44 }
  0x12   : > { %s326_s10 = sadd.s32 %s3021_s28, %s3803_s25 }
  0x13   : > { %s2496_s12 = sshll.u32 %s326_s10, 3 }
  0x14   : > { %s3193_s15 = scalar_lea.vmem %s3788_s5, %s2496_s12 }
  0x15   : > { %336 = vst [vmem:[%s3193_s15] sm:$0xff] (%p3186_p9), %v3109_v0 }
  0x16   : > { %337 = vst [vmem:[%s3193_s15 + $0x8] sm:$0xff] %v3109_v0 }
  0x17   : > { %338 = vst [vmem:[%s3193_s15 + $0x10] sm:$0xff] %v3109_v0 }
  0x18   : > { %339 = vst [vmem:[%s3193_s15 + $0x18] sm:$0xff] %v3109_v0 }
  0x19   : > { %340 = vst [vmem:[%s3193_s15 + $0x20] sm:$0xff] %v3109_v0 }
  0x1a   : > { %341 = vst [vmem:[%s3193_s15 + $0x28] sm:$0xff] %v3109_v0 }
  0x1b   : > { %342 = vst [vmem:[%s3193_s15 + $0x30] sm:$0xff] %v3109_v0 }
  0x1c   : > { %343 = vst [vmem:[%s3193_s15 + $0x38] sm:$0xff] %v3109_v0 }
  0x1d   : > { %344 = vst [vmem:[%s3193_s15 + $0x40] sm:$0xff] %v3109_v0 }
  0x1e   : > { %345 = vst [vmem:[%s3193_s15 + $0x48] sm:$0xff] %v3109_v0 }
  0x1f   : > { %346 = vst [vmem:[%s3193_s15 + $0x50] sm:$0xff] %v3109_v0 }
  0x20   : > { %347 = vst [vmem:[%s3193_s15 + $0x58] sm:$0xff] %v3109_v0 }
  0x21   : > { %348 = vst [vmem:[%s3193_s15 + $0x60] sm:$0xff] %v3109_v0 }
  0x22   : > { %349 = vst [vmem:[%s3193_s15 + $0x68] sm:$0xff] %v3109_v0 }
  0x23   : > { %350 = vst [vmem:[%s3193_s15 + $0x70] sm:$0xff] %v3109_v0 }
  0x24   : > { %351 = vst [vmem:[%s3193_s15 + $0x78] sm:$0xff] %v3109_v0 }
  0x25 PF: > { %354 = sbr.rel (%p3186_p9) target bundleno = 500 (0x1f4), region = 48  ;;  %s2497_s30 = sshll.u32 (!%p3186_p9), %s3091_s18, 7 }
  0x26   : > { %s3232_s10 = scalar_lea.vmem (!%p3186_p9), %s3179_s6, %s2497_s30 }
  0x2a   : > { %v2931_v1 = vld [vmem:[%s3784_s1 + $0x38] sm:$0xff]  ;;  %v2930_v2 = vld [vmem:[%s3784_s1 + $0x30] sm:$0xff]  ;;  %v2929_v3 = vld [vmem:[%s3784_s1 + $0x28] sm:$0xff] }
  0x2b   : > { %2996 = vmatpush.bf16.msra.mxu1 %v2931_v1  ;;  %2997 = vmatpush.bf16.msra.mxu2 %v2931_v1  ;;  %v2928_v4 = vld [vmem:[%s3784_s1 + $0x20] sm:$0xff]  ;;  %v2927_v5 = vld [vmem:[%s3784_s1 + $0x18] sm:$0xff]  ;;  %v2926_v6 = vld [vmem:[%s3784_s1 + $0x10] sm:$0xff] }
  0x2c   : > { %2998 = vmatpush.bf16.msra.mxu3 %v2931_v1  ;;  %1669 = vmatpush.bf16.msra.mxu0 %v2931_v1  ;;  %v2503_v7 = vld [vmem:[%s3232_s10 + $0xc] sm:$0xff]  ;;  %v2504_v8 = vld [vmem:[%s3232_s10 + $0x14] sm:$0xff]  ;;  %v2924_v28 = vld [vmem:[%s3784_s1] sm:$0xff] }
  0x2d   : > { %v2507_v9 = vld [vmem:[%s3232_s10 + $0x2c] sm:$0xff]  ;;  %v2508_v10 = vld [vmem:[%s3232_s10 + $0x34] sm:$0xff]  ;;  %v378_v15 = vpack.c.bf16 %v2503_v7, %v2503_v7  ;;  %v379_v16 = vpack.c.bf16 %v2504_v8, %v2504_v8  ;;  %v2505_v45 = vld [vmem:[%s3232_s10 + $0x1c] sm:$0xff] }
  0x2e   : > { %v2511_v11 = vld [vmem:[%s3232_s10 + $0x4c] sm:$0xff]  ;;  %v2512_v12 = vld [vmem:[%s3232_s10 + $0x54] sm:$0xff]  ;;  %v382_v17 = vpack.c.bf16 %v2507_v9, %v2507_v9  ;;  %v383_v18 = vpack.c.bf16 %v2508_v10, %v2508_v10  ;;  %v2506_v46 = vld [vmem:[%s3232_s10 + $0x24] sm:$0xff]  ;;  %v380_v55 = vpack.c.bf16 %v2505_v45, %v2505_v45 }
  0x2f   : > { %2999 = vmatpush.bf16.msra.mxu1 %v2930_v2  ;;  %3000 = vmatpush.bf16.msra.mxu2 %v2930_v2  ;;  %v2499_v13 = vld [vmem:[%s3232_s10 - $0x14] sm:$0xff]  ;;  %v2500_v14 = vld [vmem:[%s3232_s10 - $0xc] sm:$0xff]  ;;  %v386_v19 = vpack.c.bf16 %v2511_v11, %v2511_v11  ;;  %v387_v21 = vpack.c.bf16 %v2512_v12, %v2512_v12  ;;  %v681_v24 = vunpack.c.l.b16 %v378_v15  ;;  %v682_v25 = vunpack.c.l.b16 %v379_v16  ;;  %v2509_v47 = vld [vmem:[%s3232_s10 + $0x3c] sm:$0xff] }
  0x30   : > { %3001 = vmatpush.bf16.msra.mxu3 %v2930_v2  ;;  %1670 = vmatpush.bf16.msra.mxu0 %v2930_v2  ;;  %v2925_v20 = vld [vmem:[%s3784_s1 + $0x8] sm:$0xff]  ;;  %v374_v22 = vpack.c.bf16 %v2499_v13, %v2499_v13  ;;  %v375_v23 = vpack.c.bf16 %v2500_v14, %v2500_v14  ;;  %v685_v26 = vunpack.c.l.b16 %v382_v17  ;;  %v686_v27 = vunpack.c.l.b16 %v383_v18  ;;  %v2947_v33 = vld [vmem:[%s3784_s1 + $0xb8] sm:$0xff]  ;;  %v2946_v41 = vld [vmem:[%s3784_s1 + $0xb0] sm:$0xff] }
  0x31   : > { %v689_v29 = vunpack.c.l.b16 %v386_v19  ;;  %v690_v30 = vunpack.c.l.b16 %v387_v21  ;;  %v2939_v34 = vld [vmem:[%s3784_s1 + $0x78] sm:$0xff]  ;;  %v695_v35 = vpack.c.b16 %v682_v25, %v681_v24  ;;  %v2938_v42 = vld [vmem:[%s3784_s1 + $0x70] sm:$0xff]  ;;  %v2510_v48 = vld [vmem:[%s3232_s10 + $0x44] sm:$0xff]  ;;  %v381_v56 = vpack.c.bf16 %v2506_v46, %v2506_v46 }
  0x32   : > { %v677_v31 = vunpack.c.l.b16 %v374_v22  ;;  %v678_v32 = vunpack.c.l.b16 %v375_v23  ;;  %v697_v36 = vpack.c.b16 %v686_v27, %v685_v26  ;;  %v2955_v39 = vld [vmem:[%s3784_s1 + $0xf8] sm:$0xff]  ;;  %v2954_v43 = vld [vmem:[%s3784_s1 + $0xf0] sm:$0xff]  ;;  %v2514_v50 = vld [vmem:[%s3232_s10 + $0x64] sm:$0xff]  ;;  %v384_v57 = vpack.c.bf16 %v2509_v47, %v2509_v47 }
  0x33   : > { %3002 = vmatpush.bf16.msra.mxu1 %v2929_v3  ;;  %3003 = vmatpush.bf16.msra.mxu2 %v2929_v3  ;;  %v699_v37 = vpack.c.b16 %v690_v30, %v689_v29  ;;  %v2963_v40 = vld [vmem:[%s3784_s1 + $0x138] sm:$0xff]  ;;  %v2962_v44 = vld [vmem:[%s3784_s1 + $0x130] sm:$0xff]  ;;  %v2502_v52 = vld [vmem:[%s3232_s10 + $0x4] sm:$0xff]  ;;  %v385_v58 = vpack.c.bf16 %v2510_v48, %v2510_v48  ;;  %v389_v60 = vpack.c.bf16 %v2514_v50, %v2514_v50 }
  0x34   : > { %3004 = vmatpush.bf16.msra.mxu3 %v2929_v3  ;;  %1671 = vmatpush.bf16.msra.mxu0 %v2929_v3  ;;  %v693_v38 = vpack.c.b16 %v678_v32, %v677_v31  ;;  %v2513_v49 = vld [vmem:[%s3232_s10 + $0x5c] sm:$0xff]  ;;  %v2945_v53 = vld [vmem:[%s3784_s1 + $0xa8] sm:$0xff]  ;;  %v377_v62 = vpack.c.bf16 %v2502_v52, %v2502_v52  ;;  %v683_v3 = vunpack.c.l.b16 %v380_v55  ;;  %v2942_v21 = vld [vmem:[%s3784_s1 + $0x90] sm:$0xff] }
  0x35   : > { %v2501_v51 = vld [vmem:[%s3232_s10 - $0x4] sm:$0xff]  ;;  %v2937_v54 = vld [vmem:[%s3784_s1 + $0x68] sm:$0xff]  ;;  %v388_v59 = vpack.c.bf16 %v2513_v49, %v2513_v49  ;;  %v692_v8 = vunpack.c.l.b16 %v389_v60  ;;  %v2934_v22 = vld [vmem:[%s3784_s1 + $0x50] sm:$0xff] }
  0x36   : > { %v376_v61 = vpack.c.bf16 %v2501_v51, %v2501_v51  ;;  %v2953_v63 = vld [vmem:[%s3784_s1 + $0xe8] sm:$0xff]  ;;  %v2944_v1 = vld [vmem:[%s3784_s1 + $0xa0] sm:$0xff]  ;;  %v680_v10 = vunpack.c.l.b16 %v377_v62  ;;  %v2943_v13 = vld [vmem:[%s3784_s1 + $0x98] sm:$0xff] }
  0x37   : > { %3005 = vmatpush.bf16.msra.mxu1 %v2928_v4  ;;  %3006 = vmatpush.bf16.msra.mxu2 %v2928_v4  ;;  %v2961_v0 = vld [vmem:[%s3784_s1 + $0x128] sm:$0xff]  ;;  %v2936_v2 = vld [vmem:[%s3784_s1 + $0x60] sm:$0xff]  ;;  %v691_v7 = vunpack.c.l.b16 %v388_v59  ;;  %v2935_v14 = vld [vmem:[%s3784_s1 + $0x58] sm:$0xff] }
  0x38   : > { %3007 = vmatpush.bf16.msra.mxu3 %v2928_v4  ;;  %1672 = vmatpush.bf16.msra.mxu0 %v2928_v4  ;;  %v684_v4 = vunpack.c.l.b16 %v381_v56  ;;  %v679_v9 = vunpack.c.l.b16 %v376_v61  ;;  %v2952_v11 = vld [vmem:[%s3784_s1 + $0xe0] sm:$0xff]  ;;  %v2951_v19 = vld [vmem:[%s3784_s1 + $0xd8] sm:$0xff]  ;;  %v2950_v23 = vld [vmem:[%s3784_s1 + $0xd0] sm:$0xff] }
  0x39   : > { %v2960_v12 = vld [vmem:[%s3784_s1 + $0x120] sm:$0xff]  ;;  %v700_v17 = vpack.c.b16 %v692_v8, %v691_v7  ;;  %v2958_v24 = vld [vmem:[%s3784_s1 + $0x110] sm:$0xff]  ;;  %v494_v32 = vld [vmem:[%s3232_s10 + $0x8] sm:$0xff] }
  0x3a   : > { %v696_v15 = vpack.c.b16 %v684_v4, %v683_v3  ;;  %v694_v18 = vpack.c.b16 %v680_v10, %v679_v9  ;;  %v2516_v25 = vld [vmem:[%s3232_s10 - $0x13] sm:$0xff]  ;;  %v2517_v26 = vld [vmem:[%s3232_s10 - $0xb] sm:$0xff]  ;;  %v2550_v29 = vld [vmem:[%s3232_s10 - $0x1] sm:$0xff] }
  0x3b   : > { %3008 = vmatpush.bf16.msra.mxu1 %v2927_v5  ;;  %3009 = vmatpush.bf16.msra.mxu2 %v2927_v5  ;;  %v2533_v27 = vld [vmem:[%s3232_s10 - $0x12] sm:$0xff]  ;;  %v493_v31 = vld [vmem:[%s3232_s10] sm:$0xff]  ;;  %v2979_v51 = vld [vmem:[%s3784_s1 + $0x1b8] sm:$0xff] }
  0x3c   : > { %3010 = vmatpush.bf16.msra.mxu3 %v2927_v5  ;;  %1673 = vmatpush.bf16.msra.mxu0 %v2927_v5  ;;  %v687_v5 = vunpack.c.l.b16 %v384_v57  ;;  %v2551_v30 = vld [vmem:[%s3232_s10 + $0x7] sm:$0xff]  ;;  %v2971_v52 = vld [vmem:[%s3784_s1 + $0x178] sm:$0xff]  ;;  %v2986_v4 = vld [vmem:[%s3784_s1 + $0x1f0] sm:$0xff] }
  0x3d   : > { %v2940_v45 = vld [vmem:[%s3784_s1 + $0x80] sm:$0xff]  ;;  %v2987_v59 = vld [vmem:[%s3784_s1 + $0x1f8] sm:$0xff]  ;;  %v2552_v9 = vld [vmem:[%s3232_s10 + $0xf] sm:$0xff] }
  0x3e   : > { %v2932_v46 = vld [vmem:[%s3784_s1 + $0x40] sm:$0xff]  ;;  %v2995_v60 = vld [vmem:[%s3784_s1 + $0x238] sm:$0xff] }
  0x3f   : > { %3011 = vmatpush.bf16.msra.mxu1 %v2926_v6  ;;  %3012 = vmatpush.bf16.msra.mxu2 %v2926_v6  ;;  %v2948_v57 = vld [vmem:[%s3784_s1 + $0xc0] sm:$0xff]  ;;  %v2553_v10 = vld [vmem:[%s3232_s10 + $0x17] sm:$0xff] }
  0x40   : > { %3013 = vmatpush.bf16.msra.mxu3 %v2926_v6  ;;  %1674 = vmatpush.bf16.msra.mxu0 %v2926_v6  ;;  %v688_v6 = vunpack.c.l.b16 %v385_v58  ;;  %v2956_v58 = vld [vmem:[%s3784_s1 + $0x100] sm:$0xff] }
  0x41   : > { %v2518_v3 = vld [vmem:[%s3232_s10 - $0x3] sm:$0xff]  ;;  %v2536_v8 = vld [vmem:[%s3232_s10 + $0x6] sm:$0xff] }
  0x42   : > { %v698_v16 = vpack.c.b16 %v688_v6, %v687_v5  ;;  %v2994_v5 = vld [vmem:[%s3784_s1 + $0x230] sm:$0xff]  ;;  %v2519_v6 = vld [vmem:[%s3232_s10 + $0x5] sm:$0xff] }
  0x43   : > { %3014 = vmatpush.bf16.msra.mxu1 %v2925_v20  ;;  %3015 = vmatpush.bf16.msra.mxu2 %v2925_v20  ;;  %v2535_v7 = vld [vmem:[%s3232_s10 - $0x2] sm:$0xff] }
  0x44   : > { %3016 = vmatpush.bf16.msra.mxu3 %v2925_v20  ;;  %1675 = vmatpush.bf16.msra.mxu0 %v2925_v20  ;;  %v2959_v20 = vld [vmem:[%s3784_s1 + $0x118] sm:$0xff] }
  0x47   : > { %3017 = vmatpush.bf16.msra.mxu1 %v2924_v28  ;;  %3018 = vmatpush.bf16.msra.mxu2 %v2924_v28 }
  0x48   : > { %3019 = vmatpush.bf16.msra.mxu3 %v2924_v28  ;;  %1676 = vmatpush.bf16.msra.mxu0 %v2924_v28  ;;  %v2534_v28 = vld [vmem:[%s3232_s10 - $0xa] sm:$0xff] }
  0x4a   : > { %1687 = vmatmul.bf16.vlgmr.msra.gmra.mxu1 %v695_v35  ;;  %1697 = vmatmul.bf16.vlgmr.msra.gmra.mxu2 %v697_v36  ;;  %v408_v35 = vpack.c.bf16 %v2516_v25, %v2516_v25  ;;  %v409_v36 = vpack.c.bf16 %v2517_v26, %v2517_v26 }
  0x4b   : > { %1767 = vmatpush.bf16.msrb.mxu2 %v2947_v33  ;;  %1718 = vmatpush.bf16.msrb.mxu1 %v2939_v34  ;;  %v2941_v33 = vld [vmem:[%s3784_s1 + $0x88] sm:$0xff] }
  0x4c   : > { %1707 = vmatmul.bf16.vlgmr.msra.gmra.mxu3 %v699_v37  ;;  %1677 = vmatmul.bf16.vlgmr.msra.gmra.mxu0 %v693_v38  ;;  %v2933_v34 = vld [vmem:[%s3784_s1 + $0x48] sm:$0xff]  ;;  %v442_v37 = vpack.c.bf16 %v2533_v27, %v2533_v27  ;;  %v443_v38 = vpack.c.bf16 %v2534_v28, %v2534_v28  ;;  %v725_v47 = vunpack.c.l.b16 %v408_v35  ;;  %v726_v48 = vunpack.c.l.b16 %v409_v36 }
  0x4d   : > { %1816 = vmatpush.bf16.msrb.mxu3 %v2955_v39  ;;  %1865 = vmatpush.bf16.msrb.mxu0 %v2963_v40  ;;  %v476_v39 = vpack.c.bf16 %v2550_v29, %v2550_v29  ;;  %v477_v40 = vpack.c.bf16 %v2551_v30, %v2551_v30 }
  0x4e   : > { %v773_v49 = vunpack.c.l.b16 %v442_v37  ;;  %v774_v50 = vunpack.c.l.b16 %v443_v38  ;;  %v741_v61 = vpack.c.b16 %v726_v48, %v725_v47  ;;  %v2520_v37 = vld [vmem:[%s3232_s10 + $0xd] sm:$0xff]  ;;  %v2521_v38 = vld [vmem:[%s3232_s10 + $0x15] sm:$0xff]  ;;  %v2992_v48 = vld [vmem:[%s3784_s1 + $0x220] sm:$0xff] }
  0x4f   : > { %1768 = vmatpush.bf16.msrb.mxu2 %v2946_v41  ;;  %1719 = vmatpush.bf16.msrb.mxu1 %v2938_v42  ;;  %v509_v41 = vpack.c.bf16 %v493_v31, %v493_v31  ;;  %v510_v42 = vpack.c.bf16 %v494_v32, %v494_v32  ;;  %v498_v47 = vld [vmem:[%s3232_s10 + $0x28] sm:$0xff] }
  0x50   : > { %v789_v62 = vpack.c.b16 %v774_v50, %v773_v49  ;;  %v412_v49 = vpack.c.bf16 %v2520_v37, %v2520_v37  ;;  %v413_v50 = vpack.c.bf16 %v2521_v38, %v2521_v38  ;;  %v2524_v37 = vld [vmem:[%s3232_s10 + $0x2d] sm:$0xff]  ;;  %v2525_v38 = vld [vmem:[%s3232_s10 + $0x35] sm:$0xff] }
  0x51   : > { %1817 = vmatpush.bf16.msrb.mxu3 %v2954_v43  ;;  %1866 = vmatpush.bf16.msrb.mxu0 %v2962_v44  ;;  %v2949_v43 = vld [vmem:[%s3784_s1 + $0xc8] sm:$0xff]  ;;  %v869_v55 = vunpack.c.l.b16 %v509_v41  ;;  %v870_v56 = vunpack.c.l.b16 %v510_v42  ;;  %v2554_v41 = vld [vmem:[%s3232_s10 + $0x1f] sm:$0xff] }
  0x52   : > { %v2957_v44 = vld [vmem:[%s3784_s1 + $0x108] sm:$0xff] }
  0x53   : > { %1769 = vmatpush.bf16.msrb.mxu2 %v2945_v53  ;;  %1720 = vmatpush.bf16.msrb.mxu1 %v2937_v54  ;;  %v821_v53 = vunpack.c.l.b16 %v476_v39  ;;  %v822_v54 = vunpack.c.l.b16 %v477_v40  ;;  %v2537_v39 = vld [vmem:[%s3232_s10 + $0xe] sm:$0xff]  ;;  %v2538_v40 = vld [vmem:[%s3232_s10 + $0x16] sm:$0xff] }
  0x54   : > { %v2555_v42 = vld [vmem:[%s3232_s10 + $0x27] sm:$0xff] }
  0x55   : > { %1818 = vmatpush.bf16.msrb.mxu3 %v2953_v63  ;;  %1867 = vmatpush.bf16.msrb.mxu0 %v2961_v0  ;;  %v837_v63 = vpack.c.b16 %v822_v54, %v821_v53  ;;  %v885_v0 = vpack.c.b16 %v870_v56, %v869_v55  ;;  %v480_v53 = vpack.c.bf16 %v2554_v41, %v2554_v41  ;;  %v2558_v41 = vld [vmem:[%s3232_s10 + $0x3f] sm:$0xff] }
  0x56   : > { %v481_v54 = vpack.c.bf16 %v2555_v42, %v2555_v42  ;;  %v514_v56 = vpack.c.bf16 %v498_v47, %v498_v47  ;;  %v2559_v42 = vld [vmem:[%s3232_s10 + $0x47] sm:$0xff] }
  0x57   : > { %1770 = vmatpush.bf16.msrb.mxu2 %v2944_v1  ;;  %1721 = vmatpush.bf16.msrb.mxu1 %v2936_v2  ;;  %v2978_v1 = vld [vmem:[%s3784_s1 + $0x1b0] sm:$0xff]  ;;  %v502_v47 = vld [vmem:[%s3232_s10 + $0x48] sm:$0xff] }
  0x58   : > { %v2970_v2 = vld [vmem:[%s3784_s1 + $0x170] sm:$0xff] }
  0x59   : > { %1819 = vmatpush.bf16.msrb.mxu3 %v2952_v11  ;;  %1868 = vmatpush.bf16.msrb.mxu0 %v2960_v12  ;;  %v495_v11 = vld [vmem:[%s3232_s10 + $0x10] sm:$0xff]  ;;  %v496_v12 = vld [vmem:[%s3232_s10 + $0x18] sm:$0xff] }
  0x5a   : > { %1692 = vmatmul.bf16.gmra.mxu1 %v696_v15  ;;  %1702 = vmatmul.bf16.gmra.mxu2 %v698_v16  ;;  %v2985_v15 = vld [vmem:[%s3784_s1 + $0x1e8] sm:$0xff] }
  0x5b   : > { %1771 = vmatpush.bf16.msrb.mxu2 %v2943_v13  ;;  %1722 = vmatpush.bf16.msrb.mxu1 %v2935_v14  ;;  %v2977_v13 = vld [vmem:[%s3784_s1 + $0x1a8] sm:$0xff] }
  0x5c   : > { %1712 = vmatmul.bf16.gmra.mxu3 %v700_v17  ;;  %1682 = vmatmul.bf16.gmra.mxu0 %v694_v18  ;;  %v2969_v14 = vld [vmem:[%s3784_s1 + $0x168] sm:$0xff]  ;;  %v410_v17 = vpack.c.bf16 %v2518_v3, %v2518_v3  ;;  %v411_v18 = vpack.c.bf16 %v2519_v6, %v2519_v6 }
  0x5d   : > { %1820 = vmatpush.bf16.msrb.mxu3 %v2951_v19  ;;  %1869 = vmatpush.bf16.msrb.mxu0 %v2959_v20  ;;  %v2993_v16 = vld [vmem:[%s3784_s1 + $0x228] sm:$0xff]  ;;  %v444_v19 = vpack.c.bf16 %v2535_v7, %v2535_v7  ;;  %v445_v20 = vpack.c.bf16 %v2536_v8, %v2536_v8  ;;  %v2539_v7 = vld [vmem:[%s3232_s10 + $0x1e] sm:$0xff] }
  0x5e   : > { %v727_v25 = vunpack.c.l.b16 %v410_v17  ;;  %v728_v26 = vunpack.c.l.b16 %v411_v18  ;;  %v2523_v6 = vld [vmem:[%s3232_s10 + $0x25] sm:$0xff] }
  0x5f   : > { %1772 = vmatpush.bf16.msrb.mxu2 %v2942_v21  ;;  %1723 = vmatpush.bf16.msrb.mxu1 %v2934_v22  ;;  %v478_v21 = vpack.c.bf16 %v2552_v9, %v2552_v9  ;;  %v479_v22 = vpack.c.bf16 %v2553_v10, %v2553_v10  ;;  %v775_v27 = vunpack.c.l.b16 %v444_v19  ;;  %v776_v28 = vunpack.c.l.b16 %v445_v20  ;;  %v2540_v8 = vld [vmem:[%s3232_s10 + $0x26] sm:$0xff]  ;;  %v2556_v9 = vld [vmem:[%s3232_s10 + $0x2f] sm:$0xff]  ;;  %v2557_v10 = vld [vmem:[%s3232_s10 + $0x37] sm:$0xff] }
  0x60   : > { %v415_v18 = vpack.c.bf16 %v2523_v6, %v2523_v6  ;;  %v448_v19 = vpack.c.bf16 %v2539_v7, %v2539_v7  ;;  %v449_v20 = vpack.c.bf16 %v2540_v8, %v2540_v8  ;;  %v2527_v6 = vld [vmem:[%s3232_s10 + $0x45] sm:$0xff] }
  0x61   : > { %1821 = vmatpush.bf16.msrb.mxu3 %v2950_v23  ;;  %1870 = vmatpush.bf16.msrb.mxu0 %v2958_v24  ;;  %v511_v23 = vpack.c.bf16 %v495_v11, %v495_v11  ;;  %v512_v24 = vpack.c.bf16 %v496_v12, %v496_v12  ;;  %v823_v29 = vunpack.c.l.b16 %v478_v21  ;;  %v824_v30 = vunpack.c.l.b16 %v479_v22  ;;  %v2975_v11 = vld [vmem:[%s3784_s1 + $0x198] sm:$0xff]  ;;  %v2544_v8 = vld [vmem:[%s3232_s10 + $0x46] sm:$0xff] }
  0x62   : > { %v2983_v12 = vld [vmem:[%s3784_s1 + $0x1d8] sm:$0xff]  ;;  %v482_v21 = vpack.c.bf16 %v2556_v9, %v2556_v9  ;;  %v483_v22 = vpack.c.bf16 %v2557_v10, %v2557_v10  ;;  %v2560_v9 = vld [vmem:[%s3232_s10 + $0x4f] sm:$0xff] }
  0x63   : > { %1773 = vmatpush.bf16.msrb.mxu2 %v2941_v33  ;;  %1724 = vmatpush.bf16.msrb.mxu1 %v2933_v34  ;;  %v871_v31 = vunpack.c.l.b16 %v511_v23  ;;  %v872_v32 = vunpack.c.l.b16 %v512_v24  ;;  %v742_v33 = vpack.c.b16 %v728_v26, %v727_v25  ;;  %v790_v34 = vpack.c.b16 %v776_v28, %v775_v27  ;;  %v2543_v7 = vld [vmem:[%s3232_s10 + $0x3e] sm:$0xff]  ;;  %v2973_v10 = vld [vmem:[%s3784_s1 + $0x188] sm:$0xff] }
  0x64   : > { %v838_v35 = vpack.c.b16 %v824_v30, %v823_v29  ;;  %v732_v26 = vunpack.c.l.b16 %v415_v18  ;;  %v779_v27 = vunpack.c.l.b16 %v448_v19  ;;  %v780_v28 = vunpack.c.l.b16 %v449_v20  ;;  %v2965_v19 = vld [vmem:[%s3784_s1 + $0x148] sm:$0xff] }
  0x65   : > { %1822 = vmatpush.bf16.msrb.mxu3 %v2949_v43  ;;  %1871 = vmatpush.bf16.msrb.mxu0 %v2957_v44  ;;  %v886_v36 = vpack.c.b16 %v872_v32, %v871_v31  ;;  %v2976_v43 = vld [vmem:[%s3784_s1 + $0x1a0] sm:$0xff]  ;;  %v827_v29 = vunpack.c.l.b16 %v482_v21  ;;  %v828_v30 = vunpack.c.l.b16 %v483_v22  ;;  %v453_v18 = vpack.c.bf16 %v2544_v8, %v2544_v8 }
  0x66   : > { %v2984_v44 = vld [vmem:[%s3784_s1 + $0x1e0] sm:$0xff]  ;;  %v486_v20 = vpack.c.bf16 %v2560_v9, %v2560_v9 }
  0x67   : > { %1774 = vmatpush.bf16.msrb.mxu2 %v2940_v45  ;;  %1725 = vmatpush.bf16.msrb.mxu1 %v2932_v46  ;;  %v2968_v45 = vld [vmem:[%s3784_s1 + $0x160] sm:$0xff] }
  0x68   : > { %v497_v46 = vld [vmem:[%s3232_s10 + $0x20] sm:$0xff] }
  0x69   : > { %1823 = vmatpush.bf16.msrb.mxu3 %v2948_v57  ;;  %1872 = vmatpush.bf16.msrb.mxu0 %v2956_v58  ;;  %v513_v55 = vpack.c.bf16 %v497_v46, %v497_v46  ;;  %v729_v57 = vunpack.c.l.b16 %v412_v49  ;;  %v730_v58 = vunpack.c.l.b16 %v413_v50  ;;  %v501_v46 = vld [vmem:[%s3232_s10 + $0x40] sm:$0xff]  ;;  %v416_v49 = vpack.c.bf16 %v2524_v37, %v2524_v37  ;;  %v2528_v37 = vld [vmem:[%s3232_s10 + $0x4d] sm:$0xff] }
  0x6a   : > { %1726 = vmatmul.bf16.vlgmr.msrb.gmra.mxu1 %v741_v61  ;;  %1775 = vmatmul.bf16.vlgmr.msrb.gmra.mxu2 %v789_v62  ;;  %v825_v61 = vunpack.c.l.b16 %v480_v53  ;;  %v826_v62 = vunpack.c.l.b16 %v481_v54  ;;  %v417_v50 = vpack.c.bf16 %v2525_v38, %v2525_v38  ;;  %v484_v53 = vpack.c.bf16 %v2558_v41, %v2558_v41  ;;  %v2529_v38 = vld [vmem:[%s3232_s10 + $0x55] sm:$0xff]  ;;  %v2562_v41 = vld [vmem:[%s3232_s10 + $0x5f] sm:$0xff] }
  0x6b   : > { %1963 = vmatpush.bf16.msra.mxu2 %v2979_v51  ;;  %1914 = vmatpush.bf16.msra.mxu1 %v2971_v52  ;;  %v446_v51 = vpack.c.bf16 %v2537_v39, %v2537_v39  ;;  %v447_v52 = vpack.c.bf16 %v2538_v40, %v2538_v40  ;;  %v2541_v39 = vld [vmem:[%s3232_s10 + $0x2e] sm:$0xff]  ;;  %v2542_v40 = vld [vmem:[%s3232_s10 + $0x36] sm:$0xff]  ;;  %v485_v54 = vpack.c.bf16 %v2559_v42, %v2559_v42  ;;  %v2972_v42 = vld [vmem:[%s3784_s1 + $0x180] sm:$0xff] }
  0x6c   : > { %1824 = vmatmul.bf16.vlgmr.msrb.gmra.mxu3 %v837_v63  ;;  %1873 = vmatmul.bf16.vlgmr.msrb.gmra.mxu0 %v885_v0  ;;  %v873_v63 = vunpack.c.l.b16 %v513_v55  ;;  %v874_v0 = vunpack.c.l.b16 %v514_v56  ;;  %v839_v3 = vpack.c.b16 %v826_v62, %v825_v61  ;;  %v517_v55 = vpack.c.bf16 %v501_v46, %v501_v46  ;;  %v506_v46 = vld [vmem:[%s3232_s10 + $0x68] sm:$0xff]  ;;  %v2547_v9 = vld [vmem:[%s3232_s10 + $0x5e] sm:$0xff] }
  0x6d   : > { %2012 = vmatpush.bf16.msra.mxu3 %v2987_v59  ;;  %2061 = vmatpush.bf16.msra.mxu0 %v2995_v60  ;;  %v777_v59 = vunpack.c.l.b16 %v446_v51  ;;  %v778_v60 = vunpack.c.l.b16 %v447_v52  ;;  %v450_v51 = vpack.c.bf16 %v2541_v39, %v2541_v39  ;;  %v451_v52 = vpack.c.bf16 %v2542_v40, %v2542_v40  ;;  %v2545_v39 = vld [vmem:[%s3232_s10 + $0x4e] sm:$0xff]  ;;  %v2546_v40 = vld [vmem:[%s3232_s10 + $0x56] sm:$0xff]  ;;  %v2531_v8 = vld [vmem:[%s3232_s10 + $0x65] sm:$0xff] }
  0x6e   : > { %v518_v56 = vpack.c.bf16 %v502_v47, %v502_v47  ;;  %v829_v61 = vunpack.c.l.b16 %v484_v53  ;;  %v830_v62 = vunpack.c.l.b16 %v485_v54  ;;  %v420_v47 = vpack.c.bf16 %v2528_v37, %v2528_v37 }
  0x6f   : > { %1964 = vmatpush.bf16.msra.mxu2 %v2978_v1  ;;  %1915 = vmatpush.bf16.msra.mxu1 %v2970_v2  ;;  %v743_v1 = vpack.c.b16 %v730_v58, %v729_v57  ;;  %v791_v2 = vpack.c.b16 %v778_v60, %v777_v59  ;;  %v733_v57 = vunpack.c.l.b16 %v416_v49  ;;  %v734_v58 = vunpack.c.l.b16 %v417_v50 }
  0x70   : > { %v781_v59 = vunpack.c.l.b16 %v450_v51  ;;  %v782_v60 = vunpack.c.l.b16 %v451_v52  ;;  %v454_v49 = vpack.c.bf16 %v2545_v39, %v2545_v39  ;;  %v455_v50 = vpack.c.bf16 %v2546_v40, %v2546_v40  ;;  %v2964_v51 = vld [vmem:[%s3784_s1 + $0x140] sm:$0xff] }
  0x71   : > { %2013 = vmatpush.bf16.msra.mxu3 %v2986_v4  ;;  %2062 = vmatpush.bf16.msra.mxu0 %v2994_v5  ;;  %v887_v4 = vpack.c.b16 %v874_v0, %v873_v63  ;;  %v2522_v5 = vld [vmem:[%s3232_s10 + $0x1d] sm:$0xff]  ;;  %v877_v63 = vunpack.c.l.b16 %v517_v55  ;;  %v878_v0 = vunpack.c.l.b16 %v518_v56  ;;  %v488_v52 = vpack.c.bf16 %v2562_v41, %v2562_v41 }
  0x72   : > { %v414_v17 = vpack.c.bf16 %v2522_v5, %v2522_v5  ;;  %v2526_v5 = vld [vmem:[%s3232_s10 + $0x3d] sm:$0xff]  ;;  %v522_v55 = vpack.c.bf16 %v506_v46, %v506_v46 }
  0x73   : > { %1965 = vmatpush.bf16.msra.mxu2 %v2977_v13  ;;  %1916 = vmatpush.bf16.msra.mxu1 %v2969_v14  ;;  %v2967_v13 = vld [vmem:[%s3784_s1 + $0x158] sm:$0xff]  ;;  %v499_v14 = vld [vmem:[%s3232_s10 + $0x30] sm:$0xff]  ;;  %v2988_v56 = vld [vmem:[%s3784_s1 + $0x200] sm:$0xff] }
  0x74   : > { %v515_v23 = vpack.c.bf16 %v499_v14, %v499_v14  ;;  %v731_v25 = vunpack.c.l.b16 %v414_v17  ;;  %v504_v14 = vld [vmem:[%s3232_s10 + $0x58] sm:$0xff]  ;;  %v452_v17 = vpack.c.bf16 %v2543_v7, %v2543_v7 }
  0x75   : > { %2014 = vmatpush.bf16.msra.mxu3 %v2985_v15  ;;  %2063 = vmatpush.bf16.msra.mxu0 %v2993_v16  ;;  %v500_v15 = vld [vmem:[%s3232_s10 + $0x38] sm:$0xff] }
  0x76   : > { %v2991_v16 = vld [vmem:[%s3784_s1 + $0x218] sm:$0xff]  ;;  %v516_v24 = vpack.c.bf16 %v500_v15, %v500_v15  ;;  %v875_v31 = vunpack.c.l.b16 %v515_v23  ;;  %v418_v15 = vpack.c.bf16 %v2526_v5, %v2526_v5  ;;  %v520_v23 = vpack.c.bf16 %v504_v14, %v504_v14 }
  0x77   : > { %1966 = vmatpush.bf16.msra.mxu2 %v2976_v43  ;;  %1917 = vmatpush.bf16.msra.mxu1 %v2968_v45  ;;  %v2974_v43 = vld [vmem:[%s3784_s1 + $0x190] sm:$0xff]  ;;  %v2530_v7 = vld [vmem:[%s3232_s10 + $0x5d] sm:$0xff] }
  0x78   : > { %v876_v32 = vunpack.c.l.b16 %v516_v24  ;;  %v2966_v45 = vld [vmem:[%s3784_s1 + $0x150] sm:$0xff]  ;;  %v2989_v24 = vld [vmem:[%s3784_s1 + $0x208] sm:$0xff]  ;;  %v508_v14 = vld [vmem:[%s3232_s10 + $0x78] sm:$0xff] }
  0x79   : > { %2015 = vmatpush.bf16.msra.mxu3 %v2984_v44  ;;  %2064 = vmatpush.bf16.msra.mxu0 %v2992_v48  ;;  %v2982_v44 = vld [vmem:[%s3784_s1 + $0x1d0] sm:$0xff]  ;;  %v2585_v46 = vld [vmem:[%s3232_s10 + $0x1a] sm:$0xff] }
  0x7a   : > { %1731 = vmatmul.bf16.gmra.mxu1 %v742_v33  ;;  %1780 = vmatmul.bf16.gmra.mxu2 %v790_v34  ;;  %v744_v33 = vpack.c.b16 %v732_v26, %v731_v25  ;;  %v792_v34 = vpack.c.b16 %v780_v28, %v779_v27  ;;  %v2990_v48 = vld [vmem:[%s3784_s1 + $0x210] sm:$0xff]  ;;  %v735_v25 = vunpack.c.l.b16 %v418_v15  ;;  %v783_v27 = vunpack.c.l.b16 %v452_v17 }
  0x7b   : > { %1967 = vmatpush.bf16.msra.mxu2 %v2975_v11  ;;  %1918 = vmatpush.bf16.msra.mxu1 %v2967_v13  ;;  %v2981_v11 = vld [vmem:[%s3784_s1 + $0x1c8] sm:$0xff]  ;;  %v503_v13 = vld [vmem:[%s3232_s10 + $0x50] sm:$0xff]  ;;  %v784_v28 = vunpack.c.l.b16 %v453_v18  ;;  %v422_v17 = vpack.c.bf16 %v2530_v7, %v2530_v7  ;;  %v423_v18 = vpack.c.bf16 %v2531_v8, %v2531_v8 }
  0x7c   : > { %1829 = vmatmul.bf16.gmra.mxu3 %v838_v35  ;;  %1878 = vmatmul.bf16.gmra.mxu0 %v886_v36  ;;  %v840_v35 = vpack.c.b16 %v828_v30, %v827_v29  ;;  %v888_v36 = vpack.c.b16 %v876_v32, %v875_v31  ;;  %v519_v22 = vpack.c.bf16 %v503_v13, %v503_v13  ;;  %v831_v29 = vunpack.c.l.b16 %v486_v20  ;;  %v507_v13 = vld [vmem:[%s3232_s10 + $0x70] sm:$0xff] }
  0x7d   : > { %2016 = vmatpush.bf16.msra.mxu3 %v2983_v12  ;;  %2065 = vmatpush.bf16.msra.mxu0 %v2991_v16  ;;  %v2561_v12 = vld [vmem:[%s3232_s10 + $0x57] sm:$0xff]  ;;  %v419_v16 = vpack.c.bf16 %v2527_v6, %v2527_v6  ;;  %v880_v32 = vunpack.c.l.b16 %v520_v23 }
  0x7e   : > { %v487_v21 = vpack.c.bf16 %v2561_v12, %v2561_v12  ;;  %v879_v31 = vunpack.c.l.b16 %v519_v22  ;;  %v2565_v12 = vld [vmem:[%s3232_s10 + $0x77] sm:$0xff] }
  0x7f   : > { %1968 = vmatpush.bf16.msra.mxu2 %v2974_v43  ;;  %1919 = vmatpush.bf16.msra.mxu1 %v2966_v45  ;;  %v736_v26 = vunpack.c.l.b16 %v419_v16  ;;  %v2980_v43 = vld [vmem:[%s3784_s1 + $0x1c0] sm:$0xff]  ;;  %v491_v23 = vpack.c.bf16 %v2565_v12, %v2565_v12 }
  0x80   : > { %v832_v30 = vunpack.c.l.b16 %v487_v21  ;;  %v505_v45 = vld [vmem:[%s3232_s10 + $0x60] sm:$0xff] }
  0x81   : > { %2017 = vmatpush.bf16.msra.mxu3 %v2982_v44  ;;  %2066 = vmatpush.bf16.msra.mxu0 %v2990_v48  ;;  %v2563_v44 = vld [vmem:[%s3232_s10 + $0x67] sm:$0xff]  ;;  %v421_v48 = vpack.c.bf16 %v2529_v38, %v2529_v38  ;;  %v521_v54 = vpack.c.bf16 %v505_v45, %v505_v45  ;;  %v2584_v45 = vld [vmem:[%s3232_s10 + $0x12] sm:$0xff] }
  0x82   : > { %v489_v53 = vpack.c.bf16 %v2563_v44, %v2563_v44  ;;  %v2568_v44 = vld [vmem:[%s3232_s10 + $0x9] sm:$0xff] }
  0x83   : > { %1969 = vmatpush.bf16.msra.mxu2 %v2973_v10  ;;  %1920 = vmatpush.bf16.msra.mxu1 %v2965_v19  ;;  %v2548_v10 = vld [vmem:[%s3232_s10 + $0x66] sm:$0xff]  ;;  %v456_v19 = vpack.c.bf16 %v2547_v9, %v2547_v9 }
  0x84   : > { %v457_v20 = vpack.c.bf16 %v2548_v10, %v2548_v10  ;;  %v2166_v10 = vld [vmem:[%s3184_s9] sm:$0xff] }
  0x85   : > { %2018 = vmatpush.bf16.msra.mxu3 %v2981_v11  ;;  %2067 = vmatpush.bf16.msra.mxu0 %v2989_v24  ;;  %v2564_v11 = vld [vmem:[%s3232_s10 + $0x6f] sm:$0xff]  ;;  %v523_v24 = vpack.c.bf16 %v507_v13, %v507_v13  ;;  %vm2182_vm0 = vcmp.gt.f32.partialorder %v2166_v10, 0.5 }
  0x86   : > { %v490_v22 = vpack.c.bf16 %v2564_v11, %v2564_v11 }
  0x87   : > { %1970 = vmatpush.bf16.msra.mxu2 %v2972_v42  ;;  %1921 = vmatpush.bf16.msra.mxu1 %v2964_v51 }
  0x89   : > { %2019 = vmatpush.bf16.msra.mxu3 %v2980_v43  ;;  %2068 = vmatpush.bf16.msra.mxu0 %v2988_v56  ;;  %v2567_v43 = vld [vmem:[%s3232_s10 + $0x1] sm:$0xff]  ;;  %v578_v56 = vpack.c.bf16 %v2585_v46, %v2585_v46 }
  0x8a   : > { %1736 = vmatmul.bf16.gmra.mxu1 %v743_v1  ;;  %1785 = vmatmul.bf16.gmra.mxu2 %v791_v2  ;;  %v745_v1 = vpack.c.b16 %v734_v58, %v733_v57  ;;  %v793_v2 = vpack.c.b16 %v782_v60, %v781_v59  ;;  %v737_v57 = vunpack.c.l.b16 %v420_v47  ;;  %v738_v58 = vunpack.c.l.b16 %v421_v48  ;;  %v2601_v47 = vld [vmem:[%s3232_s10 + $0x13] sm:$0xff]  ;;  %v2602_v48 = vld [vmem:[%s3232_s10 + $0x1b] sm:$0xff] }
  0x8b   : > { %v785_v59 = vunpack.c.l.b16 %v454_v49  ;;  %v786_v60 = vunpack.c.l.b16 %v455_v50  ;;  %v2618_v49 = vld [vmem:[%s3232_s10 + $0x14] sm:$0xff]  ;;  %v2619_v50 = vld [vmem:[%s3232_s10 + $0x1c] sm:$0xff] }
  0x8c   : > { %1834 = vmatmul.bf16.gmra.mxu3 %v839_v3  ;;  %1883 = vmatmul.bf16.gmra.mxu0 %v887_v4  ;;  %v841_v3 = vpack.c.b16 %v830_v62, %v829_v61  ;;  %v889_v4 = vpack.c.b16 %v878_v0, %v877_v63  ;;  %v833_v61 = vunpack.c.l.b16 %v488_v52  ;;  %v834_v62 = vunpack.c.l.b16 %v489_v53 }
  0x8d   : > { %v881_v63 = vunpack.c.l.b16 %v521_v54  ;;  %v882_v0 = vunpack.c.l.b16 %v522_v55  ;;  %v543_v53 = vpack.c.bf16 %v2567_v43, %v2567_v43  ;;  %v544_v54 = vpack.c.bf16 %v2568_v44, %v2568_v44 }
  0x8e   : > { %v577_v55 = vpack.c.bf16 %v2584_v45, %v2584_v45 }
  0x8f   : > { %v891_v5 = vpack.c.b16 %v882_v0, %v881_v63  ;;  %v3110_v63 = vmov 0   ;;  %v917_v0 = vunpack.c.l.b16 %v543_v53 }
  0x90   : > { %3064 = vset.pattern.permute.xlu0 %v3110_v63  ;;  %3065 = vset.pattern.permute.xlu1 %v3110_v63 }
  0x91   : > { %3066 = vset.pattern.permute.xlu2 %v3110_v63 }
  0x9a   : > { %1741 = vmatmul.bf16.gmra.mxu1 %v744_v33  ;;  %1790 = vmatmul.bf16.gmra.mxu2 %v792_v34  ;;  %v746_v33 = vpack.c.b16 %v736_v26, %v735_v25  ;;  %v794_v34 = vpack.c.b16 %v784_v28, %v783_v27  ;;  %v524_v25 = vpack.c.bf16 %v508_v14, %v508_v14  ;;  %v739_v27 = vunpack.c.l.b16 %v422_v17 }
  0x9b   : > { %v740_v28 = vunpack.c.l.b16 %v423_v18  ;;  %v2198_v17 = vsel %vm2182_vm0, 1, %v3110_v63 }
  0x9c   : > { %1839 = vmatmul.bf16.gmra.mxu3 %v840_v35  ;;  %1888 = vmatmul.bf16.gmra.mxu0 %v888_v36  ;;  %v842_v35 = vpack.c.b16 %v832_v30, %v831_v29  ;;  %v890_v36 = vpack.c.b16 %v880_v32, %v879_v31  ;;  %v787_v29 = vunpack.c.l.b16 %v456_v19  ;;  %v788_v30 = vunpack.c.l.b16 %v457_v20 }
  0x9d   : > { %v835_v31 = vunpack.c.l.b16 %v490_v22  ;;  %v836_v32 = vunpack.c.l.b16 %v491_v23  ;;  %v748_v37 = vpack.c.b16 %v740_v28, %v739_v27  ;;  %2215 = vperm.xlu0 %3064, %v2198_v17   ;;  %v2586_v27 = vld [vmem:[%s3232_s10 + $0x22] sm:$0xff]  ;;  %v2587_v28 = vld [vmem:[%s3232_s10 + $0x2a] sm:$0xff] }
  0x9e   : > { %v796_v38 = vpack.c.b16 %v788_v30, %v787_v29  ;;  %v2603_v29 = vld [vmem:[%s3232_s10 + $0x23] sm:$0xff]  ;;  %v2604_v30 = vld [vmem:[%s3232_s10 + $0x2b] sm:$0xff]  ;;  %v580_v43 = vpack.c.bf16 %v2587_v28, %v2587_v28  ;;  %v2605_v28 = vld [vmem:[%s3232_s10 + $0x33] sm:$0xff] }
  0x9f   : > { %v844_v40 = vpack.c.b16 %v836_v32, %v835_v31  ;;  %v2620_v31 = vld [vmem:[%s3232_s10 + $0x24] sm:$0xff]  ;;  %v2621_v32 = vld [vmem:[%s3232_s10 + $0x2c] sm:$0xff]  ;;  %v613_v46 = vpack.c.bf16 %v2603_v29, %v2603_v29  ;;  %v2606_v29 = vld [vmem:[%s3232_s10 + $0x3b] sm:$0xff] }
  0xaa   : > { %1746 = vmatmul.bf16.gmra.mxu1 %v745_v1  ;;  %1795 = vmatmul.bf16.gmra.mxu2 %v793_v2  ;;  %v747_v1 = vpack.c.b16 %v738_v58, %v737_v57  ;;  %v795_v2 = vpack.c.b16 %v786_v60, %v785_v59  ;;  %v611_v58 = vpack.c.bf16 %v2601_v47, %v2601_v47 }
  0xab   : > { %v612_v59 = vpack.c.bf16 %v2602_v48, %v2602_v48  ;;  %v645_v60 = vpack.c.bf16 %v2618_v49, %v2618_v49  ;;  %v614_v47 = vpack.c.bf16 %v2604_v30, %v2604_v30  ;;  %v647_v48 = vpack.c.bf16 %v2620_v31, %v2620_v31  ;;  %v2622_v30 = vld [vmem:[%s3232_s10 + $0x34] sm:$0xff]  ;;  %v2623_v31 = vld [vmem:[%s3232_s10 + $0x3c] sm:$0xff] }
  0xac   : > { %1844 = vmatmul.bf16.gmra.mxu3 %v841_v3  ;;  %1893 = vmatmul.bf16.gmra.mxu0 %v889_v4  ;;  %v843_v4 = vpack.c.b16 %v834_v62, %v833_v61  ;;  %v646_v61 = vpack.c.bf16 %v2619_v50, %v2619_v50  ;;  %v648_v49 = vpack.c.bf16 %v2621_v32, %v2621_v32  ;;  %v2169_v32 = vld [vmem:[%s3184_s9 + $0x18] sm:$0xff] }
  0xad   : > { %v1014_v7 = vunpack.c.l.b16 %v612_v59  ;;  %v1061_v8 = vunpack.c.l.b16 %v645_v60  ;;  %v968_v59 = vunpack.c.l.b16 %v580_v43  ;;  %vm2185_vm3 = vcmp.gt.f32.partialorder %v2169_v32, 0.5 }
  0xae   : > { %v1062_v9 = vunpack.c.l.b16 %v646_v61  ;;  %v1015_v61 = vunpack.c.l.b16 %v613_v46  ;;  %v649_v46 = vpack.c.bf16 %v2622_v30, %v2622_v30 }
  0xb0   : > { %v1077_v20 = vpack.c.b16 %v1062_v9, %v1061_v8 }
  0xba   : > { %1751 = vmatmul.bf16.gmra.mxu1 %v746_v33  ;;  %1800 = vmatmul.bf16.gmra.mxu2 %v794_v34  ;;  %v883_v33 = vunpack.c.l.b16 %v523_v24  ;;  %v884_v34 = vunpack.c.l.b16 %v524_v25  ;;  %v2569_v24 = vld [vmem:[%s3232_s10 + $0x11] sm:$0xff]  ;;  %v2570_v25 = vld [vmem:[%s3232_s10 + $0x19] sm:$0xff] }
  0xbc   : > { %1849 = vmatmul.bf16.gmra.mxu3 %v842_v35  ;;  %1898 = vmatmul.bf16.gmra.mxu0 %v890_v36  ;;  %v892_v41 = vpack.c.b16 %v884_v34, %v883_v33  ;;  %v2167_v33 = vld [vmem:[%s3184_s9 + $0x8] sm:$0xff] }
  0xbd   : > { %vm2183_vm1 = vcmp.gt.f32.partialorder %v2167_v33, 0.5 }
  0xbe   : > { %v2199_v44 = vsel %vm2183_vm1, 1, %v3110_v63 }
  0xbf   : > { %2218 = vperm.xlu0 %3064, %v2199_v44   ;;  %v615_v44 = vpack.c.bf16 %v2605_v28, %v2605_v28  ;;  %v2625_v28 = vld [vmem:[%s3232_s10 + $0x4c] sm:$0xff] }
  0xc7   : > { %v3507_v3 = vpop.f32.mrf.mxu1 }
  0xc9   : > { %v3509_v6 = vpop.f32.mrf.mxu0 }
  0xca   : > { %1756 = vmatmul.bf16.gmra.mxu1 %v747_v1  ;;  %1805 = vmatmul.bf16.gmra.mxu2 %v795_v2  ;;  %v918_v1 = vunpack.c.l.b16 %v544_v54  ;;  %v965_v2 = vunpack.c.l.b16 %v577_v55 }
  0xcc   : > { %1854 = vmatmul.bf16.gmra.mxu3 %v843_v4  ;;  %1903 = vmatmul.bf16.gmra.mxu0 %v891_v5  ;;  %v966_v4 = vunpack.c.l.b16 %v578_v56  ;;  %v1013_v5 = vunpack.c.l.b16 %v611_v58  ;;  %v933_v13 = vpack.c.b16 %v918_v1, %v917_v0  ;;  %v1016_v0 = vunpack.c.l.b16 %v614_v47 }
  0xcd   : > { %v3519_v15 = vpop.f32.mrf.mxu2  ;;  %v1063_v1 = vunpack.c.l.b16 %v647_v48  ;;  %v650_v47 = vpack.c.bf16 %v2623_v31, %v2623_v31 }
  0xce   : > { %v981_v14 = vpack.c.b16 %v966_v4, %v965_v2  ;;  %v1029_v19 = vpack.c.b16 %v1014_v7, %v1013_v5  ;;  %v1064_v2 = vunpack.c.l.b16 %v648_v49  ;;  %v2168_v4 = vld [vmem:[%s3184_s9 + $0x10] sm:$0xff] }
  0xcf   : > { %v3521_v16 = vpop.f32.mrf.mxu3  ;;  %v3523_v21 = vpop.f32.mrf.mxu1  ;;  %vm2184_vm2 = vcmp.gt.f32.partialorder %v2168_v4, 0.5 }
  0xd0   : > { %v2200_v10 = vsel %vm2184_vm2, 1, %v3110_v63  ;;  %v1078_v17 = vpack.c.b16 %v1064_v2, %v1063_v1  ;;  %v1066_v1 = vunpack.c.l.b16 %v650_v47 }
  0xd1   : > { %v3525_v26 = vpop.f32.mrf.mxu0  ;;  %2221 = vperm.xlu1 %3065, %v2200_v10  }
  0xd5   : > { %v3527_v35 = vpop.f32.mrf.mxu2 }
  0xd7   : > { %v3529_v36 = vpop.f32.mrf.mxu3  ;;  %v3531_v39 = vpop.f32.mrf.mxu1 }
  0xd9   : > { %v3533_v42 = vpop.f32.mrf.mxu0 }
  0xda   : > { %1761 = vmatmul.bf16.gmra.mxu1 %v748_v37  ;;  %1810 = vmatmul.bf16.gmra.mxu2 %v796_v38  ;;  %v545_v37 = vpack.c.bf16 %v2569_v24, %v2569_v24  ;;  %v546_v38 = vpack.c.bf16 %v2570_v25, %v2570_v25  ;;  %v2588_v24 = vld [vmem:[%s3232_s10 + $0x32] sm:$0xff] }
  0xdc   : > { %1859 = vmatmul.bf16.gmra.mxu3 %v844_v40  ;;  %1908 = vmatmul.bf16.gmra.mxu0 %v892_v41  ;;  %v579_v41 = vpack.c.bf16 %v2586_v27, %v2586_v27  ;;  %v919_v55 = vunpack.c.l.b16 %v545_v37  ;;  %v920_v56 = vunpack.c.l.b16 %v546_v38  ;;  %v2589_v27 = vld [vmem:[%s3232_s10 + $0x3a] sm:$0xff] }
  0xdd   : > { %v3543_v51 = vpop.f32.mrf.mxu2 }
  0xde   : > { %v967_v58 = vunpack.c.l.b16 %v579_v41  ;;  %v2201_v41 = vsel %vm2185_vm3, 1, %v3110_v63 }
  0xdf   : > { %v3545_v52 = vpop.f32.mrf.mxu3  ;;  %v3547_v57 = vpop.f32.mrf.mxu1  ;;  %2224 = vperm.xlu1 %3065, %v2201_v41  }
  0xe0   : > { %v982_v9 = vpack.c.b16 %v968_v59, %v967_v58  ;;  %v1017_v59 = vunpack.c.l.b16 %v615_v44 }
  0xe1   : > { %v3549_v62 = vpop.f32.mrf.mxu0 }
  0xe5   : > { %v3555_v11 = vpop.f32.mrf.mxu2 }
  0xe7   : > { %v3557_v12 = vpop.f32.mrf.mxu3  ;;  %v1727_v18 = vpop.f32.mrf.mxu1 }
  0xe8   : > { %v1728_v22 = vadd.f32 %v1727_v18, %v3509_v6 }
  0xe9   : > { %v1874_v23 = vpop.f32.mrf.mxu0 }
  0xea   : > { %1922 = vmatmul.bf16.vlgmr.msra.gmra.mxu1 %v933_v13  ;;  %1971 = vmatmul.bf16.vlgmr.msra.gmra.mxu2 %v981_v14  ;;  %v1030_v14 = vpack.c.b16 %v1016_v0, %v1015_v61  ;;  %v1065_v0 = vunpack.c.l.b16 %v649_v46 }
  0xec   : > { %2020 = vmatmul.bf16.vlgmr.msra.gmra.mxu3 %v1029_v19  ;;  %2069 = vmatmul.bf16.vlgmr.msra.gmra.mxu0 %v1077_v20 }
  0xed   : > { %v1776_v34 = vpop.f32.mrf.mxu2 }
  0xee   : > { %v1777_v40 = vadd.f32 %v1776_v34, %v1728_v22  ;;  %v2571_v22 = vld [vmem:[%s3232_s10 + $0x21] sm:$0xff] }
  0xef   : > { %v1825_v6 = vpop.f32.mrf.mxu3  ;;  %v1729_v45 = vpop.f32.mrf.mxu1  ;;  %v547_v34 = vpack.c.bf16 %v2571_v22, %v2571_v22  ;;  %v2591_v22 = vld [vmem:[%s3232_s10 + $0x4a] sm:$0xff] }
  0xf0   : > { %v1826_v50 = vadd.f32 %v1825_v6, %v1777_v40  ;;  %v1730_v53 = vadd.f32 %v1729_v45, %v3525_v26  ;;  %v934_v26 = vpack.c.b16 %v920_v56, %v919_v55  ;;  %v581_v40 = vpack.c.bf16 %v2588_v24, %v2588_v24  ;;  %v2608_v24 = vld [vmem:[%s3232_s10 + $0x4b] sm:$0xff] }
  0xf1   : > { %v1876_v54 = vpop.f32.mrf.mxu0  ;;  %v582_v6 = vpack.c.bf16 %v2589_v27, %v2589_v27  ;;  %v616_v45 = vpack.c.bf16 %v2606_v29, %v2606_v29  ;;  %v2624_v27 = vld [vmem:[%s3232_s10 + $0x44] sm:$0xff] }
  0xf2   : > { %v3572_v60 = vadd.f32 %v1874_v23, %v1826_v50  ;;  %v2572_v23 = vld [vmem:[%s3232_s10 + $0x29] sm:$0xff]  ;;  %v969_v55 = vunpack.c.l.b16 %v581_v40  ;;  %v651_v40 = vpack.c.bf16 %v2624_v27, %v2624_v27  ;;  %v2170_v27 = vld [vmem:[%s3184_s9 + $0x20] sm:$0xff] }
  0xf3   : > { %v548_v37 = vpack.c.bf16 %v2572_v23, %v2572_v23  ;;  %v970_v56 = vunpack.c.l.b16 %v582_v6  ;;  %v1018_v61 = vunpack.c.l.b16 %v616_v45  ;;  %v2607_v23 = vld [vmem:[%s3232_s10 + $0x43] sm:$0xff]  ;;  %v652_v6 = vpack.c.bf16 %v2625_v28, %v2625_v28  ;;  %v2173_v28 = vld [vmem:[%s3184_s9 + $0x38] sm:$0xff] }
  0xf4   : > { %vm2186_vm5 = vcmp.gt.f32.partialorder %v2170_v27, 0.5  ;;  %vm2189_vm6 = vcmp.gt.f32.partialorder %v2173_v28, 0.5  ;;  %v2629_v27 = vld [vmem:[%s3232_s10 + $0x6c] sm:$0xff]  ;;  %v2178_v28 = vld [vmem:[%s3184_s9 + $0x60] sm:$0xff] }
  0xf5   : > { %v1778_v5 = vpop.f32.mrf.mxu2  ;;  %vm2194_vm9 = vcmp.gt.f32.partialorder %v2178_v28, 0.5 }
  0xf6   : > { %v1779_v7 = vadd.f32 %v1778_v5, %v1730_v53  ;;  %v921_v53 = vunpack.c.l.b16 %v547_v34  ;;  %v584_v34 = vpack.c.bf16 %v2591_v22, %v2591_v22  ;;  %v2626_v22 = vld [vmem:[%s3232_s10 + $0x54] sm:$0xff] }
  0xf7   : > { %v1827_v8 = vpop.f32.mrf.mxu3  ;;  %v1732_v13 = vpop.f32.mrf.mxu1 }
  0xf8   : > { %v1828_v18 = vadd.f32 %v1827_v8, %v1779_v7  ;;  %v1733_v19 = vadd.f32 %v1732_v13, %v3533_v42 }
  0xf9   : > { %v1879_v20 = vpop.f32.mrf.mxu0 }
  0xfa   : > { %1927 = vmatmul.bf16.gmra.mxu1 %v934_v26  ;;  %1976 = vmatmul.bf16.gmra.mxu2 %v982_v9  ;;  %v3580_v25 = vadd.f32 %v1876_v54, %v1828_v18  ;;  %v922_v54 = vunpack.c.l.b16 %v548_v37  ;;  %v1031_v26 = vpack.c.b16 %v1018_v61, %v1017_v59  ;;  %v1079_v9 = vpack.c.b16 %v1066_v1, %v1065_v0  ;;  %v2574_v18 = vld [vmem:[%s3232_s10 + $0x39] sm:$0xff] }
  0xfc   : > { %2025 = vmatmul.bf16.gmra.mxu3 %v1030_v14  ;;  %2074 = vmatmul.bf16.gmra.mxu0 %v1078_v17  ;;  %v935_v7 = vpack.c.b16 %v922_v54, %v921_v53  ;;  %v2573_v17 = vld [vmem:[%s3232_s10 + $0x31] sm:$0xff]  ;;  %v1067_v54 = vunpack.c.l.b16 %v651_v40  ;;  %v653_v40 = vpack.c.bf16 %v2626_v22, %v2626_v22  ;;  %v2611_v22 = vld [vmem:[%s3232_s10 + $0x63] sm:$0xff] }
  0xfd   : > { %v1781_v33 = vpop.f32.mrf.mxu2  ;;  %v549_v30 = vpack.c.bf16 %v2573_v17, %v2573_v17 }
  0xfe   : > { %v1782_v42 = vadd.f32 %v1781_v33, %v1733_v19 }
  0xff   : > { %v1830_v38 = vpop.f32.mrf.mxu3  ;;  %v1734_v43 = vpop.f32.mrf.mxu1  ;;  %v923_v45 = vunpack.c.l.b16 %v549_v30 }
 0x100   : > { %v1831_v48 = vadd.f32 %v1830_v38, %v1782_v42  ;;  %v1735_v49 = vadd.f32 %v1734_v43, %v3549_v62  ;;  %v983_v62 = vpack.c.b16 %v970_v56, %v969_v55  ;;  %v617_v42 = vpack.c.bf16 %v2607_v23, %v2607_v23  ;;  %v2172_v56 = vld [vmem:[%s3184_s9 + $0x30] sm:$0xff] }
 0x101   : > { %v1881_v50 = vpop.f32.mrf.mxu0  ;;  %v618_v38 = vpack.c.bf16 %v2608_v24, %v2608_v24  ;;  %v1068_v55 = vunpack.c.l.b16 %v652_v6  ;;  %vm2188_vm4 = vcmp.gt.f32.partialorder %v2172_v56, 0.5 }
 0x102   : > { %v3590_v58 = vadd.f32 %v1879_v20, %v1831_v48  ;;  %v2590_v20 = vld [vmem:[%s3232_s10 + $0x42] sm:$0xff]  ;;  %v972_v48 = vunpack.c.l.b16 %v584_v34  ;;  %v2202_v34 = vsel %vm2186_vm5, 1, %v3110_v63 }
 0x103   : > { %v583_v33 = vpack.c.bf16 %v2590_v20, %v2590_v20  ;;  %v1020_v53 = vunpack.c.l.b16 %v618_v38  ;;  %v2610_v20 = vld [vmem:[%s3232_s10 + $0x5b] sm:$0xff]  ;;  %2227 = vperm.xlu2 %3066, %v2202_v34  }
 0x104   : > { %v620_v38 = vpack.c.bf16 %v2610_v20, %v2610_v20  ;;  %v2595_v20 = vld [vmem:[%s3232_s10 + $0x6a] sm:$0xff] }
 0x105   : > { %v1783_v2 = vpop.f32.mrf.mxu2  ;;  %v971_v47 = vunpack.c.l.b16 %v583_v33  ;;  %v588_v34 = vpack.c.bf16 %v2595_v20, %v2595_v20  ;;  %v2597_v20 = vld [vmem:[%s3232_s10 + $0x7a] sm:$0xff] }
 0x106   : > { %v1784_v4 = vadd.f32 %v1783_v2, %v1735_v49  ;;  %v2204_v2 = vsel %vm2188_vm4, 1, %v3110_v63 }
 0x107   : > { %v1832_v5 = vpop.f32.mrf.mxu3  ;;  %v1737_v8 = vpop.f32.mrf.mxu1  ;;  %v984_v1 = vpack.c.b16 %v972_v48, %v971_v47  ;;  %2233 = vperm.xlu0 %3064, %v2204_v2  }
 0x108   : > { %v1833_v10 = vadd.f32 %v1832_v5, %v1784_v4  ;;  %v1738_v13 = vadd.f32 %v1737_v8, %v3507_v3  ;;  %v550_v3 = vpack.c.bf16 %v2574_v18, %v2574_v18  ;;  %v2609_v18 = vld [vmem:[%s3232_s10 + $0x53] sm:$0xff] }
 0x109   : > { %v1884_v14 = vpop.f32.mrf.mxu0  ;;  %v619_v33 = vpack.c.bf16 %v2609_v18, %v2609_v18 }
 0x10a   : > { %1932 = vmatmul.bf16.gmra.mxu1 %v935_v7  ;;  %1981 = vmatmul.bf16.gmra.mxu2 %v983_v62  ;;  %v3595_v19 = vadd.f32 %v1881_v50, %v1833_v10  ;;  %v924_v46 = vunpack.c.l.b16 %v550_v3  ;;  %v1019_v50 = vunpack.c.l.b16 %v617_v42  ;;  %v1080_v7 = vpack.c.b16 %v1068_v55, %v1067_v54  ;;  %v2576_v10 = vld [vmem:[%s3232_s10 + $0x49] sm:$0xff] }
 0x10b   : > { %v552_v24 = vpack.c.bf16 %v2576_v10, %v2576_v10  ;;  %v1022_v54 = vunpack.c.l.b16 %v620_v38  ;;  %v1069_v55 = vunpack.c.l.b16 %v653_v40  ;;  %v2577_v10 = vld [vmem:[%s3232_s10 + $0x51] sm:$0xff]  ;;  %v621_v38 = vpack.c.bf16 %v2611_v22, %v2611_v22 }
 0x10c   : > { %2030 = vmatmul.bf16.gmra.mxu3 %v1031_v26  ;;  %2079 = vmatmul.bf16.gmra.mxu0 %v1079_v9  ;;  %v1032_v5 = vpack.c.b16 %v1020_v53, %v1019_v50  ;;  %v2575_v9 = vld [vmem:[%s3232_s10 + $0x41] sm:$0xff]  ;;  %v1021_v53 = vunpack.c.l.b16 %v619_v33 }
 0x10d   : > { %v1786_v29 = vpop.f32.mrf.mxu2  ;;  %v551_v23 = vpack.c.bf16 %v2575_v9, %v2575_v9 }
 0x10e   : > { %v1787_v31 = vadd.f32 %v1786_v29, %v1738_v13  ;;  %v2592_v13 = vld [vmem:[%s3232_s10 + $0x52] sm:$0xff] }
 0x10f   : > { %v1835_v32 = vpop.f32.mrf.mxu3  ;;  %v1739_v37 = vpop.f32.mrf.mxu1  ;;  %v585_v30 = vpack.c.bf16 %v2592_v13, %v2592_v13  ;;  %v2578_v13 = vld [vmem:[%s3232_s10 + $0x59] sm:$0xff] }
 0x110   : > { %v1836_v41 = vadd.f32 %v1835_v32, %v1787_v31  ;;  %v1740_v43 = vadd.f32 %v1739_v37, %v3523_v21  ;;  %v936_v21 = vpack.c.b16 %v924_v46, %v923_v45  ;;  %v2205_v37 = vsel %vm2189_vm6, 1, %v3110_v63 }
 0x111   : > { %v1886_v44 = vpop.f32.mrf.mxu0  ;;  %2236 = vperm.xlu1 %3065, %v2205_v37   ;;  %v925_v45 = vunpack.c.l.b16 %v551_v23  ;;  %v926_v46 = vunpack.c.l.b16 %v552_v24  ;;  %v973_v47 = vunpack.c.l.b16 %v585_v30  ;;  %v2612_v23 = vld [vmem:[%s3232_s10 + $0x6b] sm:$0xff]  ;;  %v553_v30 = vpack.c.bf16 %v2577_v10, %v2577_v10  ;;  %v2579_v10 = vld [vmem:[%s3232_s10 + $0x61] sm:$0xff] }
 0x112   : > { %v3604_v49 = vadd.f32 %v1884_v14, %v1836_v41  ;;  %v2593_v14 = vld [vmem:[%s3232_s10 + $0x5a] sm:$0xff]  ;;  %v2210_v37 = vsel %vm2194_vm9, 1, %v3110_v63  ;;  %v622_v40 = vpack.c.bf16 %v2612_v23, %v2612_v23  ;;  %v555_v28 = vpack.c.bf16 %v2579_v10, %v2579_v10  ;;  %v2598_v10 = vld [vmem:[%s3232_s10 + $0x82] sm:$0xff] }
 0x113   : > { %v586_v31 = vpack.c.bf16 %v2593_v14, %v2593_v14  ;;  %v2594_v14 = vld [vmem:[%s3232_s10 + $0x62] sm:$0xff]  ;;  %v2613_v23 = vld [vmem:[%s3232_s10 + $0x73] sm:$0xff] }
 0x114   : > { %v587_v33 = vpack.c.bf16 %v2594_v14, %v2594_v14  ;;  %v2596_v14 = vld [vmem:[%s3232_s10 + $0x72] sm:$0xff] }
 0x115   : > { %v1788_v59 = vpop.f32.mrf.mxu2  ;;  %v974_v48 = vunpack.c.l.b16 %v586_v31  ;;  %v554_v31 = vpack.c.bf16 %v2578_v13, %v2578_v13  ;;  %v2580_v13 = vld [vmem:[%s3232_s10 + $0x69] sm:$0xff] }
 0x116   : > { %v1789_v61 = vadd.f32 %v1788_v59, %v1740_v43  ;;  %v2171_v59 = vld [vmem:[%s3184_s9 + $0x28] sm:$0xff] }
 0x117   : > { %v1837_v0 = vpop.f32.mrf.mxu3  ;;  %v1742_v4 = vpop.f32.mrf.mxu1  ;;  %vm2187_vm7 = vcmp.gt.f32.partialorder %v2171_v59, 0.5  ;;  %v985_v2 = vpack.c.b16 %v974_v48, %v973_v47  ;;  %v976_v47 = vunpack.c.l.b16 %v588_v34  ;;  %v590_v34 = vpack.c.bf16 %v2597_v20, %v2597_v20  ;;  %v2615_v20 = vld [vmem:[%s3232_s10 + $0x83] sm:$0xff] }
 0x118   : > { %v1838_v62 = vadd.f32 %v1837_v0, %v1789_v61  ;;  %v1743_v8 = vadd.f32 %v1742_v4, %v3531_v39  ;;  %v2627_v39 = vld [vmem:[%s3232_s10 + $0x5c] sm:$0xff]  ;;  %v2175_v61 = vld [vmem:[%s3184_s9 + $0x48] sm:$0xff]  ;;  %v2203_v4 = vsel %vm2187_vm7, 1, %v3110_v63 }
 0x119   : > { %v1889_v26 = vpop.f32.mrf.mxu0  ;;  %v654_v6 = vpack.c.bf16 %v2627_v39, %v2627_v39  ;;  %vm2191_vm8 = vcmp.gt.f32.partialorder %v2175_v61, 0.5  ;;  %2230 = vperm.xlu2 %3066, %v2203_v4   ;;  %v2628_v39 = vld [vmem:[%s3232_s10 + $0x64] sm:$0xff]  ;;  %v2176_v61 = vld [vmem:[%s3184_s9 + $0x50] sm:$0xff] }
 0x11a   : > { %1937 = vmatmul.bf16.gmra.mxu1 %v936_v21  ;;  %1986 = vmatmul.bf16.gmra.mxu2 %v984_v1  ;;  %v3613_v17 = vadd.f32 %v1886_v44, %v1838_v62  ;;  %v937_v21 = vpack.c.b16 %v926_v46, %v925_v45  ;;  %v1033_v62 = vpack.c.b16 %v1022_v54, %v1021_v53  ;;  %v928_v45 = vunpack.c.l.b16 %v554_v31  ;;  %v2174_v31 = vld [vmem:[%s3184_s9 + $0x40] sm:$0xff] }
 0x11b   : > { %v1070_v56 = vunpack.c.l.b16 %v654_v6  ;;  %v655_v6 = vpack.c.bf16 %v2628_v39, %v2628_v39  ;;  %v975_v46 = vunpack.c.l.b16 %v587_v33  ;;  %v1023_v53 = vunpack.c.l.b16 %v621_v38  ;;  %v2630_v39 = vld [vmem:[%s3232_s10 + $0x74] sm:$0xff] }
 0x11c   : > { %2035 = vmatmul.bf16.gmra.mxu3 %v1032_v5  ;;  %2084 = vmatmul.bf16.gmra.mxu0 %v1080_v7  ;;  %v2207_v5 = vsel %vm2191_vm8, 1, %v3110_v63  ;;  %v1024_v54 = vunpack.c.l.b16 %v622_v40  ;;  %vm2192_vm10 = vcmp.gt.f32.partialorder %v2176_v61, 0.5  ;;  %v589_v33 = vpack.c.bf16 %v2596_v14, %v2596_v14  ;;  %v2599_v14 = vld [vmem:[%s3232_s10 + $0x8a] sm:$0xff] }
 0x11d   : > { %v1791_v29 = vpop.f32.mrf.mxu2  ;;  %2242 = vperm.xlu0 %3064, %v2207_v5   ;;  %v986_v4 = vpack.c.b16 %v976_v47, %v975_v46  ;;  %v2208_v5 = vsel %vm2192_vm10, 1, %v3110_v63  ;;  %vm2190_vm12 = vcmp.gt.f32.partialorder %v2174_v31, 0.5  ;;  %v623_v38 = vpack.c.bf16 %v2613_v23, %v2613_v23  ;;  %v2616_v23 = vld [vmem:[%s3232_s10 + $0x8b] sm:$0xff] }
 0x11e   : > { %v1792_v32 = vadd.f32 %v1791_v29, %v1743_v8  ;;  %v1081_v8 = vpack.c.b16 %v1070_v56, %v1069_v55  ;;  %v1071_v55 = vunpack.c.l.b16 %v655_v6  ;;  %2245 = vperm.xlu1 %3065, %v2208_v5   ;;  %v2206_v40 = vsel %vm2190_vm12, 1, %v3110_v63 }
 0x11f   : > { %v1840_v3 = vpop.f32.mrf.mxu3  ;;  %v1744_v42 = vpop.f32.mrf.mxu1  ;;  %v929_v46 = vunpack.c.l.b16 %v555_v28  ;;  %v2177_v28 = vld [vmem:[%s3184_s9 + $0x58] sm:$0xff] }
 0x120   : > { %v1841_v41 = vadd.f32 %v1840_v3, %v1792_v32  ;;  %v1745_v43 = vadd.f32 %v1744_v42, %v3547_v57  ;;  %vm2193_vm14 = vcmp.gt.f32.partialorder %v2177_v28, 0.5 }
 0x121   : > { %v1891_v44 = vpop.f32.mrf.mxu0  ;;  %2239 = vperm.xlu2 %3066, %v2206_v40   ;;  %v626_v40 = vpack.c.bf16 %v2616_v23, %v2616_v23 }
 0x122   : > { %v3624_v50 = vadd.f32 %v1889_v26, %v1841_v41 }
 0x125   : > { %v1793_v0 = vpop.f32.mrf.mxu2  ;;  %2251 = vperm.xlu0 %3064, %v2210_v37  }
 0x126   : > { %v1794_v57 = vadd.f32 %v1793_v0, %v1745_v43  ;;  %v2181_v0 = vld [vmem:[%s3184_s9 + $0x78] sm:$0xff] }
 0x127   : > { %v1842_v1 = vpop.f32.mrf.mxu3  ;;  %v1747_v7 = vpop.f32.mrf.mxu1  ;;  %vm2197_vm11 = vcmp.gt.f32.partialorder %v2181_v0, 0.5 }
 0x128   : > { %v1843_v26 = vadd.f32 %v1842_v1, %v1794_v57  ;;  %v1748_v24 = vadd.f32 %v1747_v7, %v3519_v15  ;;  %v656_v15 = vpack.c.bf16 %v2629_v27, %v2629_v27  ;;  %v2213_v7 = vsel %vm2197_vm11, 1, %v3110_v63 }
 0x129   : > { %v1894_v9 = vpop.f32.mrf.mxu0 }
 0x12a   : > { %1942 = vmatmul.bf16.gmra.mxu1 %v937_v21  ;;  %1991 = vmatmul.bf16.gmra.mxu2 %v985_v2  ;;  %v3633_v18 = vadd.f32 %v1891_v44, %v1843_v26  ;;  %v927_v44 = vunpack.c.l.b16 %v553_v30  ;;  %v1072_v56 = vunpack.c.l.b16 %v656_v15  ;;  %v2631_v30 = vld [vmem:[%s3232_s10 + $0x7c] sm:$0xff] }
 0x12c   : > { %2040 = vmatmul.bf16.gmra.mxu3 %v1033_v62  ;;  %2089 = vmatmul.bf16.gmra.mxu0 %v1081_v8  ;;  %v938_v57 = vpack.c.b16 %v928_v45, %v927_v44  ;;  %v1082_v8 = vpack.c.b16 %v1072_v56, %v1071_v55  ;;  %v1025_v56 = vunpack.c.l.b16 %v623_v38  ;;  %v625_v38 = vpack.c.bf16 %v2615_v20, %v2615_v20 }
 0x12d   : > { %v1796_v29 = vpop.f32.mrf.mxu2  ;;  %2260 = vperm.xlu0 %3064, %v2213_v7  }
 0x12e   : > { %v1797_v32 = vadd.f32 %v1796_v29, %v1748_v24  ;;  %v2614_v24 = vld [vmem:[%s3232_s10 + $0x7b] sm:$0xff]  ;;  %v556_v29 = vpack.c.bf16 %v2580_v13, %v2580_v13 }
 0x12f   : > { %v1845_v3 = vpop.f32.mrf.mxu3  ;;  %v1749_v42 = vpop.f32.mrf.mxu1 }
 0x130   : > { %v1846_v41 = vadd.f32 %v1845_v3, %v1797_v32  ;;  %v1750_v59 = vadd.f32 %v1749_v42, %v3527_v35  ;;  %v1034_v35 = vpack.c.b16 %v1024_v54, %v1023_v53  ;;  %v2179_v32 = vld [vmem:[%s3184_s9 + $0x68] sm:$0xff]  ;;  %v930_v47 = vunpack.c.l.b16 %v556_v29 }
 0x131   : > { %v1896_v43 = vpop.f32.mrf.mxu0  ;;  %vm2195_vm13 = vcmp.gt.f32.partialorder %v2179_v32, 0.5  ;;  %v977_v53 = vunpack.c.l.b16 %v589_v33  ;;  %v978_v54 = vunpack.c.l.b16 %v590_v34  ;;  %v591_v33 = vpack.c.bf16 %v2598_v10, %v2598_v10 }
 0x132   : > { %v3643_v48 = vadd.f32 %v1894_v9, %v1846_v41  ;;  %v2211_v6 = vsel %vm2195_vm13, 1, %v3110_v63  ;;  %v624_v41 = vpack.c.bf16 %v2614_v24, %v2614_v24  ;;  %v592_v34 = vpack.c.bf16 %v2599_v14, %v2599_v14 }
 0x133   : > { %2254 = vperm.xlu1 %3065, %v2211_v6   ;;  %v987_v5 = vpack.c.b16 %v978_v54, %v977_v53  ;;  %v1028_v53 = vunpack.c.l.b16 %v626_v40 }
 0x135   : > { %v1798_v21 = vpop.f32.mrf.mxu2 }
 0x136   : > { %v1799_v1 = vadd.f32 %v1798_v21, %v1750_v59  ;;  %v1026_v59 = vunpack.c.l.b16 %v624_v41 }
 0x137   : > { %v1847_v2 = vpop.f32.mrf.mxu3  ;;  %v1752_v62 = vpop.f32.mrf.mxu1 }
 0x138   : > { %v1848_v26 = vadd.f32 %v1847_v2, %v1799_v1  ;;  %v1753_v27 = vadd.f32 %v1752_v62, %v3543_v51  ;;  %v657_v51 = vpack.c.bf16 %v2630_v39, %v2630_v39  ;;  %v1035_v62 = vpack.c.b16 %v1026_v59, %v1025_v56  ;;  %v2632_v39 = vld [vmem:[%s3232_s10 + $0x84] sm:$0xff] }
 0x139   : > { %v1899_v9 = vpop.f32.mrf.mxu0  ;;  %v659_v6 = vpack.c.bf16 %v2632_v39, %v2632_v39 }
 0x13a   : > { %1947 = vmatmul.bf16.gmra.mxu1 %v938_v57  ;;  %1996 = vmatmul.bf16.gmra.mxu2 %v986_v4  ;;  %v3654_v22 = vadd.f32 %v1896_v43, %v1848_v26  ;;  %v658_v43 = vpack.c.bf16 %v2631_v30, %v2631_v30  ;;  %v1073_v61 = vunpack.c.l.b16 %v657_v51  ;;  %v939_v4 = vpack.c.b16 %v930_v47, %v929_v46 }
 0x13b   : > { %v1027_v47 = vunpack.c.l.b16 %v625_v38  ;;  %v1075_v54 = vunpack.c.l.b16 %v659_v6  ;;  %v3698_v38 = vld [vmem:[%s3785_s2] ss:$0 sm:$0xff]  ;;  %v2216_v6 = vpop.permute.xlu0 %2215 }
 0x13c   : > { %2045 = vmatmul.bf16.gmra.mxu3 %v1034_v35  ;;  %2094 = vmatmul.bf16.gmra.mxu0 %v1082_v8  ;;  %v1074_v0 = vunpack.c.l.b16 %v658_v43  ;;  %vm2262_vm0 = vcmp.eq.s32.totalorder %v2216_v6, 1 }
 0x13d   : > { %v1801_v3 = vpop.f32.mrf.mxu2 }
 0x13e   : > { %v1802_v37 = vadd.f32 %v1801_v3, %v1753_v27  ;;  %v1083_v35 = vpack.c.b16 %v1074_v0, %v1073_v61  ;;  %v2633_v27 = vld [vmem:[%s3232_s10 + $0x8c] sm:$0xff] }
 0x13f   : > { %v1850_v42 = vpop.f32.mrf.mxu3  ;;  %v1754_v15 = vpop.f32.mrf.mxu1  ;;  %v2180_v61 = vld [vmem:[%s3184_s9 + $0x70] sm:$0xff] }
 0x140   : > { %v1851_v44 = vadd.f32 %v1850_v42, %v1802_v37  ;;  %v1755_v21 = vadd.f32 %v1754_v15, %v3555_v11  ;;  %v2582_v11 = vld [vmem:[%s3232_s10 + $0x79] sm:$0xff]  ;;  %v2209_v37 = vsel %vm2193_vm14, 1, %v3110_v63  ;;  %v660_v15 = vpack.c.bf16 %v2633_v27, %v2633_v27 }
 0x141   : > { %v1901_v45 = vpop.f32.mrf.mxu0  ;;  %v558_v31 = vpack.c.bf16 %v2582_v11, %v2582_v11  ;;  %2248 = vperm.xlu2 %3066, %v2209_v37   ;;  %vm2196_vm15 = vcmp.gt.f32.partialorder %v2180_v61, 0.5 }
 0x142   : > { %v3665_v55 = vadd.f32 %v1899_v9, %v1851_v44  ;;  %v2581_v9 = vld [vmem:[%s3232_s10 + $0x71] sm:$0xff]  ;;  %v979_v44 = vunpack.c.l.b16 %v591_v33  ;;  %v1076_v56 = vunpack.c.l.b16 %v660_v15  ;;  %v3703_v15 = vld [vmem:[%s3786_s3] ss:$0 sm:$0xff] }
 0x143   : > { %v557_v30 = vpack.c.bf16 %v2581_v9, %v2581_v9  ;;  %v932_v43 = vunpack.c.l.b16 %v558_v31 }
 0x145   : > { %v1803_v57 = vpop.f32.mrf.mxu2  ;;  %v931_v51 = vunpack.c.l.b16 %v557_v30 }
 0x146   : > { %v1804_v1 = vadd.f32 %v1803_v57, %v1755_v21 }
 0x147   : > { %v1852_v2 = vpop.f32.mrf.mxu3  ;;  %v1757_v7 = vpop.f32.mrf.mxu1 }
 0x148   : > { %v1853_v8 = vadd.f32 %v1852_v2, %v1804_v1  ;;  %v1758_v24 = vadd.f32 %v1757_v7, %v3521_v16  ;;  %v940_v1 = vpack.c.b16 %v932_v43, %v931_v51  ;;  %v1036_v7 = vpack.c.b16 %v1028_v53, %v1027_v47 }
 0x149   : > { %v1904_v26 = vpop.f32.mrf.mxu0 }
 0x14a   : > { %1952 = vmatmul.bf16.gmra.mxu1 %v939_v4  ;;  %2001 = vmatmul.bf16.gmra.mxu2 %v987_v5  ;;  %v3671_v13 = vadd.f32 %v1901_v45, %v1853_v8  ;;  %v980_v45 = vunpack.c.l.b16 %v592_v34  ;;  %v2212_v4 = vsel %vm2196_vm15, 1, %v3110_v63 }
 0x14b   : > { %2257 = vperm.xlu2 %3066, %v2212_v4  }
 0x14c   : > { %2050 = vmatmul.bf16.gmra.mxu3 %v1035_v62  ;;  %2099 = vmatmul.bf16.gmra.mxu0 %v1083_v35  ;;  %v988_v2 = vpack.c.b16 %v980_v45, %v979_v44  ;;  %v1084_v62 = vpack.c.b16 %v1076_v56, %v1075_v54 }
 0x14d   : > { %v1806_v29 = vpop.f32.mrf.mxu2 }
 0x14e   : > { %v1807_v32 = vadd.f32 %v1806_v29, %v1758_v24 }
 0x14f   : > { %v1855_v3 = vpop.f32.mrf.mxu3  ;;  %v1759_v42 = vpop.f32.mrf.mxu1 }
 0x150   : > { %v1856_v16 = vadd.f32 %v1855_v3, %v1807_v32  ;;  %v1760_v59 = vadd.f32 %v1759_v42, %v3529_v36 }
 0x151   : > { %v1906_v41 = vpop.f32.mrf.mxu0 }
 0x152   : > { %v3681_v46 = vadd.f32 %v1904_v26, %v1856_v16 }
 0x155   : > { %v1808_v0 = vpop.f32.mrf.mxu2 }
 0x156   : > { %v1809_v21 = vadd.f32 %v1808_v0, %v1760_v59 }
 0x157   : > { %v1857_v57 = vpop.f32.mrf.mxu3  ;;  %v1762_v5 = vpop.f32.mrf.mxu1 }
 0x158   : > { %v1858_v35 = vadd.f32 %v1857_v57, %v1809_v21  ;;  %v1763_v36 = vadd.f32 %v1762_v5, %v3545_v52  ;;  %v2219_v21 = vpop.permute.xlu0 %2218 }
 0x159   : > { %v1909_v8 = vpop.f32.mrf.mxu0  ;;  %vm2263_vm1 = vcmp.eq.s32.totalorder %v2219_v21, 1 }
 0x15a   : > { %1957 = vmatmul.bf16.gmra.mxu1 %v940_v1  ;;  %2006 = vmatmul.bf16.gmra.mxu2 %v988_v2  ;;  %v3686_v26 = vadd.f32 %v1906_v41, %v1858_v35 }
 0x15c   : > { %2055 = vmatmul.bf16.gmra.mxu3 %v1036_v7  ;;  %2104 = vmatmul.bf16.gmra.mxu0 %v1084_v62 }
 0x15d   : > { %v1811_v9 = vpop.f32.mrf.mxu2 }
 0x15e   : > { %v1812_v11 = vadd.f32 %v1811_v9, %v1763_v36  ;;  %v2222_v36 = vpop.permute.xlu1 %2221 }
 0x15f   : > { %v1860_v10 = vpop.f32.mrf.mxu3  ;;  %v1764_v14 = vpop.f32.mrf.mxu1  ;;  %vm2264_vm2 = vcmp.eq.s32.totalorder %v2222_v36, 1 }
 0x160   : > { %v1861_v20 = vadd.f32 %v1860_v10, %v1812_v11  ;;  %v1765_v24 = vadd.f32 %v1764_v14, %v3557_v12 }
 0x161   : > { %v1911_v63 = vpop.f32.mrf.mxu0 }
 0x162   : > { %v3689_v23 = vadd.f32 %v1909_v8, %v1861_v20 }
 0x165   : > { %v1813_v39 = vpop.f32.mrf.mxu2 }
 0x166   : > { %v1814_v27 = vadd.f32 %v1813_v39, %v1765_v24 }
 0x167   : > { %v1862_v28 = vpop.f32.mrf.mxu3  ;;  %v1923_v29 = vpop.f32.mrf.mxu1 }
 0x168   : > { %v1863_v30 = vadd.f32 %v1862_v28, %v1814_v27  ;;  %v1924_v52 = vadd.f32 %v1923_v29, %v3572_v60 }
 0x169   : > { %v2070_v31 = vpop.f32.mrf.mxu0 }
 0x16a   : > { %v3692_v32 = vadd.f32 %v1911_v63, %v1863_v30 }
 0x16d   : > { %v1972_v3 = vpop.f32.mrf.mxu2 }
 0x16e   : > { %v1973_v33 = vadd.f32 %v1972_v3, %v1924_v52  ;;  %v2225_v52 = vpop.permute.xlu1 %2224 }
 0x16f   : > { %v2021_v34 = vpop.f32.mrf.mxu3  ;;  %v1925_v37 = vpop.f32.mrf.mxu1  ;;  %vm2265_vm3 = vcmp.eq.s32.totalorder %v2225_v52, 1 }
 0x170   : > { %v2022_v42 = vadd.f32 %v2021_v34, %v1973_v33  ;;  %v1926_v16 = vadd.f32 %v1925_v37, %v3580_v25 }
 0x171   : > { %v2072_v12 = vpop.f32.mrf.mxu0 }
 0x172   : > { %v2071_v40 = vadd.f32 %v2070_v31, %v2022_v42 }
 0x174   : > { %v2114_v60 = vmul.f32 %v3698_v38, %v2071_v40 }
 0x175   : > { %v1974_v41 = vpop.f32.mrf.mxu2 }
 0x176   : > { %v1975_v51 = vadd.f32 %v1974_v41, %v1926_v16  ;;  %v2134_v44 = vadd.f32 %v3703_v15, %v2114_v60  ;;  %v2228_v16 = vpop.permute.xlu2 %2227 }
 0x177   : > { %v2023_v43 = vpop.f32.mrf.mxu3  ;;  %v1928_v45 = vpop.f32.mrf.mxu1  ;;  %vm2266_vm4 = vcmp.eq.s32.totalorder %v2228_v16, 1 }
 0x178   : > { %v2024_v47 = vadd.f32 %v2023_v43, %v1975_v51  ;;  %v2150_v53 = vmax.f32 %v2134_v44, 0.0  ;;  %v1929_v0 = vadd.f32 %v1928_v45, %v3590_v58 }
 0x179   : > { %v2075_v54 = vpop.f32.mrf.mxu0 }
 0x17a   : > { %v2073_v56 = vadd.f32 %v2072_v12, %v2024_v47  ;;  %v2278_v59 = vsel %vm2262_vm0, %v2150_v53, 0.0 }
 0x17b   : > { %2294 = vst [vmem:[%s3193_s15] sm:$0xff] %v2278_v59 }
 0x17c   : > { %v2115_v61 = vmul.f32 %v3698_v38, %v2073_v56 }
 0x17d   : > { %v1977_v25 = vpop.f32.mrf.mxu2 }
 0x17e   : > { %v1978_v57 = vadd.f32 %v1977_v25, %v1929_v0  ;;  %v2135_v2 = vadd.f32 %v3703_v15, %v2115_v61  ;;  %v2231_v25 = vpop.permute.xlu2 %2230 }
 0x17f   : > { %v2026_v1 = vpop.f32.mrf.mxu3  ;;  %v1930_v4 = vpop.f32.mrf.mxu1  ;;  %vm2267_vm5 = vcmp.eq.s32.totalorder %v2231_v25, 1 }
 0x180   : > { %v2027_v5 = vadd.f32 %v2026_v1, %v1978_v57  ;;  %v2151_v7 = vmax.f32 %v2135_v2, 0.0  ;;  %v1931_v58 = vadd.f32 %v1930_v4, %v3595_v19 }
 0x181   : > { %v2077_v62 = vpop.f32.mrf.mxu0 }
 0x182   : > { %v2076_v35 = vadd.f32 %v2075_v54, %v2027_v5  ;;  %v2279_v8 = vsel %vm2263_vm1, %v2151_v7, 0.0 }
 0x183   : > { %2295 = vst [vmem:[%s3193_s15 + $0x8] sm:$0xff] %v2279_v8 }
 0x184   : > { %v2116_v9 = vmul.f32 %v3698_v38, %v2076_v35 }
 0x185   : > { %v1979_v11 = vpop.f32.mrf.mxu2 }
 0x186   : > { %v1980_v10 = vadd.f32 %v1979_v11, %v1931_v58  ;;  %v2136_v20 = vadd.f32 %v3703_v15, %v2116_v9 }
 0x187   : > { %v2028_v14 = vpop.f32.mrf.mxu3  ;;  %v1933_v63 = vpop.f32.mrf.mxu1 }
 0x188   : > { %v2029_v24 = vadd.f32 %v2028_v14, %v1980_v10  ;;  %v2152_v39 = vmax.f32 %v2136_v20, 0.0  ;;  %v1934_v31 = vadd.f32 %v1933_v63, %v3604_v49 }
 0x189   : > { %v2080_v27 = vpop.f32.mrf.mxu0 }
 0x18a   : > { %v2078_v28 = vadd.f32 %v2077_v62, %v2029_v24  ;;  %v2280_v29 = vsel %vm2264_vm2, %v2152_v39, 0.0 }
 0x18b   : > { %2296 = vst [vmem:[%s3193_s15 + $0x10] sm:$0xff] %v2280_v29 }
 0x18c   : > { %v2117_v30 = vmul.f32 %v3698_v38, %v2078_v28 }
 0x18d   : > { %v1982_v19 = vpop.f32.mrf.mxu2 }
 0x18e   : > { %v1983_v3 = vadd.f32 %v1982_v19, %v1934_v31  ;;  %v2137_v34 = vadd.f32 %v3703_v15, %v2117_v30 }
 0x18f   : > { %v2031_v33 = vpop.f32.mrf.mxu3  ;;  %v1935_v37 = vpop.f32.mrf.mxu1 }
 0x190   : > { %v2032_v42 = vadd.f32 %v2031_v33, %v1983_v3  ;;  %v2153_v12 = vmax.f32 %v2137_v34, 0.0  ;;  %v1936_v49 = vadd.f32 %v1935_v37, %v3613_v17 }
 0x191   : > { %v2082_v40 = vpop.f32.mrf.mxu0 }
 0x192   : > { %v2081_v6 = vadd.f32 %v2080_v27, %v2032_v42  ;;  %v2281_v60 = vsel %vm2265_vm3, %v2153_v12, 0.0 }
 0x193   : > { %2297 = vst [vmem:[%s3193_s15 + $0x18] sm:$0xff] %v2281_v60 }
 0x194   : > { %v2118_v41 = vmul.f32 %v3698_v38, %v2081_v6 }
 0x195   : > { %v1984_v51 = vpop.f32.mrf.mxu2 }
 0x196   : > { %v1985_v43 = vadd.f32 %v1984_v51, %v1936_v49  ;;  %v2138_v45 = vadd.f32 %v3703_v15, %v2118_v41 }
 0x197   : > { %v2033_v44 = vpop.f32.mrf.mxu3  ;;  %v1938_v47 = vpop.f32.mrf.mxu1 }
 0x198   : > { %v2034_v53 = vadd.f32 %v2033_v44, %v1985_v43  ;;  %v2154_v54 = vmax.f32 %v2138_v45, 0.0  ;;  %v1939_v21 = vadd.f32 %v1938_v47, %v3624_v50  ;;  %v2234_v50 = vpop.permute.xlu0 %2233 }
 0x199   : > { %v2085_v56 = vpop.f32.mrf.mxu0  ;;  %vm2268_vm6 = vcmp.eq.s32.totalorder %v2234_v50, 1 }
 0x19a   : > { %v2083_v59 = vadd.f32 %v2082_v40, %v2034_v53  ;;  %v2282_v61 = vsel %vm2266_vm4, %v2154_v54, 0.0 }
 0x19b   : > { %2298 = vst [vmem:[%s3193_s15 + $0x20] sm:$0xff] %v2282_v61 }
 0x19c   : > { %v2119_v0 = vmul.f32 %v3698_v38, %v2083_v59 }
 0x19d   : > { %v1987_v17 = vpop.f32.mrf.mxu2 }
 0x19e   : > { %v1988_v57 = vadd.f32 %v1987_v17, %v1939_v21  ;;  %v2139_v2 = vadd.f32 %v3703_v15, %v2119_v0 }
 0x19f   : > { %v2036_v1 = vpop.f32.mrf.mxu3  ;;  %v1940_v4 = vpop.f32.mrf.mxu1 }
 0x1a0   : > { %v2037_v5 = vadd.f32 %v2036_v1, %v1988_v57  ;;  %v2155_v7 = vmax.f32 %v2139_v2, 0.0  ;;  %v1941_v9 = vadd.f32 %v1940_v4, %v3633_v18  ;;  %v2237_v18 = vpop.permute.xlu1 %2236  ;;  %v2243_v61 = vpop.permute.xlu0 %2242 }
 0x1a1   : > { %v2087_v62 = vpop.f32.mrf.mxu0  ;;  %vm2269_vm7 = vcmp.eq.s32.totalorder %v2237_v18, 1  ;;  %vm2271_vm9 = vcmp.eq.s32.totalorder %v2243_v61, 1 }
 0x1a2   : > { %v2086_v35 = vadd.f32 %v2085_v56, %v2037_v5  ;;  %v2283_v8 = vsel %vm2267_vm5, %v2155_v7, 0.0 }
 0x1a3   : > { %2299 = vst [vmem:[%s3193_s15 + $0x28] sm:$0xff] %v2283_v8 }
 0x1a4   : > { %v2120_v36 = vmul.f32 %v3698_v38, %v2086_v35 }
 0x1a5   : > { %v1989_v58 = vpop.f32.mrf.mxu2 }
 0x1a6   : > { %v1990_v11 = vadd.f32 %v1989_v58, %v1941_v9  ;;  %v2140_v14 = vadd.f32 %v3703_v15, %v2120_v36 }
 0x1a7   : > { %v2038_v10 = vpop.f32.mrf.mxu3  ;;  %v1943_v20 = vpop.f32.mrf.mxu1 }
 0x1a8   : > { %v2039_v63 = vadd.f32 %v2038_v10, %v1990_v11  ;;  %v2156_v24 = vmax.f32 %v2140_v14, 0.0  ;;  %v1944_v30 = vadd.f32 %v1943_v20, %v3643_v48  ;;  %v2240_v48 = vpop.permute.xlu2 %2239 }
 0x1a9   : > { %v2090_v39 = vpop.f32.mrf.mxu0  ;;  %vm2270_vm8 = vcmp.eq.s32.totalorder %v2240_v48, 1 }
 0x1aa   : > { %v2088_v27 = vadd.f32 %v2087_v62, %v2039_v63  ;;  %v2284_v28 = vsel %vm2268_vm6, %v2156_v24, 0.0 }
 0x1ab   : > { %2300 = vst [vmem:[%s3193_s15 + $0x30] sm:$0xff] %v2284_v28 }
 0x1ac   : > { %v2121_v29 = vmul.f32 %v3698_v38, %v2088_v27 }
 0x1ad   : > { %v1992_v31 = vpop.f32.mrf.mxu2 }
 0x1ae   : > { %v1993_v52 = vadd.f32 %v1992_v31, %v1944_v30  ;;  %v2141_v3 = vadd.f32 %v3703_v15, %v2121_v29 }
 0x1af   : > { %v2041_v19 = vpop.f32.mrf.mxu3  ;;  %v1945_v33 = vpop.f32.mrf.mxu1 }
 0x1b0   : > { %v2042_v34 = vadd.f32 %v2041_v19, %v1993_v52  ;;  %v2157_v37 = vmax.f32 %v2141_v3, 0.0  ;;  %v1946_v60 = vadd.f32 %v1945_v33, %v3654_v22 }
 0x1b1   : > { %v2092_v42 = vpop.f32.mrf.mxu0 }
 0x1b2   : > { %v2091_v12 = vadd.f32 %v2090_v39, %v2042_v34  ;;  %v2285_v40 = vsel %vm2269_vm7, %v2157_v37, 0.0  ;;  %v2249_v39 = vpop.permute.xlu2 %2248 }
 0x1b3   : > { %2301 = vst [vmem:[%s3193_s15 + $0x38] sm:$0xff] %v2285_v40  ;;  %vm2273_vm11 = vcmp.eq.s32.totalorder %v2249_v39, 1 }
 0x1b4   : > { %v2122_v6 = vmul.f32 %v3698_v38, %v2091_v12 }
 0x1b5   : > { %v1994_v16 = vpop.f32.mrf.mxu2 }
 0x1b6   : > { %v1995_v41 = vadd.f32 %v1994_v16, %v1946_v60  ;;  %v2142_v51 = vadd.f32 %v3703_v15, %v2122_v6  ;;  %v2252_v6 = vpop.permute.xlu0 %2251 }
 0x1b7   : > { %v2043_v49 = vpop.f32.mrf.mxu3  ;;  %v1948_v43 = vpop.f32.mrf.mxu1  ;;  %vm2274_vm12 = vcmp.eq.s32.totalorder %v2252_v6, 1 }
 0x1b8   : > { %v2044_v44 = vadd.f32 %v2043_v49, %v1995_v41  ;;  %v2158_v45 = vmax.f32 %v2142_v51, 0.0  ;;  %v1949_v59 = vadd.f32 %v1948_v43, %v3665_v55  ;;  %v2246_v55 = vpop.permute.xlu1 %2245 }
 0x1b9   : > { %v2095_v47 = vpop.f32.mrf.mxu0  ;;  %vm2272_vm10 = vcmp.eq.s32.totalorder %v2246_v55, 1 }
 0x1ba   : > { %v2093_v53 = vadd.f32 %v2092_v42, %v2044_v44  ;;  %v2286_v54 = vsel %vm2270_vm8, %v2158_v45, 0.0 }
 0x1bb   : > { %2302 = vst [vmem:[%s3193_s15 + $0x40] sm:$0xff] %v2286_v54 }
 0x1bc   : > { %v2123_v56 = vmul.f32 %v3698_v38, %v2093_v53 }
 0x1bd   : > { %v1997_v22 = vpop.f32.mrf.mxu2 }
 0x1be   : > { %v2143_v0 = vadd.f32 %v3703_v15, %v2123_v56  ;;  %v1998_v21 = vadd.f32 %v1997_v22, %v1949_v59 }
 0x1bf   : > { %v2046_v25 = vpop.f32.mrf.mxu3  ;;  %v1950_v17 = vpop.f32.mrf.mxu1 }
 0x1c0   : > { %v2159_v57 = vmax.f32 %v2143_v0, 0.0  ;;  %v2047_v1 = vadd.f32 %v2046_v25, %v1998_v21  ;;  %v1951_v62 = vadd.f32 %v1950_v17, %v3671_v13  ;;  %v2255_v43 = vpop.permute.xlu1 %2254  ;;  %v2258_v25 = vpop.permute.xlu2 %2257 }
 0x1c1   : > { %v2097_v2 = vpop.f32.mrf.mxu0  ;;  %vm2275_vm13 = vcmp.eq.s32.totalorder %v2255_v43, 1  ;;  %vm2276_vm14 = vcmp.eq.s32.totalorder %v2258_v25, 1 }
 0x1c2   : > { %v2287_v4 = vsel %vm2271_vm9, %v2159_v57, 0.0  ;;  %v2096_v5 = vadd.f32 %v2095_v47, %v2047_v1 }
 0x1c3   : > { %2303 = vst [vmem:[%s3193_s15 + $0x48] sm:$0xff] %v2287_v4 }
 0x1c4   : > { %v2124_v7 = vmul.f32 %v3698_v38, %v2096_v5 }
 0x1c5   : > { %v1999_v35 = vpop.f32.mrf.mxu2 }
 0x1c6   : > { %v2000_v8 = vadd.f32 %v1999_v35, %v1951_v62  ;;  %v2144_v9 = vadd.f32 %v3703_v15, %v2124_v7  ;;  %v2261_v35 = vpop.permute.xlu0 %2260 }
 0x1c7   : > { %v2048_v36 = vpop.f32.mrf.mxu3  ;;  %v1953_v50 = vpop.f32.mrf.mxu1  ;;  %vm2277_vm15 = vcmp.eq.s32.totalorder %v2261_v35, 1 }
 0x1c8   : > { %v2049_v58 = vadd.f32 %v2048_v36, %v2000_v8  ;;  %v2160_v11 = vmax.f32 %v2144_v9, 0.0  ;;  %v1954_v24 = vadd.f32 %v1953_v50, %v3681_v46 }
 0x1c9   : > { %v2100_v20 = vpop.f32.mrf.mxu0 }
 0x1ca   : > { %v2098_v10 = vadd.f32 %v2097_v2, %v2049_v58  ;;  %v2288_v14 = vsel %vm2272_vm10, %v2160_v11, 0.0 }
 0x1cb   : > { %2304 = vst [vmem:[%s3193_s15 + $0x50] sm:$0xff] %v2288_v14 }
 0x1cc   : > { %v2125_v63 = vmul.f32 %v3698_v38, %v2098_v10 }
 0x1cd   : > { %v2002_v13 = vpop.f32.mrf.mxu2 }
 0x1ce   : > { %v2145_v27 = vadd.f32 %v3703_v15, %v2125_v63  ;;  %v2003_v28 = vadd.f32 %v2002_v13, %v1954_v24 }
 0x1cf   : > { %v2051_v29 = vpop.f32.mrf.mxu3  ;;  %v1955_v30 = vpop.f32.mrf.mxu1 }
 0x1d0   : > { %v2161_v18 = vmax.f32 %v2145_v27, 0.0  ;;  %v2052_v31 = vadd.f32 %v2051_v29, %v2003_v28  ;;  %v1956_v33 = vadd.f32 %v1955_v30, %v3686_v26 }
 0x1d1   : > { %v2102_v34 = vpop.f32.mrf.mxu0 }
 0x1d2   : > { %v2289_v52 = vsel %vm2273_vm11, %v2161_v18, 0.0  ;;  %v2101_v19 = vadd.f32 %v2100_v20, %v2052_v31 }
 0x1d3   : > { %2305 = vst [vmem:[%s3193_s15 + $0x58] sm:$0xff] %v2289_v52 }
 0x1d4   : > { %v2126_v3 = vmul.f32 %v3698_v38, %v2101_v19 }
 0x1d5   : > { %v2004_v46 = vpop.f32.mrf.mxu2 }
 0x1d6   : > { %v2146_v37 = vadd.f32 %v3703_v15, %v2126_v3  ;;  %v2005_v42 = vadd.f32 %v2004_v46, %v1956_v33 }
 0x1d7   : > { %v2053_v12 = vpop.f32.mrf.mxu3  ;;  %v1958_v40 = vpop.f32.mrf.mxu1 }
 0x1d8   : > { %v2162_v60 = vmax.f32 %v2146_v37, 0.0  ;;  %v2054_v48 = vadd.f32 %v2053_v12, %v2005_v42  ;;  %v1959_v51 = vadd.f32 %v1958_v40, %v3689_v23 }
 0x1d9   : > { %v2105_v53 = vpop.f32.mrf.mxu0 }
 0x1da   : > { %v2290_v16 = vsel %vm2274_vm12, %v2162_v60, 0.0  ;;  %v2103_v41 = vadd.f32 %v2102_v34, %v2054_v48 }
 0x1db   : > { %2306 = vst [vmem:[%s3193_s15 + $0x60] sm:$0xff] %v2290_v16 }
 0x1dc   : > { %v2127_v49 = vmul.f32 %v3698_v38, %v2103_v41 }
 0x1dd   : > { %v2007_v26 = vpop.f32.mrf.mxu2 }
 0x1de   : > { %v2147_v44 = vadd.f32 %v3703_v15, %v2127_v49  ;;  %v2008_v45 = vadd.f32 %v2007_v26, %v1959_v51 }
 0x1df   : > { %v2056_v47 = vpop.f32.mrf.mxu3  ;;  %v1960_v59 = vpop.f32.mrf.mxu1 }
 0x1e0   : > { %v2163_v54 = vmax.f32 %v2147_v44, 0.0  ;;  %v2057_v56 = vadd.f32 %v2056_v47, %v2008_v45  ;;  %v1961_v21 = vadd.f32 %v1960_v59, %v3692_v32 }
 0x1e1   : > { %v2107_v5 = vpop.f32.mrf.mxu0 }
 0x1e2   : > { %v2291_v22 = vsel %vm2275_vm13, %v2163_v54, 0.0  ;;  %v2106_v61 = vadd.f32 %v2105_v53, %v2057_v56 }
 0x1e3   : > { %2307 = vst [vmem:[%s3193_s15 + $0x68] sm:$0xff] %v2291_v22 }
 0x1e4   : > { %v2128_v0 = vmul.f32 %v3698_v38, %v2106_v61 }
 0x1e5   : > { %v2009_v23 = vpop.f32.mrf.mxu2 }
 0x1e6   : > { %v2148_v17 = vadd.f32 %v3703_v15, %v2128_v0  ;;  %v2010_v57 = vadd.f32 %v2009_v23, %v1961_v21 }
 0x1e7   : > { %v2058_v1 = vpop.f32.mrf.mxu3 }
 0x1e8   : > { %v2164_v2 = vmax.f32 %v2148_v17, 0.0  ;;  %v2059_v4 = vadd.f32 %v2058_v1, %v2010_v57 }
 0x1ea   : > { %v2292_v7 = vsel %vm2276_vm14, %v2164_v2, 0.0  ;;  %v2108_v62 = vadd.f32 %v2107_v5, %v2059_v4 }
 0x1eb   : > { %2308 = vst [vmem:[%s3193_s15 + $0x70] sm:$0xff] %v2292_v7 }
 0x1ec   : > { %v2129_v55 = vmul.f32 %v3698_v38, %v2108_v62 }
 0x1ee   : > { %v2149_v8 = vadd.f32 %v3703_v15, %v2129_v55 }
 0x1f0   : > { %v2165_v32 = vmax.f32 %v2149_v8, 0.0 }
 0x1f2   : > { %v2293_v36 = vsel %vm2277_vm15, %v2165_v32, 0.0 }
 0x1f3   : > { %2309 = vst [vmem:[%s3193_s15 + $0x78] sm:$0xff] %v2293_v36 }
 0x1f4 PF: > { %s15_s22 = sadd.s32 1, %s3107_s22   ;;  %s3790_s18 = smov %s3099_s20 }
 0x1f5   : > { %p12_p10 = scmp.ge.s32.totalorder %s15_s22, 12   ;;  %s3791_s19 = smov %s3103_s21 }
 0x1f6   : > { %s3792_s20 = smov %s3795_s23  ;;  %s3793_s21 = smov %s3799_s24 }
 0x1f7   :  { %14 = sbr.rel (!%p12_p10) target bundleno = 3 (0x3), region = 99 }

// kernel: hm_decoder_pallas.8
= control target key start
LH: loop header
LB: loop body
LE: loop exit
PB: predicated region body
PF: predicated region fallthrough
CT: control target
= control target key end

     0   :  { %s3125_s18 = smov 0   ;;  %s3127_s19 = smov 0   ;;  %s3767_s0 = inlined_call_operand.vmem [shape: f32[2,640,128], index: 0, kind: input, shape index: {}]   ;;  %s3768_s1 = inlined_call_operand.vmem [shape: bf16[1152,128], index: 1, kind: input, shape index: {}]   ;;  %s3769_s2 = inlined_call_operand.vmem [shape: f32[1,128], index: 2, kind: input, shape index: {}]   ;;  %s3770_s3 = inlined_call_operand.vmem [shape: f32[1,128], index: 3, kind: input, shape index: {}]   ;;  %s3771_s4 = inlined_call_operand.vmem [shape: f32[640,1], index: 4, kind: input, shape index: {}]   ;;  %s3772_s5 = inlined_call_operand.vmem [shape: f32[2,640,128], index: 5, kind: output, shape index: {}]  }
   0x1   :  { %s3129_s20 = smov 0   ;;  %s3131_s21 = smov 0  }
   0x2   :  { %s3133_s22 = smov 0  }
   0x3 LB: > { %s27_s23 = sadd.s32 1, %s3083_s20  ;;  %s34_s24 = sadd.s32 1, %s3087_s21  ;;  %s3091_s22 = sphi %s3133_s22, %s15_s22   ;;  %s3087_s21 = sphi %s3131_s21, %s3777_s21   ;;  %s3083_s20 = sphi %s3129_s20, %s3776_s20   ;;  %s3079_s19 = sphi %s3127_s19, %s3775_s19   ;;  %s3075_s18 = sphi %s3125_s18, %s3774_s18  }
   0x4   : > { %p28_p0 = scmp.ge.s32.totalorder %s27_s23, 5  ;;  %p2475_p1 = scmp.ge.s32.totalorder %s3091_s22, 1 }
   0x5   : > { %p246_p2 = scmp.lt.s32.totalorder %s3091_s22, 11 }
   0x6   : > { %s3779_s23 = smov (%p28_p0, %s27_s23), 0  ;;  %s3781_s24 = smov (!%p28_p0, %s34_s24), %s3087_s21 }
   0x7   : > { %p247_p3 = pnand %p2475_p1, %p246_p2  ;;  %p36_p4 = scmp.ge.s32.totalorder %s3781_s24, 2 }
   0x8   : > { %p296_p5 = scmp.lt.s32.totalorder (!%p247_p3), %s3079_s19, 1  ;;  %s2477_s25 = sshll.u32 (!%p247_p3), %s3075_s18, 4 }
   0x9   : > { %s3783_s24 = smov (%p36_p4, %s3781_s24), 0  ;;  %250 = sbr.rel (%p247_p3) target bundleno = 498 (0x1f2), region = 40 }
   0xa   : > { %p312_p6 = scmp.lt.s32.totalorder (!%p247_p3), %s2477_s25, 79  ;;  %p330_p7 = scmp.eq.s32.totalorder (!%p247_p3), %s3075_s18, 0 }
   0xb   : > { %p331_p8 = scmp.eq.s32.totalorder (!%p247_p3), %s3075_s18, 4 }
   0xd   : > { %p3170_p9 = por (!%p247_p3), %p331_p8, %p330_p7 }
   0xe   : > { %s3785_s19 = smov (!%p296_p5, %s3079_s19), 1  ;;  %s3787_s25 = smov (!%p312_p6, %s2477_s25), 79  ;;  %v3093_v0 = vmov (%p3170_p9), 0.0  }
   0xf   : > { %s3004_s26 = smul.u32 640, %s3785_s19  ;;  %s2478_s27 = sshll.u32 %s3787_s25, 3 }
  0x10   : > { %s3005_s28 = smul.u32 80, %s3785_s19  ;;  %s3168_s9 = scalar_lea.vmem %s3771_s4, %s2478_s27 }
  0x11   : > { %s3163_s6 = scalar_lea.vmem %s3767_s0, %s3004_s26  ;;  %335 = sbr.rel (!%p3170_p9) target bundleno = 37 (0x25), region = 44 }
  0x12   : > { %s326_s10 = sadd.s32 %s3005_s28, %s3787_s25 }
  0x13   : > { %s2480_s12 = sshll.u32 %s326_s10, 3 }
  0x14   : > { %s3177_s15 = scalar_lea.vmem %s3772_s5, %s2480_s12 }
  0x15   : > { %336 = vst [vmem:[%s3177_s15] sm:$0xff] (%p3170_p9), %v3093_v0 }
  0x16   : > { %337 = vst [vmem:[%s3177_s15 + $0x8] sm:$0xff] %v3093_v0 }
  0x17   : > { %338 = vst [vmem:[%s3177_s15 + $0x10] sm:$0xff] %v3093_v0 }
  0x18   : > { %339 = vst [vmem:[%s3177_s15 + $0x18] sm:$0xff] %v3093_v0 }
  0x19   : > { %340 = vst [vmem:[%s3177_s15 + $0x20] sm:$0xff] %v3093_v0 }
  0x1a   : > { %341 = vst [vmem:[%s3177_s15 + $0x28] sm:$0xff] %v3093_v0 }
  0x1b   : > { %342 = vst [vmem:[%s3177_s15 + $0x30] sm:$0xff] %v3093_v0 }
  0x1c   : > { %343 = vst [vmem:[%s3177_s15 + $0x38] sm:$0xff] %v3093_v0 }
  0x1d   : > { %344 = vst [vmem:[%s3177_s15 + $0x40] sm:$0xff] %v3093_v0 }
  0x1e   : > { %345 = vst [vmem:[%s3177_s15 + $0x48] sm:$0xff] %v3093_v0 }
  0x1f   : > { %346 = vst [vmem:[%s3177_s15 + $0x50] sm:$0xff] %v3093_v0 }
  0x20   : > { %347 = vst [vmem:[%s3177_s15 + $0x58] sm:$0xff] %v3093_v0 }
  0x21   : > { %348 = vst [vmem:[%s3177_s15 + $0x60] sm:$0xff] %v3093_v0 }
  0x22   : > { %349 = vst [vmem:[%s3177_s15 + $0x68] sm:$0xff] %v3093_v0 }
  0x23   : > { %350 = vst [vmem:[%s3177_s15 + $0x70] sm:$0xff] %v3093_v0 }
  0x24   : > { %351 = vst [vmem:[%s3177_s15 + $0x78] sm:$0xff] %v3093_v0 }
  0x25 PF: > { %354 = sbr.rel (%p3170_p9) target bundleno = 498 (0x1f2), region = 48  ;;  %s2481_s30 = sshll.u32 (!%p3170_p9), %s3075_s18, 7 }
  0x26   : > { %s3216_s10 = scalar_lea.vmem (!%p3170_p9), %s3163_s6, %s2481_s30 }
  0x2a   : > { %v2915_v1 = vld [vmem:[%s3768_s1 + $0x38] sm:$0xff]  ;;  %v2914_v2 = vld [vmem:[%s3768_s1 + $0x30] sm:$0xff]  ;;  %v2913_v3 = vld [vmem:[%s3768_s1 + $0x28] sm:$0xff] }
  0x2b   : > { %2980 = vmatpush.bf16.msra.mxu1 %v2915_v1  ;;  %2981 = vmatpush.bf16.msra.mxu2 %v2915_v1  ;;  %v2912_v4 = vld [vmem:[%s3768_s1 + $0x20] sm:$0xff]  ;;  %v2911_v5 = vld [vmem:[%s3768_s1 + $0x18] sm:$0xff]  ;;  %v2910_v6 = vld [vmem:[%s3768_s1 + $0x10] sm:$0xff] }
  0x2c   : > { %2982 = vmatpush.bf16.msra.mxu3 %v2915_v1  ;;  %1669 = vmatpush.bf16.msra.mxu0 %v2915_v1  ;;  %v2487_v7 = vld [vmem:[%s3216_s10 + $0xc] sm:$0xff]  ;;  %v2488_v8 = vld [vmem:[%s3216_s10 + $0x14] sm:$0xff]  ;;  %v2908_v28 = vld [vmem:[%s3768_s1] sm:$0xff] }
  0x2d   : > { %v2491_v9 = vld [vmem:[%s3216_s10 + $0x2c] sm:$0xff]  ;;  %v2492_v10 = vld [vmem:[%s3216_s10 + $0x34] sm:$0xff]  ;;  %v378_v15 = vpack.c.bf16 %v2487_v7, %v2487_v7  ;;  %v379_v16 = vpack.c.bf16 %v2488_v8, %v2488_v8  ;;  %v2489_v45 = vld [vmem:[%s3216_s10 + $0x1c] sm:$0xff] }
  0x2e   : > { %v2495_v11 = vld [vmem:[%s3216_s10 + $0x4c] sm:$0xff]  ;;  %v2496_v12 = vld [vmem:[%s3216_s10 + $0x54] sm:$0xff]  ;;  %v382_v17 = vpack.c.bf16 %v2491_v9, %v2491_v9  ;;  %v383_v18 = vpack.c.bf16 %v2492_v10, %v2492_v10  ;;  %v2490_v46 = vld [vmem:[%s3216_s10 + $0x24] sm:$0xff]  ;;  %v380_v55 = vpack.c.bf16 %v2489_v45, %v2489_v45 }
  0x2f   : > { %2983 = vmatpush.bf16.msra.mxu1 %v2914_v2  ;;  %2984 = vmatpush.bf16.msra.mxu2 %v2914_v2  ;;  %v2483_v13 = vld [vmem:[%s3216_s10 - $0x14] sm:$0xff]  ;;  %v2484_v14 = vld [vmem:[%s3216_s10 - $0xc] sm:$0xff]  ;;  %v386_v19 = vpack.c.bf16 %v2495_v11, %v2495_v11  ;;  %v387_v21 = vpack.c.bf16 %v2496_v12, %v2496_v12  ;;  %v681_v24 = vunpack.c.l.b16 %v378_v15  ;;  %v682_v25 = vunpack.c.l.b16 %v379_v16  ;;  %v2493_v47 = vld [vmem:[%s3216_s10 + $0x3c] sm:$0xff] }
  0x30   : > { %2985 = vmatpush.bf16.msra.mxu3 %v2914_v2  ;;  %1670 = vmatpush.bf16.msra.mxu0 %v2914_v2  ;;  %v2909_v20 = vld [vmem:[%s3768_s1 + $0x8] sm:$0xff]  ;;  %v374_v22 = vpack.c.bf16 %v2483_v13, %v2483_v13  ;;  %v375_v23 = vpack.c.bf16 %v2484_v14, %v2484_v14  ;;  %v685_v26 = vunpack.c.l.b16 %v382_v17  ;;  %v686_v27 = vunpack.c.l.b16 %v383_v18  ;;  %v2931_v33 = vld [vmem:[%s3768_s1 + $0xb8] sm:$0xff]  ;;  %v2930_v41 = vld [vmem:[%s3768_s1 + $0xb0] sm:$0xff] }
  0x31   : > { %v689_v29 = vunpack.c.l.b16 %v386_v19  ;;  %v690_v30 = vunpack.c.l.b16 %v387_v21  ;;  %v2923_v34 = vld [vmem:[%s3768_s1 + $0x78] sm:$0xff]  ;;  %v695_v35 = vpack.c.b16 %v682_v25, %v681_v24  ;;  %v2922_v42 = vld [vmem:[%s3768_s1 + $0x70] sm:$0xff]  ;;  %v2494_v48 = vld [vmem:[%s3216_s10 + $0x44] sm:$0xff]  ;;  %v381_v56 = vpack.c.bf16 %v2490_v46, %v2490_v46 }
  0x32   : > { %v677_v31 = vunpack.c.l.b16 %v374_v22  ;;  %v678_v32 = vunpack.c.l.b16 %v375_v23  ;;  %v697_v36 = vpack.c.b16 %v686_v27, %v685_v26  ;;  %v2939_v39 = vld [vmem:[%s3768_s1 + $0xf8] sm:$0xff]  ;;  %v2938_v43 = vld [vmem:[%s3768_s1 + $0xf0] sm:$0xff]  ;;  %v2498_v50 = vld [vmem:[%s3216_s10 + $0x64] sm:$0xff]  ;;  %v384_v57 = vpack.c.bf16 %v2493_v47, %v2493_v47 }
  0x33   : > { %2986 = vmatpush.bf16.msra.mxu1 %v2913_v3  ;;  %2987 = vmatpush.bf16.msra.mxu2 %v2913_v3  ;;  %v699_v37 = vpack.c.b16 %v690_v30, %v689_v29  ;;  %v2947_v40 = vld [vmem:[%s3768_s1 + $0x138] sm:$0xff]  ;;  %v2946_v44 = vld [vmem:[%s3768_s1 + $0x130] sm:$0xff]  ;;  %v2486_v52 = vld [vmem:[%s3216_s10 + $0x4] sm:$0xff]  ;;  %v385_v58 = vpack.c.bf16 %v2494_v48, %v2494_v48  ;;  %v389_v60 = vpack.c.bf16 %v2498_v50, %v2498_v50 }
  0x34   : > { %2988 = vmatpush.bf16.msra.mxu3 %v2913_v3  ;;  %1671 = vmatpush.bf16.msra.mxu0 %v2913_v3  ;;  %v693_v38 = vpack.c.b16 %v678_v32, %v677_v31  ;;  %v2497_v49 = vld [vmem:[%s3216_s10 + $0x5c] sm:$0xff]  ;;  %v2929_v53 = vld [vmem:[%s3768_s1 + $0xa8] sm:$0xff]  ;;  %v377_v62 = vpack.c.bf16 %v2486_v52, %v2486_v52  ;;  %v683_v3 = vunpack.c.l.b16 %v380_v55  ;;  %v2926_v21 = vld [vmem:[%s3768_s1 + $0x90] sm:$0xff] }
  0x35   : > { %v2485_v51 = vld [vmem:[%s3216_s10 - $0x4] sm:$0xff]  ;;  %v2921_v54 = vld [vmem:[%s3768_s1 + $0x68] sm:$0xff]  ;;  %v388_v59 = vpack.c.bf16 %v2497_v49, %v2497_v49  ;;  %v692_v8 = vunpack.c.l.b16 %v389_v60  ;;  %v2918_v22 = vld [vmem:[%s3768_s1 + $0x50] sm:$0xff] }
  0x36   : > { %v376_v61 = vpack.c.bf16 %v2485_v51, %v2485_v51  ;;  %v2937_v63 = vld [vmem:[%s3768_s1 + $0xe8] sm:$0xff]  ;;  %v2928_v1 = vld [vmem:[%s3768_s1 + $0xa0] sm:$0xff]  ;;  %v680_v10 = vunpack.c.l.b16 %v377_v62  ;;  %v2927_v13 = vld [vmem:[%s3768_s1 + $0x98] sm:$0xff] }
  0x37   : > { %2989 = vmatpush.bf16.msra.mxu1 %v2912_v4  ;;  %2990 = vmatpush.bf16.msra.mxu2 %v2912_v4  ;;  %v2945_v0 = vld [vmem:[%s3768_s1 + $0x128] sm:$0xff]  ;;  %v2920_v2 = vld [vmem:[%s3768_s1 + $0x60] sm:$0xff]  ;;  %v691_v7 = vunpack.c.l.b16 %v388_v59  ;;  %v2919_v14 = vld [vmem:[%s3768_s1 + $0x58] sm:$0xff] }
  0x38   : > { %2991 = vmatpush.bf16.msra.mxu3 %v2912_v4  ;;  %1672 = vmatpush.bf16.msra.mxu0 %v2912_v4  ;;  %v684_v4 = vunpack.c.l.b16 %v381_v56  ;;  %v679_v9 = vunpack.c.l.b16 %v376_v61  ;;  %v2936_v11 = vld [vmem:[%s3768_s1 + $0xe0] sm:$0xff]  ;;  %v2935_v19 = vld [vmem:[%s3768_s1 + $0xd8] sm:$0xff]  ;;  %v2934_v23 = vld [vmem:[%s3768_s1 + $0xd0] sm:$0xff] }
  0x39   : > { %v2944_v12 = vld [vmem:[%s3768_s1 + $0x120] sm:$0xff]  ;;  %v700_v17 = vpack.c.b16 %v692_v8, %v691_v7  ;;  %v2942_v24 = vld [vmem:[%s3768_s1 + $0x110] sm:$0xff]  ;;  %v494_v32 = vld [vmem:[%s3216_s10 + $0x8] sm:$0xff] }
  0x3a   : > { %v696_v15 = vpack.c.b16 %v684_v4, %v683_v3  ;;  %v694_v18 = vpack.c.b16 %v680_v10, %v679_v9  ;;  %v2500_v25 = vld [vmem:[%s3216_s10 - $0x13] sm:$0xff]  ;;  %v2501_v26 = vld [vmem:[%s3216_s10 - $0xb] sm:$0xff]  ;;  %v2534_v29 = vld [vmem:[%s3216_s10 - $0x1] sm:$0xff] }
  0x3b   : > { %2992 = vmatpush.bf16.msra.mxu1 %v2911_v5  ;;  %2993 = vmatpush.bf16.msra.mxu2 %v2911_v5  ;;  %v2517_v27 = vld [vmem:[%s3216_s10 - $0x12] sm:$0xff]  ;;  %v493_v31 = vld [vmem:[%s3216_s10] sm:$0xff]  ;;  %v2963_v51 = vld [vmem:[%s3768_s1 + $0x1b8] sm:$0xff] }
  0x3c   : > { %2994 = vmatpush.bf16.msra.mxu3 %v2911_v5  ;;  %1673 = vmatpush.bf16.msra.mxu0 %v2911_v5  ;;  %v687_v5 = vunpack.c.l.b16 %v384_v57  ;;  %v2535_v30 = vld [vmem:[%s3216_s10 + $0x7] sm:$0xff]  ;;  %v2955_v52 = vld [vmem:[%s3768_s1 + $0x178] sm:$0xff]  ;;  %v2970_v4 = vld [vmem:[%s3768_s1 + $0x1f0] sm:$0xff] }
  0x3d   : > { %v2924_v45 = vld [vmem:[%s3768_s1 + $0x80] sm:$0xff]  ;;  %v2971_v59 = vld [vmem:[%s3768_s1 + $0x1f8] sm:$0xff]  ;;  %v2536_v9 = vld [vmem:[%s3216_s10 + $0xf] sm:$0xff] }
  0x3e   : > { %v2916_v46 = vld [vmem:[%s3768_s1 + $0x40] sm:$0xff]  ;;  %v2979_v60 = vld [vmem:[%s3768_s1 + $0x238] sm:$0xff] }
  0x3f   : > { %2995 = vmatpush.bf16.msra.mxu1 %v2910_v6  ;;  %2996 = vmatpush.bf16.msra.mxu2 %v2910_v6  ;;  %v2932_v57 = vld [vmem:[%s3768_s1 + $0xc0] sm:$0xff]  ;;  %v2537_v10 = vld [vmem:[%s3216_s10 + $0x17] sm:$0xff] }
  0x40   : > { %2997 = vmatpush.bf16.msra.mxu3 %v2910_v6  ;;  %1674 = vmatpush.bf16.msra.mxu0 %v2910_v6  ;;  %v688_v6 = vunpack.c.l.b16 %v385_v58  ;;  %v2940_v58 = vld [vmem:[%s3768_s1 + $0x100] sm:$0xff] }
  0x41   : > { %v2502_v3 = vld [vmem:[%s3216_s10 - $0x3] sm:$0xff]  ;;  %v2520_v8 = vld [vmem:[%s3216_s10 + $0x6] sm:$0xff] }
  0x42   : > { %v698_v16 = vpack.c.b16 %v688_v6, %v687_v5  ;;  %v2978_v5 = vld [vmem:[%s3768_s1 + $0x230] sm:$0xff]  ;;  %v2503_v6 = vld [vmem:[%s3216_s10 + $0x5] sm:$0xff] }
  0x43   : > { %2998 = vmatpush.bf16.msra.mxu1 %v2909_v20  ;;  %2999 = vmatpush.bf16.msra.mxu2 %v2909_v20  ;;  %v2519_v7 = vld [vmem:[%s3216_s10 - $0x2] sm:$0xff] }
  0x44   : > { %3000 = vmatpush.bf16.msra.mxu3 %v2909_v20  ;;  %1675 = vmatpush.bf16.msra.mxu0 %v2909_v20  ;;  %v2943_v20 = vld [vmem:[%s3768_s1 + $0x118] sm:$0xff] }
  0x47   : > { %3001 = vmatpush.bf16.msra.mxu1 %v2908_v28  ;;  %3002 = vmatpush.bf16.msra.mxu2 %v2908_v28 }
  0x48   : > { %3003 = vmatpush.bf16.msra.mxu3 %v2908_v28  ;;  %1676 = vmatpush.bf16.msra.mxu0 %v2908_v28  ;;  %v2518_v28 = vld [vmem:[%s3216_s10 - $0xa] sm:$0xff] }
  0x4a   : > { %1687 = vmatmul.bf16.vlgmr.msra.gmra.mxu1 %v695_v35  ;;  %1697 = vmatmul.bf16.vlgmr.msra.gmra.mxu2 %v697_v36  ;;  %v408_v35 = vpack.c.bf16 %v2500_v25, %v2500_v25  ;;  %v409_v36 = vpack.c.bf16 %v2501_v26, %v2501_v26 }
  0x4b   : > { %1767 = vmatpush.bf16.msrb.mxu2 %v2931_v33  ;;  %1718 = vmatpush.bf16.msrb.mxu1 %v2923_v34  ;;  %v2925_v33 = vld [vmem:[%s3768_s1 + $0x88] sm:$0xff] }
  0x4c   : > { %1707 = vmatmul.bf16.vlgmr.msra.gmra.mxu3 %v699_v37  ;;  %1677 = vmatmul.bf16.vlgmr.msra.gmra.mxu0 %v693_v38  ;;  %v2917_v34 = vld [vmem:[%s3768_s1 + $0x48] sm:$0xff]  ;;  %v442_v37 = vpack.c.bf16 %v2517_v27, %v2517_v27  ;;  %v443_v38 = vpack.c.bf16 %v2518_v28, %v2518_v28  ;;  %v725_v47 = vunpack.c.l.b16 %v408_v35  ;;  %v726_v48 = vunpack.c.l.b16 %v409_v36 }
  0x4d   : > { %1816 = vmatpush.bf16.msrb.mxu3 %v2939_v39  ;;  %1865 = vmatpush.bf16.msrb.mxu0 %v2947_v40  ;;  %v476_v39 = vpack.c.bf16 %v2534_v29, %v2534_v29  ;;  %v477_v40 = vpack.c.bf16 %v2535_v30, %v2535_v30 }
  0x4e   : > { %v773_v49 = vunpack.c.l.b16 %v442_v37  ;;  %v774_v50 = vunpack.c.l.b16 %v443_v38  ;;  %v741_v61 = vpack.c.b16 %v726_v48, %v725_v47  ;;  %v2504_v37 = vld [vmem:[%s3216_s10 + $0xd] sm:$0xff]  ;;  %v2505_v38 = vld [vmem:[%s3216_s10 + $0x15] sm:$0xff]  ;;  %v2976_v48 = vld [vmem:[%s3768_s1 + $0x220] sm:$0xff] }
  0x4f   : > { %1768 = vmatpush.bf16.msrb.mxu2 %v2930_v41  ;;  %1719 = vmatpush.bf16.msrb.mxu1 %v2922_v42  ;;  %v509_v41 = vpack.c.bf16 %v493_v31, %v493_v31  ;;  %v510_v42 = vpack.c.bf16 %v494_v32, %v494_v32  ;;  %v498_v47 = vld [vmem:[%s3216_s10 + $0x28] sm:$0xff] }
  0x50   : > { %v789_v62 = vpack.c.b16 %v774_v50, %v773_v49  ;;  %v412_v49 = vpack.c.bf16 %v2504_v37, %v2504_v37  ;;  %v413_v50 = vpack.c.bf16 %v2505_v38, %v2505_v38  ;;  %v2508_v37 = vld [vmem:[%s3216_s10 + $0x2d] sm:$0xff]  ;;  %v2509_v38 = vld [vmem:[%s3216_s10 + $0x35] sm:$0xff] }
  0x51   : > { %1817 = vmatpush.bf16.msrb.mxu3 %v2938_v43  ;;  %1866 = vmatpush.bf16.msrb.mxu0 %v2946_v44  ;;  %v2933_v43 = vld [vmem:[%s3768_s1 + $0xc8] sm:$0xff]  ;;  %v869_v55 = vunpack.c.l.b16 %v509_v41  ;;  %v870_v56 = vunpack.c.l.b16 %v510_v42  ;;  %v2538_v41 = vld [vmem:[%s3216_s10 + $0x1f] sm:$0xff] }
  0x52   : > { %v2941_v44 = vld [vmem:[%s3768_s1 + $0x108] sm:$0xff] }
  0x53   : > { %1769 = vmatpush.bf16.msrb.mxu2 %v2929_v53  ;;  %1720 = vmatpush.bf16.msrb.mxu1 %v2921_v54  ;;  %v821_v53 = vunpack.c.l.b16 %v476_v39  ;;  %v822_v54 = vunpack.c.l.b16 %v477_v40  ;;  %v2521_v39 = vld [vmem:[%s3216_s10 + $0xe] sm:$0xff]  ;;  %v2522_v40 = vld [vmem:[%s3216_s10 + $0x16] sm:$0xff] }
  0x54   : > { %v2539_v42 = vld [vmem:[%s3216_s10 + $0x27] sm:$0xff] }
  0x55   : > { %1818 = vmatpush.bf16.msrb.mxu3 %v2937_v63  ;;  %1867 = vmatpush.bf16.msrb.mxu0 %v2945_v0  ;;  %v837_v63 = vpack.c.b16 %v822_v54, %v821_v53  ;;  %v885_v0 = vpack.c.b16 %v870_v56, %v869_v55  ;;  %v480_v53 = vpack.c.bf16 %v2538_v41, %v2538_v41  ;;  %v2542_v41 = vld [vmem:[%s3216_s10 + $0x3f] sm:$0xff] }
  0x56   : > { %v481_v54 = vpack.c.bf16 %v2539_v42, %v2539_v42  ;;  %v514_v56 = vpack.c.bf16 %v498_v47, %v498_v47  ;;  %v2543_v42 = vld [vmem:[%s3216_s10 + $0x47] sm:$0xff] }
  0x57   : > { %1770 = vmatpush.bf16.msrb.mxu2 %v2928_v1  ;;  %1721 = vmatpush.bf16.msrb.mxu1 %v2920_v2  ;;  %v2962_v1 = vld [vmem:[%s3768_s1 + $0x1b0] sm:$0xff]  ;;  %v502_v47 = vld [vmem:[%s3216_s10 + $0x48] sm:$0xff] }
  0x58   : > { %v2954_v2 = vld [vmem:[%s3768_s1 + $0x170] sm:$0xff] }
  0x59   : > { %1819 = vmatpush.bf16.msrb.mxu3 %v2936_v11  ;;  %1868 = vmatpush.bf16.msrb.mxu0 %v2944_v12  ;;  %v495_v11 = vld [vmem:[%s3216_s10 + $0x10] sm:$0xff]  ;;  %v496_v12 = vld [vmem:[%s3216_s10 + $0x18] sm:$0xff] }
  0x5a   : > { %1692 = vmatmul.bf16.gmra.mxu1 %v696_v15  ;;  %1702 = vmatmul.bf16.gmra.mxu2 %v698_v16  ;;  %v2969_v15 = vld [vmem:[%s3768_s1 + $0x1e8] sm:$0xff] }
  0x5b   : > { %1771 = vmatpush.bf16.msrb.mxu2 %v2927_v13  ;;  %1722 = vmatpush.bf16.msrb.mxu1 %v2919_v14  ;;  %v2961_v13 = vld [vmem:[%s3768_s1 + $0x1a8] sm:$0xff] }
  0x5c   : > { %1712 = vmatmul.bf16.gmra.mxu3 %v700_v17  ;;  %1682 = vmatmul.bf16.gmra.mxu0 %v694_v18  ;;  %v2953_v14 = vld [vmem:[%s3768_s1 + $0x168] sm:$0xff]  ;;  %v410_v17 = vpack.c.bf16 %v2502_v3, %v2502_v3  ;;  %v411_v18 = vpack.c.bf16 %v2503_v6, %v2503_v6 }
  0x5d   : > { %1820 = vmatpush.bf16.msrb.mxu3 %v2935_v19  ;;  %1869 = vmatpush.bf16.msrb.mxu0 %v2943_v20  ;;  %v2977_v16 = vld [vmem:[%s3768_s1 + $0x228] sm:$0xff]  ;;  %v444_v19 = vpack.c.bf16 %v2519_v7, %v2519_v7  ;;  %v445_v20 = vpack.c.bf16 %v2520_v8, %v2520_v8  ;;  %v2523_v7 = vld [vmem:[%s3216_s10 + $0x1e] sm:$0xff] }
  0x5e   : > { %v727_v25 = vunpack.c.l.b16 %v410_v17  ;;  %v728_v26 = vunpack.c.l.b16 %v411_v18  ;;  %v2507_v6 = vld [vmem:[%s3216_s10 + $0x25] sm:$0xff] }
  0x5f   : > { %1772 = vmatpush.bf16.msrb.mxu2 %v2926_v21  ;;  %1723 = vmatpush.bf16.msrb.mxu1 %v2918_v22  ;;  %v478_v21 = vpack.c.bf16 %v2536_v9, %v2536_v9  ;;  %v479_v22 = vpack.c.bf16 %v2537_v10, %v2537_v10  ;;  %v775_v27 = vunpack.c.l.b16 %v444_v19  ;;  %v776_v28 = vunpack.c.l.b16 %v445_v20  ;;  %v2524_v8 = vld [vmem:[%s3216_s10 + $0x26] sm:$0xff]  ;;  %v2540_v9 = vld [vmem:[%s3216_s10 + $0x2f] sm:$0xff]  ;;  %v2541_v10 = vld [vmem:[%s3216_s10 + $0x37] sm:$0xff] }
  0x60   : > { %v415_v18 = vpack.c.bf16 %v2507_v6, %v2507_v6  ;;  %v448_v19 = vpack.c.bf16 %v2523_v7, %v2523_v7  ;;  %v449_v20 = vpack.c.bf16 %v2524_v8, %v2524_v8  ;;  %v2511_v6 = vld [vmem:[%s3216_s10 + $0x45] sm:$0xff] }
  0x61   : > { %1821 = vmatpush.bf16.msrb.mxu3 %v2934_v23  ;;  %1870 = vmatpush.bf16.msrb.mxu0 %v2942_v24  ;;  %v511_v23 = vpack.c.bf16 %v495_v11, %v495_v11  ;;  %v512_v24 = vpack.c.bf16 %v496_v12, %v496_v12  ;;  %v823_v29 = vunpack.c.l.b16 %v478_v21  ;;  %v824_v30 = vunpack.c.l.b16 %v479_v22  ;;  %v2959_v11 = vld [vmem:[%s3768_s1 + $0x198] sm:$0xff]  ;;  %v2528_v8 = vld [vmem:[%s3216_s10 + $0x46] sm:$0xff] }
  0x62   : > { %v2967_v12 = vld [vmem:[%s3768_s1 + $0x1d8] sm:$0xff]  ;;  %v482_v21 = vpack.c.bf16 %v2540_v9, %v2540_v9  ;;  %v483_v22 = vpack.c.bf16 %v2541_v10, %v2541_v10  ;;  %v2544_v9 = vld [vmem:[%s3216_s10 + $0x4f] sm:$0xff] }
  0x63   : > { %1773 = vmatpush.bf16.msrb.mxu2 %v2925_v33  ;;  %1724 = vmatpush.bf16.msrb.mxu1 %v2917_v34  ;;  %v871_v31 = vunpack.c.l.b16 %v511_v23  ;;  %v872_v32 = vunpack.c.l.b16 %v512_v24  ;;  %v742_v33 = vpack.c.b16 %v728_v26, %v727_v25  ;;  %v790_v34 = vpack.c.b16 %v776_v28, %v775_v27  ;;  %v2527_v7 = vld [vmem:[%s3216_s10 + $0x3e] sm:$0xff]  ;;  %v2957_v10 = vld [vmem:[%s3768_s1 + $0x188] sm:$0xff] }
  0x64   : > { %v838_v35 = vpack.c.b16 %v824_v30, %v823_v29  ;;  %v732_v26 = vunpack.c.l.b16 %v415_v18  ;;  %v779_v27 = vunpack.c.l.b16 %v448_v19  ;;  %v780_v28 = vunpack.c.l.b16 %v449_v20  ;;  %v2949_v19 = vld [vmem:[%s3768_s1 + $0x148] sm:$0xff] }
  0x65   : > { %1822 = vmatpush.bf16.msrb.mxu3 %v2933_v43  ;;  %1871 = vmatpush.bf16.msrb.mxu0 %v2941_v44  ;;  %v886_v36 = vpack.c.b16 %v872_v32, %v871_v31  ;;  %v2960_v43 = vld [vmem:[%s3768_s1 + $0x1a0] sm:$0xff]  ;;  %v827_v29 = vunpack.c.l.b16 %v482_v21  ;;  %v828_v30 = vunpack.c.l.b16 %v483_v22  ;;  %v453_v18 = vpack.c.bf16 %v2528_v8, %v2528_v8 }
  0x66   : > { %v2968_v44 = vld [vmem:[%s3768_s1 + $0x1e0] sm:$0xff]  ;;  %v486_v20 = vpack.c.bf16 %v2544_v9, %v2544_v9 }
  0x67   : > { %1774 = vmatpush.bf16.msrb.mxu2 %v2924_v45  ;;  %1725 = vmatpush.bf16.msrb.mxu1 %v2916_v46  ;;  %v2952_v45 = vld [vmem:[%s3768_s1 + $0x160] sm:$0xff] }
  0x68   : > { %v497_v46 = vld [vmem:[%s3216_s10 + $0x20] sm:$0xff] }
  0x69   : > { %1823 = vmatpush.bf16.msrb.mxu3 %v2932_v57  ;;  %1872 = vmatpush.bf16.msrb.mxu0 %v2940_v58  ;;  %v513_v55 = vpack.c.bf16 %v497_v46, %v497_v46  ;;  %v729_v57 = vunpack.c.l.b16 %v412_v49  ;;  %v730_v58 = vunpack.c.l.b16 %v413_v50  ;;  %v501_v46 = vld [vmem:[%s3216_s10 + $0x40] sm:$0xff]  ;;  %v416_v49 = vpack.c.bf16 %v2508_v37, %v2508_v37  ;;  %v2512_v37 = vld [vmem:[%s3216_s10 + $0x4d] sm:$0xff] }
  0x6a   : > { %1726 = vmatmul.bf16.vlgmr.msrb.gmra.mxu1 %v741_v61  ;;  %1775 = vmatmul.bf16.vlgmr.msrb.gmra.mxu2 %v789_v62  ;;  %v825_v61 = vunpack.c.l.b16 %v480_v53  ;;  %v826_v62 = vunpack.c.l.b16 %v481_v54  ;;  %v417_v50 = vpack.c.bf16 %v2509_v38, %v2509_v38  ;;  %v484_v53 = vpack.c.bf16 %v2542_v41, %v2542_v41  ;;  %v2513_v38 = vld [vmem:[%s3216_s10 + $0x55] sm:$0xff]  ;;  %v2546_v41 = vld [vmem:[%s3216_s10 + $0x5f] sm:$0xff] }
  0x6b   : > { %1963 = vmatpush.bf16.msra.mxu2 %v2963_v51  ;;  %1914 = vmatpush.bf16.msra.mxu1 %v2955_v52  ;;  %v446_v51 = vpack.c.bf16 %v2521_v39, %v2521_v39  ;;  %v447_v52 = vpack.c.bf16 %v2522_v40, %v2522_v40  ;;  %v2525_v39 = vld [vmem:[%s3216_s10 + $0x2e] sm:$0xff]  ;;  %v2526_v40 = vld [vmem:[%s3216_s10 + $0x36] sm:$0xff]  ;;  %v485_v54 = vpack.c.bf16 %v2543_v42, %v2543_v42  ;;  %v2956_v42 = vld [vmem:[%s3768_s1 + $0x180] sm:$0xff] }
  0x6c   : > { %1824 = vmatmul.bf16.vlgmr.msrb.gmra.mxu3 %v837_v63  ;;  %1873 = vmatmul.bf16.vlgmr.msrb.gmra.mxu0 %v885_v0  ;;  %v873_v63 = vunpack.c.l.b16 %v513_v55  ;;  %v874_v0 = vunpack.c.l.b16 %v514_v56  ;;  %v839_v3 = vpack.c.b16 %v826_v62, %v825_v61  ;;  %v517_v55 = vpack.c.bf16 %v501_v46, %v501_v46  ;;  %v506_v46 = vld [vmem:[%s3216_s10 + $0x68] sm:$0xff]  ;;  %v2531_v9 = vld [vmem:[%s3216_s10 + $0x5e] sm:$0xff] }
  0x6d   : > { %2012 = vmatpush.bf16.msra.mxu3 %v2971_v59  ;;  %2061 = vmatpush.bf16.msra.mxu0 %v2979_v60  ;;  %v777_v59 = vunpack.c.l.b16 %v446_v51  ;;  %v778_v60 = vunpack.c.l.b16 %v447_v52  ;;  %v450_v51 = vpack.c.bf16 %v2525_v39, %v2525_v39  ;;  %v451_v52 = vpack.c.bf16 %v2526_v40, %v2526_v40  ;;  %v2529_v39 = vld [vmem:[%s3216_s10 + $0x4e] sm:$0xff]  ;;  %v2530_v40 = vld [vmem:[%s3216_s10 + $0x56] sm:$0xff]  ;;  %v2515_v8 = vld [vmem:[%s3216_s10 + $0x65] sm:$0xff] }
  0x6e   : > { %v518_v56 = vpack.c.bf16 %v502_v47, %v502_v47  ;;  %v829_v61 = vunpack.c.l.b16 %v484_v53  ;;  %v830_v62 = vunpack.c.l.b16 %v485_v54  ;;  %v420_v47 = vpack.c.bf16 %v2512_v37, %v2512_v37 }
  0x6f   : > { %1964 = vmatpush.bf16.msra.mxu2 %v2962_v1  ;;  %1915 = vmatpush.bf16.msra.mxu1 %v2954_v2  ;;  %v743_v1 = vpack.c.b16 %v730_v58, %v729_v57  ;;  %v791_v2 = vpack.c.b16 %v778_v60, %v777_v59  ;;  %v733_v57 = vunpack.c.l.b16 %v416_v49  ;;  %v734_v58 = vunpack.c.l.b16 %v417_v50 }
  0x70   : > { %v781_v59 = vunpack.c.l.b16 %v450_v51  ;;  %v782_v60 = vunpack.c.l.b16 %v451_v52  ;;  %v454_v49 = vpack.c.bf16 %v2529_v39, %v2529_v39  ;;  %v455_v50 = vpack.c.bf16 %v2530_v40, %v2530_v40  ;;  %v2948_v51 = vld [vmem:[%s3768_s1 + $0x140] sm:$0xff] }
  0x71   : > { %2013 = vmatpush.bf16.msra.mxu3 %v2970_v4  ;;  %2062 = vmatpush.bf16.msra.mxu0 %v2978_v5  ;;  %v887_v4 = vpack.c.b16 %v874_v0, %v873_v63  ;;  %v2506_v5 = vld [vmem:[%s3216_s10 + $0x1d] sm:$0xff]  ;;  %v877_v63 = vunpack.c.l.b16 %v517_v55  ;;  %v878_v0 = vunpack.c.l.b16 %v518_v56  ;;  %v488_v52 = vpack.c.bf16 %v2546_v41, %v2546_v41 }
  0x72   : > { %v414_v17 = vpack.c.bf16 %v2506_v5, %v2506_v5  ;;  %v2510_v5 = vld [vmem:[%s3216_s10 + $0x3d] sm:$0xff]  ;;  %v522_v55 = vpack.c.bf16 %v506_v46, %v506_v46 }
  0x73   : > { %1965 = vmatpush.bf16.msra.mxu2 %v2961_v13  ;;  %1916 = vmatpush.bf16.msra.mxu1 %v2953_v14  ;;  %v2951_v13 = vld [vmem:[%s3768_s1 + $0x158] sm:$0xff]  ;;  %v499_v14 = vld [vmem:[%s3216_s10 + $0x30] sm:$0xff]  ;;  %v2972_v56 = vld [vmem:[%s3768_s1 + $0x200] sm:$0xff] }
  0x74   : > { %v515_v23 = vpack.c.bf16 %v499_v14, %v499_v14  ;;  %v731_v25 = vunpack.c.l.b16 %v414_v17  ;;  %v504_v14 = vld [vmem:[%s3216_s10 + $0x58] sm:$0xff]  ;;  %v452_v17 = vpack.c.bf16 %v2527_v7, %v2527_v7 }
  0x75   : > { %2014 = vmatpush.bf16.msra.mxu3 %v2969_v15  ;;  %2063 = vmatpush.bf16.msra.mxu0 %v2977_v16  ;;  %v500_v15 = vld [vmem:[%s3216_s10 + $0x38] sm:$0xff] }
  0x76   : > { %v2975_v16 = vld [vmem:[%s3768_s1 + $0x218] sm:$0xff]  ;;  %v516_v24 = vpack.c.bf16 %v500_v15, %v500_v15  ;;  %v875_v31 = vunpack.c.l.b16 %v515_v23  ;;  %v418_v15 = vpack.c.bf16 %v2510_v5, %v2510_v5  ;;  %v520_v23 = vpack.c.bf16 %v504_v14, %v504_v14 }
  0x77   : > { %1966 = vmatpush.bf16.msra.mxu2 %v2960_v43  ;;  %1917 = vmatpush.bf16.msra.mxu1 %v2952_v45  ;;  %v2958_v43 = vld [vmem:[%s3768_s1 + $0x190] sm:$0xff]  ;;  %v2514_v7 = vld [vmem:[%s3216_s10 + $0x5d] sm:$0xff] }
  0x78   : > { %v876_v32 = vunpack.c.l.b16 %v516_v24  ;;  %v2950_v45 = vld [vmem:[%s3768_s1 + $0x150] sm:$0xff]  ;;  %v2973_v24 = vld [vmem:[%s3768_s1 + $0x208] sm:$0xff]  ;;  %v508_v14 = vld [vmem:[%s3216_s10 + $0x78] sm:$0xff] }
  0x79   : > { %2015 = vmatpush.bf16.msra.mxu3 %v2968_v44  ;;  %2064 = vmatpush.bf16.msra.mxu0 %v2976_v48  ;;  %v2966_v44 = vld [vmem:[%s3768_s1 + $0x1d0] sm:$0xff]  ;;  %v2569_v46 = vld [vmem:[%s3216_s10 + $0x1a] sm:$0xff] }
  0x7a   : > { %1731 = vmatmul.bf16.gmra.mxu1 %v742_v33  ;;  %1780 = vmatmul.bf16.gmra.mxu2 %v790_v34  ;;  %v744_v33 = vpack.c.b16 %v732_v26, %v731_v25  ;;  %v792_v34 = vpack.c.b16 %v780_v28, %v779_v27  ;;  %v2974_v48 = vld [vmem:[%s3768_s1 + $0x210] sm:$0xff]  ;;  %v735_v25 = vunpack.c.l.b16 %v418_v15  ;;  %v783_v27 = vunpack.c.l.b16 %v452_v17 }
  0x7b   : > { %1967 = vmatpush.bf16.msra.mxu2 %v2959_v11  ;;  %1918 = vmatpush.bf16.msra.mxu1 %v2951_v13  ;;  %v2965_v11 = vld [vmem:[%s3768_s1 + $0x1c8] sm:$0xff]  ;;  %v503_v13 = vld [vmem:[%s3216_s10 + $0x50] sm:$0xff]  ;;  %v784_v28 = vunpack.c.l.b16 %v453_v18  ;;  %v422_v17 = vpack.c.bf16 %v2514_v7, %v2514_v7  ;;  %v423_v18 = vpack.c.bf16 %v2515_v8, %v2515_v8 }
  0x7c   : > { %1829 = vmatmul.bf16.gmra.mxu3 %v838_v35  ;;  %1878 = vmatmul.bf16.gmra.mxu0 %v886_v36  ;;  %v840_v35 = vpack.c.b16 %v828_v30, %v827_v29  ;;  %v888_v36 = vpack.c.b16 %v876_v32, %v875_v31  ;;  %v519_v22 = vpack.c.bf16 %v503_v13, %v503_v13  ;;  %v831_v29 = vunpack.c.l.b16 %v486_v20  ;;  %v507_v13 = vld [vmem:[%s3216_s10 + $0x70] sm:$0xff] }
  0x7d   : > { %2016 = vmatpush.bf16.msra.mxu3 %v2967_v12  ;;  %2065 = vmatpush.bf16.msra.mxu0 %v2975_v16  ;;  %v2545_v12 = vld [vmem:[%s3216_s10 + $0x57] sm:$0xff]  ;;  %v419_v16 = vpack.c.bf16 %v2511_v6, %v2511_v6  ;;  %v880_v32 = vunpack.c.l.b16 %v520_v23 }
  0x7e   : > { %v487_v21 = vpack.c.bf16 %v2545_v12, %v2545_v12  ;;  %v879_v31 = vunpack.c.l.b16 %v519_v22  ;;  %v2549_v12 = vld [vmem:[%s3216_s10 + $0x77] sm:$0xff] }
  0x7f   : > { %1968 = vmatpush.bf16.msra.mxu2 %v2958_v43  ;;  %1919 = vmatpush.bf16.msra.mxu1 %v2950_v45  ;;  %v736_v26 = vunpack.c.l.b16 %v419_v16  ;;  %v2964_v43 = vld [vmem:[%s3768_s1 + $0x1c0] sm:$0xff]  ;;  %v491_v23 = vpack.c.bf16 %v2549_v12, %v2549_v12 }
  0x80   : > { %v832_v30 = vunpack.c.l.b16 %v487_v21  ;;  %v505_v45 = vld [vmem:[%s3216_s10 + $0x60] sm:$0xff] }
  0x81   : > { %2017 = vmatpush.bf16.msra.mxu3 %v2966_v44  ;;  %2066 = vmatpush.bf16.msra.mxu0 %v2974_v48  ;;  %v2547_v44 = vld [vmem:[%s3216_s10 + $0x67] sm:$0xff]  ;;  %v421_v48 = vpack.c.bf16 %v2513_v38, %v2513_v38  ;;  %v521_v54 = vpack.c.bf16 %v505_v45, %v505_v45  ;;  %v2568_v45 = vld [vmem:[%s3216_s10 + $0x12] sm:$0xff] }
  0x82   : > { %v489_v53 = vpack.c.bf16 %v2547_v44, %v2547_v44  ;;  %v2552_v44 = vld [vmem:[%s3216_s10 + $0x9] sm:$0xff] }
  0x83   : > { %1969 = vmatpush.bf16.msra.mxu2 %v2957_v10  ;;  %1920 = vmatpush.bf16.msra.mxu1 %v2949_v19  ;;  %v2532_v10 = vld [vmem:[%s3216_s10 + $0x66] sm:$0xff]  ;;  %v456_v19 = vpack.c.bf16 %v2531_v9, %v2531_v9 }
  0x84   : > { %v457_v20 = vpack.c.bf16 %v2532_v10, %v2532_v10 }
  0x85   : > { %2018 = vmatpush.bf16.msra.mxu3 %v2965_v11  ;;  %2067 = vmatpush.bf16.msra.mxu0 %v2973_v24  ;;  %v2548_v11 = vld [vmem:[%s3216_s10 + $0x6f] sm:$0xff]  ;;  %v523_v24 = vpack.c.bf16 %v507_v13, %v507_v13 }
  0x86   : > { %v490_v22 = vpack.c.bf16 %v2548_v11, %v2548_v11 }
  0x87   : > { %1970 = vmatpush.bf16.msra.mxu2 %v2956_v42  ;;  %1921 = vmatpush.bf16.msra.mxu1 %v2948_v51 }
  0x89   : > { %2019 = vmatpush.bf16.msra.mxu3 %v2964_v43  ;;  %2068 = vmatpush.bf16.msra.mxu0 %v2972_v56  ;;  %v2551_v43 = vld [vmem:[%s3216_s10 + $0x1] sm:$0xff]  ;;  %v578_v56 = vpack.c.bf16 %v2569_v46, %v2569_v46 }
  0x8a   : > { %1736 = vmatmul.bf16.gmra.mxu1 %v743_v1  ;;  %1785 = vmatmul.bf16.gmra.mxu2 %v791_v2  ;;  %v745_v1 = vpack.c.b16 %v734_v58, %v733_v57  ;;  %v793_v2 = vpack.c.b16 %v782_v60, %v781_v59  ;;  %v737_v57 = vunpack.c.l.b16 %v420_v47  ;;  %v738_v58 = vunpack.c.l.b16 %v421_v48  ;;  %v2585_v47 = vld [vmem:[%s3216_s10 + $0x13] sm:$0xff]  ;;  %v2586_v48 = vld [vmem:[%s3216_s10 + $0x1b] sm:$0xff] }
  0x8b   : > { %v785_v59 = vunpack.c.l.b16 %v454_v49  ;;  %v786_v60 = vunpack.c.l.b16 %v455_v50  ;;  %v2602_v49 = vld [vmem:[%s3216_s10 + $0x14] sm:$0xff]  ;;  %v2603_v50 = vld [vmem:[%s3216_s10 + $0x1c] sm:$0xff] }
  0x8c   : > { %1834 = vmatmul.bf16.gmra.mxu3 %v839_v3  ;;  %1883 = vmatmul.bf16.gmra.mxu0 %v887_v4  ;;  %v841_v3 = vpack.c.b16 %v830_v62, %v829_v61  ;;  %v889_v4 = vpack.c.b16 %v878_v0, %v877_v63  ;;  %v833_v61 = vunpack.c.l.b16 %v488_v52  ;;  %v834_v62 = vunpack.c.l.b16 %v489_v53 }
  0x8d   : > { %v881_v63 = vunpack.c.l.b16 %v521_v54  ;;  %v882_v0 = vunpack.c.l.b16 %v522_v55  ;;  %v543_v52 = vpack.c.bf16 %v2551_v43, %v2551_v43  ;;  %v544_v54 = vpack.c.bf16 %v2552_v44, %v2552_v44 }
  0x8e   : > { %v577_v55 = vpack.c.bf16 %v2568_v45, %v2568_v45 }
  0x8f   : > { %v891_v5 = vpack.c.b16 %v882_v0, %v881_v63  ;;  %v2150_v63 = vld [vmem:[%s3168_s9] sm:$0xff]  ;;  %v917_v0 = vunpack.c.l.b16 %v543_v52 }
  0x90   : > { %vm2166_vm0 = vcmp.gt.f32.partialorder %v2150_v63, 0.5 }
  0x9a   : > { %1741 = vmatmul.bf16.gmra.mxu1 %v744_v33  ;;  %1790 = vmatmul.bf16.gmra.mxu2 %v792_v34  ;;  %v746_v33 = vpack.c.b16 %v736_v26, %v735_v25  ;;  %v794_v34 = vpack.c.b16 %v784_v28, %v783_v27  ;;  %v524_v25 = vpack.c.bf16 %v508_v14, %v508_v14  ;;  %v739_v27 = vunpack.c.l.b16 %v422_v17 }
  0x9b   : > { %v740_v28 = vunpack.c.l.b16 %v423_v18 }
  0x9c   : > { %1839 = vmatmul.bf16.gmra.mxu3 %v840_v35  ;;  %1888 = vmatmul.bf16.gmra.mxu0 %v888_v36  ;;  %v842_v35 = vpack.c.b16 %v832_v30, %v831_v29  ;;  %v890_v36 = vpack.c.b16 %v880_v32, %v879_v31  ;;  %v787_v29 = vunpack.c.l.b16 %v456_v19  ;;  %v788_v30 = vunpack.c.l.b16 %v457_v20 }
  0x9d   : > { %v835_v31 = vunpack.c.l.b16 %v490_v22  ;;  %v836_v32 = vunpack.c.l.b16 %v491_v23  ;;  %v748_v37 = vpack.c.b16 %v740_v28, %v739_v27  ;;  %v2151_v27 = vld [vmem:[%s3168_s9 + $0x8] sm:$0xff] }
  0x9e   : > { %v796_v38 = vpack.c.b16 %v788_v30, %v787_v29  ;;  %v2570_v28 = vld [vmem:[%s3216_s10 + $0x22] sm:$0xff]  ;;  %v2571_v29 = vld [vmem:[%s3216_s10 + $0x2a] sm:$0xff]  ;;  %vm2167_vm1 = vcmp.gt.f32.partialorder %v2151_v27, 0.5  ;;  %v2572_v27 = vld [vmem:[%s3216_s10 + $0x32] sm:$0xff] }
  0x9f   : > { %v844_v40 = vpack.c.b16 %v836_v32, %v835_v31  ;;  %v2587_v30 = vld [vmem:[%s3216_s10 + $0x23] sm:$0xff]  ;;  %v2588_v31 = vld [vmem:[%s3216_s10 + $0x2b] sm:$0xff]  ;;  %v579_v43 = vpack.c.bf16 %v2570_v28, %v2570_v28  ;;  %v580_v44 = vpack.c.bf16 %v2571_v29, %v2571_v29  ;;  %v2573_v28 = vld [vmem:[%s3216_s10 + $0x3a] sm:$0xff] }
  0xa0   : > { %v2604_v32 = vld [vmem:[%s3216_s10 + $0x24] sm:$0xff]  ;;  %v613_v46 = vpack.c.bf16 %v2587_v30, %v2587_v30  ;;  %v2589_v29 = vld [vmem:[%s3216_s10 + $0x33] sm:$0xff]  ;;  %v2590_v30 = vld [vmem:[%s3216_s10 + $0x3b] sm:$0xff] }
  0xaa   : > { %1746 = vmatmul.bf16.gmra.mxu1 %v745_v1  ;;  %1795 = vmatmul.bf16.gmra.mxu2 %v793_v2  ;;  %v747_v1 = vpack.c.b16 %v738_v58, %v737_v57  ;;  %v795_v2 = vpack.c.b16 %v786_v60, %v785_v59  ;;  %v611_v58 = vpack.c.bf16 %v2585_v47, %v2585_v47 }
  0xab   : > { %v612_v59 = vpack.c.bf16 %v2586_v48, %v2586_v48  ;;  %v645_v60 = vpack.c.bf16 %v2602_v49, %v2602_v49  ;;  %v614_v47 = vpack.c.bf16 %v2588_v31, %v2588_v31  ;;  %v647_v48 = vpack.c.bf16 %v2604_v32, %v2604_v32  ;;  %v2606_v31 = vld [vmem:[%s3216_s10 + $0x34] sm:$0xff]  ;;  %v2607_v32 = vld [vmem:[%s3216_s10 + $0x3c] sm:$0xff] }
  0xac   : > { %1844 = vmatmul.bf16.gmra.mxu3 %v841_v3  ;;  %1893 = vmatmul.bf16.gmra.mxu0 %v889_v4  ;;  %v843_v4 = vpack.c.b16 %v834_v62, %v833_v61  ;;  %v646_v61 = vpack.c.bf16 %v2603_v50, %v2603_v50  ;;  %v1013_v8 = vunpack.c.l.b16 %v611_v58 }
  0xad   : > { %v1014_v9 = vunpack.c.l.b16 %v612_v59  ;;  %v1061_v10 = vunpack.c.l.b16 %v645_v60  ;;  %v967_v59 = vunpack.c.l.b16 %v579_v43  ;;  %v968_v60 = vunpack.c.l.b16 %v580_v44 }
  0xae   : > { %v1062_v11 = vunpack.c.l.b16 %v646_v61  ;;  %v615_v44 = vpack.c.bf16 %v2589_v29, %v2589_v29 }
  0xaf   : > { %v1029_v19 = vpack.c.b16 %v1014_v9, %v1013_v8 }
  0xb0   : > { %v1077_v20 = vpack.c.b16 %v1062_v11, %v1061_v10  ;;  %v982_v10 = vpack.c.b16 %v968_v60, %v967_v59  ;;  %v1017_v59 = vunpack.c.l.b16 %v615_v44 }
  0xba   : > { %1751 = vmatmul.bf16.gmra.mxu1 %v746_v33  ;;  %1800 = vmatmul.bf16.gmra.mxu2 %v794_v34  ;;  %v883_v33 = vunpack.c.l.b16 %v523_v24  ;;  %v884_v34 = vunpack.c.l.b16 %v524_v25  ;;  %v2553_v24 = vld [vmem:[%s3216_s10 + $0x11] sm:$0xff]  ;;  %v2554_v25 = vld [vmem:[%s3216_s10 + $0x19] sm:$0xff] }
  0xbc   : > { %1849 = vmatmul.bf16.gmra.mxu3 %v842_v35  ;;  %1898 = vmatmul.bf16.gmra.mxu0 %v890_v36  ;;  %v892_v41 = vpack.c.b16 %v884_v34, %v883_v33  ;;  %v2605_v33 = vld [vmem:[%s3216_s10 + $0x2c] sm:$0xff] }
  0xbd   : > { %v648_v49 = vpack.c.bf16 %v2605_v33, %v2605_v33 }
  0xc7   : > { %v3491_v3 = vpop.f32.mrf.mxu1 }
  0xc9   : > { %v3493_v6 = vpop.f32.mrf.mxu0 }
  0xca   : > { %1756 = vmatmul.bf16.gmra.mxu1 %v747_v1  ;;  %1805 = vmatmul.bf16.gmra.mxu2 %v795_v2  ;;  %v3094_v1 = vmov 0   ;;  %v918_v2 = vunpack.c.l.b16 %v544_v54 }
  0xcb   : > { %3048 = vset.pattern.permute.xlu0 %v3094_v1  ;;  %3049 = vset.pattern.permute.xlu1 %v3094_v1  ;;  %v2182_v7 = vsel %vm2166_vm0, 1, %v3094_v1  ;;  %v2183_v34 = vsel %vm2167_vm1, 1, %v3094_v1 }
  0xcc   : > { %1854 = vmatmul.bf16.gmra.mxu3 %v843_v4  ;;  %1903 = vmatmul.bf16.gmra.mxu0 %v891_v5  ;;  %v965_v4 = vunpack.c.l.b16 %v577_v55  ;;  %v966_v5 = vunpack.c.l.b16 %v578_v56  ;;  %v933_v14 = vpack.c.b16 %v918_v2, %v917_v0  ;;  %v2152_v55 = vld [vmem:[%s3168_s9 + $0x10] sm:$0xff]  ;;  %v1015_v0 = vunpack.c.l.b16 %v613_v46 }
  0xcd   : > { %v3503_v15 = vpop.f32.mrf.mxu2  ;;  %3050 = vset.pattern.permute.xlu2 %v3094_v1  ;;  %2199 = vperm.xlu0 %3048, %v2182_v7   ;;  %vm2168_vm2 = vcmp.gt.f32.partialorder %v2152_v55, 0.5  ;;  %v1016_v2 = vunpack.c.l.b16 %v614_v47  ;;  %v649_v46 = vpack.c.bf16 %v2606_v31, %v2606_v31  ;;  %v650_v47 = vpack.c.bf16 %v2607_v32, %v2607_v32 }
  0xce   : > { %v981_v17 = vpack.c.b16 %v966_v5, %v965_v4  ;;  %v2184_v61 = vsel %vm2168_vm2, 1, %v3094_v1  ;;  %v1063_v4 = vunpack.c.l.b16 %v647_v48  ;;  %v1064_v5 = vunpack.c.l.b16 %v648_v49 }
  0xcf   : > { %v3505_v16 = vpop.f32.mrf.mxu3  ;;  %v3507_v21 = vpop.f32.mrf.mxu1  ;;  %2205 = vperm.xlu1 %3049, %v2184_v61   ;;  %v1065_v61 = vunpack.c.l.b16 %v649_v46 }
  0xd1   : > { %v3509_v26 = vpop.f32.mrf.mxu0 }
  0xd5   : > { %v3511_v35 = vpop.f32.mrf.mxu2  ;;  %2202 = vperm.xlu0 %3048, %v2183_v34  }
  0xd7   : > { %v3513_v36 = vpop.f32.mrf.mxu3  ;;  %v3515_v39 = vpop.f32.mrf.mxu1 }
  0xd9   : > { %v3517_v42 = vpop.f32.mrf.mxu0 }
  0xda   : > { %1761 = vmatmul.bf16.gmra.mxu1 %v748_v37  ;;  %1810 = vmatmul.bf16.gmra.mxu2 %v796_v38  ;;  %v546_v38 = vpack.c.bf16 %v2554_v25, %v2554_v25 }
  0xdc   : > { %1859 = vmatmul.bf16.gmra.mxu3 %v844_v40  ;;  %1908 = vmatmul.bf16.gmra.mxu0 %v892_v41  ;;  %v920_v58 = vunpack.c.l.b16 %v546_v38 }
  0xdd   : > { %v3527_v51 = vpop.f32.mrf.mxu2 }
  0xdf   : > { %v3529_v53 = vpop.f32.mrf.mxu3  ;;  %v3531_v57 = vpop.f32.mrf.mxu1 }
  0xe1   : > { %v3533_v62 = vpop.f32.mrf.mxu0 }
  0xe5   : > { %v3540_v12 = vpop.f32.mrf.mxu2 }
  0xe7   : > { %v3542_v13 = vpop.f32.mrf.mxu3  ;;  %v1727_v18 = vpop.f32.mrf.mxu1 }
  0xe8   : > { %v1728_v22 = vadd.f32 %v1727_v18, %v3493_v6  ;;  %v545_v6 = vpack.c.bf16 %v2553_v24, %v2553_v24  ;;  %v2153_v24 = vld [vmem:[%s3168_s9 + $0x18] sm:$0xff] }
  0xe9   : > { %v1874_v23 = vpop.f32.mrf.mxu0  ;;  %vm2169_vm3 = vcmp.gt.f32.partialorder %v2153_v24, 0.5  ;;  %v2592_v24 = vld [vmem:[%s3216_s10 + $0x4b] sm:$0xff] }
  0xea   : > { %1922 = vmatmul.bf16.vlgmr.msra.gmra.mxu1 %v933_v14  ;;  %1971 = vmatmul.bf16.vlgmr.msra.gmra.mxu2 %v981_v17  ;;  %v919_v56 = vunpack.c.l.b16 %v545_v6  ;;  %v1030_v14 = vpack.c.b16 %v1016_v2, %v1015_v0  ;;  %v1078_v17 = vpack.c.b16 %v1064_v5, %v1063_v4  ;;  %v1066_v0 = vunpack.c.l.b16 %v650_v47 }
  0xec   : > { %2020 = vmatmul.bf16.vlgmr.msra.gmra.mxu3 %v1029_v19  ;;  %2069 = vmatmul.bf16.vlgmr.msra.gmra.mxu0 %v1077_v20  ;;  %v934_v9 = vpack.c.b16 %v920_v58, %v919_v56 }
  0xed   : > { %v1776_v37 = vpop.f32.mrf.mxu2 }
  0xee   : > { %v1777_v40 = vadd.f32 %v1776_v37, %v1728_v22  ;;  %v2555_v22 = vld [vmem:[%s3216_s10 + $0x21] sm:$0xff] }
  0xef   : > { %v1825_v41 = vpop.f32.mrf.mxu3  ;;  %v1729_v45 = vpop.f32.mrf.mxu1  ;;  %v547_v34 = vpack.c.bf16 %v2555_v22, %v2555_v22  ;;  %v2575_v22 = vld [vmem:[%s3216_s10 + $0x4a] sm:$0xff] }
  0xf0   : > { %v1826_v50 = vadd.f32 %v1825_v41, %v1777_v40  ;;  %v1730_v52 = vadd.f32 %v1729_v45, %v3509_v26  ;;  %v581_v40 = vpack.c.bf16 %v2572_v27, %v2572_v27  ;;  %v582_v41 = vpack.c.bf16 %v2573_v28, %v2573_v28  ;;  %v2608_v27 = vld [vmem:[%s3216_s10 + $0x44] sm:$0xff]  ;;  %v2609_v28 = vld [vmem:[%s3216_s10 + $0x4c] sm:$0xff] }
  0xf1   : > { %v1876_v54 = vpop.f32.mrf.mxu0  ;;  %v616_v45 = vpack.c.bf16 %v2590_v30, %v2590_v30 }
  0xf2   : > { %v3558_v63 = vadd.f32 %v1874_v23, %v1826_v50  ;;  %v2556_v23 = vld [vmem:[%s3216_s10 + $0x29] sm:$0xff]  ;;  %v969_v55 = vunpack.c.l.b16 %v581_v40  ;;  %v970_v56 = vunpack.c.l.b16 %v582_v41  ;;  %v652_v40 = vpack.c.bf16 %v2609_v28, %v2609_v28 }
  0xf3   : > { %v548_v38 = vpack.c.bf16 %v2556_v23, %v2556_v23  ;;  %v1018_v60 = vunpack.c.l.b16 %v616_v45  ;;  %v2591_v23 = vld [vmem:[%s3216_s10 + $0x43] sm:$0xff]  ;;  %v2156_v45 = vld [vmem:[%s3168_s9 + $0x30] sm:$0xff] }
  0xf4   : > { %vm2172_vm4 = vcmp.gt.f32.partialorder %v2156_v45, 0.5 }
  0xf5   : > { %v1778_v26 = vpop.f32.mrf.mxu2 }
  0xf6   : > { %v1779_v7 = vadd.f32 %v1778_v26, %v1730_v52  ;;  %v921_v52 = vunpack.c.l.b16 %v547_v34 }
  0xf7   : > { %v1827_v8 = vpop.f32.mrf.mxu3  ;;  %v1732_v11 = vpop.f32.mrf.mxu1 }
  0xf8   : > { %v1828_v18 = vadd.f32 %v1827_v8, %v1779_v7  ;;  %v1733_v19 = vadd.f32 %v1732_v11, %v3517_v42  ;;  %v2185_v42 = vsel %vm2169_vm3, 1, %v3094_v1  ;;  %v1031_v8 = vpack.c.b16 %v1018_v60, %v1017_v59 }
  0xf9   : > { %v1879_v20 = vpop.f32.mrf.mxu0  ;;  %2208 = vperm.xlu1 %3049, %v2185_v42   ;;  %v1068_v59 = vunpack.c.l.b16 %v652_v40 }
  0xfa   : > { %1927 = vmatmul.bf16.gmra.mxu1 %v934_v9  ;;  %1976 = vmatmul.bf16.gmra.mxu2 %v982_v10  ;;  %v3564_v25 = vadd.f32 %v1876_v54, %v1828_v18  ;;  %v922_v54 = vunpack.c.l.b16 %v548_v38  ;;  %v1079_v9 = vpack.c.b16 %v1066_v0, %v1065_v61  ;;  %v2558_v18 = vld [vmem:[%s3216_s10 + $0x39] sm:$0xff]  ;;  %v651_v38 = vpack.c.bf16 %v2608_v27, %v2608_v27 }
  0xfb   : > { %v550_v31 = vpack.c.bf16 %v2558_v18, %v2558_v18  ;;  %v2611_v27 = vld [vmem:[%s3216_s10 + $0x5c] sm:$0xff] }
  0xfc   : > { %2025 = vmatmul.bf16.gmra.mxu3 %v1030_v14  ;;  %2074 = vmatmul.bf16.gmra.mxu0 %v1078_v17  ;;  %v935_v26 = vpack.c.b16 %v922_v54, %v921_v52  ;;  %v2557_v17 = vld [vmem:[%s3216_s10 + $0x31] sm:$0xff]  ;;  %v654_v40 = vpack.c.bf16 %v2611_v27, %v2611_v27 }
  0xfd   : > { %v1781_v33 = vpop.f32.mrf.mxu2  ;;  %v549_v30 = vpack.c.bf16 %v2557_v17, %v2557_v17  ;;  %v924_v47 = vunpack.c.l.b16 %v550_v31  ;;  %v2157_v17 = vld [vmem:[%s3168_s9 + $0x38] sm:$0xff]  ;;  %v2596_v27 = vld [vmem:[%s3216_s10 + $0x6b] sm:$0xff] }
  0xfe   : > { %v1782_v37 = vadd.f32 %v1781_v33, %v1733_v19  ;;  %v584_v33 = vpack.c.bf16 %v2575_v22, %v2575_v22  ;;  %v2593_v22 = vld [vmem:[%s3216_s10 + $0x53] sm:$0xff]  ;;  %vm2173_vm6 = vcmp.gt.f32.partialorder %v2157_v17, 0.5  ;;  %v2162_v17 = vld [vmem:[%s3168_s9 + $0x60] sm:$0xff] }
  0xff   : > { %v1830_v6 = vpop.f32.mrf.mxu3  ;;  %v1734_v43 = vpop.f32.mrf.mxu1  ;;  %v923_v46 = vunpack.c.l.b16 %v549_v30  ;;  %vm2178_vm9 = vcmp.gt.f32.partialorder %v2162_v17, 0.5  ;;  %v2163_v17 = vld [vmem:[%s3168_s9 + $0x68] sm:$0xff] }
 0x100   : > { %v1831_v48 = vadd.f32 %v1830_v6, %v1782_v37  ;;  %v1735_v49 = vadd.f32 %v1734_v43, %v3533_v62  ;;  %v983_v62 = vpack.c.b16 %v970_v56, %v969_v55  ;;  %v617_v37 = vpack.c.bf16 %v2591_v23, %v2591_v23  ;;  %v2594_v23 = vld [vmem:[%s3216_s10 + $0x5b] sm:$0xff] }
 0x101   : > { %v1881_v50 = vpop.f32.mrf.mxu0  ;;  %v618_v6 = vpack.c.bf16 %v2592_v24, %v2592_v24  ;;  %v1067_v56 = vunpack.c.l.b16 %v651_v38  ;;  %v936_v0 = vpack.c.b16 %v924_v47, %v923_v46  ;;  %v2610_v24 = vld [vmem:[%s3216_s10 + $0x54] sm:$0xff]  ;;  %v2155_v46 = vld [vmem:[%s3168_s9 + $0x28] sm:$0xff]  ;;  %vm2179_vm13 = vcmp.gt.f32.partialorder %v2163_v17, 0.5 }
 0x102   : > { %v3574_v58 = vadd.f32 %v1879_v20, %v1831_v48  ;;  %v2574_v20 = vld [vmem:[%s3216_s10 + $0x42] sm:$0xff]  ;;  %v1019_v54 = vunpack.c.l.b16 %v617_v37  ;;  %v619_v37 = vpack.c.bf16 %v2593_v22, %v2593_v22  ;;  %v653_v38 = vpack.c.bf16 %v2610_v24, %v2610_v24  ;;  %v2579_v22 = vld [vmem:[%s3216_s10 + $0x6a] sm:$0xff] }
 0x103   : > { %v583_v42 = vpack.c.bf16 %v2574_v20, %v2574_v20  ;;  %v1020_v55 = vunpack.c.l.b16 %v618_v6  ;;  %v2577_v20 = vld [vmem:[%s3216_s10 + $0x5a] sm:$0xff]  ;;  %v620_v6 = vpack.c.bf16 %v2594_v23, %v2594_v23  ;;  %v2159_v47 = vld [vmem:[%s3168_s9 + $0x48] sm:$0xff]  ;;  %vm2171_vm7 = vcmp.gt.f32.partialorder %v2155_v46, 0.5 }
 0x104   : > { %vm2175_vm8 = vcmp.gt.f32.partialorder %v2159_v47, 0.5  ;;  %v2165_v46 = vld [vmem:[%s3168_s9 + $0x78] sm:$0xff]  ;;  %v2582_v17 = vld [vmem:[%s3216_s10 + $0x82] sm:$0xff] }
 0x105   : > { %v1783_v2 = vpop.f32.mrf.mxu2  ;;  %v971_v48 = vunpack.c.l.b16 %v583_v42  ;;  %vm2181_vm11 = vcmp.gt.f32.partialorder %v2165_v46, 0.5 }
 0x106   : > { %v1784_v4 = vadd.f32 %v1783_v2, %v1735_v49  ;;  %v972_v49 = vunpack.c.l.b16 %v584_v33  ;;  %v586_v33 = vpack.c.bf16 %v2577_v20, %v2577_v20 }
 0x107   : > { %v1832_v5 = vpop.f32.mrf.mxu3  ;;  %v1737_v7 = vpop.f32.mrf.mxu1 }
 0x108   : > { %v1833_v10 = vadd.f32 %v1832_v5, %v1784_v4  ;;  %v1738_v11 = vadd.f32 %v1737_v7, %v3491_v3  ;;  %v984_v2 = vpack.c.b16 %v972_v49, %v971_v48  ;;  %v1032_v5 = vpack.c.b16 %v1020_v55, %v1019_v54 }
 0x109   : > { %v1884_v14 = vpop.f32.mrf.mxu0  ;;  %v2187_v54 = vsel %vm2171_vm7, 1, %v3094_v1  ;;  %v2191_v55 = vsel %vm2175_vm8, 1, %v3094_v1 }
 0x10a   : > { %1932 = vmatmul.bf16.gmra.mxu1 %v935_v26  ;;  %1981 = vmatmul.bf16.gmra.mxu2 %v983_v62  ;;  %v3579_v19 = vadd.f32 %v1881_v50, %v1833_v10  ;;  %v2188_v50 = vsel %vm2172_vm4, 1, %v3094_v1  ;;  %v1080_v26 = vpack.c.b16 %v1068_v59, %v1067_v56  ;;  %v2560_v10 = vld [vmem:[%s3216_s10 + $0x49] sm:$0xff]  ;;  %v1021_v59 = vunpack.c.l.b16 %v619_v37 }
 0x10b   : > { %2217 = vperm.xlu0 %3048, %v2188_v50   ;;  %v552_v31 = vpack.c.bf16 %v2560_v10, %v2560_v10  ;;  %v974_v50 = vunpack.c.l.b16 %v586_v33  ;;  %v2561_v10 = vld [vmem:[%s3216_s10 + $0x51] sm:$0xff] }
 0x10c   : > { %2030 = vmatmul.bf16.gmra.mxu3 %v1031_v8  ;;  %2079 = vmatmul.bf16.gmra.mxu0 %v1079_v9  ;;  %v2559_v9 = vld [vmem:[%s3216_s10 + $0x41] sm:$0xff]  ;;  %v553_v24 = vpack.c.bf16 %v2561_v10, %v2561_v10 }
 0x10d   : > { %v1786_v29 = vpop.f32.mrf.mxu2  ;;  %v926_v48 = vunpack.c.l.b16 %v552_v31 }
 0x10e   : > { %v1787_v3 = vadd.f32 %v1786_v29, %v1738_v11  ;;  %v2576_v11 = vld [vmem:[%s3216_s10 + $0x52] sm:$0xff]  ;;  %v2189_v29 = vsel %vm2173_vm6, 1, %v3094_v1 }
 0x10f   : > { %v1835_v32 = vpop.f32.mrf.mxu3  ;;  %v1739_v34 = vpop.f32.mrf.mxu1  ;;  %2220 = vperm.xlu1 %3049, %v2189_v29   ;;  %v2613_v29 = vld [vmem:[%s3216_s10 + $0x6c] sm:$0xff] }
 0x110   : > { %v1836_v41 = vadd.f32 %v1835_v32, %v1787_v3  ;;  %v1740_v43 = vadd.f32 %v1739_v34, %v3507_v21  ;;  %v585_v3 = vpack.c.bf16 %v2576_v11, %v2576_v11  ;;  %v2562_v11 = vld [vmem:[%s3216_s10 + $0x59] sm:$0xff] }
 0x111   : > { %v1886_v44 = vpop.f32.mrf.mxu0 }
 0x112   : > { %v3590_v52 = vadd.f32 %v1884_v14, %v1836_v41  ;;  %v2154_v14 = vld [vmem:[%s3168_s9 + $0x20] sm:$0xff]  ;;  %v973_v49 = vunpack.c.l.b16 %v585_v3  ;;  %v554_v3 = vpack.c.bf16 %v2562_v11, %v2562_v11 }
 0x113   : > { %vm2170_vm5 = vcmp.gt.f32.partialorder %v2154_v14, 0.5  ;;  %2226 = vperm.xlu0 %3048, %v2191_v55   ;;  %v2578_v14 = vld [vmem:[%s3216_s10 + $0x62] sm:$0xff] }
 0x114   : > { %v2186_v28 = vsel %vm2170_vm5, 1, %v3094_v1  ;;  %v928_v47 = vunpack.c.l.b16 %v554_v3  ;;  %v2563_v11 = vld [vmem:[%s3216_s10 + $0x61] sm:$0xff]  ;;  %v2195_v3 = vsel %vm2179_vm13, 1, %v3094_v1 }
 0x115   : > { %v1788_v21 = vpop.f32.mrf.mxu2  ;;  %2211 = vperm.xlu2 %3050, %v2186_v28   ;;  %v2612_v28 = vld [vmem:[%s3216_s10 + $0x64] sm:$0xff] }
 0x116   : > { %v1789_v60 = vadd.f32 %v1788_v21, %v1740_v43  ;;  %v1022_v21 = vunpack.c.l.b16 %v620_v6 }
 0x117   : > { %v1837_v61 = vpop.f32.mrf.mxu3  ;;  %v1742_v4 = vpop.f32.mrf.mxu1 }
 0x118   : > { %v1838_v62 = vadd.f32 %v1837_v61, %v1789_v60  ;;  %v1743_v7 = vadd.f32 %v1742_v4, %v3515_v39  ;;  %v551_v39 = vpack.c.bf16 %v2559_v9, %v2559_v9  ;;  %v1069_v60 = vunpack.c.l.b16 %v653_v38 }
 0x119   : > { %v1889_v8 = vpop.f32.mrf.mxu0  ;;  %v622_v38 = vpack.c.bf16 %v2596_v27, %v2596_v27 }
 0x11a   : > { %1937 = vmatmul.bf16.gmra.mxu1 %v936_v0  ;;  %1986 = vmatmul.bf16.gmra.mxu2 %v984_v2  ;;  %v3598_v18 = vadd.f32 %v1886_v44, %v1838_v62  ;;  %v925_v45 = vunpack.c.l.b16 %v551_v39  ;;  %v1033_v62 = vpack.c.b16 %v1022_v21, %v1021_v59  ;;  %v2595_v39 = vld [vmem:[%s3216_s10 + $0x63] sm:$0xff] }
 0x11b   : > { %v621_v6 = vpack.c.bf16 %v2595_v39, %v2595_v39  ;;  %v1024_v21 = vunpack.c.l.b16 %v622_v38  ;;  %v2580_v39 = vld [vmem:[%s3216_s10 + $0x72] sm:$0xff] }
 0x11c   : > { %2035 = vmatmul.bf16.gmra.mxu3 %v1032_v5  ;;  %2084 = vmatmul.bf16.gmra.mxu0 %v1080_v26  ;;  %v937_v4 = vpack.c.b16 %v926_v48, %v925_v45  ;;  %v985_v5 = vpack.c.b16 %v974_v50, %v973_v49  ;;  %v2160_v45 = vld [vmem:[%s3168_s9 + $0x50] sm:$0xff] }
 0x11d   : > { %v1791_v30 = vpop.f32.mrf.mxu2  ;;  %2214 = vperm.xlu2 %3050, %v2187_v54   ;;  %vm2176_vm10 = vcmp.gt.f32.partialorder %v2160_v45, 0.5  ;;  %v2197_v54 = vsel %vm2181_vm11, 1, %v3094_v1  ;;  %v1023_v59 = vunpack.c.l.b16 %v621_v6  ;;  %v589_v6 = vpack.c.bf16 %v2580_v39, %v2580_v39  ;;  %v2583_v39 = vld [vmem:[%s3216_s10 + $0x8a] sm:$0xff] }
 0x11e   : > { %v1792_v32 = vadd.f32 %v1791_v30, %v1743_v7  ;;  %v2194_v30 = vsel %vm2178_vm9, 1, %v3094_v1  ;;  %v2192_v50 = vsel %vm2176_vm10, 1, %v3094_v1 }
 0x11f   : > { %v1840_v42 = vpop.f32.mrf.mxu3  ;;  %v1744_v34 = vpop.f32.mrf.mxu1  ;;  %2235 = vperm.xlu0 %3048, %v2194_v30   ;;  %2229 = vperm.xlu1 %3049, %v2192_v50   ;;  %v2615_v30 = vld [vmem:[%s3216_s10 + $0x7c] sm:$0xff] }
 0x120   : > { %v1841_v41 = vadd.f32 %v1840_v42, %v1792_v32  ;;  %v1745_v43 = vadd.f32 %v1744_v34, %v3531_v57  ;;  %v1070_v57 = vunpack.c.l.b16 %v654_v40  ;;  %v587_v32 = vpack.c.bf16 %v2578_v14, %v2578_v14  ;;  %v2158_v14 = vld [vmem:[%s3168_s9 + $0x40] sm:$0xff] }
 0x121   : > { %v1891_v44 = vpop.f32.mrf.mxu0  ;;  %v588_v34 = vpack.c.bf16 %v2579_v22, %v2579_v22  ;;  %v655_v40 = vpack.c.bf16 %v2612_v28, %v2612_v28  ;;  %vm2174_vm12 = vcmp.gt.f32.partialorder %v2158_v14, 0.5  ;;  %v2598_v28 = vld [vmem:[%s3216_s10 + $0x7b] sm:$0xff] }
 0x122   : > { %v3612_v56 = vadd.f32 %v1889_v8, %v1841_v41  ;;  %v1081_v7 = vpack.c.b16 %v1070_v57, %v1069_v60  ;;  %v975_v48 = vunpack.c.l.b16 %v587_v32 }
 0x123   : > { %v976_v49 = vunpack.c.l.b16 %v588_v34  ;;  %v1071_v60 = vunpack.c.l.b16 %v655_v40 }
 0x125   : > { %v1793_v61 = vpop.f32.mrf.mxu2 }
 0x126   : > { %v1794_v0 = vadd.f32 %v1793_v61, %v1745_v43 }
 0x127   : > { %v1842_v2 = vpop.f32.mrf.mxu3  ;;  %v1747_v26 = vpop.f32.mrf.mxu1  ;;  %2244 = vperm.xlu0 %3048, %v2197_v54   ;;  %2238 = vperm.xlu1 %3049, %v2195_v3  }
 0x128   : > { %v1843_v8 = vadd.f32 %v1842_v2, %v1794_v0  ;;  %v1748_v23 = vadd.f32 %v1747_v26, %v3503_v15  ;;  %v656_v15 = vpack.c.bf16 %v2613_v29, %v2613_v29  ;;  %v986_v26 = vpack.c.b16 %v976_v49, %v975_v48  ;;  %v2614_v29 = vld [vmem:[%s3216_s10 + $0x74] sm:$0xff] }
 0x129   : > { %v1894_v9 = vpop.f32.mrf.mxu0  ;;  %v977_v48 = vunpack.c.l.b16 %v589_v6 }
 0x12a   : > { %1942 = vmatmul.bf16.gmra.mxu1 %v937_v4  ;;  %1991 = vmatmul.bf16.gmra.mxu2 %v985_v5  ;;  %v3618_v20 = vadd.f32 %v1891_v44, %v1843_v8  ;;  %v927_v44 = vunpack.c.l.b16 %v553_v24  ;;  %v1072_v57 = vunpack.c.l.b16 %v656_v15  ;;  %v2597_v24 = vld [vmem:[%s3216_s10 + $0x73] sm:$0xff] }
 0x12b   : > { %v623_v15 = vpack.c.bf16 %v2597_v24, %v2597_v24 }
 0x12c   : > { %2040 = vmatmul.bf16.gmra.mxu3 %v1033_v62  ;;  %2089 = vmatmul.bf16.gmra.mxu0 %v1081_v7  ;;  %v938_v5 = vpack.c.b16 %v928_v47, %v927_v44  ;;  %v1034_v7 = vpack.c.b16 %v1024_v21, %v1023_v59  ;;  %v1082_v8 = vpack.c.b16 %v1072_v57, %v1071_v60 }
 0x12d   : > { %v1796_v31 = vpop.f32.mrf.mxu2  ;;  %v1025_v54 = vunpack.c.l.b16 %v623_v15 }
 0x12e   : > { %v1797_v42 = vadd.f32 %v1796_v31, %v1748_v23  ;;  %v2581_v23 = vld [vmem:[%s3216_s10 + $0x7a] sm:$0xff]  ;;  %v2190_v31 = vsel %vm2174_vm12, 1, %v3094_v1 }
 0x12f   : > { %v1845_v33 = vpop.f32.mrf.mxu3  ;;  %v1749_v37 = vpop.f32.mrf.mxu1  ;;  %2223 = vperm.xlu2 %3050, %v2190_v31   ;;  %v590_v38 = vpack.c.bf16 %v2581_v23, %v2581_v23  ;;  %v2599_v23 = vld [vmem:[%s3216_s10 + $0x83] sm:$0xff] }
 0x130   : > { %v1846_v41 = vadd.f32 %v1845_v33, %v1797_v42  ;;  %v1750_v61 = vadd.f32 %v1749_v37, %v3511_v35  ;;  %v2564_v35 = vld [vmem:[%s3216_s10 + $0x69] sm:$0xff]  ;;  %v555_v42 = vpack.c.bf16 %v2563_v11, %v2563_v11  ;;  %v2566_v11 = vld [vmem:[%s3216_s10 + $0x79] sm:$0xff] }
 0x131   : > { %v1896_v43 = vpop.f32.mrf.mxu0  ;;  %v556_v37 = vpack.c.bf16 %v2564_v35, %v2564_v35  ;;  %v978_v49 = vunpack.c.l.b16 %v590_v38  ;;  %v558_v3 = vpack.c.bf16 %v2566_v11, %v2566_v11 }
 0x132   : > { %v3631_v55 = vadd.f32 %v1894_v9, %v1846_v41  ;;  %v624_v41 = vpack.c.bf16 %v2598_v28, %v2598_v28  ;;  %v929_v46 = vunpack.c.l.b16 %v555_v42  ;;  %v2616_v28 = vld [vmem:[%s3216_s10 + $0x84] sm:$0xff] }
 0x133   : > { %v930_v47 = vunpack.c.l.b16 %v556_v37  ;;  %v625_v37 = vpack.c.bf16 %v2599_v23, %v2599_v23 }
 0x134   : > { %v1026_v59 = vunpack.c.l.b16 %v624_v41 }
 0x135   : > { %v1798_v0 = vpop.f32.mrf.mxu2 }
 0x136   : > { %v1799_v2 = vadd.f32 %v1798_v0, %v1750_v61 }
 0x137   : > { %v1847_v4 = vpop.f32.mrf.mxu3  ;;  %v1752_v62 = vpop.f32.mrf.mxu1 }
 0x138   : > { %v1848_v9 = vadd.f32 %v1847_v4, %v1799_v2  ;;  %v1753_v27 = vadd.f32 %v1752_v62, %v3527_v51  ;;  %v657_v51 = vpack.c.bf16 %v2614_v29, %v2614_v29  ;;  %v939_v4 = vpack.c.b16 %v930_v47, %v929_v46  ;;  %v2617_v29 = vld [vmem:[%s3216_s10 + $0x8c] sm:$0xff] }
 0x139   : > { %v1899_v10 = vpop.f32.mrf.mxu0  ;;  %v1035_v62 = vpack.c.b16 %v1026_v59, %v1025_v54  ;;  %v660_v15 = vpack.c.bf16 %v2617_v29, %v2617_v29  ;;  %v1027_v46 = vunpack.c.l.b16 %v625_v37  ;;  %v2164_v47 = vld [vmem:[%s3168_s9 + $0x70] sm:$0xff] }
 0x13a   : > { %1947 = vmatmul.bf16.gmra.mxu1 %v938_v5  ;;  %1996 = vmatmul.bf16.gmra.mxu2 %v986_v26  ;;  %v3638_v22 = vadd.f32 %v1896_v43, %v1848_v9  ;;  %v658_v43 = vpack.c.bf16 %v2615_v30, %v2615_v30  ;;  %v1073_v21 = vunpack.c.l.b16 %v657_v51  ;;  %v987_v5 = vpack.c.b16 %v978_v49, %v977_v48 }
 0x13b   : > { %v1076_v59 = vunpack.c.l.b16 %v660_v15  ;;  %vm2180_vm15 = vcmp.gt.f32.partialorder %v2164_v47, 0.5  ;;  %v3687_v15 = vld [vmem:[%s3770_s3] ss:$0 sm:$0xff] }
 0x13c   : > { %2045 = vmatmul.bf16.gmra.mxu3 %v1034_v7  ;;  %2094 = vmatmul.bf16.gmra.mxu0 %v1082_v8  ;;  %v1074_v60 = vunpack.c.l.b16 %v658_v43  ;;  %v932_v43 = vunpack.c.l.b16 %v558_v3 }
 0x13d   : > { %v1801_v32 = vpop.f32.mrf.mxu2 }
 0x13e   : > { %v1802_v33 = vadd.f32 %v1801_v32, %v1753_v27  ;;  %v1083_v7 = vpack.c.b16 %v1074_v60, %v1073_v21  ;;  %v2600_v27 = vld [vmem:[%s3216_s10 + $0x8b] sm:$0xff]  ;;  %v2196_v60 = vsel %vm2180_vm15, 1, %v3094_v1 }
 0x13f   : > { %v1850_v34 = vpop.f32.mrf.mxu3  ;;  %v1754_v40 = vpop.f32.mrf.mxu1  ;;  %v626_v38 = vpack.c.bf16 %v2600_v27, %v2600_v27 }
 0x140   : > { %v1851_v44 = vadd.f32 %v1850_v34, %v1802_v33  ;;  %v1755_v57 = vadd.f32 %v1754_v40, %v3540_v12  ;;  %v2565_v12 = vld [vmem:[%s3216_s10 + $0x71] sm:$0xff]  ;;  %v591_v33 = vpack.c.bf16 %v2582_v17, %v2582_v17  ;;  %v592_v34 = vpack.c.bf16 %v2583_v39, %v2583_v39 }
 0x141   : > { %v1901_v45 = vpop.f32.mrf.mxu0  ;;  %v557_v31 = vpack.c.bf16 %v2565_v12, %v2565_v12  ;;  %v659_v40 = vpack.c.bf16 %v2616_v28, %v2616_v28  ;;  %v1028_v49 = vunpack.c.l.b16 %v626_v38  ;;  %v2200_v38 = vpop.permute.xlu0 %2199 }
 0x142   : > { %v3649_v50 = vadd.f32 %v1899_v10, %v1851_v44  ;;  %v2161_v10 = vld [vmem:[%s3168_s9 + $0x58] sm:$0xff]  ;;  %v979_v44 = vunpack.c.l.b16 %v591_v33  ;;  %vm2246_vm0 = vcmp.eq.s32.totalorder %v2200_v38, 1 }
 0x143   : > { %vm2177_vm14 = vcmp.gt.f32.partialorder %v2161_v10, 0.5  ;;  %v1075_v54 = vunpack.c.l.b16 %v659_v40 }
 0x144   : > { %v2193_v35 = vsel %vm2177_vm14, 1, %v3094_v1 }
 0x145   : > { %v1803_v61 = vpop.f32.mrf.mxu2  ;;  %2232 = vperm.xlu2 %3050, %v2193_v35  }
 0x146   : > { %v1804_v0 = vadd.f32 %v1803_v61, %v1755_v57 }
 0x147   : > { %v1852_v2 = vpop.f32.mrf.mxu3  ;;  %v1757_v26 = vpop.f32.mrf.mxu1 }
 0x148   : > { %v1853_v8 = vadd.f32 %v1852_v2, %v1804_v0  ;;  %v1758_v24 = vadd.f32 %v1757_v26, %v3505_v16  ;;  %v931_v16 = vunpack.c.l.b16 %v557_v31  ;;  %v1036_v26 = vpack.c.b16 %v1028_v49, %v1027_v46 }
 0x149   : > { %v1904_v9 = vpop.f32.mrf.mxu0 }
 0x14a   : > { %1952 = vmatmul.bf16.gmra.mxu1 %v939_v4  ;;  %2001 = vmatmul.bf16.gmra.mxu2 %v987_v5  ;;  %v3656_v14 = vadd.f32 %v1901_v45, %v1853_v8  ;;  %v980_v45 = vunpack.c.l.b16 %v592_v34  ;;  %v940_v2 = vpack.c.b16 %v932_v43, %v931_v16 }
 0x14c   : > { %2050 = vmatmul.bf16.gmra.mxu3 %v1035_v62  ;;  %2099 = vmatmul.bf16.gmra.mxu0 %v1083_v7  ;;  %v988_v4 = vpack.c.b16 %v980_v45, %v979_v44  ;;  %v1084_v62 = vpack.c.b16 %v1076_v59, %v1075_v54  ;;  %v2203_v59 = vpop.permute.xlu0 %2202 }
 0x14d   : > { %v1806_v30 = vpop.f32.mrf.mxu2  ;;  %2241 = vperm.xlu2 %3050, %v2196_v60   ;;  %vm2247_vm1 = vcmp.eq.s32.totalorder %v2203_v59, 1 }
 0x14e   : > { %v1807_v32 = vadd.f32 %v1806_v30, %v1758_v24 }
 0x14f   : > { %v1855_v42 = vpop.f32.mrf.mxu3  ;;  %v1759_v6 = vpop.f32.mrf.mxu1 }
 0x150   : > { %v1856_v41 = vadd.f32 %v1855_v42, %v1807_v32  ;;  %v1760_v21 = vadd.f32 %v1759_v6, %v3513_v36  ;;  %v3682_v6 = vld [vmem:[%s3769_s2] ss:$0 sm:$0xff] }
 0x151   : > { %v1906_v51 = vpop.f32.mrf.mxu0 }
 0x152   : > { %v3666_v48 = vadd.f32 %v1904_v9, %v1856_v41 }
 0x155   : > { %v1808_v57 = vpop.f32.mrf.mxu2 }
 0x156   : > { %v1809_v61 = vadd.f32 %v1808_v57, %v1760_v21 }
 0x157   : > { %v1857_v0 = vpop.f32.mrf.mxu3  ;;  %v1762_v5 = vpop.f32.mrf.mxu1 }
 0x158   : > { %v1858_v7 = vadd.f32 %v1857_v0, %v1809_v61  ;;  %v1763_v36 = vadd.f32 %v1762_v5, %v3529_v53 }
 0x159   : > { %v1909_v8 = vpop.f32.mrf.mxu0 }
 0x15a   : > { %1957 = vmatmul.bf16.gmra.mxu1 %v940_v2  ;;  %2006 = vmatmul.bf16.gmra.mxu2 %v988_v4  ;;  %v3670_v9 = vadd.f32 %v1906_v51, %v1858_v7 }
 0x15c   : > { %2055 = vmatmul.bf16.gmra.mxu3 %v1036_v26  ;;  %2104 = vmatmul.bf16.gmra.mxu0 %v1084_v62  ;;  %v2206_v62 = vpop.permute.xlu1 %2205 }
 0x15d   : > { %v1811_v1 = vpop.f32.mrf.mxu2  ;;  %vm2248_vm2 = vcmp.eq.s32.totalorder %v2206_v62, 1 }
 0x15e   : > { %v1812_v10 = vadd.f32 %v1811_v1, %v1763_v36 }
 0x15f   : > { %v1860_v12 = vpop.f32.mrf.mxu3  ;;  %v1764_v11 = vpop.f32.mrf.mxu1 }
 0x160   : > { %v1861_v35 = vadd.f32 %v1860_v12, %v1812_v10  ;;  %v1765_v23 = vadd.f32 %v1764_v11, %v3542_v13 }
 0x161   : > { %v1911_v17 = vpop.f32.mrf.mxu0 }
 0x162   : > { %v3673_v39 = vadd.f32 %v1909_v8, %v1861_v35 }
 0x165   : > { %v1813_v24 = vpop.f32.mrf.mxu2 }
 0x166   : > { %v1814_v27 = vadd.f32 %v1813_v24, %v1765_v23 }
 0x167   : > { %v1862_v28 = vpop.f32.mrf.mxu3  ;;  %v1923_v29 = vpop.f32.mrf.mxu1 }
 0x168   : > { %v1863_v30 = vadd.f32 %v1862_v28, %v1814_v27  ;;  %v1924_v53 = vadd.f32 %v1923_v29, %v3558_v63 }
 0x169   : > { %v2070_v31 = vpop.f32.mrf.mxu0 }
 0x16a   : > { %v3676_v3 = vadd.f32 %v1911_v17, %v1863_v30 }
 0x16b   : > { %v2209_v27 = vpop.permute.xlu1 %2208 }
 0x16c   : > { %vm2249_vm3 = vcmp.eq.s32.totalorder %v2209_v27, 1 }
 0x16d   : > { %v1972_v32 = vpop.f32.mrf.mxu2 }
 0x16e   : > { %v1973_v42 = vadd.f32 %v1972_v32, %v1924_v53 }
 0x16f   : > { %v2021_v33 = vpop.f32.mrf.mxu3  ;;  %v1925_v34 = vpop.f32.mrf.mxu1 }
 0x170   : > { %v2022_v37 = vadd.f32 %v2021_v33, %v1973_v42  ;;  %v1926_v41 = vadd.f32 %v1925_v34, %v3564_v25 }
 0x171   : > { %v2072_v13 = vpop.f32.mrf.mxu0 }
 0x172   : > { %v2071_v40 = vadd.f32 %v2070_v31, %v2022_v37  ;;  %v2212_v37 = vpop.permute.xlu2 %2211 }
 0x173   : > { %vm2250_vm4 = vcmp.eq.s32.totalorder %v2212_v37, 1 }
 0x174   : > { %v2114_v63 = vmul.f32 %v3682_v6, %v2071_v40 }
 0x175   : > { %v1974_v51 = vpop.f32.mrf.mxu2 }
 0x176   : > { %v1975_v16 = vadd.f32 %v1974_v51, %v1926_v41  ;;  %v2134_v44 = vadd.f32 %v3687_v15, %v2114_v63 }
 0x177   : > { %v2023_v43 = vpop.f32.mrf.mxu3  ;;  %v1928_v45 = vpop.f32.mrf.mxu1 }
 0x178   : > { %v2024_v46 = vadd.f32 %v2023_v43, %v1975_v16  ;;  %v2262_v47 = vsel %vm2246_vm0, %v2134_v44, 0.0  ;;  %v1929_v60 = vadd.f32 %v1928_v45, %v3574_v58 }
 0x179   : > { %v2075_v49 = vpop.f32.mrf.mxu0  ;;  %2278 = vst [vmem:[%s3177_s15] sm:$0xff] %v2262_v47 }
 0x17a   : > { %v2073_v54 = vadd.f32 %v2072_v13, %v2024_v46  ;;  %v2215_v47 = vpop.permute.xlu2 %2214 }
 0x17b   : > { %vm2251_vm5 = vcmp.eq.s32.totalorder %v2215_v47, 1 }
 0x17c   : > { %v2115_v21 = vmul.f32 %v3682_v6, %v2073_v54 }
 0x17d   : > { %v1977_v57 = vpop.f32.mrf.mxu2 }
 0x17e   : > { %v1978_v25 = vadd.f32 %v1977_v57, %v1929_v60  ;;  %v2135_v0 = vadd.f32 %v3687_v15, %v2115_v21 }
 0x17f   : > { %v2026_v61 = vpop.f32.mrf.mxu3  ;;  %v1930_v2 = vpop.f32.mrf.mxu1 }
 0x180   : > { %v2027_v4 = vadd.f32 %v2026_v61, %v1978_v25  ;;  %v2263_v5 = vsel %vm2247_vm1, %v2135_v0, 0.0  ;;  %v1931_v36 = vadd.f32 %v1930_v2, %v3579_v19 }
 0x181   : > { %v2077_v26 = vpop.f32.mrf.mxu0  ;;  %2279 = vst [vmem:[%s3177_s15 + $0x8] sm:$0xff] %v2263_v5 }
 0x182   : > { %v2076_v7 = vadd.f32 %v2075_v49, %v2027_v4  ;;  %v2218_v4 = vpop.permute.xlu0 %2217 }
 0x183   : > { %vm2252_vm6 = vcmp.eq.s32.totalorder %v2218_v4, 1 }
 0x184   : > { %v2116_v8 = vmul.f32 %v3682_v6, %v2076_v7 }
 0x185   : > { %v1979_v1 = vpop.f32.mrf.mxu2 }
 0x186   : > { %v1980_v58 = vadd.f32 %v1979_v1, %v1931_v36  ;;  %v2136_v12 = vadd.f32 %v3687_v15, %v2116_v8 }
 0x187   : > { %v2028_v10 = vpop.f32.mrf.mxu3  ;;  %v1933_v11 = vpop.f32.mrf.mxu1 }
 0x188   : > { %v2029_v35 = vadd.f32 %v2028_v10, %v1980_v58  ;;  %v2264_v17 = vsel %vm2248_vm2, %v2136_v12, 0.0  ;;  %v1934_v29 = vadd.f32 %v1933_v11, %v3590_v52  ;;  %v2221_v11 = vpop.permute.xlu1 %2220 }
 0x189   : > { %v2080_v23 = vpop.f32.mrf.mxu0  ;;  %2280 = vst [vmem:[%s3177_s15 + $0x10] sm:$0xff] %v2264_v17  ;;  %vm2253_vm7 = vcmp.eq.s32.totalorder %v2221_v11, 1 }
 0x18a   : > { %v2078_v24 = vadd.f32 %v2077_v26, %v2029_v35 }
 0x18c   : > { %v2117_v28 = vmul.f32 %v3682_v6, %v2078_v24 }
 0x18d   : > { %v1982_v30 = vpop.f32.mrf.mxu2 }
 0x18e   : > { %v1983_v19 = vadd.f32 %v1982_v30, %v1934_v29  ;;  %v2137_v53 = vadd.f32 %v3687_v15, %v2117_v28 }
 0x18f   : > { %v2031_v31 = vpop.f32.mrf.mxu3  ;;  %v1935_v32 = vpop.f32.mrf.mxu1 }
 0x190   : > { %v2032_v42 = vadd.f32 %v2031_v31, %v1983_v19  ;;  %v2265_v33 = vsel %vm2249_vm3, %v2137_v53, 0.0  ;;  %v1936_v40 = vadd.f32 %v1935_v32, %v3598_v18  ;;  %v2224_v53 = vpop.permute.xlu2 %2223 }
 0x191   : > { %v2082_v34 = vpop.f32.mrf.mxu0  ;;  %2281 = vst [vmem:[%s3177_s15 + $0x18] sm:$0xff] %v2265_v33  ;;  %vm2254_vm8 = vcmp.eq.s32.totalorder %v2224_v53, 1 }
 0x192   : > { %v2081_v13 = vadd.f32 %v2080_v23, %v2032_v42 }
 0x194   : > { %v2118_v38 = vmul.f32 %v3682_v6, %v2081_v13 }
 0x195   : > { %v1984_v63 = vpop.f32.mrf.mxu2 }
 0x196   : > { %v1985_v52 = vadd.f32 %v1984_v63, %v1936_v40  ;;  %v2138_v51 = vadd.f32 %v3687_v15, %v2118_v38 }
 0x197   : > { %v2033_v41 = vpop.f32.mrf.mxu3  ;;  %v1938_v16 = vpop.f32.mrf.mxu1 }
 0x198   : > { %v2034_v43 = vadd.f32 %v2033_v41, %v1985_v52  ;;  %v2266_v44 = vsel %vm2250_vm4, %v2138_v51, 0.0  ;;  %v1939_v54 = vadd.f32 %v1938_v16, %v3612_v56  ;;  %v2227_v51 = vpop.permute.xlu0 %2226 }
 0x199   : > { %v2085_v45 = vpop.f32.mrf.mxu0  ;;  %2282 = vst [vmem:[%s3177_s15 + $0x20] sm:$0xff] %v2266_v44  ;;  %vm2255_vm9 = vcmp.eq.s32.totalorder %v2227_v51, 1 }
 0x19a   : > { %v2083_v46 = vadd.f32 %v2082_v34, %v2034_v43 }
 0x19c   : > { %v2119_v49 = vmul.f32 %v3682_v6, %v2083_v46 }
 0x19d   : > { %v1987_v59 = vpop.f32.mrf.mxu2 }
 0x19e   : > { %v1988_v18 = vadd.f32 %v1987_v59, %v1939_v54  ;;  %v2139_v60 = vadd.f32 %v3687_v15, %v2119_v49 }
 0x19f   : > { %v2036_v21 = vpop.f32.mrf.mxu3  ;;  %v1940_v57 = vpop.f32.mrf.mxu1 }
 0x1a0   : > { %v2037_v25 = vadd.f32 %v2036_v21, %v1988_v18  ;;  %v2267_v61 = vsel %vm2251_vm5, %v2139_v60, 0.0  ;;  %v1941_v26 = vadd.f32 %v1940_v57, %v3618_v20  ;;  %v2230_v18 = vpop.permute.xlu1 %2229 }
 0x1a1   : > { %v2087_v0 = vpop.f32.mrf.mxu0  ;;  %2283 = vst [vmem:[%s3177_s15 + $0x28] sm:$0xff] %v2267_v61  ;;  %vm2256_vm10 = vcmp.eq.s32.totalorder %v2230_v18, 1 }
 0x1a2   : > { %v2086_v2 = vadd.f32 %v2085_v45, %v2037_v25 }
 0x1a4   : > { %v2120_v5 = vmul.f32 %v3682_v6, %v2086_v2 }
 0x1a5   : > { %v1989_v62 = vpop.f32.mrf.mxu2 }
 0x1a6   : > { %v1990_v56 = vadd.f32 %v1989_v62, %v1941_v26  ;;  %v2140_v8 = vadd.f32 %v3687_v15, %v2120_v5 }
 0x1a7   : > { %v2038_v7 = vpop.f32.mrf.mxu3  ;;  %v1943_v36 = vpop.f32.mrf.mxu1 }
 0x1a8   : > { %v2039_v1 = vadd.f32 %v2038_v7, %v1990_v56  ;;  %v2268_v58 = vsel %vm2252_vm6, %v2140_v8, 0.0  ;;  %v1944_v17 = vadd.f32 %v1943_v36, %v3631_v55  ;;  %v2233_v56 = vpop.permute.xlu2 %2232  ;;  %v2239_v53 = vpop.permute.xlu1 %2238 }
 0x1a9   : > { %v2090_v10 = vpop.f32.mrf.mxu0  ;;  %2284 = vst [vmem:[%s3177_s15 + $0x30] sm:$0xff] %v2268_v58  ;;  %vm2257_vm11 = vcmp.eq.s32.totalorder %v2233_v56, 1  ;;  %vm2259_vm13 = vcmp.eq.s32.totalorder %v2239_v53, 1 }
 0x1aa   : > { %v2088_v12 = vadd.f32 %v2087_v0, %v2039_v1 }
 0x1ac   : > { %v2121_v35 = vmul.f32 %v3682_v6, %v2088_v12 }
 0x1ad   : > { %v1992_v23 = vpop.f32.mrf.mxu2 }
 0x1ae   : > { %v1993_v20 = vadd.f32 %v1992_v23, %v1944_v17  ;;  %v2141_v27 = vadd.f32 %v3687_v15, %v2121_v35 }
 0x1af   : > { %v2041_v24 = vpop.f32.mrf.mxu3  ;;  %v1945_v28 = vpop.f32.mrf.mxu1 }
 0x1b0   : > { %v2042_v29 = vadd.f32 %v2041_v24, %v1993_v20  ;;  %v2269_v30 = vsel %vm2253_vm7, %v2141_v27, 0.0  ;;  %v1946_v42 = vadd.f32 %v1945_v28, %v3638_v22  ;;  %v2236_v24 = vpop.permute.xlu0 %2235 }
 0x1b1   : > { %v2092_v19 = vpop.f32.mrf.mxu0  ;;  %2285 = vst [vmem:[%s3177_s15 + $0x38] sm:$0xff] %v2269_v30  ;;  %vm2258_vm12 = vcmp.eq.s32.totalorder %v2236_v24, 1 }
 0x1b2   : > { %v2091_v31 = vadd.f32 %v2090_v10, %v2042_v29 }
 0x1b4   : > { %v2122_v32 = vmul.f32 %v3682_v6, %v2091_v31 }
 0x1b5   : > { %v1994_v33 = vpop.f32.mrf.mxu2 }
 0x1b6   : > { %v1995_v55 = vadd.f32 %v1994_v33, %v1946_v42  ;;  %v2142_v37 = vadd.f32 %v3687_v15, %v2122_v32 }
 0x1b7   : > { %v2043_v34 = vpop.f32.mrf.mxu3  ;;  %v1948_v13 = vpop.f32.mrf.mxu1 }
 0x1b8   : > { %v2044_v38 = vadd.f32 %v2043_v34, %v1995_v55  ;;  %v2270_v40 = vsel %vm2254_vm8, %v2142_v37, 0.0  ;;  %v1949_v16 = vadd.f32 %v1948_v13, %v3649_v50 }
 0x1b9   : > { %v2095_v63 = vpop.f32.mrf.mxu0  ;;  %2286 = vst [vmem:[%s3177_s15 + $0x40] sm:$0xff] %v2270_v40 }
 0x1ba   : > { %v2093_v52 = vadd.f32 %v2092_v19, %v2044_v38 }
 0x1bc   : > { %v2123_v41 = vmul.f32 %v3682_v6, %v2093_v52  ;;  %v2242_v52 = vpop.permute.xlu2 %2241 }
 0x1bd   : > { %v1997_v22 = vpop.f32.mrf.mxu2  ;;  %vm2260_vm14 = vcmp.eq.s32.totalorder %v2242_v52, 1 }
 0x1be   : > { %v2143_v43 = vadd.f32 %v3687_v15, %v2123_v41  ;;  %v1998_v44 = vadd.f32 %v1997_v22, %v1949_v16 }
 0x1bf   : > { %v2046_v45 = vpop.f32.mrf.mxu3  ;;  %v1950_v46 = vpop.f32.mrf.mxu1 }
 0x1c0   : > { %v2271_v47 = vsel %vm2255_vm9, %v2143_v43, 0.0  ;;  %v2047_v49 = vadd.f32 %v2046_v45, %v1998_v44  ;;  %v1951_v60 = vadd.f32 %v1950_v46, %v3656_v14 }
 0x1c1   : > { %2287 = vst [vmem:[%s3177_s15 + $0x48] sm:$0xff] %v2271_v47  ;;  %v2097_v54 = vpop.f32.mrf.mxu0 }
 0x1c2   : > { %v2096_v59 = vadd.f32 %v2095_v63, %v2047_v49  ;;  %v2245_v49 = vpop.permute.xlu0 %2244 }
 0x1c3   : > { %vm2261_vm15 = vcmp.eq.s32.totalorder %v2245_v49, 1 }
 0x1c4   : > { %v2124_v21 = vmul.f32 %v3682_v6, %v2096_v59 }
 0x1c5   : > { %v1999_v57 = vpop.f32.mrf.mxu2 }
 0x1c6   : > { %v2000_v50 = vadd.f32 %v1999_v57, %v1951_v60  ;;  %v2144_v61 = vadd.f32 %v3687_v15, %v2124_v21 }
 0x1c7   : > { %v2048_v25 = vpop.f32.mrf.mxu3  ;;  %v1953_v0 = vpop.f32.mrf.mxu1 }
 0x1c8   : > { %v2049_v2 = vadd.f32 %v2048_v25, %v2000_v50  ;;  %v2272_v4 = vsel %vm2256_vm10, %v2144_v61, 0.0  ;;  %v1954_v7 = vadd.f32 %v1953_v0, %v3666_v48 }
 0x1c9   : > { %2288 = vst [vmem:[%s3177_s15 + $0x50] sm:$0xff] %v2272_v4  ;;  %v2100_v26 = vpop.f32.mrf.mxu0 }
 0x1ca   : > { %v2098_v5 = vadd.f32 %v2097_v54, %v2049_v2 }
 0x1cc   : > { %v2125_v62 = vmul.f32 %v3682_v6, %v2098_v5 }
 0x1cd   : > { %v2002_v14 = vpop.f32.mrf.mxu2 }
 0x1ce   : > { %v2145_v8 = vadd.f32 %v3687_v15, %v2125_v62  ;;  %v2003_v36 = vadd.f32 %v2002_v14, %v1954_v7 }
 0x1cf   : > { %v2051_v1 = vpop.f32.mrf.mxu3  ;;  %v1955_v58 = vpop.f32.mrf.mxu1 }
 0x1d0   : > { %v2273_v10 = vsel %vm2257_vm11, %v2145_v8, 0.0  ;;  %v2052_v12 = vadd.f32 %v2051_v1, %v2003_v36  ;;  %v1956_v17 = vadd.f32 %v1955_v58, %v3670_v9 }
 0x1d1   : > { %2289 = vst [vmem:[%s3177_s15 + $0x58] sm:$0xff] %v2273_v10  ;;  %v2102_v23 = vpop.f32.mrf.mxu0 }
 0x1d2   : > { %v2101_v11 = vadd.f32 %v2100_v26, %v2052_v12 }
 0x1d4   : > { %v2126_v35 = vmul.f32 %v3682_v6, %v2101_v11 }
 0x1d5   : > { %v2004_v20 = vpop.f32.mrf.mxu2 }
 0x1d6   : > { %v2146_v48 = vadd.f32 %v3687_v15, %v2126_v35  ;;  %v2005_v27 = vadd.f32 %v2004_v20, %v1956_v17 }
 0x1d7   : > { %v2053_v28 = vpop.f32.mrf.mxu3  ;;  %v1958_v29 = vpop.f32.mrf.mxu1 }
 0x1d8   : > { %v2274_v30 = vsel %vm2258_vm12, %v2146_v48, 0.0  ;;  %v2054_v19 = vadd.f32 %v2053_v28, %v2005_v27  ;;  %v1959_v42 = vadd.f32 %v1958_v29, %v3673_v39 }
 0x1d9   : > { %2290 = vst [vmem:[%s3177_s15 + $0x60] sm:$0xff] %v2274_v30  ;;  %v2105_v37 = vpop.f32.mrf.mxu0 }
 0x1da   : > { %v2103_v31 = vadd.f32 %v2102_v23, %v2054_v19 }
 0x1dc   : > { %v2127_v32 = vmul.f32 %v3682_v6, %v2103_v31 }
 0x1dd   : > { %v2007_v9 = vpop.f32.mrf.mxu2 }
 0x1de   : > { %v2147_v33 = vadd.f32 %v3687_v15, %v2127_v32  ;;  %v2008_v55 = vadd.f32 %v2007_v9, %v1959_v42 }
 0x1df   : > { %v2056_v34 = vpop.f32.mrf.mxu3  ;;  %v1960_v40 = vpop.f32.mrf.mxu1 }
 0x1e0   : > { %v2275_v13 = vsel %vm2259_vm13, %v2147_v33, 0.0  ;;  %v2057_v38 = vadd.f32 %v2056_v34, %v2008_v55  ;;  %v1961_v51 = vadd.f32 %v1960_v40, %v3676_v3 }
 0x1e1   : > { %2291 = vst [vmem:[%s3177_s15 + $0x68] sm:$0xff] %v2275_v13  ;;  %v2107_v46 = vpop.f32.mrf.mxu0 }
 0x1e2   : > { %v2106_v63 = vadd.f32 %v2105_v37, %v2057_v38 }
 0x1e4   : > { %v2128_v41 = vmul.f32 %v3682_v6, %v2106_v63 }
 0x1e5   : > { %v2009_v39 = vpop.f32.mrf.mxu2 }
 0x1e6   : > { %v2148_v16 = vadd.f32 %v3687_v15, %v2128_v41  ;;  %v2010_v22 = vadd.f32 %v2009_v39, %v1961_v51 }
 0x1e7   : > { %v2058_v43 = vpop.f32.mrf.mxu3 }
 0x1e8   : > { %v2276_v44 = vsel %vm2260_vm14, %v2148_v16, 0.0  ;;  %v2059_v45 = vadd.f32 %v2058_v43, %v2010_v22 }
 0x1e9   : > { %2292 = vst [vmem:[%s3177_s15 + $0x70] sm:$0xff] %v2276_v44 }
 0x1ea   : > { %v2108_v47 = vadd.f32 %v2107_v46, %v2059_v45 }
 0x1ec   : > { %v2129_v54 = vmul.f32 %v3682_v6, %v2108_v47 }
 0x1ee   : > { %v2149_v59 = vadd.f32 %v3687_v15, %v2129_v54 }
 0x1f0   : > { %v2277_v18 = vsel %vm2261_vm15, %v2149_v59, 0.0 }
 0x1f1   : > { %2293 = vst [vmem:[%s3177_s15 + $0x78] sm:$0xff] %v2277_v18 }
 0x1f2 PF: > { %s15_s22 = sadd.s32 1, %s3091_s22   ;;  %s3774_s18 = smov %s3083_s20 }
 0x1f3   : > { %p12_p10 = scmp.ge.s32.totalorder %s15_s22, 12   ;;  %s3775_s19 = smov %s3087_s21 }
 0x1f4   : > { %s3776_s20 = smov %s3779_s23  ;;  %s3777_s21 = smov %s3783_s24 }
 0x1f5   :  { %14 = sbr.rel (!%p12_p10) target bundleno = 3 (0x3), region = 99 }

// kernel: hm_decoder_pallas.11
= control target key start
LH: loop header
LB: loop body
LE: loop exit
PB: predicated region body
PF: predicated region fallthrough
CT: control target
= control target key end

     0   :  { %s4528_s18 = smov 0   ;;  %s4530_s19 = smov 0   ;;  %s5518_s0 = inlined_call_operand.vmem [shape: f32[2,2048,128], index: 0, kind: input, shape index: {}]   ;;  %s5519_s1 = inlined_call_operand.vmem [shape: bf16[1152,128], index: 1, kind: input, shape index: {}]   ;;  %s5520_s2 = inlined_call_operand.vmem [shape: f32[1,128], index: 2, kind: input, shape index: {}]   ;;  %s5521_s3 = inlined_call_operand.vmem [shape: f32[1,128], index: 3, kind: input, shape index: {}]   ;;  %s5522_s4 = inlined_call_operand.vmem [shape: f32[2048,1], index: 4, kind: input, shape index: {}]   ;;  %s5523_s5 = inlined_call_operand.vmem [shape: f32[2,2048,128], index: 5, kind: output, shape index: {}]  }
   0x1   :  { %s4532_s20 = smov 0   ;;  %s4534_s21 = smov 0  }
   0x2   :  { %s4536_s22 = smov 0  }
   0x3 LB: > { %s27_s23 = sadd.s32 1, %s4486_s20  ;;  %s34_s24 = sadd.s32 1, %s4490_s21  ;;  %s4494_s22 = sphi %s4536_s22, %s15_s22   ;;  %s4490_s21 = sphi %s4534_s21, %s5528_s21   ;;  %s4486_s20 = sphi %s4532_s20, %s5527_s20   ;;  %s4482_s19 = sphi %s4530_s19, %s5526_s19   ;;  %s4478_s18 = sphi %s4528_s18, %s5525_s18  }
   0x4   : > { %p28_p0 = scmp.ge.s32.totalorder %s27_s23, 8  ;;  %p3747_p1 = scmp.ge.s32.totalorder %s4494_s22, 1 }
   0x5   : > { %p246_p2 = scmp.lt.s32.totalorder %s4494_s22, 17 }
   0x6   : > { %s5530_s23 = smov (%p28_p0, %s27_s23), 0  ;;  %s5532_s24 = smov (!%p28_p0, %s34_s24), %s4490_s21 }
   0x7   : > { %p247_p3 = pnand %p3747_p1, %p246_p2  ;;  %p36_p4 = scmp.ge.s32.totalorder %s5532_s24, 2 }
   0x8   : > { %p296_p5 = scmp.lt.s32.totalorder (!%p247_p3), %s4482_s19, 1  ;;  %s3750_s25 = sshll.u32 (!%p247_p3), %s4478_s18, 5 }
   0x9   : > { %s5534_s24 = smov (%p36_p4, %s5532_s24), 0  ;;  %250 = sbr.rel (%p247_p3) target bundleno = 801 (0x321), region = 40 }
   0xa   : > { %p312_p6 = scmp.lt.s32.totalorder (!%p247_p3), %s3750_s25, 255  ;;  %p330_p7 = scmp.eq.s32.totalorder (!%p247_p3), %s4478_s18, 0 }
   0xb   : > { %p331_p8 = scmp.eq.s32.totalorder (!%p247_p3), %s4478_s18, 7 }
   0xd   : > { %p4578_p9 = por (!%p247_p3), %p331_p8, %p330_p7 }
   0xe   : > { %s5536_s19 = smov (!%p296_p5, %s4482_s19), 1  ;;  %s5538_s25 = smov (!%p312_p6, %s3750_s25), 255  ;;  %v4496_v0 = vmov (%p4578_p9), 0.0  }
   0xf   : > { %s4310_s26 = sshll.u32 %s5536_s19, 11  ;;  %s3753_s27 = sshll.u32 %s5536_s19, 8 }
  0x10   : > { %s4565_s30 = scalar_lea.vmem %s5518_s0, %s4310_s26  ;;  %s3751_s6 = sshll.u32 %s5538_s25, 3 }
  0x11   : > { %s4570_s9 = scalar_lea.vmem %s5522_s4, %s3751_s6  ;;  %s326_s10 = sadd.s32 %s3753_s27, %s5538_s25 }
  0x12   : > { %s3754_s11 = sshll.u32 %s326_s10, 3  ;;  %335 = sbr.rel (!%p4578_p9) target bundleno = 52 (0x34), region = 44 }
  0x13   : > { %s4576_s14 = scalar_lea.vmem %s5523_s5, %s3754_s11 }
  0x14   : > { %336 = vst [vmem:[%s4576_s14] sm:$0xff] (%p4578_p9), %v4496_v0 }
  0x15   : > { %337 = vst [vmem:[%s4576_s14 + $0x8] sm:$0xff] (%p4578_p9), %v4496_v0 }
  0x16   : > { %338 = vst [vmem:[%s4576_s14 + $0x10] sm:$0xff] (%p4578_p9), %v4496_v0 }
  0x17   : > { %339 = vst [vmem:[%s4576_s14 + $0x18] sm:$0xff] %v4496_v0 }
  0x18   : > { %340 = vst [vmem:[%s4576_s14 + $0x20] sm:$0xff] %v4496_v0 }
  0x19   : > { %341 = vst [vmem:[%s4576_s14 + $0x28] sm:$0xff] %v4496_v0 }
  0x1a   : > { %342 = vst [vmem:[%s4576_s14 + $0x30] sm:$0xff] %v4496_v0 }
  0x1b   : > { %343 = vst [vmem:[%s4576_s14 + $0x38] sm:$0xff] %v4496_v0 }
  0x1c   : > { %344 = vst [vmem:[%s4576_s14 + $0x40] sm:$0xff] %v4496_v0 }
  0x1d   : > { %345 = vst [vmem:[%s4576_s14 + $0x48] sm:$0xff] %v4496_v0 }
  0x1e   : > { %346 = vst [vmem:[%s4576_s14 + $0x50] sm:$0xff] %v4496_v0 }
  0x1f   : > { %347 = vst [vmem:[%s4576_s14 + $0x58] sm:$0xff] %v4496_v0 }
  0x20   : > { %348 = vst [vmem:[%s4576_s14 + $0x60] sm:$0xff] %v4496_v0 }
  0x21   : > { %349 = vst [vmem:[%s4576_s14 + $0x68] sm:$0xff] %v4496_v0 }
  0x22   : > { %350 = vst [vmem:[%s4576_s14 + $0x70] sm:$0xff] %v4496_v0 }
  0x23   : > { %351 = vst [vmem:[%s4576_s14 + $0x78] sm:$0xff] %v4496_v0 }
  0x24   : > { %352 = vst [vmem:[%s4576_s14 + $0x80] sm:$0xff] %v4496_v0 }
  0x25   : > { %353 = vst [vmem:[%s4576_s14 + $0x88] sm:$0xff] %v4496_v0 }
  0x26   : > { %354 = vst [vmem:[%s4576_s14 + $0x90] sm:$0xff] %v4496_v0 }
  0x27   : > { %355 = vst [vmem:[%s4576_s14 + $0x98] sm:$0xff] %v4496_v0 }
  0x28   : > { %356 = vst [vmem:[%s4576_s14 + $0xa0] sm:$0xff] %v4496_v0 }
  0x29   : > { %357 = vst [vmem:[%s4576_s14 + $0xa8] sm:$0xff] %v4496_v0 }
  0x2a   : > { %358 = vst [vmem:[%s4576_s14 + $0xb0] sm:$0xff] %v4496_v0 }
  0x2b   : > { %359 = vst [vmem:[%s4576_s14 + $0xb8] sm:$0xff] %v4496_v0 }
  0x2c   : > { %360 = vst [vmem:[%s4576_s14 + $0xc0] sm:$0xff] %v4496_v0 }
  0x2d   : > { %361 = vst [vmem:[%s4576_s14 + $0xc8] sm:$0xff] %v4496_v0 }
  0x2e   : > { %362 = vst [vmem:[%s4576_s14 + $0xd0] sm:$0xff] %v4496_v0 }
  0x2f   : > { %363 = vst [vmem:[%s4576_s14 + $0xd8] sm:$0xff] %v4496_v0 }
  0x30   : > { %364 = vst [vmem:[%s4576_s14 + $0xe0] sm:$0xff] %v4496_v0 }
  0x31   : > { %365 = vst [vmem:[%s4576_s14 + $0xe8] sm:$0xff] %v4496_v0 }
  0x32   : > { %366 = vst [vmem:[%s4576_s14 + $0xf0] sm:$0xff] %v4496_v0 }
  0x33   : > { %367 = vst [vmem:[%s4576_s14 + $0xf8] sm:$0xff] %v4496_v0 }
  0x34 PF: > { %370 = sbr.rel (%p4578_p9) target bundleno = 801 (0x321), region = 48  ;;  %s3755_s6 = sshll.u32 (!%p4578_p9), %s4478_s18, 8 }
  0x35   : > { %s4635_s10 = scalar_lea.vmem (!%p4578_p9), %s4565_s30, %s3755_s6 }
  0x39   : > { %v4318_v1 = vld [vmem:[%s5519_s1 + $0x38] sm:$0xff]  ;;  %v4317_v2 = vld [vmem:[%s5519_s1 + $0x30] sm:$0xff]  ;;  %v4316_v3 = vld [vmem:[%s5519_s1 + $0x28] sm:$0xff] }
  0x3a   : > { %4383 = vmatpush.bf16.msra.mxu1 %v4318_v1  ;;  %4384 = vmatpush.bf16.msra.mxu2 %v4318_v1  ;;  %v4315_v4 = vld [vmem:[%s5519_s1 + $0x20] sm:$0xff]  ;;  %v4314_v5 = vld [vmem:[%s5519_s1 + $0x18] sm:$0xff]  ;;  %v4313_v6 = vld [vmem:[%s5519_s1 + $0x10] sm:$0xff] }
  0x3b   : > { %4385 = vmatpush.bf16.msra.mxu3 %v4318_v1  ;;  %2405 = vmatpush.bf16.msra.mxu0 %v4318_v1  ;;  %v3765_v7 = vld [vmem:[%s4635_s10 + $0x1a] sm:$0xff]  ;;  %v3766_v8 = vld [vmem:[%s4635_s10 + $0x22] sm:$0xff]  ;;  %v4333_v41 = vld [vmem:[%s5519_s1 + $0xb0] sm:$0xff] }
  0x3c   : > { %v3773_v9 = vld [vmem:[%s4635_s10 + $0x5a] sm:$0xff]  ;;  %v3774_v10 = vld [vmem:[%s4635_s10 + $0x62] sm:$0xff]  ;;  %v414_v15 = vpack.c.bf16 %v3765_v7, %v3765_v7  ;;  %v415_v16 = vpack.c.bf16 %v3766_v8, %v3766_v8  ;;  %v4341_v42 = vld [vmem:[%s5519_s1 + $0xf0] sm:$0xff] }
  0x3d   : > { %v3781_v11 = vld [vmem:[%s4635_s10 + $0x9a] sm:$0xff]  ;;  %v3782_v12 = vld [vmem:[%s4635_s10 + $0xa2] sm:$0xff]  ;;  %v422_v17 = vpack.c.bf16 %v3773_v9, %v3773_v9  ;;  %v423_v18 = vpack.c.bf16 %v3774_v10, %v3774_v10  ;;  %v4325_v43 = vld [vmem:[%s5519_s1 + $0x70] sm:$0xff] }
  0x3e   : > { %4386 = vmatpush.bf16.msra.mxu1 %v4317_v2  ;;  %4387 = vmatpush.bf16.msra.mxu2 %v4317_v2  ;;  %v3757_v13 = vld [vmem:[%s4635_s10 - $0x26] sm:$0xff]  ;;  %v3758_v14 = vld [vmem:[%s4635_s10 - $0x1e] sm:$0xff]  ;;  %v430_v19 = vpack.c.bf16 %v3781_v11, %v3781_v11  ;;  %v431_v21 = vpack.c.bf16 %v3782_v12, %v3782_v12  ;;  %v1005_v24 = vunpack.c.l.b16 %v414_v15  ;;  %v1006_v25 = vunpack.c.l.b16 %v415_v16  ;;  %v3767_v44 = vld [vmem:[%s4635_s10 + $0x2a] sm:$0xff] }
  0x3f   : > { %4388 = vmatpush.bf16.msra.mxu3 %v4317_v2  ;;  %2406 = vmatpush.bf16.msra.mxu0 %v4317_v2  ;;  %v4312_v20 = vld [vmem:[%s5519_s1 + $0x8] sm:$0xff]  ;;  %v406_v22 = vpack.c.bf16 %v3757_v13, %v3757_v13  ;;  %v407_v23 = vpack.c.bf16 %v3758_v14, %v3758_v14  ;;  %v1013_v26 = vunpack.c.l.b16 %v422_v17  ;;  %v1014_v27 = vunpack.c.l.b16 %v423_v18  ;;  %v4311_v28 = vld [vmem:[%s5519_s1] sm:$0xff]  ;;  %v4334_v33 = vld [vmem:[%s5519_s1 + $0xb8] sm:$0xff] }
  0x40   : > { %v1021_v29 = vunpack.c.l.b16 %v430_v19  ;;  %v1022_v30 = vunpack.c.l.b16 %v431_v21  ;;  %v4342_v34 = vld [vmem:[%s5519_s1 + $0xf8] sm:$0xff]  ;;  %v1033_v35 = vpack.c.b16 %v1006_v25, %v1005_v24  ;;  %v3775_v46 = vld [vmem:[%s4635_s10 + $0x6a] sm:$0xff]  ;;  %v416_v55 = vpack.c.bf16 %v3767_v44, %v3767_v44  ;;  %v4331_v1 = vld [vmem:[%s5519_s1 + $0xa0] sm:$0xff] }
  0x41   : > { %v997_v31 = vunpack.c.l.b16 %v406_v22  ;;  %v998_v32 = vunpack.c.l.b16 %v407_v23  ;;  %v1037_v36 = vpack.c.b16 %v1014_v27, %v1013_v26  ;;  %v4326_v39 = vld [vmem:[%s5519_s1 + $0x78] sm:$0xff]  ;;  %v3783_v48 = vld [vmem:[%s4635_s10 + $0xaa] sm:$0xff]  ;;  %v424_v57 = vpack.c.bf16 %v3775_v46, %v3775_v46  ;;  %v4339_v2 = vld [vmem:[%s5519_s1 + $0xe0] sm:$0xff] }
  0x42   : > { %4389 = vmatpush.bf16.msra.mxu1 %v4316_v3  ;;  %4390 = vmatpush.bf16.msra.mxu2 %v4316_v3  ;;  %v1041_v37 = vpack.c.b16 %v1022_v30, %v1021_v29  ;;  %v4350_v40 = vld [vmem:[%s5519_s1 + $0x138] sm:$0xff]  ;;  %v3759_v50 = vld [vmem:[%s4635_s10 - $0x16] sm:$0xff]  ;;  %v432_v59 = vpack.c.bf16 %v3783_v48, %v3783_v48  ;;  %v4323_v11 = vld [vmem:[%s5519_s1 + $0x60] sm:$0xff] }
  0x43   : > { %4391 = vmatpush.bf16.msra.mxu3 %v4316_v3  ;;  %2407 = vmatpush.bf16.msra.mxu0 %v4316_v3  ;;  %v1029_v38 = vpack.c.b16 %v998_v32, %v997_v31  ;;  %v3768_v45 = vld [vmem:[%s4635_s10 + $0x32] sm:$0xff]  ;;  %v4332_v53 = vld [vmem:[%s5519_s1 + $0xa8] sm:$0xff]  ;;  %v408_v61 = vpack.c.bf16 %v3759_v50, %v3759_v50  ;;  %v1007_v3 = vunpack.c.l.b16 %v416_v55  ;;  %v4347_v12 = vld [vmem:[%s5519_s1 + $0x120] sm:$0xff] }
  0x44   : > { %v3776_v47 = vld [vmem:[%s4635_s10 + $0x72] sm:$0xff]  ;;  %v4340_v54 = vld [vmem:[%s5519_s1 + $0xe8] sm:$0xff]  ;;  %v417_v56 = vpack.c.bf16 %v3768_v45, %v3768_v45  ;;  %v1023_v7 = vunpack.c.l.b16 %v432_v59  ;;  %v3769_v21 = vld [vmem:[%s4635_s10 + $0x3a] sm:$0xff] }
  0x45   : > { %v3784_v49 = vld [vmem:[%s4635_s10 + $0xb2] sm:$0xff]  ;;  %v425_v58 = vpack.c.bf16 %v3776_v47, %v3776_v47  ;;  %v4324_v63 = vld [vmem:[%s5519_s1 + $0x68] sm:$0xff]  ;;  %v999_v9 = vunpack.c.l.b16 %v408_v61  ;;  %v3777_v25 = vld [vmem:[%s4635_s10 + $0x7a] sm:$0xff] }
  0x46   : > { %4392 = vmatpush.bf16.msra.mxu1 %v4315_v4  ;;  %4393 = vmatpush.bf16.msra.mxu2 %v4315_v4  ;;  %v3760_v51 = vld [vmem:[%s4635_s10 - $0xe] sm:$0xff]  ;;  %v433_v60 = vpack.c.bf16 %v3784_v49, %v3784_v49  ;;  %v4348_v0 = vld [vmem:[%s5519_s1 + $0x128] sm:$0xff]  ;;  %v3785_v27 = vld [vmem:[%s4635_s10 + $0xba] sm:$0xff] }
  0x47   : > { %4394 = vmatpush.bf16.msra.mxu3 %v4315_v4  ;;  %2408 = vmatpush.bf16.msra.mxu0 %v4315_v4  ;;  %v4349_v52 = vld [vmem:[%s5519_s1 + $0x130] sm:$0xff]  ;;  %v409_v62 = vpack.c.bf16 %v3760_v51, %v3760_v51  ;;  %v1008_v4 = vunpack.c.l.b16 %v417_v56  ;;  %v4330_v13 = vld [vmem:[%s5519_s1 + $0x98] sm:$0xff]  ;;  %v3770_v24 = vld [vmem:[%s4635_s10 + $0x42] sm:$0xff] }
  0x48   : > { %v1024_v8 = vunpack.c.l.b16 %v433_v60  ;;  %v4338_v14 = vld [vmem:[%s5519_s1 + $0xd8] sm:$0xff]  ;;  %v4329_v22 = vld [vmem:[%s5519_s1 + $0x90] sm:$0xff]  ;;  %v3778_v26 = vld [vmem:[%s4635_s10 + $0x82] sm:$0xff] }
  0x49   : > { %v1000_v10 = vunpack.c.l.b16 %v409_v62  ;;  %v1034_v15 = vpack.c.b16 %v1008_v4, %v1007_v3  ;;  %v4322_v19 = vld [vmem:[%s5519_s1 + $0x58] sm:$0xff]  ;;  %v4337_v23 = vld [vmem:[%s5519_s1 + $0xd0] sm:$0xff]  ;;  %v3762_v30 = vld [vmem:[%s4635_s10 + $0x2] sm:$0xff] }
  0x4a   : > { %4395 = vmatpush.bf16.msra.mxu1 %v4314_v5  ;;  %4396 = vmatpush.bf16.msra.mxu2 %v4314_v5  ;;  %v1042_v17 = vpack.c.b16 %v1024_v8, %v1023_v7  ;;  %v3761_v29 = vld [vmem:[%s4635_s10 - $0x6] sm:$0xff]  ;;  %v4321_v31 = vld [vmem:[%s5519_s1 + $0x50] sm:$0xff]  ;;  %v4344_v44 = vld [vmem:[%s5519_s1 + $0x108] sm:$0xff] }
  0x4b   : > { %4397 = vmatpush.bf16.msra.mxu3 %v4314_v5  ;;  %2409 = vmatpush.bf16.msra.mxu0 %v4314_v5  ;;  %v1015_v5 = vunpack.c.l.b16 %v424_v57  ;;  %v1030_v18 = vpack.c.b16 %v1000_v10, %v999_v9  ;;  %v4345_v32 = vld [vmem:[%s5519_s1 + $0x110] sm:$0xff]  ;;  %v4327_v45 = vld [vmem:[%s5519_s1 + $0x80] sm:$0xff]  ;;  %v4366_v3 = vld [vmem:[%s5519_s1 + $0x1b8] sm:$0xff] }
  0x4c   : > { %v4335_v46 = vld [vmem:[%s5519_s1 + $0xc0] sm:$0xff]  ;;  %v3771_v61 = vld [vmem:[%s4635_s10 + $0x4a] sm:$0xff]  ;;  %v3772_v62 = vld [vmem:[%s4635_s10 + $0x52] sm:$0xff] }
  0x4d   : > { %v4319_v55 = vld [vmem:[%s5519_s1 + $0x40] sm:$0xff]  ;;  %v4374_v4 = vld [vmem:[%s5519_s1 + $0x1f8] sm:$0xff]  ;;  %v420_v9 = vpack.c.bf16 %v3771_v61, %v3771_v61  ;;  %v421_v10 = vpack.c.bf16 %v3772_v62, %v3772_v62  ;;  %v3858_v61 = vld [vmem:[%s4635_s10 + $0xf] sm:$0xff] }
  0x4e   : > { %4398 = vmatpush.bf16.msra.mxu1 %v4313_v6  ;;  %4399 = vmatpush.bf16.msra.mxu2 %v4313_v6  ;;  %v4343_v56 = vld [vmem:[%s5519_s1 + $0x100] sm:$0xff]  ;;  %v3764_v7 = vld [vmem:[%s4635_s10 + $0x12] sm:$0xff] }
  0x4f   : > { %4400 = vmatpush.bf16.msra.mxu3 %v4313_v6  ;;  %2410 = vmatpush.bf16.msra.mxu0 %v4313_v6  ;;  %v1016_v6 = vunpack.c.l.b16 %v425_v58  ;;  %v4382_v8 = vld [vmem:[%s5519_s1 + $0x238] sm:$0xff] }
  0x50   : > { %v3859_v62 = vld [vmem:[%s4635_s10 + $0x17] sm:$0xff] }
  0x51   : > { %v1038_v16 = vpack.c.b16 %v1016_v6, %v1015_v5  ;;  %v4358_v5 = vld [vmem:[%s5519_s1 + $0x178] sm:$0xff]  ;;  %v3763_v6 = vld [vmem:[%s4635_s10 + $0xa] sm:$0xff] }
  0x52   : > { %4401 = vmatpush.bf16.msra.mxu1 %v4312_v20  ;;  %4402 = vmatpush.bf16.msra.mxu2 %v4312_v20 }
  0x53   : > { %4403 = vmatpush.bf16.msra.mxu3 %v4312_v20  ;;  %2411 = vmatpush.bf16.msra.mxu0 %v4312_v20  ;;  %v4346_v20 = vld [vmem:[%s5519_s1 + $0x118] sm:$0xff] }
  0x56   : > { %4404 = vmatpush.bf16.msra.mxu1 %v4311_v28  ;;  %4405 = vmatpush.bf16.msra.mxu2 %v4311_v28 }
  0x57   : > { %4406 = vmatpush.bf16.msra.mxu3 %v4311_v28  ;;  %2412 = vmatpush.bf16.msra.mxu0 %v4311_v28  ;;  %v3786_v28 = vld [vmem:[%s4635_s10 + $0xc2] sm:$0xff] }
  0x59   : > { %2433 = vmatmul.bf16.vlgmr.msra.gmra.mxu1 %v1033_v35  ;;  %2453 = vmatmul.bf16.vlgmr.msra.gmra.mxu2 %v1037_v36  ;;  %v418_v35 = vpack.c.bf16 %v3769_v21, %v3769_v21  ;;  %v419_v36 = vpack.c.bf16 %v3770_v24, %v3770_v24 }
  0x5a   : > { %2583 = vmatpush.bf16.msrb.mxu2 %v4334_v33  ;;  %2473 = vmatmul.bf16.vlgmr.msra.gmra.mxu3 %v1041_v37  ;;  %v4328_v33 = vld [vmem:[%s5519_s1 + $0x88] sm:$0xff]  ;;  %v426_v37 = vpack.c.bf16 %v3777_v25, %v3777_v25 }
  0x5b   : > { %2672 = vmatpush.bf16.msrb.mxu3 %v4342_v34  ;;  %2413 = vmatmul.bf16.vlgmr.msra.gmra.mxu0 %v1029_v38  ;;  %v4336_v34 = vld [vmem:[%s5519_s1 + $0xc8] sm:$0xff]  ;;  %v427_v38 = vpack.c.bf16 %v3778_v26, %v3778_v26  ;;  %v1009_v47 = vunpack.c.l.b16 %v418_v35  ;;  %v1010_v48 = vunpack.c.l.b16 %v419_v36  ;;  %v637_v35 = vld [vmem:[%s4635_s10] sm:$0xff] }
  0x5c   : > { %2494 = vmatpush.bf16.msrb.mxu1 %v4326_v39  ;;  %2761 = vmatpush.bf16.msrb.mxu0 %v4350_v40  ;;  %v434_v39 = vpack.c.bf16 %v3785_v27, %v3785_v27  ;;  %v435_v40 = vpack.c.bf16 %v3786_v28, %v3786_v28  ;;  %v1017_v49 = vunpack.c.l.b16 %v426_v37  ;;  %v638_v36 = vld [vmem:[%s4635_s10 + $0x8] sm:$0xff] }
  0x5d   : > { %v1018_v50 = vunpack.c.l.b16 %v427_v38  ;;  %v1035_v57 = vpack.c.b16 %v1010_v48, %v1009_v47 }
  0x5e   : > { %2584 = vmatpush.bf16.msrb.mxu2 %v4333_v41  ;;  %v410_v41 = vpack.c.bf16 %v3761_v29, %v3761_v29  ;;  %v1025_v51 = vunpack.c.l.b16 %v434_v39  ;;  %v3790_v29 = vld [vmem:[%s4635_s10 - $0x25] sm:$0xff] }
  0x5f   : > { %2673 = vmatpush.bf16.msrb.mxu3 %v4341_v42  ;;  %v411_v42 = vpack.c.bf16 %v3762_v30, %v3762_v30  ;;  %v1039_v58 = vpack.c.b16 %v1018_v50, %v1017_v49  ;;  %v3791_v30 = vld [vmem:[%s4635_s10 - $0x1d] sm:$0xff]  ;;  %v472_v37 = vpack.c.bf16 %v3790_v29, %v3790_v29 }
  0x60   : > { %2495 = vmatpush.bf16.msrb.mxu1 %v4325_v43  ;;  %2762 = vmatpush.bf16.msrb.mxu0 %v4349_v52  ;;  %v4320_v43 = vld [vmem:[%s5519_s1 + $0x48] sm:$0xff]  ;;  %v1026_v52 = vunpack.c.l.b16 %v435_v40  ;;  %v473_v38 = vpack.c.bf16 %v3791_v30, %v3791_v30  ;;  %v3860_v29 = vld [vmem:[%s4635_s10 + $0x1f] sm:$0xff] }
  0x61   : > { %v3861_v30 = vld [vmem:[%s4635_s10 + $0x27] sm:$0xff] }
  0x62   : > { %2585 = vmatpush.bf16.msrb.mxu2 %v4332_v53  ;;  %v1001_v53 = vunpack.c.l.b16 %v410_v41  ;;  %v1043_v59 = vpack.c.b16 %v1026_v52, %v1025_v51 }
  0x63   : > { %2674 = vmatpush.bf16.msrb.mxu3 %v4340_v54  ;;  %v1002_v54 = vunpack.c.l.b16 %v411_v42 }
  0x64   : > { %2496 = vmatpush.bf16.msrb.mxu1 %v4324_v63  ;;  %2763 = vmatpush.bf16.msrb.mxu0 %v4348_v0  ;;  %v3779_v63 = vld [vmem:[%s4635_s10 + $0x8a] sm:$0xff]  ;;  %v3780_v0 = vld [vmem:[%s4635_s10 + $0x92] sm:$0xff] }
  0x65   : > { %v1031_v60 = vpack.c.b16 %v1002_v54, %v1001_v53 }
  0x66   : > { %2586 = vmatpush.bf16.msrb.mxu2 %v4331_v1  ;;  %v3787_v1 = vld [vmem:[%s4635_s10 + $0xca] sm:$0xff] }
  0x67   : > { %2675 = vmatpush.bf16.msrb.mxu3 %v4339_v2  ;;  %v3788_v2 = vld [vmem:[%s4635_s10 + $0xd2] sm:$0xff] }
  0x68   : > { %2497 = vmatpush.bf16.msrb.mxu1 %v4323_v11  ;;  %2764 = vmatpush.bf16.msrb.mxu0 %v4347_v12  ;;  %v428_v11 = vpack.c.bf16 %v3779_v63, %v3779_v63  ;;  %v429_v12 = vpack.c.bf16 %v3780_v0, %v3780_v0  ;;  %v4365_v63 = vld [vmem:[%s5519_s1 + $0x1b0] sm:$0xff] }
  0x69   : > { %2438 = vmatmul.bf16.gmra.mxu1 %v1034_v15  ;;  %2458 = vmatmul.bf16.gmra.mxu2 %v1038_v16  ;;  %v412_v15 = vpack.c.bf16 %v3763_v6, %v3763_v6  ;;  %v413_v16 = vpack.c.bf16 %v3764_v7, %v3764_v7  ;;  %v4373_v0 = vld [vmem:[%s5519_s1 + $0x1f0] sm:$0xff] }
  0x6a   : > { %2587 = vmatpush.bf16.msrb.mxu2 %v4330_v13  ;;  %2478 = vmatmul.bf16.gmra.mxu3 %v1042_v17  ;;  %v436_v13 = vpack.c.bf16 %v3787_v1, %v3787_v1  ;;  %v1011_v17 = vunpack.c.l.b16 %v420_v9  ;;  %v4357_v1 = vld [vmem:[%s5519_s1 + $0x170] sm:$0xff]  ;;  %v606_v9 = vpack.c.bf16 %v3858_v61, %v3858_v61 }
  0x6b   : > { %2676 = vmatpush.bf16.msrb.mxu3 %v4338_v14  ;;  %2418 = vmatmul.bf16.gmra.mxu0 %v1030_v18  ;;  %v437_v14 = vpack.c.bf16 %v3788_v2, %v3788_v2  ;;  %v1012_v18 = vunpack.c.l.b16 %v421_v10  ;;  %v1004_v24 = vunpack.c.l.b16 %v413_v16  ;;  %v639_v2 = vld [vmem:[%s4635_s10 + $0x10] sm:$0xff]  ;;  %v607_v10 = vpack.c.bf16 %v3859_v62, %v3859_v62  ;;  %v644_v62 = vld [vmem:[%s4635_s10 + $0x38] sm:$0xff] }
  0x6c   : > { %2498 = vmatpush.bf16.msrb.mxu1 %v4322_v19  ;;  %2765 = vmatpush.bf16.msrb.mxu0 %v4346_v20  ;;  %v1019_v19 = vunpack.c.l.b16 %v428_v11  ;;  %v1020_v20 = vunpack.c.l.b16 %v429_v12  ;;  %v1027_v21 = vunpack.c.l.b16 %v436_v13  ;;  %v671_v11 = vpack.c.bf16 %v639_v2, %v639_v2  ;;  %v643_v61 = vld [vmem:[%s4635_s10 + $0x30] sm:$0xff] }
  0x6d   : > { %v1036_v25 = vpack.c.b16 %v1012_v18, %v1011_v17  ;;  %v1287_v17 = vunpack.c.l.b16 %v606_v9  ;;  %v1288_v18 = vunpack.c.l.b16 %v607_v10 }
  0x6e   : > { %2588 = vmatpush.bf16.msrb.mxu2 %v4329_v22  ;;  %v1028_v22 = vunpack.c.l.b16 %v437_v14  ;;  %v1040_v26 = vpack.c.b16 %v1020_v20, %v1019_v19  ;;  %v1383_v19 = vunpack.c.l.b16 %v671_v11 }
  0x6f   : > { %2677 = vmatpush.bf16.msrb.mxu3 %v4337_v23  ;;  %v1003_v23 = vunpack.c.l.b16 %v412_v15 }
  0x70   : > { %2499 = vmatpush.bf16.msrb.mxu1 %v4321_v31  ;;  %2766 = vmatpush.bf16.msrb.mxu0 %v4345_v32  ;;  %v1044_v27 = vpack.c.b16 %v1028_v22, %v1027_v21  ;;  %v3823_v31 = vld [vmem:[%s4635_s10 - $0x24] sm:$0xff]  ;;  %v3824_v32 = vld [vmem:[%s4635_s10 - $0x1c] sm:$0xff] }
  0x71   : > { %v1032_v28 = vpack.c.b16 %v1004_v24, %v1003_v23  ;;  %v538_v39 = vpack.c.bf16 %v3823_v31, %v3823_v31  ;;  %v539_v40 = vpack.c.bf16 %v3824_v32, %v3824_v32  ;;  %v1318_v23 = vpack.c.b16 %v1288_v18, %v1287_v17  ;;  %v641_v31 = vld [vmem:[%s4635_s10 + $0x20] sm:$0xff]  ;;  %v642_v32 = vld [vmem:[%s4635_s10 + $0x28] sm:$0xff] }
  0x72   : > { %2589 = vmatpush.bf16.msrb.mxu2 %v4328_v33  ;;  %v3856_v33 = vld [vmem:[%s4635_s10 - $0x1] sm:$0xff] }
  0x73   : > { %2678 = vmatpush.bf16.msrb.mxu3 %v4336_v34  ;;  %v3857_v34 = vld [vmem:[%s4635_s10 + $0x7] sm:$0xff]  ;;  %v604_v41 = vpack.c.bf16 %v3856_v33, %v3856_v33  ;;  %v1189_v47 = vunpack.c.l.b16 %v538_v39  ;;  %v1190_v48 = vunpack.c.l.b16 %v539_v40  ;;  %v673_v39 = vpack.c.bf16 %v641_v31, %v641_v31 }
  0x74   : > { %2500 = vmatpush.bf16.msrb.mxu1 %v4320_v43  ;;  %2767 = vmatpush.bf16.msrb.mxu0 %v4344_v44  ;;  %v605_v42 = vpack.c.bf16 %v3857_v34, %v3857_v34  ;;  %v669_v43 = vpack.c.bf16 %v637_v35, %v637_v35  ;;  %v670_v44 = vpack.c.bf16 %v638_v36, %v638_v36 }
  0x75   : > { %v1285_v49 = vunpack.c.l.b16 %v604_v41  ;;  %v1221_v54 = vpack.c.b16 %v1190_v48, %v1189_v47  ;;  %v674_v40 = vpack.c.bf16 %v642_v32, %v642_v32  ;;  %v1385_v47 = vunpack.c.l.b16 %v673_v39 }
  0x76   : > { %2590 = vmatpush.bf16.msrb.mxu2 %v4327_v45  ;;  %v1093_v45 = vunpack.c.l.b16 %v472_v37  ;;  %v1286_v50 = vunpack.c.l.b16 %v605_v42  ;;  %v1381_v51 = vunpack.c.l.b16 %v669_v43  ;;  %v1382_v52 = vunpack.c.l.b16 %v670_v44 }
  0x77   : > { %2679 = vmatpush.bf16.msrb.mxu3 %v4335_v46  ;;  %v1094_v46 = vunpack.c.l.b16 %v473_v38  ;;  %v608_v37 = vpack.c.bf16 %v3860_v29, %v3860_v29  ;;  %v609_v38 = vpack.c.bf16 %v3861_v30, %v3861_v30  ;;  %v1386_v48 = vunpack.c.l.b16 %v674_v40 }
  0x78   : > { %2501 = vmatpush.bf16.msrb.mxu1 %v4319_v55  ;;  %2768 = vmatpush.bf16.msrb.mxu0 %v4343_v56  ;;  %v1317_v55 = vpack.c.b16 %v1286_v50, %v1285_v49  ;;  %v1413_v56 = vpack.c.b16 %v1382_v52, %v1381_v51 }
  0x79   : > { %2443 = vmatmul.bf16.gmra.mxu1 %v1035_v57  ;;  %2463 = vmatmul.bf16.gmra.mxu2 %v1039_v58  ;;  %v1125_v53 = vpack.c.b16 %v1094_v46, %v1093_v45  ;;  %v3792_v57 = vld [vmem:[%s4635_s10 - $0x15] sm:$0xff]  ;;  %v3793_v58 = vld [vmem:[%s4635_s10 - $0xd] sm:$0xff]  ;;  %v1289_v45 = vunpack.c.l.b16 %v608_v37  ;;  %v1290_v46 = vunpack.c.l.b16 %v609_v38  ;;  %v1415_v52 = vpack.c.b16 %v1386_v48, %v1385_v47 }
  0x7a   : > { %2483 = vmatmul.bf16.gmra.mxu3 %v1043_v59  ;;  %2939 = vmatpush.bf16.msra.mxu2 %v4366_v3  ;;  %v3825_v59 = vld [vmem:[%s4635_s10 - $0x14] sm:$0xff]  ;;  %v640_v3 = vld [vmem:[%s4635_s10 + $0x18] sm:$0xff]  ;;  %v475_v6 = vpack.c.bf16 %v3793_v58, %v3793_v58 }
  0x7b   : > { %2423 = vmatmul.bf16.gmra.mxu0 %v1031_v60  ;;  %3028 = vmatpush.bf16.msra.mxu3 %v4374_v4  ;;  %v3826_v60 = vld [vmem:[%s4635_s10 - $0xc] sm:$0xff]  ;;  %v540_v7 = vpack.c.bf16 %v3825_v59, %v3825_v59  ;;  %v672_v12 = vpack.c.bf16 %v640_v3, %v640_v3  ;;  %v1319_v51 = vpack.c.b16 %v1290_v46, %v1289_v45  ;;  %v4364_v58 = vld [vmem:[%s5519_s1 + $0x1a8] sm:$0xff] }
  0x7c   : > { %2850 = vmatpush.bf16.msra.mxu1 %v4358_v5  ;;  %3117 = vmatpush.bf16.msra.mxu0 %v4382_v8  ;;  %v4381_v4 = vld [vmem:[%s5519_s1 + $0x230] sm:$0xff]  ;;  %v474_v5 = vpack.c.bf16 %v3792_v57, %v3792_v57  ;;  %v541_v8 = vpack.c.bf16 %v3826_v60, %v3826_v60  ;;  %v1096_v14 = vunpack.c.l.b16 %v475_v6  ;;  %v4372_v59 = vld [vmem:[%s5519_s1 + $0x1e8] sm:$0xff]  ;;  %v675_v6 = vpack.c.bf16 %v643_v61, %v643_v61 }
  0x7d   : > { %v1191_v15 = vunpack.c.l.b16 %v540_v7  ;;  %v1384_v20 = vunpack.c.l.b16 %v672_v12  ;;  %v3862_v57 = vld [vmem:[%s4635_s10 + $0x2f] sm:$0xff]  ;;  %v3863_v60 = vld [vmem:[%s4635_s10 + $0x37] sm:$0xff]  ;;  %v676_v7 = vpack.c.bf16 %v644_v62, %v644_v62 }
  0x7e   : > { %2940 = vmatpush.bf16.msra.mxu2 %v4365_v63  ;;  %v1095_v13 = vunpack.c.l.b16 %v474_v5  ;;  %v1192_v16 = vunpack.c.l.b16 %v541_v8  ;;  %v4356_v3 = vld [vmem:[%s5519_s1 + $0x168] sm:$0xff]  ;;  %v611_v5 = vpack.c.bf16 %v3863_v60, %v3863_v60  ;;  %v648_v60 = vld [vmem:[%s4635_s10 + $0x58] sm:$0xff] }
  0x7f   : > { %3029 = vmatpush.bf16.msra.mxu3 %v4373_v0  ;;  %v1414_v24 = vpack.c.b16 %v1384_v20, %v1383_v19  ;;  %v4380_v8 = vld [vmem:[%s5519_s1 + $0x228] sm:$0xff] }
  0x80   : > { %2851 = vmatpush.bf16.msra.mxu1 %v4357_v1  ;;  %3118 = vmatpush.bf16.msra.mxu0 %v4381_v4  ;;  %v1126_v21 = vpack.c.b16 %v1096_v14, %v1095_v13  ;;  %v1222_v22 = vpack.c.b16 %v1192_v16, %v1191_v15  ;;  %v610_v4 = vpack.c.bf16 %v3862_v57, %v3862_v57  ;;  %v1292_v14 = vunpack.c.l.b16 %v611_v5  ;;  %v4371_v57 = vld [vmem:[%s5519_s1 + $0x1e0] sm:$0xff] }
  0x81   : > { %v1387_v15 = vunpack.c.l.b16 %v675_v6  ;;  %v1388_v16 = vunpack.c.l.b16 %v676_v7 }
  0x82   : > { %2941 = vmatpush.bf16.msra.mxu2 %v4364_v58  ;;  %v1291_v13 = vunpack.c.l.b16 %v610_v4  ;;  %v3867_v58 = vld [vmem:[%s4635_s10 + $0x57] sm:$0xff] }
  0x83   : > { %3030 = vmatpush.bf16.msra.mxu3 %v4372_v59  ;;  %v1416_v20 = vpack.c.b16 %v1388_v16, %v1387_v15  ;;  %v647_v59 = vld [vmem:[%s4635_s10 + $0x50] sm:$0xff]  ;;  %v615_v6 = vpack.c.bf16 %v3867_v58, %v3867_v58 }
  0x84   : > { %2852 = vmatpush.bf16.msra.mxu1 %v4356_v3  ;;  %3119 = vmatpush.bf16.msra.mxu0 %v4380_v8  ;;  %v1320_v19 = vpack.c.b16 %v1292_v14, %v1291_v13  ;;  %v4355_v3 = vld [vmem:[%s5519_s1 + $0x160] sm:$0xff]  ;;  %v679_v7 = vpack.c.bf16 %v647_v59, %v647_v59  ;;  %v680_v8 = vpack.c.bf16 %v648_v60, %v648_v60 }
  0x85   : > { %v1296_v16 = vunpack.c.l.b16 %v615_v6  ;;  %v3837_v6 = vld [vmem:[%s4635_s10 + $0x4c] sm:$0xff] }
  0x87   : > { %3031 = vmatpush.bf16.msra.mxu3 %v4371_v57 }
  0x88   : > { %2853 = vmatpush.bf16.msra.mxu1 %v4355_v3  ;;  %v3804_v3 = vld [vmem:[%s4635_s10 + $0x4b] sm:$0xff] }
  0x89   : > { %2448 = vmatmul.bf16.gmra.mxu1 %v1036_v25  ;;  %2468 = vmatmul.bf16.gmra.mxu2 %v1040_v26  ;;  %v3794_v25 = vld [vmem:[%s4635_s10 - $0x5] sm:$0xff]  ;;  %v3795_v26 = vld [vmem:[%s4635_s10 + $0x3] sm:$0xff] }
  0x8a   : > { %2488 = vmatmul.bf16.gmra.mxu3 %v1044_v27  ;;  %v3827_v27 = vld [vmem:[%s4635_s10 - $0x4] sm:$0xff]  ;;  %v476_v33 = vpack.c.bf16 %v3794_v25, %v3794_v25  ;;  %v477_v34 = vpack.c.bf16 %v3795_v26, %v3795_v26  ;;  %v3865_v26 = vld [vmem:[%s4635_s10 + $0x47] sm:$0xff] }
  0x8b   : > { %2428 = vmatmul.bf16.gmra.mxu0 %v1032_v28  ;;  %v3828_v28 = vld [vmem:[%s4635_s10 + $0x4] sm:$0xff]  ;;  %v542_v35 = vpack.c.bf16 %v3827_v27, %v3827_v27 }
  0x8c   : > { %v543_v36 = vpack.c.bf16 %v3828_v28, %v3828_v28  ;;  %v1097_v41 = vunpack.c.l.b16 %v476_v33  ;;  %v1098_v42 = vunpack.c.l.b16 %v477_v34  ;;  %v3864_v25 = vld [vmem:[%s4635_s10 + $0x3f] sm:$0xff]  ;;  %v646_v28 = vld [vmem:[%s4635_s10 + $0x48] sm:$0xff]  ;;  %v613_v34 = vpack.c.bf16 %v3865_v26, %v3865_v26 }
  0x8d   : > { %v1193_v43 = vunpack.c.l.b16 %v542_v35  ;;  %v645_v27 = vld [vmem:[%s4635_s10 + $0x40] sm:$0xff]  ;;  %v612_v33 = vpack.c.bf16 %v3864_v25, %v3864_v25 }
  0x8e   : > { %v1194_v44 = vunpack.c.l.b16 %v543_v36  ;;  %v1127_v49 = vpack.c.b16 %v1098_v42, %v1097_v41  ;;  %v677_v35 = vpack.c.bf16 %v645_v27, %v645_v27  ;;  %v678_v36 = vpack.c.bf16 %v646_v28, %v646_v28  ;;  %v3802_v27 = vld [vmem:[%s4635_s10 + $0x3b] sm:$0xff]  ;;  %v3803_v28 = vld [vmem:[%s4635_s10 + $0x43] sm:$0xff] }
  0x8f   : > { %v1293_v41 = vunpack.c.l.b16 %v612_v33  ;;  %v1294_v42 = vunpack.c.l.b16 %v613_v34  ;;  %v649_v33 = vld [vmem:[%s4635_s10 + $0x60] sm:$0xff]  ;;  %v650_v34 = vld [vmem:[%s4635_s10 + $0x68] sm:$0xff] }
  0x90   : > { %v1223_v50 = vpack.c.b16 %v1194_v44, %v1193_v43  ;;  %v1389_v43 = vunpack.c.l.b16 %v677_v35  ;;  %v1390_v44 = vunpack.c.l.b16 %v678_v36 }
  0x91   : > { %v1321_v48 = vpack.c.b16 %v1294_v42, %v1293_v41 }
  0x99   : > { %2502 = vmatmul.bf16.vlgmr.msrb.gmra.mxu1 %v1125_v53  ;;  %2591 = vmatmul.bf16.vlgmr.msrb.gmra.mxu2 %v1221_v54  ;;  %v3796_v53 = vld [vmem:[%s4635_s10 + $0xb] sm:$0xff]  ;;  %v3797_v54 = vld [vmem:[%s4635_s10 + $0x13] sm:$0xff] }
  0x9a   : > { %2680 = vmatmul.bf16.vlgmr.msrb.gmra.mxu3 %v1317_v55  ;;  %v3829_v55 = vld [vmem:[%s4635_s10 + $0xc] sm:$0xff]  ;;  %v478_v63 = vpack.c.bf16 %v3796_v53, %v3796_v53  ;;  %v479_v0 = vpack.c.bf16 %v3797_v54, %v3797_v54  ;;  %v3834_v54 = vld [vmem:[%s4635_s10 + $0x34] sm:$0xff] }
  0x9b   : > { %2769 = vmatmul.bf16.vlgmr.msrb.gmra.mxu0 %v1413_v56  ;;  %v3830_v56 = vld [vmem:[%s4635_s10 + $0x14] sm:$0xff]  ;;  %v544_v1 = vpack.c.bf16 %v3829_v55, %v3829_v55  ;;  %v3833_v53 = vld [vmem:[%s4635_s10 + $0x2c] sm:$0xff] }
  0x9c   : > { %v545_v2 = vpack.c.bf16 %v3830_v56, %v3830_v56  ;;  %v1099_v9 = vunpack.c.l.b16 %v478_v63  ;;  %v1100_v10 = vunpack.c.l.b16 %v479_v0  ;;  %v3866_v55 = vld [vmem:[%s4635_s10 + $0x4f] sm:$0xff]  ;;  %v4363_v56 = vld [vmem:[%s5519_s1 + $0x1a0] sm:$0xff] }
  0x9d   : > { %v1195_v11 = vunpack.c.l.b16 %v544_v1  ;;  %2942 = vmatpush.bf16.msra.mxu2 %v4363_v56  ;;  %v548_v1 = vpack.c.bf16 %v3833_v53, %v3833_v53  ;;  %v614_v5 = vpack.c.bf16 %v3866_v55, %v3866_v55 }
  0x9e   : > { %v1196_v12 = vunpack.c.l.b16 %v545_v2  ;;  %v1128_v17 = vpack.c.b16 %v1100_v10, %v1099_v9  ;;  %v549_v2 = vpack.c.bf16 %v3834_v54, %v3834_v54  ;;  %v4379_v10 = vld [vmem:[%s5519_s1 + $0x220] sm:$0xff] }
  0x9f   : > { %v1199_v13 = vunpack.c.l.b16 %v548_v1  ;;  %3120 = vmatpush.bf16.msra.mxu0 %v4379_v10  ;;  %v1295_v15 = vunpack.c.l.b16 %v614_v5  ;;  %v3805_v5 = vld [vmem:[%s4635_s10 + $0x53] sm:$0xff] }
  0xa0   : > { %v1224_v18 = vpack.c.b16 %v1196_v12, %v1195_v11  ;;  %v1200_v14 = vunpack.c.l.b16 %v549_v2  ;;  %v4362_v10 = vld [vmem:[%s5519_s1 + $0x198] sm:$0xff] }
  0xa1   : > { %2943 = vmatpush.bf16.msra.mxu2 %v4362_v10 }
  0xa9   : > { %2507 = vmatmul.bf16.gmra.mxu1 %v1126_v21  ;;  %2596 = vmatmul.bf16.gmra.mxu2 %v1222_v22  ;;  %v3798_v21 = vld [vmem:[%s4635_s10 + $0x1b] sm:$0xff]  ;;  %v3799_v22 = vld [vmem:[%s4635_s10 + $0x23] sm:$0xff] }
  0xaa   : > { %2685 = vmatmul.bf16.gmra.mxu3 %v1318_v23  ;;  %v3831_v23 = vld [vmem:[%s4635_s10 + $0x1c] sm:$0xff]  ;;  %v480_v29 = vpack.c.bf16 %v3798_v21, %v3798_v21  ;;  %v481_v30 = vpack.c.bf16 %v3799_v22, %v3799_v22  ;;  %v1226_v22 = vpack.c.b16 %v1200_v14, %v1199_v13  ;;  %v651_v13 = vld [vmem:[%s4635_s10 + $0x70] sm:$0xff] }
  0xab   : > { %2774 = vmatmul.bf16.gmra.mxu0 %v1414_v24  ;;  %v3832_v24 = vld [vmem:[%s4635_s10 + $0x24] sm:$0xff]  ;;  %v546_v31 = vpack.c.bf16 %v3831_v23, %v3831_v23  ;;  %v652_v14 = vld [vmem:[%s4635_s10 + $0x78] sm:$0xff] }
  0xac   : > { %v547_v32 = vpack.c.bf16 %v3832_v24, %v3832_v24  ;;  %v1101_v37 = vunpack.c.l.b16 %v480_v29  ;;  %v1102_v38 = vunpack.c.l.b16 %v481_v30  ;;  %v1322_v24 = vpack.c.b16 %v1296_v16, %v1295_v15  ;;  %v3835_v29 = vld [vmem:[%s4635_s10 + $0x3c] sm:$0xff]  ;;  %v3836_v30 = vld [vmem:[%s4635_s10 + $0x44] sm:$0xff] }
  0xad   : > { %v1197_v39 = vunpack.c.l.b16 %v546_v31  ;;  %v3868_v31 = vld [vmem:[%s4635_s10 + $0x5f] sm:$0xff] }
  0xae   : > { %v1198_v40 = vunpack.c.l.b16 %v547_v32  ;;  %v1129_v45 = vpack.c.b16 %v1102_v38, %v1101_v37  ;;  %v3869_v32 = vld [vmem:[%s4635_s10 + $0x67] sm:$0xff]  ;;  %v484_v37 = vpack.c.bf16 %v3802_v27, %v3802_v27  ;;  %v485_v38 = vpack.c.bf16 %v3803_v28, %v3803_v28 }
  0xaf   : > { %v616_v42 = vpack.c.bf16 %v3868_v31, %v3868_v31  ;;  %v683_v28 = vpack.c.bf16 %v651_v13, %v651_v13  ;;  %v4354_v31 = vld [vmem:[%s5519_s1 + $0x158] sm:$0xff] }
  0xb0   : > { %v1225_v46 = vpack.c.b16 %v1198_v40, %v1197_v39  ;;  %v550_v39 = vpack.c.bf16 %v3835_v29, %v3835_v29  ;;  %v551_v40 = vpack.c.bf16 %v3836_v30, %v3836_v30  ;;  %v684_v29 = vpack.c.bf16 %v652_v14, %v652_v14  ;;  %2854 = vmatpush.bf16.msra.mxu1 %v4354_v31 }
  0xb1   : > { %v1297_v53 = vunpack.c.l.b16 %v616_v42  ;;  %v1395_v42 = vunpack.c.l.b16 %v683_v28 }
  0xb9   : > { %2512 = vmatmul.bf16.gmra.mxu1 %v1127_v49  ;;  %2601 = vmatmul.bf16.gmra.mxu2 %v1223_v50  ;;  %v1417_v49 = vpack.c.b16 %v1390_v44, %v1389_v43  ;;  %v617_v43 = vpack.c.bf16 %v3869_v32, %v3869_v32  ;;  %v681_v44 = vpack.c.bf16 %v649_v33, %v649_v33  ;;  %v4378_v32 = vld [vmem:[%s5519_s1 + $0x218] sm:$0xff] }
  0xba   : > { %2690 = vmatmul.bf16.gmra.mxu3 %v1319_v51  ;;  %v3800_v51 = vld [vmem:[%s4635_s10 + $0x2b] sm:$0xff]  ;;  %3121 = vmatpush.bf16.msra.mxu0 %v4378_v32 }
  0xbb   : > { %2779 = vmatmul.bf16.gmra.mxu0 %v1415_v52  ;;  %v3801_v52 = vld [vmem:[%s4635_s10 + $0x33] sm:$0xff]  ;;  %v482_v63 = vpack.c.bf16 %v3800_v51, %v3800_v51  ;;  %v1201_v51 = vunpack.c.l.b16 %v550_v39  ;;  %v1298_v54 = vunpack.c.l.b16 %v617_v43  ;;  %v1393_v55 = vunpack.c.l.b16 %v681_v44 }
  0xbc   : > { %v483_v0 = vpack.c.bf16 %v3801_v52, %v3801_v52  ;;  %v1202_v52 = vunpack.c.l.b16 %v551_v40  ;;  %v1396_v43 = vunpack.c.l.b16 %v684_v29 }
  0xbd   : > { %v1103_v11 = vunpack.c.l.b16 %v482_v63 }
  0xbe   : > { %v1104_v12 = vunpack.c.l.b16 %v483_v0  ;;  %v1227_v60 = vpack.c.b16 %v1202_v52, %v1201_v51  ;;  %v1323_v0 = vpack.c.b16 %v1298_v54, %v1297_v53  ;;  %v1420_v53 = vpack.c.b16 %v1396_v43, %v1395_v42 }
  0xc0   : > { %v1130_v21 = vpack.c.b16 %v1104_v12, %v1103_v11  ;;  %v4370_v11 = vld [vmem:[%s5519_s1 + $0x1d8] sm:$0xff] }
  0xc1   : > { %v3871_v12 = vld [vmem:[%s4635_s10 + $0x77] sm:$0xff]  ;;  %3032 = vmatpush.bf16.msra.mxu3 %v4370_v11 }
  0xc2   : > { %v619_v27 = vpack.c.bf16 %v3871_v12, %v3871_v12 }
  0xc4   : > { %v1300_v40 = vunpack.c.l.b16 %v619_v27 }
  0xc9   : > { %2517 = vmatmul.bf16.gmra.mxu1 %v1128_v17  ;;  %2606 = vmatmul.bf16.gmra.mxu2 %v1224_v18  ;;  %v1391_v17 = vunpack.c.l.b16 %v679_v7  ;;  %v1392_v18 = vunpack.c.l.b16 %v680_v8  ;;  %v3838_v7 = vld [vmem:[%s4635_s10 + $0x54] sm:$0xff] }
  0xca   : > { %2695 = vmatmul.bf16.gmra.mxu3 %v1320_v19  ;;  %v3870_v8 = vld [vmem:[%s4635_s10 + $0x6f] sm:$0xff] }
  0xcb   : > { %2784 = vmatmul.bf16.gmra.mxu0 %v1416_v20  ;;  %v1418_v25 = vpack.c.b16 %v1392_v18, %v1391_v17  ;;  %v486_v17 = vpack.c.bf16 %v3804_v3, %v3804_v3  ;;  %v487_v18 = vpack.c.bf16 %v3805_v5, %v3805_v5  ;;  %v653_v3 = vld [vmem:[%s4635_s10 + $0x80] sm:$0xff]  ;;  %v654_v5 = vld [vmem:[%s4635_s10 + $0x88] sm:$0xff] }
  0xcd   : > { %v1107_v33 = vunpack.c.l.b16 %v486_v17 }
  0xd6   : > { %v4850_v47 = vpop.f32.mrf.mxu1 }
  0xd8   : > { %v4852_v50 = vpop.f32.mrf.mxu0 }
  0xd9   : > { %2522 = vmatmul.bf16.gmra.mxu1 %v1129_v45  ;;  %2611 = vmatmul.bf16.gmra.mxu2 %v1225_v46  ;;  %v682_v45 = vpack.c.bf16 %v650_v34, %v650_v34  ;;  %v1108_v34 = vunpack.c.l.b16 %v487_v18  ;;  %v685_v18 = vpack.c.bf16 %v653_v3, %v653_v3  ;;  %v3875_v3 = vld [vmem:[%s4635_s10 + $0x97] sm:$0xff] }
  0xda   : > { %2700 = vmatmul.bf16.gmra.mxu3 %v1321_v48  ;;  %v1105_v48 = vunpack.c.l.b16 %v484_v37 }
  0xdb   : > { %2789 = vmatmul.bf16.gmra.mxu0 %v1417_v49  ;;  %v1106_v49 = vunpack.c.l.b16 %v485_v38  ;;  %v1394_v56 = vunpack.c.l.b16 %v682_v45 }
  0xdc   : > { %v4868_v61 = vpop.f32.mrf.mxu2 }
  0xdd   : > { %v4870_v62 = vpop.f32.mrf.mxu3  ;;  %v1131_v59 = vpack.c.b16 %v1106_v49, %v1105_v48  ;;  %v1419_v1 = vpack.c.b16 %v1394_v56, %v1393_v55  ;;  %v1132_v48 = vpack.c.b16 %v1108_v34, %v1107_v33  ;;  %v3806_v55 = vld [vmem:[%s4635_s10 + $0x5b] sm:$0xff]  ;;  %v3807_v56 = vld [vmem:[%s4635_s10 + $0x63] sm:$0xff]  ;;  %v1397_v33 = vunpack.c.l.b16 %v685_v18 }
  0xde   : > { %v4875_v4 = vpop.f32.mrf.mxu1  ;;  %v489_v10 = vpack.c.bf16 %v3807_v56, %v3807_v56  ;;  %v3841_v56 = vld [vmem:[%s4635_s10 + $0x6c] sm:$0xff] }
  0xe0   : > { %v4877_v9 = vpop.f32.mrf.mxu0  ;;  %v1110_v27 = vunpack.c.l.b16 %v489_v10 }
  0xe4   : > { %v4882_v19 = vpop.f32.mrf.mxu2 }
  0xe5   : > { %v4884_v20 = vpop.f32.mrf.mxu3 }
  0xe6   : > { %v4886_v23 = vpop.f32.mrf.mxu1 }
  0xe8   : > { %v4888_v26 = vpop.f32.mrf.mxu0 }
  0xe9   : > { %2527 = vmatmul.bf16.gmra.mxu1 %v1130_v21  ;;  %2616 = vmatmul.bf16.gmra.mxu2 %v1226_v22  ;;  %v552_v21 = vpack.c.bf16 %v3837_v6, %v3837_v6  ;;  %v553_v22 = vpack.c.bf16 %v3838_v7, %v3838_v7 }
  0xea   : > { %2705 = vmatmul.bf16.gmra.mxu3 %v1322_v24 }
  0xeb   : > { %2794 = vmatmul.bf16.gmra.mxu0 %v1418_v25  ;;  %v618_v25 = vpack.c.bf16 %v3870_v8, %v3870_v8  ;;  %v1203_v37 = vunpack.c.l.b16 %v552_v21  ;;  %v1204_v38 = vunpack.c.l.b16 %v553_v22  ;;  %v488_v8 = vpack.c.bf16 %v3806_v55, %v3806_v55  ;;  %v3809_v55 = vld [vmem:[%s4635_s10 + $0x73] sm:$0xff] }
  0xec   : > { %v4898_v35 = vpop.f32.mrf.mxu2  ;;  %v686_v21 = vpack.c.bf16 %v654_v5, %v654_v5  ;;  %v656_v5 = vld [vmem:[%s4635_s10 + $0x98] sm:$0xff] }
  0xed   : > { %v4900_v36 = vpop.f32.mrf.mxu3  ;;  %v1299_v39 = vunpack.c.l.b16 %v618_v25  ;;  %v1228_v49 = vpack.c.b16 %v1204_v38, %v1203_v37  ;;  %v1109_v25 = vunpack.c.l.b16 %v488_v8 }
  0xee   : > { %v4902_v41 = vpop.f32.mrf.mxu1  ;;  %v1398_v34 = vunpack.c.l.b16 %v686_v21 }
  0xef   : > { %v1324_v52 = vpack.c.b16 %v1300_v40, %v1299_v39  ;;  %v1133_v39 = vpack.c.b16 %v1110_v27, %v1109_v25  ;;  %v623_v27 = vpack.c.bf16 %v3875_v3, %v3875_v3 }
  0xf0   : > { %v4904_v46 = vpop.f32.mrf.mxu0 }
  0xf4   : > { %v4906_v57 = vpop.f32.mrf.mxu2 }
  0xf5   : > { %v4908_v58 = vpop.f32.mrf.mxu3 }
  0xf6   : > { %v4910_v63 = vpop.f32.mrf.mxu1 }
  0xf8   : > { %v4912_v2 = vpop.f32.mrf.mxu0 }
  0xf9   : > { %2532 = vmatmul.bf16.gmra.mxu1 %v1131_v59  ;;  %2621 = vmatmul.bf16.gmra.mxu2 %v1227_v60  ;;  %v3839_v59 = vld [vmem:[%s4635_s10 + $0x5c] sm:$0xff]  ;;  %v3840_v60 = vld [vmem:[%s4635_s10 + $0x64] sm:$0xff] }
  0xfa   : > { %2710 = vmatmul.bf16.gmra.mxu3 %v1323_v0  ;;  %v3872_v0 = vld [vmem:[%s4635_s10 + $0x7f] sm:$0xff]  ;;  %v554_v11 = vpack.c.bf16 %v3839_v59, %v3839_v59  ;;  %v555_v12 = vpack.c.bf16 %v3840_v60, %v3840_v60  ;;  %v3842_v59 = vld [vmem:[%s4635_s10 + $0x74] sm:$0xff] }
  0xfb   : > { %2799 = vmatmul.bf16.gmra.mxu0 %v1419_v1  ;;  %v3873_v1 = vld [vmem:[%s4635_s10 + $0x87] sm:$0xff]  ;;  %v620_v14 = vpack.c.bf16 %v3872_v0, %v3872_v0  ;;  %v3874_v60 = vld [vmem:[%s4635_s10 + $0x8f] sm:$0xff]  ;;  %v557_v18 = vpack.c.bf16 %v3842_v59, %v3842_v59 }
  0xfc   : > { %v4928_v15 = vpop.f32.mrf.mxu2  ;;  %v621_v17 = vpack.c.bf16 %v3873_v1, %v3873_v1  ;;  %v1205_v28 = vunpack.c.l.b16 %v554_v11  ;;  %v1206_v29 = vunpack.c.l.b16 %v555_v12  ;;  %v4361_v0 = vld [vmem:[%s5519_s1 + $0x190] sm:$0xff]  ;;  %v622_v25 = vpack.c.bf16 %v3874_v60, %v3874_v60 }
  0xfd   : > { %v4930_v16 = vpop.f32.mrf.mxu3  ;;  %v1301_v31 = vunpack.c.l.b16 %v620_v14  ;;  %v4369_v1 = vld [vmem:[%s5519_s1 + $0x1d0] sm:$0xff]  ;;  %2944 = vmatpush.bf16.msra.mxu2 %v4361_v0  ;;  %v491_v14 = vpack.c.bf16 %v3809_v55, %v3809_v55  ;;  %v1304_v55 = vunpack.c.l.b16 %v623_v27  ;;  %v3877_v27 = vld [vmem:[%s4635_s10 + $0xa7] sm:$0xff] }
  0xfe   : > { %v4932_v24 = vpop.f32.mrf.mxu1  ;;  %v1302_v32 = vunpack.c.l.b16 %v621_v17  ;;  %v1229_v40 = vpack.c.b16 %v1206_v29, %v1205_v28  ;;  %3033 = vmatpush.bf16.msra.mxu3 %v4369_v1  ;;  %v556_v17 = vpack.c.bf16 %v3841_v56, %v3841_v56  ;;  %v688_v29 = vpack.c.bf16 %v656_v5, %v656_v5 }
 0x100   : > { %v4934_v30 = vpop.f32.mrf.mxu0  ;;  %v1325_v43 = vpack.c.b16 %v1302_v32, %v1301_v31  ;;  %v1400_v56 = vunpack.c.l.b16 %v688_v29  ;;  %v658_v29 = vld [vmem:[%s4635_s10 + $0xa8] sm:$0xff] }
 0x104   : > { %v4942_v44 = vpop.f32.mrf.mxu2 }
 0x105   : > { %v4944_v45 = vpop.f32.mrf.mxu3 }
 0x106   : > { %v4946_v51 = vpop.f32.mrf.mxu1 }
 0x108   : > { %v4948_v54 = vpop.f32.mrf.mxu0 }
 0x109   : > { %2537 = vmatmul.bf16.gmra.mxu1 %v1132_v48  ;;  %2626 = vmatmul.bf16.gmra.mxu2 %v1228_v49  ;;  %v1421_v48 = vpack.c.b16 %v1398_v34, %v1397_v33  ;;  %v4353_v34 = vld [vmem:[%s5519_s1 + $0x150] sm:$0xff] }
 0x10a   : > { %2715 = vmatmul.bf16.gmra.mxu3 %v1324_v52  ;;  %2855 = vmatpush.bf16.msra.mxu1 %v4353_v34 }
 0x10b   : > { %2804 = vmatmul.bf16.gmra.mxu0 %v1420_v53  ;;  %v3808_v53 = vld [vmem:[%s4635_s10 + $0x6b] sm:$0xff] }
 0x10c   : > { %v4958_v6 = vpop.f32.mrf.mxu2  ;;  %v490_v10 = vpack.c.bf16 %v3808_v53, %v3808_v53  ;;  %v1303_v53 = vunpack.c.l.b16 %v622_v25  ;;  %v3876_v25 = vld [vmem:[%s4635_s10 + $0x9f] sm:$0xff] }
 0x10d   : > { %v4960_v7 = vpop.f32.mrf.mxu3 }
 0x10e   : > { %v4962_v13 = vpop.f32.mrf.mxu1  ;;  %v1326_v5 = vpack.c.b16 %v1304_v55, %v1303_v53  ;;  %v625_v53 = vpack.c.bf16 %v3877_v27, %v3877_v27  ;;  %v690_v55 = vpack.c.bf16 %v658_v29, %v658_v29 }
 0x110   : > { %v4964_v22 = vpop.f32.mrf.mxu0 }
 0x114   : > { %v4966_v37 = vpop.f32.mrf.mxu2 }
 0x115   : > { %v4968_v38 = vpop.f32.mrf.mxu3 }
 0x116   : > { %v2503_v42 = vpop.f32.mrf.mxu1 }
 0x117   : > { %v2504_v49 = vadd.f32 %v2503_v42, %v4852_v50  ;;  %v655_v50 = vld [vmem:[%s4635_s10 + $0x90] sm:$0xff]  ;;  %v1112_v42 = vunpack.c.l.b16 %v491_v14  ;;  %v3811_v14 = vld [vmem:[%s4635_s10 + $0x83] sm:$0xff] }
 0x118   : > { %v2770_v52 = vpop.f32.mrf.mxu0  ;;  %v687_v28 = vpack.c.bf16 %v655_v50, %v655_v50 }
 0x119   : > { %2542 = vmatmul.bf16.gmra.mxu1 %v1133_v39  ;;  %2631 = vmatmul.bf16.gmra.mxu2 %v1229_v40  ;;  %v4377_v39 = vld [vmem:[%s5519_s1 + $0x210] sm:$0xff]  ;;  %v1111_v40 = vunpack.c.l.b16 %v490_v10 }
 0x11a   : > { %2720 = vmatmul.bf16.gmra.mxu3 %v1325_v43  ;;  %v1207_v43 = vunpack.c.l.b16 %v556_v17  ;;  %3122 = vmatpush.bf16.msra.mxu0 %v4377_v39 }
 0x11b   : > { %2809 = vmatmul.bf16.gmra.mxu0 %v1421_v48  ;;  %v1208_v48 = vunpack.c.l.b16 %v557_v18  ;;  %v1134_v1 = vpack.c.b16 %v1112_v42, %v1111_v40  ;;  %v3843_v18 = vld [vmem:[%s4635_s10 + $0x7c] sm:$0xff] }
 0x11c   : > { %v2592_v8 = vpop.f32.mrf.mxu2  ;;  %v558_v40 = vpack.c.bf16 %v3843_v18, %v3843_v18 }
 0x11d   : > { %v2593_v11 = vadd.f32 %v2592_v8, %v2504_v49  ;;  %v2681_v12 = vpop.f32.mrf.mxu3  ;;  %v1230_v3 = vpack.c.b16 %v1208_v48, %v1207_v43  ;;  %v624_v48 = vpack.c.bf16 %v3876_v25, %v3876_v25 }
 0x11e   : > { %v2505_v21 = vpop.f32.mrf.mxu1 }
 0x11f   : > { %v2682_v31 = vadd.f32 %v2681_v12, %v2593_v11  ;;  %v2506_v32 = vadd.f32 %v2505_v21, %v4877_v9  ;;  %v1399_v9 = vunpack.c.l.b16 %v687_v28  ;;  %v3810_v12 = vld [vmem:[%s4635_s10 + $0x7b] sm:$0xff]  ;;  %v3844_v21 = vld [vmem:[%s4635_s10 + $0x84] sm:$0xff] }
 0x120   : > { %v2772_v33 = vpop.f32.mrf.mxu0  ;;  %v657_v28 = vld [vmem:[%s4635_s10 + $0xa0] sm:$0xff]  ;;  %v559_v42 = vpack.c.bf16 %v3844_v21, %v3844_v21 }
 0x121   : > { %v4992_v49 = vadd.f32 %v2770_v52, %v2682_v31  ;;  %v1422_v52 = vpack.c.b16 %v1400_v56, %v1399_v9 }
 0x124   : > { %v2594_v59 = vpop.f32.mrf.mxu2 }
 0x125   : > { %v2595_v60 = vadd.f32 %v2594_v59, %v2506_v32  ;;  %v2683_v0 = vpop.f32.mrf.mxu3  ;;  %v492_v32 = vpack.c.bf16 %v3810_v12, %v3810_v12 }
 0x126   : > { %v2508_v50 = vpop.f32.mrf.mxu1 }
 0x127   : > { %v2684_v8 = vadd.f32 %v2683_v0, %v2595_v60  ;;  %v2509_v10 = vadd.f32 %v2508_v50, %v4888_v26  ;;  %v493_v26 = vpack.c.bf16 %v3811_v14, %v3811_v14  ;;  %v1113_v60 = vunpack.c.l.b16 %v492_v32  ;;  %v3812_v32 = vld [vmem:[%s4635_s10 + $0x8b] sm:$0xff] }
 0x128   : > { %v2775_v11 = vpop.f32.mrf.mxu0 }
 0x129   : > { %2547 = vmatmul.bf16.gmra.mxu1 %v1134_v1  ;;  %2636 = vmatmul.bf16.gmra.mxu2 %v1230_v3  ;;  %v4997_v17 = vadd.f32 %v2772_v33, %v2684_v8  ;;  %v689_v33 = vpack.c.bf16 %v657_v28, %v657_v28  ;;  %v1114_v0 = vunpack.c.l.b16 %v493_v26  ;;  %v1209_v1 = vunpack.c.l.b16 %v558_v40  ;;  %v3846_v26 = vld [vmem:[%s4635_s10 + $0x94] sm:$0xff] }
 0x12a   : > { %2725 = vmatmul.bf16.gmra.mxu3 %v1326_v5  ;;  %v1210_v3 = vunpack.c.l.b16 %v559_v42  ;;  %v1305_v5 = vunpack.c.l.b16 %v624_v48  ;;  %v3878_v42 = vld [vmem:[%s4635_s10 + $0xaf] sm:$0xff]  ;;  %v3879_v48 = vld [vmem:[%s4635_s10 + $0xb7] sm:$0xff] }
 0x12b   : > { %2814 = vmatmul.bf16.gmra.mxu0 %v1422_v52  ;;  %v1306_v52 = vunpack.c.l.b16 %v625_v53  ;;  %v1401_v8 = vunpack.c.l.b16 %v689_v33  ;;  %v1135_v21 = vpack.c.b16 %v1114_v0, %v1113_v60  ;;  %v659_v53 = vld [vmem:[%s4635_s10 + $0xb0] sm:$0xff]  ;;  %v660_v33 = vld [vmem:[%s4635_s10 + $0xb8] sm:$0xff] }
 0x12c   : > { %v2597_v31 = vpop.f32.mrf.mxu2 }
 0x12d   : > { %v2598_v34 = vadd.f32 %v2597_v31, %v2509_v10  ;;  %v2686_v39 = vpop.f32.mrf.mxu3  ;;  %v1402_v10 = vunpack.c.l.b16 %v690_v55  ;;  %v1327_v27 = vpack.c.b16 %v1306_v52, %v1305_v5  ;;  %v626_v5 = vpack.c.bf16 %v3878_v42, %v3878_v42 }
 0x12e   : > { %v2510_v43 = vpop.f32.mrf.mxu1  ;;  %v627_v52 = vpack.c.bf16 %v3879_v48, %v3879_v48 }
 0x12f   : > { %v2687_v9 = vadd.f32 %v2686_v39, %v2598_v34  ;;  %v2511_v56 = vadd.f32 %v2510_v43, %v4904_v46  ;;  %v1231_v46 = vpack.c.b16 %v1210_v3, %v1209_v1  ;;  %v1423_v28 = vpack.c.b16 %v1402_v10, %v1401_v8  ;;  %v3813_v34 = vld [vmem:[%s4635_s10 + $0x93] sm:$0xff]  ;;  %v4360_v43 = vld [vmem:[%s5519_s1 + $0x188] sm:$0xff] }
 0x130   : > { %v2777_v59 = vpop.f32.mrf.mxu0  ;;  %v3845_v39 = vld [vmem:[%s4635_s10 + $0x8c] sm:$0xff]  ;;  %2945 = vmatpush.bf16.msra.mxu2 %v4360_v43  ;;  %v495_v60 = vpack.c.bf16 %v3813_v34, %v3813_v34  ;;  %v561_v1 = vpack.c.bf16 %v3846_v26, %v3846_v26  ;;  %v691_v8 = vpack.c.bf16 %v659_v53, %v659_v53  ;;  %v692_v10 = vpack.c.bf16 %v660_v33, %v660_v33 }
 0x131   : > { %v5006_v50 = vadd.f32 %v2775_v11, %v2687_v9  ;;  %v494_v9 = vpack.c.bf16 %v3812_v32, %v3812_v32  ;;  %v560_v0 = vpack.c.bf16 %v3845_v39, %v3845_v39  ;;  %v1307_v32 = vunpack.c.l.b16 %v626_v5  ;;  %v3880_v5 = vld [vmem:[%s4635_s10 + $0xbf] sm:$0xff] }
 0x132   : > { %v1308_v34 = vunpack.c.l.b16 %v627_v52  ;;  %v1404_v39 = vunpack.c.l.b16 %v692_v10  ;;  %v3881_v52 = vld [vmem:[%s4635_s10 + $0xc7] sm:$0xff] }
 0x133   : > { %v662_v10 = vld [vmem:[%s4635_s10 + $0xc8] sm:$0xff] }
 0x134   : > { %v2599_v12 = vpop.f32.mrf.mxu2  ;;  %v1328_v33 = vpack.c.b16 %v1308_v34, %v1307_v32  ;;  %v629_v32 = vpack.c.bf16 %v3881_v52, %v3881_v52  ;;  %v694_v34 = vpack.c.bf16 %v662_v10, %v662_v10 }
 0x135   : > { %v2600_v14 = vadd.f32 %v2599_v12, %v2511_v56  ;;  %v2688_v18 = vpop.f32.mrf.mxu3 }
 0x136   : > { %v2513_v25 = vpop.f32.mrf.mxu1 }
 0x137   : > { %v2689_v11 = vadd.f32 %v2688_v18, %v2600_v14  ;;  %v2514_v29 = vadd.f32 %v2513_v25, %v4912_v2  ;;  %v4368_v2 = vld [vmem:[%s5519_s1 + $0x1c8] sm:$0xff]  ;;  %v1115_v25 = vunpack.c.l.b16 %v494_v9 }
 0x138   : > { %v2780_v31 = vpop.f32.mrf.mxu0  ;;  %3034 = vmatpush.bf16.msra.mxu3 %v4368_v2 }
 0x139   : > { %2552 = vmatmul.bf16.gmra.mxu1 %v1135_v21  ;;  %2641 = vmatmul.bf16.gmra.mxu2 %v1231_v46  ;;  %v5013_v40 = vadd.f32 %v2777_v59, %v2689_v11  ;;  %v4352_v21 = vld [vmem:[%s5519_s1 + $0x148] sm:$0xff]  ;;  %v1212_v11 = vunpack.c.l.b16 %v561_v1  ;;  %v3847_v1 = vld [vmem:[%s4635_s10 + $0x9c] sm:$0xff] }
 0x13a   : > { %2730 = vmatmul.bf16.gmra.mxu3 %v1327_v27  ;;  %v4376_v46 = vld [vmem:[%s5519_s1 + $0x208] sm:$0xff]  ;;  %v1116_v27 = vunpack.c.l.b16 %v495_v60  ;;  %2856 = vmatpush.bf16.msra.mxu1 %v4352_v21 }
 0x13b   : > { %2819 = vmatmul.bf16.gmra.mxu0 %v1423_v28  ;;  %v1211_v28 = vunpack.c.l.b16 %v560_v0  ;;  %v3815_v60 = vld [vmem:[%s4635_s10 + $0xa3] sm:$0xff] }
 0x13c   : > { %v2602_v55 = vpop.f32.mrf.mxu2  ;;  %3123 = vmatpush.bf16.msra.mxu0 %v4376_v46  ;;  %v1136_v2 = vpack.c.b16 %v1116_v27, %v1115_v25  ;;  %v562_v25 = vpack.c.bf16 %v3847_v1, %v3847_v1 }
 0x13d   : > { %v2603_v56 = vadd.f32 %v2602_v55, %v2514_v29  ;;  %v2691_v59 = vpop.f32.mrf.mxu3  ;;  %v1232_v48 = vpack.c.b16 %v1212_v11, %v1211_v28  ;;  %v628_v11 = vpack.c.bf16 %v3880_v5, %v3880_v5 }
 0x13e   : > { %v2515_v3 = vpop.f32.mrf.mxu1 }
 0x13f   : > { %v2692_v12 = vadd.f32 %v2691_v59, %v2603_v56  ;;  %v2516_v14 = vadd.f32 %v2515_v3, %v4934_v30  ;;  %v1403_v30 = vunpack.c.l.b16 %v691_v8  ;;  %v3814_v59 = vld [vmem:[%s4635_s10 + $0x9b] sm:$0xff]  ;;  %v3848_v3 = vld [vmem:[%s4635_s10 + $0xa4] sm:$0xff] }
 0x140   : > { %v2782_v18 = vpop.f32.mrf.mxu0  ;;  %v661_v8 = vld [vmem:[%s4635_s10 + $0xc0] sm:$0xff]  ;;  %v563_v27 = vpack.c.bf16 %v3848_v3, %v3848_v3 }
 0x141   : > { %v5032_v29 = vadd.f32 %v2780_v31, %v2692_v12  ;;  %v1424_v31 = vpack.c.b16 %v1404_v39, %v1403_v30 }
 0x144   : > { %v2604_v26 = vpop.f32.mrf.mxu2 }
 0x145   : > { %v2605_v42 = vadd.f32 %v2604_v26, %v2516_v14  ;;  %v2693_v43 = vpop.f32.mrf.mxu3  ;;  %v496_v14 = vpack.c.bf16 %v3814_v59, %v3814_v59 }
 0x146   : > { %v2518_v53 = vpop.f32.mrf.mxu1 }
 0x147   : > { %v2694_v55 = vadd.f32 %v2693_v43, %v2605_v42  ;;  %v2519_v9 = vadd.f32 %v2518_v53, %v4948_v54  ;;  %v497_v54 = vpack.c.bf16 %v3815_v60, %v3815_v60  ;;  %v1117_v42 = vunpack.c.l.b16 %v496_v14  ;;  %v3817_v14 = vld [vmem:[%s4635_s10 + $0xb3] sm:$0xff] }
 0x148   : > { %v2785_v56 = vpop.f32.mrf.mxu0 }
 0x149   : > { %2557 = vmatmul.bf16.gmra.mxu1 %v1136_v2  ;;  %2646 = vmatmul.bf16.gmra.mxu2 %v1232_v48  ;;  %v5037_v0 = vadd.f32 %v2782_v18, %v2694_v55  ;;  %v693_v18 = vpack.c.bf16 %v661_v8, %v661_v8  ;;  %v1118_v43 = vunpack.c.l.b16 %v497_v54  ;;  %v1213_v2 = vunpack.c.l.b16 %v562_v25  ;;  %v3882_v25 = vld [vmem:[%s4635_s10 + $0xcf] sm:$0xff] }
 0x14a   : > { %2735 = vmatmul.bf16.gmra.mxu3 %v1328_v33  ;;  %v1214_v48 = vunpack.c.l.b16 %v563_v27  ;;  %v1309_v33 = vunpack.c.l.b16 %v628_v11  ;;  %v4359_v27 = vld [vmem:[%s5519_s1 + $0x180] sm:$0xff] }
 0x14b   : > { %2824 = vmatmul.bf16.gmra.mxu0 %v1424_v31  ;;  %v1310_v31 = vunpack.c.l.b16 %v629_v32  ;;  %v1405_v55 = vunpack.c.l.b16 %v693_v18  ;;  %v1137_v3 = vpack.c.b16 %v1118_v43, %v1117_v42  ;;  %v3883_v32 = vld [vmem:[%s4635_s10 + $0xd7] sm:$0xff]  ;;  %2946 = vmatpush.bf16.msra.mxu2 %v4359_v27  ;;  %v499_v43 = vpack.c.bf16 %v3817_v14, %v3817_v14 }
 0x14c   : > { %v2607_v12 = vpop.f32.mrf.mxu2  ;;  %v663_v18 = vld [vmem:[%s4635_s10 + $0xd0] sm:$0xff] }
 0x14d   : > { %v2608_v21 = vadd.f32 %v2607_v12, %v2519_v9  ;;  %v2696_v46 = vpop.f32.mrf.mxu3  ;;  %v1406_v9 = vunpack.c.l.b16 %v694_v34  ;;  %v1329_v52 = vpack.c.b16 %v1310_v31, %v1309_v33  ;;  %v3816_v12 = vld [vmem:[%s4635_s10 + $0xab] sm:$0xff]  ;;  %v664_v34 = vld [vmem:[%s4635_s10 + $0xd8] sm:$0xff]  ;;  %v630_v31 = vpack.c.bf16 %v3882_v25, %v3882_v25 }
 0x14e   : > { %v2520_v28 = vpop.f32.mrf.mxu1 }
 0x14f   : > { %v2697_v30 = vadd.f32 %v2696_v46, %v2608_v21  ;;  %v2521_v39 = vadd.f32 %v2520_v28, %v4964_v22  ;;  %v1233_v22 = vpack.c.b16 %v1214_v48, %v1213_v2  ;;  %v1425_v8 = vpack.c.b16 %v1406_v9, %v1405_v55  ;;  %v3849_v21 = vld [vmem:[%s4635_s10 + $0xac] sm:$0xff]  ;;  %v3850_v46 = vld [vmem:[%s4635_s10 + $0xb4] sm:$0xff]  ;;  %v4367_v28 = vld [vmem:[%s5519_s1 + $0x1c0] sm:$0xff] }
 0x150   : > { %v2787_v26 = vpop.f32.mrf.mxu0  ;;  %3035 = vmatpush.bf16.msra.mxu3 %v4367_v28  ;;  %v564_v2 = vpack.c.bf16 %v3849_v21, %v3849_v21  ;;  %v565_v48 = vpack.c.bf16 %v3850_v46, %v3850_v46  ;;  %v631_v55 = vpack.c.bf16 %v3883_v32, %v3883_v32  ;;  %v695_v9 = vpack.c.bf16 %v663_v18, %v663_v18 }
 0x151   : > { %v5046_v53 = vadd.f32 %v2785_v56, %v2697_v30 }
 0x152   : > { %v1312_v14 = vunpack.c.l.b16 %v631_v55  ;;  %v1407_v21 = vunpack.c.l.b16 %v695_v9  ;;  %v3885_v55 = vld [vmem:[%s4635_s10 + $0xe7] sm:$0xff] }
 0x153   : > { %v665_v9 = vld [vmem:[%s4635_s10 + $0xe0] sm:$0xff] }
 0x154   : > { %v2609_v59 = vpop.f32.mrf.mxu2 }
 0x155   : > { %v2610_v60 = vadd.f32 %v2609_v59, %v2521_v39  ;;  %v2698_v1 = vpop.f32.mrf.mxu3  ;;  %v498_v39 = vpack.c.bf16 %v3816_v12, %v3816_v12  ;;  %v696_v59 = vpack.c.bf16 %v664_v34, %v664_v34  ;;  %v1311_v12 = vunpack.c.l.b16 %v630_v31 }
 0x156   : > { %v2523_v5 = vpop.f32.mrf.mxu1 }
 0x157   : > { %v2699_v10 = vadd.f32 %v2698_v1, %v2610_v60  ;;  %v2524_v11 = vadd.f32 %v2523_v5, %v4850_v47  ;;  %v4351_v47 = vld [vmem:[%s5519_s1 + $0x140] sm:$0xff]  ;;  %v1120_v5 = vunpack.c.l.b16 %v499_v43  ;;  %v1408_v46 = vunpack.c.l.b16 %v696_v59  ;;  %v666_v59 = vld [vmem:[%s4635_s10 + $0xe8] sm:$0xff] }
 0x158   : > { %v2790_v56 = vpop.f32.mrf.mxu0  ;;  %2857 = vmatpush.bf16.msra.mxu1 %v4351_v47 }
 0x159   : > { %2562 = vmatmul.bf16.gmra.mxu1 %v1137_v3  ;;  %2651 = vmatmul.bf16.gmra.mxu2 %v1233_v22  ;;  %v5052_v54 = vadd.f32 %v2787_v26, %v2699_v10  ;;  %v4375_v3 = vld [vmem:[%s5519_s1 + $0x200] sm:$0xff]  ;;  %v1119_v22 = vunpack.c.l.b16 %v498_v39 }
 0x15a   : > { %2740 = vmatmul.bf16.gmra.mxu3 %v1329_v52  ;;  %v1215_v52 = vunpack.c.l.b16 %v564_v2  ;;  %3124 = vmatpush.bf16.msra.mxu0 %v4375_v3  ;;  %v3851_v2 = vld [vmem:[%s4635_s10 + $0xbc] sm:$0xff] }
 0x15b   : > { %2829 = vmatmul.bf16.gmra.mxu0 %v1425_v8  ;;  %v1216_v8 = vunpack.c.l.b16 %v565_v48  ;;  %v1138_v32 = vpack.c.b16 %v1120_v5, %v1119_v22  ;;  %v3852_v48 = vld [vmem:[%s4635_s10 + $0xc4] sm:$0xff] }
 0x15c   : > { %v2612_v30 = vpop.f32.mrf.mxu2 }
 0x15d   : > { %v2613_v26 = vadd.f32 %v2612_v30, %v2524_v11  ;;  %v2701_v42 = vpop.f32.mrf.mxu3  ;;  %v1234_v18 = vpack.c.b16 %v1216_v8, %v1215_v52  ;;  %v1426_v30 = vpack.c.b16 %v1408_v46, %v1407_v21  ;;  %v566_v52 = vpack.c.bf16 %v3851_v2, %v3851_v2 }
 0x15e   : > { %v2525_v33 = vpop.f32.mrf.mxu1  ;;  %v567_v8 = vpack.c.bf16 %v3852_v48, %v3852_v48  ;;  %v697_v21 = vpack.c.bf16 %v665_v9, %v665_v9  ;;  %v698_v46 = vpack.c.bf16 %v666_v59, %v666_v59 }
 0x15f   : > { %v2702_v60 = vadd.f32 %v2701_v42, %v2613_v26  ;;  %v2526_v25 = vadd.f32 %v2525_v33, %v4875_v4  ;;  %v3818_v42 = vld [vmem:[%s4635_s10 + $0xbb] sm:$0xff]  ;;  %v3819_v4 = vld [vmem:[%s4635_s10 + $0xc3] sm:$0xff] }
 0x160   : > { %v2792_v1 = vpop.f32.mrf.mxu0  ;;  %v3884_v33 = vld [vmem:[%s4635_s10 + $0xdf] sm:$0xff]  ;;  %v500_v47 = vpack.c.bf16 %v3818_v42, %v3818_v42  ;;  %v501_v5 = vpack.c.bf16 %v3819_v4, %v3819_v4 }
 0x161   : > { %v5071_v10 = vadd.f32 %v2790_v56, %v2702_v60  ;;  %v1330_v56 = vpack.c.b16 %v1312_v14, %v1311_v12  ;;  %v633_v14 = vpack.c.bf16 %v3885_v55, %v3885_v55 }
 0x164   : > { %v2614_v27 = vpop.f32.mrf.mxu2 }
 0x165   : > { %v2615_v28 = vadd.f32 %v2614_v27, %v2526_v25  ;;  %v2703_v11 = vpop.f32.mrf.mxu3 }
 0x166   : > { %v2528_v34 = vpop.f32.mrf.mxu1 }
 0x167   : > { %v2704_v39 = vadd.f32 %v2703_v11, %v2615_v28  ;;  %v2529_v31 = vadd.f32 %v2528_v34, %v4886_v23  ;;  %v1121_v28 = vunpack.c.l.b16 %v500_v47  ;;  %v1122_v11 = vunpack.c.l.b16 %v501_v5  ;;  %v3820_v47 = vld [vmem:[%s4635_s10 + $0xcb] sm:$0xff]  ;;  %v3854_v5 = vld [vmem:[%s4635_s10 + $0xd4] sm:$0xff] }
 0x168   : > { %v2795_v26 = vpop.f32.mrf.mxu0  ;;  %v1217_v23 = vunpack.c.l.b16 %v566_v52  ;;  %v3886_v52 = vld [vmem:[%s4635_s10 + $0xef] sm:$0xff] }
 0x169   : > { %2567 = vmatmul.bf16.gmra.mxu1 %v1138_v32  ;;  %2656 = vmatmul.bf16.gmra.mxu2 %v1234_v18  ;;  %v5076_v43 = vadd.f32 %v2792_v1, %v2704_v39  ;;  %v632_v1 = vpack.c.bf16 %v3884_v33, %v3884_v33  ;;  %v1218_v32 = vunpack.c.l.b16 %v567_v8  ;;  %v1410_v39 = vunpack.c.l.b16 %v698_v46 }
 0x16a   : > { %2745 = vmatmul.bf16.gmra.mxu3 %v1330_v56  ;;  %v1314_v56 = vunpack.c.l.b16 %v633_v14  ;;  %v1139_v33 = vpack.c.b16 %v1122_v11, %v1121_v28  ;;  %v668_v14 = vld [vmem:[%s4635_s10 + $0xf8] sm:$0xff]  ;;  %v502_v46 = vpack.c.bf16 %v3820_v47, %v3820_v47 }
 0x16b   : > { %2834 = vmatmul.bf16.gmra.mxu0 %v1426_v30  ;;  %v1313_v34 = vunpack.c.l.b16 %v632_v1  ;;  %v1409_v30 = vunpack.c.l.b16 %v697_v21  ;;  %v667_v1 = vld [vmem:[%s4635_s10 + $0xf0] sm:$0xff] }
 0x16c   : > { %v2617_v60 = vpop.f32.mrf.mxu2 }
 0x16d   : > { %v2618_v3 = vadd.f32 %v2617_v60, %v2529_v31  ;;  %v2706_v22 = vpop.f32.mrf.mxu3  ;;  %v1235_v31 = vpack.c.b16 %v1218_v32, %v1217_v23  ;;  %v1427_v9 = vpack.c.b16 %v1410_v39, %v1409_v30  ;;  %v569_v32 = vpack.c.bf16 %v3854_v5, %v3854_v5 }
 0x16e   : > { %v2530_v12 = vpop.f32.mrf.mxu1  ;;  %v699_v30 = vpack.c.bf16 %v667_v1, %v667_v1  ;;  %v700_v39 = vpack.c.bf16 %v668_v14, %v668_v14 }
 0x16f   : > { %v2707_v25 = vadd.f32 %v2706_v22, %v2618_v3  ;;  %v2531_v42 = vadd.f32 %v2530_v12, %v4902_v41  ;;  %v3821_v41 = vld [vmem:[%s4635_s10 + $0xd3] sm:$0xff] }
 0x170   : > { %v2797_v27 = vpop.f32.mrf.mxu0  ;;  %v3853_v22 = vld [vmem:[%s4635_s10 + $0xcc] sm:$0xff]  ;;  %v3887_v12 = vld [vmem:[%s4635_s10 + $0xf7] sm:$0xff]  ;;  %v503_v11 = vpack.c.bf16 %v3821_v41, %v3821_v41 }
 0x171   : > { %v5085_v18 = vadd.f32 %v2795_v26, %v2707_v25  ;;  %v1331_v26 = vpack.c.b16 %v1314_v56, %v1313_v34  ;;  %v568_v23 = vpack.c.bf16 %v3853_v22, %v3853_v22  ;;  %v635_v56 = vpack.c.bf16 %v3887_v12, %v3887_v12 }
 0x174   : > { %v2619_v4 = vpop.f32.mrf.mxu2 }
 0x175   : > { %v2620_v2 = vadd.f32 %v2619_v4, %v2531_v42  ;;  %v2708_v48 = vpop.f32.mrf.mxu3 }
 0x176   : > { %v2533_v55 = vpop.f32.mrf.mxu1 }
 0x177   : > { %v2709_v59 = vadd.f32 %v2708_v48, %v2620_v2  ;;  %v2534_v8 = vadd.f32 %v2533_v55, %v4910_v63  ;;  %v1123_v2 = vunpack.c.l.b16 %v502_v46  ;;  %v1124_v48 = vunpack.c.l.b16 %v503_v11  ;;  %v3889_v46 = vld [vmem:[%s4635_s10 + $0x1] sm:$0xff]  ;;  %v3923_v11 = vld [vmem:[%s4635_s10 + $0x2c] sm:$0xff] }
 0x178   : > { %v2800_v60 = vpop.f32.mrf.mxu0  ;;  %v1219_v63 = vunpack.c.l.b16 %v568_v23  ;;  %v3955_v23 = vld [vmem:[%s4635_s10 + $0x25] sm:$0xff] }
 0x179   : > { %2572 = vmatmul.bf16.gmra.mxu1 %v1139_v33  ;;  %2661 = vmatmul.bf16.gmra.mxu2 %v1235_v31  ;;  %v5090_v3 = vadd.f32 %v2797_v27, %v2709_v59  ;;  %v634_v27 = vpack.c.bf16 %v3886_v52, %v3886_v52  ;;  %v1220_v33 = vunpack.c.l.b16 %v569_v32  ;;  %v1412_v59 = vunpack.c.l.b16 %v700_v39 }
 0x17a   : > { %2750 = vmatmul.bf16.gmra.mxu3 %v1331_v26  ;;  %v1316_v26 = vunpack.c.l.b16 %v635_v56  ;;  %v1140_v52 = vpack.c.b16 %v1124_v48, %v1123_v2  ;;  %v3989_v56 = vld [vmem:[%s4635_s10 + $0x2e] sm:$0xff]  ;;  %v735_v39 = vpack.c.bf16 %v3889_v46, %v3889_v46 }
 0x17b   : > { %2839 = vmatmul.bf16.gmra.mxu0 %v1427_v9  ;;  %v1315_v55 = vunpack.c.l.b16 %v634_v27  ;;  %v1411_v9 = vunpack.c.l.b16 %v699_v30  ;;  %v3988_v27 = vld [vmem:[%s4635_s10 + $0x26] sm:$0xff] }
 0x17c   : > { %v2622_v21 = vpop.f32.mrf.mxu2 }
 0x17d   : > { %v2623_v25 = vadd.f32 %v2622_v21, %v2534_v8  ;;  %v2711_v28 = vpop.f32.mrf.mxu3  ;;  %v1236_v8 = vpack.c.b16 %v1220_v33, %v1219_v63  ;;  %v1428_v1 = vpack.c.b16 %v1412_v59, %v1411_v9  ;;  %v802_v33 = vpack.c.bf16 %v3923_v11, %v3923_v11 }
 0x17e   : > { %v2535_v34 = vpop.f32.mrf.mxu1  ;;  %v933_v9 = vpack.c.bf16 %v3988_v27, %v3988_v27  ;;  %v934_v59 = vpack.c.bf16 %v3989_v56, %v3989_v56 }
 0x17f   : > { %v2712_v42 = vadd.f32 %v2711_v28, %v2623_v25  ;;  %v2536_v47 = vadd.f32 %v2535_v34, %v4932_v24  ;;  %v3890_v24 = vld [vmem:[%s4635_s10 + $0x9] sm:$0xff] }
 0x180   : > { %v2802_v4 = vpop.f32.mrf.mxu0  ;;  %v3922_v28 = vld [vmem:[%s4635_s10 + $0x24] sm:$0xff]  ;;  %v3956_v34 = vld [vmem:[%s4635_s10 + $0x2d] sm:$0xff] }
 0x181   : > { %v5099_v31 = vadd.f32 %v2800_v60, %v2712_v42  ;;  %v1332_v60 = vpack.c.b16 %v1316_v26, %v1315_v55  ;;  %v736_v42 = vpack.c.bf16 %v3890_v24, %v3890_v24  ;;  %v801_v63 = vpack.c.bf16 %v3922_v28, %v3922_v28 }
 0x182   : > { %v867_v55 = vpack.c.bf16 %v3955_v23, %v3955_v23  ;;  %v868_v26 = vpack.c.bf16 %v3956_v34, %v3956_v34  ;;  %v1765_v24 = vunpack.c.l.b16 %v933_v9  ;;  %v1766_v28 = vunpack.c.l.b16 %v934_v59  ;;  %v3958_v59 = vld [vmem:[%s4635_s10 + $0x3d] sm:$0xff] }
 0x184   : > { %v2624_v41 = vpop.f32.mrf.mxu2  ;;  %v1670_v46 = vunpack.c.l.b16 %v868_v26  ;;  %v3957_v26 = vld [vmem:[%s4635_s10 + $0x35] sm:$0xff] }
 0x185   : > { %v2625_v22 = vadd.f32 %v2624_v41, %v2536_v47  ;;  %v2713_v5 = vpop.f32.mrf.mxu3 }
 0x186   : > { %v2538_v12 = vpop.f32.mrf.mxu1 }
 0x187   : > { %v2714_v14 = vadd.f32 %v2713_v5, %v2625_v22  ;;  %v2539_v32 = vadd.f32 %v2538_v12, %v4946_v51  ;;  %v3278_v22 = vld [vmem:[%s4570_s9] sm:$0xff]  ;;  %v1477_v51 = vunpack.c.l.b16 %v735_v39  ;;  %v1478_v5 = vunpack.c.l.b16 %v736_v42 }
 0x188   : > { %v2805_v21 = vpop.f32.mrf.mxu0  ;;  %vm3310_vm0 = vcmp.gt.f32.partialorder %v3278_v22, 0.5  ;;  %v1574_v12 = vunpack.c.l.b16 %v802_v33  ;;  %v1797_v39 = vpack.c.b16 %v1766_v28, %v1765_v24  ;;  %v3991_v22 = vld [vmem:[%s4635_s10 + $0x3e] sm:$0xff]  ;;  %v869_v28 = vpack.c.bf16 %v3957_v26, %v3957_v26 }
 0x189   : > { %2577 = vmatmul.bf16.gmra.mxu1 %v1140_v52  ;;  %2666 = vmatmul.bf16.gmra.mxu2 %v1236_v8  ;;  %v5104_v25 = vadd.f32 %v2802_v4, %v2714_v14  ;;  %v4497_v52 = vmov 0   ;;  %v1573_v8 = vunpack.c.l.b16 %v801_v63  ;;  %v1669_v14 = vunpack.c.l.b16 %v867_v55  ;;  %v3279_v63 = vld [vmem:[%s4570_s9 + $0x8] sm:$0xff]  ;;  %v3925_v55 = vld [vmem:[%s4635_s10 + $0x3c] sm:$0xff] }
 0x18a   : > { %2755 = vmatmul.bf16.gmra.mxu3 %v1332_v60  ;;  %4449 = vset.pattern.permute.xlu0 %v4497_v52  ;;  %v3342_v60 = vsel %vm3310_vm0, 1, %v4497_v52  ;;  %v1509_v27 = vpack.c.b16 %v1478_v5, %v1477_v51  ;;  %vm3311_vm1 = vcmp.gt.f32.partialorder %v3279_v63, 0.5 }
 0x18b   : > { %2844 = vmatmul.bf16.gmra.mxu0 %v1428_v1  ;;  %4450 = vset.pattern.permute.xlu1 %v4497_v52  ;;  %v1605_v56 = vpack.c.b16 %v1574_v12, %v1573_v8  ;;  %v3343_v51 = vsel %vm3311_vm1, 1, %v4497_v52 }
 0x18c   : > { %v2627_v30 = vpop.f32.mrf.mxu2  ;;  %4451 = vset.pattern.permute.xlu2 %v4497_v52  ;;  %3375 = vperm.xlu0 %4449, %v3342_v60  }
 0x18d   : > { %v2628_v2 = vadd.f32 %v2627_v30, %v2539_v32  ;;  %v2716_v48 = vpop.f32.mrf.mxu3  ;;  %v1701_v30 = vpack.c.b16 %v1670_v46, %v1669_v14  ;;  %v804_v46 = vpack.c.bf16 %v3925_v55, %v3925_v55 }
 0x18e   : > { %v2540_v4 = vpop.f32.mrf.mxu1 }
 0x18f   : > { %v2717_v47 = vadd.f32 %v2716_v48, %v2628_v2  ;;  %v2541_v11 = vadd.f32 %v2540_v4, %v4962_v13  ;;  %v3891_v48 = vld [vmem:[%s4635_s10 + $0x11] sm:$0xff]  ;;  %v3892_v13 = vld [vmem:[%s4635_s10 + $0x19] sm:$0xff] }
 0x190   : > { %v2807_v41 = vpop.f32.mrf.mxu0  ;;  %v3924_v4 = vld [vmem:[%s4635_s10 + $0x34] sm:$0xff]  ;;  %v737_v8 = vpack.c.bf16 %v3891_v48, %v3891_v48  ;;  %v738_v12 = vpack.c.bf16 %v3892_v13, %v3892_v13  ;;  %v1671_v13 = vunpack.c.l.b16 %v869_v28  ;;  %v3927_v28 = vld [vmem:[%s4635_s10 + $0x4c] sm:$0xff] }
 0x191   : > { %v5118_v1 = vadd.f32 %v2805_v21, %v2717_v47  ;;  %v3990_v47 = vld [vmem:[%s4635_s10 + $0x36] sm:$0xff]  ;;  %v803_v14 = vpack.c.bf16 %v3924_v4, %v3924_v4 }
 0x194   : > { %v2629_v23 = vpop.f32.mrf.mxu2  ;;  %3378 = vperm.xlu0 %4449, %v3343_v51  }
 0x195   : > { %v2630_v32 = vadd.f32 %v2629_v23, %v2541_v11  ;;  %v2718_v34 = vpop.f32.mrf.mxu3  ;;  %v870_v11 = vpack.c.bf16 %v3958_v59, %v3958_v59  ;;  %v935_v23 = vpack.c.bf16 %v3990_v47, %v3990_v47 }
 0x196   : > { %v2543_v21 = vpop.f32.mrf.mxu1 }
 0x197   : > { %v2719_v42 = vadd.f32 %v2718_v34, %v2630_v32  ;;  %v2544_v9 = vadd.f32 %v2543_v21, %v4868_v61  ;;  %v936_v32 = vpack.c.bf16 %v3991_v22, %v3991_v22  ;;  %v1480_v21 = vunpack.c.l.b16 %v738_v12 }
 0x198   : > { %v2810_v2 = vpop.f32.mrf.mxu0  ;;  %v1672_v63 = vunpack.c.l.b16 %v870_v11  ;;  %v1767_v4 = vunpack.c.l.b16 %v935_v23  ;;  %v3959_v11 = vld [vmem:[%s4635_s10 + $0x45] sm:$0xff] }
 0x199   : > { %2858 = vmatmul.bf16.vlgmr.msra.gmra.mxu1 %v1509_v27  ;;  %2947 = vmatmul.bf16.vlgmr.msra.gmra.mxu2 %v1605_v56  ;;  %v5124_v33 = vadd.f32 %v2807_v41, %v2719_v42  ;;  %v3280_v27 = vld [vmem:[%s4570_s9 + $0x10] sm:$0xff]  ;;  %v1479_v56 = vunpack.c.l.b16 %v737_v8  ;;  %v1768_v55 = vunpack.c.l.b16 %v936_v32 }
 0x19a   : > { %3036 = vmatmul.bf16.vlgmr.msra.gmra.mxu3 %v1701_v30  ;;  %vm3312_vm2 = vcmp.gt.f32.partialorder %v3280_v27, 0.5  ;;  %v1575_v30 = vunpack.c.l.b16 %v803_v14  ;;  %v3281_v14 = vld [vmem:[%s4570_s9 + $0x18] sm:$0xff]  ;;  %v3960_v32 = vld [vmem:[%s4635_s10 + $0x4d] sm:$0xff] }
 0x19b   : > { %3125 = vmatmul.bf16.vlgmr.msra.gmra.mxu0 %v1797_v39  ;;  %v1576_v39 = vunpack.c.l.b16 %v804_v46  ;;  %v3344_v42 = vsel %vm3312_vm2, 1, %v4497_v52  ;;  %v1510_v22 = vpack.c.b16 %v1480_v21, %v1479_v56  ;;  %v1798_v8 = vpack.c.b16 %v1768_v55, %v1767_v4  ;;  %v3993_v27 = vld [vmem:[%s4635_s10 + $0x4e] sm:$0xff] }
 0x19c   : > { %v2632_v5 = vpop.f32.mrf.mxu2  ;;  %3381 = vperm.xlu1 %4450, %v3344_v42   ;;  %vm3313_vm3 = vcmp.gt.f32.partialorder %v3281_v14, 0.5  ;;  %v871_v55 = vpack.c.bf16 %v3959_v11, %v3959_v11 }
 0x19d   : > { %v2633_v41 = vadd.f32 %v2632_v5, %v2544_v9  ;;  %v2721_v60 = vpop.f32.mrf.mxu3  ;;  %v1606_v51 = vpack.c.b16 %v1576_v39, %v1575_v30  ;;  %v1702_v5 = vpack.c.b16 %v1672_v63, %v1671_v13  ;;  %v3345_v56 = vsel %vm3313_vm3, 1, %v4497_v52 }
 0x19e   : > { %v2545_v24 = vpop.f32.mrf.mxu1  ;;  %v806_v63 = vpack.c.bf16 %v3927_v28, %v3927_v28 }
 0x19f   : > { %v2722_v61 = vadd.f32 %v2721_v60, %v2633_v41  ;;  %v2546_v26 = vadd.f32 %v2545_v24, %v4882_v19  ;;  %v3893_v60 = vld [vmem:[%s4635_s10 + $0x21] sm:$0xff]  ;;  %v3894_v19 = vld [vmem:[%s4635_s10 + $0x29] sm:$0xff] }
 0x1a0   : > { %v2812_v34 = vpop.f32.mrf.mxu0  ;;  %v3926_v24 = vld [vmem:[%s4635_s10 + $0x44] sm:$0xff]  ;;  %v739_v30 = vpack.c.bf16 %v3893_v60, %v3893_v60 }
 0x1a1   : > { %v5136_v48 = vadd.f32 %v2810_v2, %v2722_v61  ;;  %v3992_v61 = vld [vmem:[%s4635_s10 + $0x46] sm:$0xff]  ;;  %v805_v13 = vpack.c.bf16 %v3926_v24, %v3926_v24 }
 0x1a4   : > { %v2634_v9 = vpop.f32.mrf.mxu2  ;;  %3384 = vperm.xlu1 %4450, %v3345_v56  }
 0x1a5   : > { %v2635_v59 = vadd.f32 %v2634_v9, %v2546_v26  ;;  %v2723_v47 = vpop.f32.mrf.mxu3  ;;  %v872_v26 = vpack.c.bf16 %v3960_v32, %v3960_v32  ;;  %v937_v9 = vpack.c.bf16 %v3992_v61, %v3992_v61 }
 0x1a6   : > { %v2548_v2 = vpop.f32.mrf.mxu1 }
 0x1a7   : > { %v2724_v12 = vadd.f32 %v2723_v47, %v2635_v59  ;;  %v2549_v23 = vadd.f32 %v2548_v2, %v4898_v35  ;;  %v938_v59 = vpack.c.bf16 %v3993_v27, %v3993_v27  ;;  %v1577_v2 = vunpack.c.l.b16 %v805_v13  ;;  %v3929_v13 = vld [vmem:[%s4635_s10 + $0x5c] sm:$0xff] }
 0x1a8   : > { %v2815_v41 = vpop.f32.mrf.mxu0  ;;  %v1674_v60 = vunpack.c.l.b16 %v872_v26  ;;  %v1769_v14 = vunpack.c.l.b16 %v937_v9  ;;  %v3994_v26 = vld [vmem:[%s4635_s10 + $0x56] sm:$0xff]  ;;  %v3995_v9 = vld [vmem:[%s4635_s10 + $0x5e] sm:$0xff] }
 0x1a9   : > { %2863 = vmatmul.bf16.gmra.mxu1 %v1510_v22  ;;  %2952 = vmatmul.bf16.gmra.mxu2 %v1606_v51  ;;  %v5142_v46 = vadd.f32 %v2812_v34, %v2724_v12  ;;  %v740_v34 = vpack.c.bf16 %v3894_v19, %v3894_v19  ;;  %v1481_v22 = vunpack.c.l.b16 %v739_v30  ;;  %v1673_v12 = vunpack.c.l.b16 %v871_v55  ;;  %v3962_v55 = vld [vmem:[%s4635_s10 + $0x5d] sm:$0xff] }
 0x1aa   : > { %3041 = vmatmul.bf16.gmra.mxu3 %v1702_v5  ;;  %v1578_v5 = vunpack.c.l.b16 %v806_v63  ;;  %v1770_v19 = vunpack.c.l.b16 %v938_v59  ;;  %v3961_v63 = vld [vmem:[%s4635_s10 + $0x55] sm:$0xff] }
 0x1ab   : > { %3130 = vmatmul.bf16.gmra.mxu0 %v1798_v8  ;;  %v1482_v51 = vunpack.c.l.b16 %v740_v34  ;;  %v3928_v34 = vld [vmem:[%s4635_s10 + $0x54] sm:$0xff] }
 0x1ac   : > { %v2637_v21 = vpop.f32.mrf.mxu2  ;;  %v1607_v61 = vpack.c.b16 %v1578_v5, %v1577_v2  ;;  %v1799_v56 = vpack.c.b16 %v1770_v19, %v1769_v14  ;;  %v807_v5 = vpack.c.bf16 %v3928_v34, %v3928_v34  ;;  %v874_v14 = vpack.c.bf16 %v3962_v55, %v3962_v55 }
 0x1ad   : > { %v2638_v39 = vadd.f32 %v2637_v21, %v2549_v23  ;;  %v2726_v42 = vpop.f32.mrf.mxu3  ;;  %v1511_v32 = vpack.c.b16 %v1482_v51, %v1481_v22  ;;  %v939_v19 = vpack.c.bf16 %v3994_v26, %v3994_v26 }
 0x1ae   : > { %v2550_v4 = vpop.f32.mrf.mxu1 }
 0x1af   : > { %v2727_v47 = vadd.f32 %v2726_v42, %v2638_v39  ;;  %v2551_v24 = vadd.f32 %v2550_v4, %v4906_v57  ;;  %v3895_v39 = vld [vmem:[%s4635_s10 + $0x31] sm:$0xff]  ;;  %v3896_v57 = vld [vmem:[%s4635_s10 + $0x39] sm:$0xff] }
 0x1b0   : > { %v2817_v35 = vpop.f32.mrf.mxu0  ;;  %v742_v22 = vpack.c.bf16 %v3896_v57, %v3896_v57  ;;  %v1771_v57 = vunpack.c.l.b16 %v939_v19  ;;  %v3963_v19 = vld [vmem:[%s4635_s10 + $0x65] sm:$0xff] }
 0x1b1   : > { %v5152_v8 = vadd.f32 %v2815_v41, %v2727_v47  ;;  %v1703_v41 = vpack.c.b16 %v1674_v60, %v1673_v12  ;;  %v741_v47 = vpack.c.bf16 %v3895_v39, %v3895_v39  ;;  %v808_v12 = vpack.c.bf16 %v3929_v13, %v3929_v13 }
 0x1b2   : > { %v873_v60 = vpack.c.bf16 %v3961_v63, %v3961_v63  ;;  %v1676_v39 = vunpack.c.l.b16 %v874_v14  ;;  %v3931_v14 = vld [vmem:[%s4635_s10 + $0x6c] sm:$0xff] }
 0x1b4   : > { %v2639_v28 = vpop.f32.mrf.mxu2 }
 0x1b5   : > { %v2640_v11 = vadd.f32 %v2639_v28, %v2551_v24  ;;  %v2728_v23 = vpop.f32.mrf.mxu3  ;;  %v940_v24 = vpack.c.bf16 %v3995_v9, %v3995_v9 }
 0x1b6   : > { %v2553_v27 = vpop.f32.mrf.mxu1 }
 0x1b7   : > { %v2729_v21 = vadd.f32 %v2728_v23, %v2640_v11  ;;  %v2554_v4 = vadd.f32 %v2553_v27, %v4928_v15  ;;  %v3284_v23 = vld [vmem:[%s4570_s9 + $0x30] sm:$0xff]  ;;  %v1483_v15 = vunpack.c.l.b16 %v741_v47  ;;  %v1580_v27 = vunpack.c.l.b16 %v808_v12  ;;  %v3285_v12 = vld [vmem:[%s4570_s9 + $0x38] sm:$0xff] }
 0x1b8   : > { %v2820_v30 = vpop.f32.mrf.mxu0  ;;  %vm3316_vm4 = vcmp.gt.f32.partialorder %v3284_v23, 0.5  ;;  %v1772_v34 = vunpack.c.l.b16 %v940_v24  ;;  %vm3317_vm6 = vcmp.gt.f32.partialorder %v3285_v12, 0.5  ;;  %v3996_v23 = vld [vmem:[%s4635_s10 + $0x66] sm:$0xff] }
 0x1b9   : > { %2868 = vmatmul.bf16.gmra.mxu1 %v1511_v32  ;;  %2957 = vmatmul.bf16.gmra.mxu2 %v1607_v61  ;;  %v5157_v42 = vadd.f32 %v2817_v35, %v2729_v21  ;;  %v1484_v32 = vunpack.c.l.b16 %v742_v22  ;;  %v1579_v61 = vunpack.c.l.b16 %v807_v5  ;;  %v1675_v21 = vunpack.c.l.b16 %v873_v60  ;;  %v3282_v5 = vld [vmem:[%s4570_s9 + $0x20] sm:$0xff] }
 0x1ba   : > { %3046 = vmatmul.bf16.gmra.mxu3 %v1703_v41  ;;  %v3348_v41 = vsel %vm3316_vm4, 1, %v4497_v52  ;;  %v1800_v47 = vpack.c.b16 %v1772_v34, %v1771_v57  ;;  %v3930_v60 = vld [vmem:[%s4635_s10 + $0x64] sm:$0xff]  ;;  %vm3314_vm5 = vcmp.gt.f32.partialorder %v3282_v5, 0.5  ;;  %v810_v34 = vpack.c.bf16 %v3931_v14, %v3931_v14 }
 0x1bb   : > { %3135 = vmatmul.bf16.gmra.mxu0 %v1799_v56  ;;  %3393 = vperm.xlu0 %4449, %v3348_v41   ;;  %v1512_v26 = vpack.c.b16 %v1484_v32, %v1483_v15  ;;  %v1608_v9 = vpack.c.b16 %v1580_v27, %v1579_v61  ;;  %v3997_v15 = vld [vmem:[%s4635_s10 + $0x6e] sm:$0xff]  ;;  %v3346_v32 = vsel %vm3314_vm5, 1, %v4497_v52  ;;  %v3349_v61 = vsel %vm3317_vm6, 1, %v4497_v52 }
 0x1bc   : > { %v2642_v59 = vpop.f32.mrf.mxu2  ;;  %3387 = vperm.xlu2 %4451, %v3346_v32   ;;  %3396 = vperm.xlu1 %4450, %v3349_v61   ;;  %v809_v57 = vpack.c.bf16 %v3930_v60, %v3930_v60 }
 0x1bd   : > { %v2643_v51 = vadd.f32 %v2642_v59, %v2554_v4  ;;  %v2731_v2 = vpop.f32.mrf.mxu3  ;;  %v1704_v59 = vpack.c.b16 %v1676_v39, %v1675_v21 }
 0x1be   : > { %v2555_v35 = vpop.f32.mrf.mxu1 }
 0x1bf   : > { %v2732_v28 = vadd.f32 %v2731_v2, %v2643_v51  ;;  %v2556_v13 = vadd.f32 %v2555_v35, %v4942_v44  ;;  %v3897_v2 = vld [vmem:[%s4635_s10 + $0x41] sm:$0xff]  ;;  %v3898_v44 = vld [vmem:[%s4635_s10 + $0x49] sm:$0xff] }
 0x1c0   : > { %v2822_v11 = vpop.f32.mrf.mxu0  ;;  %v744_v41 = vpack.c.bf16 %v3898_v44, %v3898_v44 }
 0x1c1   : > { %v5168_v56 = vadd.f32 %v2820_v30, %v2732_v28  ;;  %v3964_v28 = vld [vmem:[%s4635_s10 + $0x6d] sm:$0xff] }
 0x1c4   : > { %v2644_v63 = vpop.f32.mrf.mxu2 }
 0x1c5   : > { %v2645_v4 = vadd.f32 %v2644_v63, %v2556_v13  ;;  %v2733_v55 = vpop.f32.mrf.mxu3  ;;  %v875_v63 = vpack.c.bf16 %v3963_v19, %v3963_v19 }
 0x1c6   : > { %v2558_v30 = vpop.f32.mrf.mxu1 }
 0x1c7   : > { %v2734_v22 = vadd.f32 %v2733_v55, %v2645_v4  ;;  %v2559_v24 = vadd.f32 %v2558_v30, %v4958_v6  ;;  %v876_v6 = vpack.c.bf16 %v3964_v28, %v3964_v28  ;;  %v941_v4 = vpack.c.bf16 %v3996_v23, %v3996_v23  ;;  %v3283_v30 = vld [vmem:[%s4570_s9 + $0x28] sm:$0xff] }
 0x1c8   : > { %v2825_v51 = vpop.f32.mrf.mxu0  ;;  %v942_v55 = vpack.c.bf16 %v3997_v15, %v3997_v15  ;;  %vm3315_vm7 = vcmp.gt.f32.partialorder %v3283_v30, 0.5  ;;  %v1677_v12 = vunpack.c.l.b16 %v875_v63  ;;  %v3933_v63 = vld [vmem:[%s4635_s10 + $0x7c] sm:$0xff] }
 0x1c9   : > { %2873 = vmatmul.bf16.gmra.mxu1 %v1512_v26  ;;  %2962 = vmatmul.bf16.gmra.mxu2 %v1608_v9  ;;  %v5175_v35 = vadd.f32 %v2822_v11, %v2734_v22  ;;  %v743_v11 = vpack.c.bf16 %v3897_v2, %v3897_v2  ;;  %v1581_v22 = vunpack.c.l.b16 %v809_v57  ;;  %v1582_v2 = vunpack.c.l.b16 %v810_v34  ;;  %v3287_v57 = vld [vmem:[%s4570_s9 + $0x48] sm:$0xff]  ;;  %v3999_v30 = vld [vmem:[%s4635_s10 + $0x7e] sm:$0xff] }
 0x1ca   : > { %3051 = vmatmul.bf16.gmra.mxu3 %v1704_v59  ;;  %v3347_v44 = vsel %vm3315_vm7, 1, %v4497_v52  ;;  %v1678_v60 = vunpack.c.l.b16 %v876_v6  ;;  %v1773_v14 = vunpack.c.l.b16 %v941_v4  ;;  %v1774_v19 = vunpack.c.l.b16 %v942_v55  ;;  %v3965_v6 = vld [vmem:[%s4635_s10 + $0x75] sm:$0xff]  ;;  %v3966_v55 = vld [vmem:[%s4635_s10 + $0x7d] sm:$0xff] }
 0x1cb   : > { %3140 = vmatmul.bf16.gmra.mxu0 %v1800_v47  ;;  %v1485_v59 = vunpack.c.l.b16 %v743_v11  ;;  %v1486_v47 = vunpack.c.l.b16 %v744_v41  ;;  %3390 = vperm.xlu2 %4451, %v3347_v44   ;;  %v1609_v61 = vpack.c.b16 %v1582_v2, %v1581_v22  ;;  %vm3319_vm8 = vcmp.gt.f32.partialorder %v3287_v57, 0.5 }
 0x1cc   : > { %v2647_v27 = vpop.f32.mrf.mxu2  ;;  %v1801_v11 = vpack.c.b16 %v1774_v19, %v1773_v14  ;;  %v877_v19 = vpack.c.bf16 %v3965_v6, %v3965_v6 }
 0x1cd   : > { %v2648_v21 = vadd.f32 %v2647_v27, %v2559_v24  ;;  %v2736_v39 = vpop.f32.mrf.mxu3  ;;  %v1513_v32 = vpack.c.b16 %v1486_v47, %v1485_v59  ;;  %v1705_v27 = vpack.c.b16 %v1678_v60, %v1677_v12  ;;  %v3351_v59 = vsel %vm3319_vm8, 1, %v4497_v52 }
 0x1ce   : > { %v2560_v13 = vpop.f32.mrf.mxu1  ;;  %3402 = vperm.xlu0 %4449, %v3351_v59   ;;  %v812_v60 = vpack.c.bf16 %v3933_v63, %v3933_v63 }
 0x1cf   : > { %v2737_v26 = vadd.f32 %v2736_v39, %v2648_v21  ;;  %v2561_v24 = vadd.f32 %v2560_v13, %v4966_v37  ;;  %v3899_v37 = vld [vmem:[%s4635_s10 + $0x51] sm:$0xff]  ;;  %v3900_v39 = vld [vmem:[%s4635_s10 + $0x59] sm:$0xff] }
 0x1d0   : > { %v2827_v9 = vpop.f32.mrf.mxu0  ;;  %v3932_v13 = vld [vmem:[%s4635_s10 + $0x74] sm:$0xff]  ;;  %v745_v22 = vpack.c.bf16 %v3899_v37, %v3899_v37  ;;  %v746_v2 = vpack.c.bf16 %v3900_v39, %v3900_v39  ;;  %v1679_v39 = vunpack.c.l.b16 %v877_v19  ;;  %v3935_v19 = vld [vmem:[%s4635_s10 + $0x8c] sm:$0xff] }
 0x1d1   : > { %v5188_v5 = vadd.f32 %v2825_v51, %v2737_v26  ;;  %v3998_v26 = vld [vmem:[%s4635_s10 + $0x76] sm:$0xff]  ;;  %v811_v12 = vpack.c.bf16 %v3932_v13, %v3932_v13 }
 0x1d4   : > { %v2649_v28 = vpop.f32.mrf.mxu2 }
 0x1d5   : > { %v2650_v23 = vadd.f32 %v2649_v28, %v2561_v24  ;;  %v2738_v15 = vpop.f32.mrf.mxu3  ;;  %v878_v24 = vpack.c.bf16 %v3966_v55, %v3966_v55  ;;  %v943_v28 = vpack.c.bf16 %v3998_v26, %v3998_v26 }
 0x1d6   : > { %v2563_v51 = vpop.f32.mrf.mxu1 }
 0x1d7   : > { %v2739_v41 = vadd.f32 %v2738_v15, %v2650_v23  ;;  %v2564_v4 = vadd.f32 %v2563_v51, %v4870_v62  ;;  %v944_v23 = vpack.c.bf16 %v3999_v30, %v3999_v30  ;;  %v1488_v51 = vunpack.c.l.b16 %v746_v2 }
 0x1d8   : > { %v2830_v21 = vpop.f32.mrf.mxu0  ;;  %v1680_v57 = vunpack.c.l.b16 %v878_v24  ;;  %v1775_v13 = vunpack.c.l.b16 %v943_v28  ;;  %v3967_v24 = vld [vmem:[%s4635_s10 + $0x85] sm:$0xff] }
 0x1d9   : > { %2878 = vmatmul.bf16.gmra.mxu1 %v1513_v32  ;;  %2967 = vmatmul.bf16.gmra.mxu2 %v1609_v61  ;;  %v5194_v34 = vadd.f32 %v2827_v9, %v2739_v41  ;;  %v3288_v32 = vld [vmem:[%s4570_s9 + $0x50] sm:$0xff]  ;;  %v1487_v61 = vunpack.c.l.b16 %v745_v22  ;;  %v1776_v63 = vunpack.c.l.b16 %v944_v23 }
 0x1da   : > { %3056 = vmatmul.bf16.gmra.mxu3 %v1705_v27  ;;  %vm3320_vm9 = vcmp.gt.f32.partialorder %v3288_v32, 0.5  ;;  %v1583_v27 = vunpack.c.l.b16 %v811_v12  ;;  %v3286_v12 = vld [vmem:[%s4570_s9 + $0x40] sm:$0xff]  ;;  %v3968_v23 = vld [vmem:[%s4635_s10 + $0x8d] sm:$0xff] }
 0x1db   : > { %3145 = vmatmul.bf16.gmra.mxu0 %v1801_v11  ;;  %v1584_v11 = vunpack.c.l.b16 %v812_v60  ;;  %v3352_v41 = vsel %vm3320_vm9, 1, %v4497_v52  ;;  %v1514_v30 = vpack.c.b16 %v1488_v51, %v1487_v61  ;;  %v1802_v22 = vpack.c.b16 %v1776_v63, %v1775_v13  ;;  %v4001_v32 = vld [vmem:[%s4635_s10 + $0x8e] sm:$0xff] }
 0x1dc   : > { %v2652_v47 = vpop.f32.mrf.mxu2  ;;  %3405 = vperm.xlu1 %4450, %v3352_v41   ;;  %vm3318_vm10 = vcmp.gt.f32.partialorder %v3286_v12, 0.5  ;;  %v879_v63 = vpack.c.bf16 %v3967_v24, %v3967_v24 }
 0x1dd   : > { %v2653_v9 = vadd.f32 %v2652_v47, %v2564_v4  ;;  %v2741_v44 = vpop.f32.mrf.mxu3  ;;  %v1610_v59 = vpack.c.b16 %v1584_v11, %v1583_v27  ;;  %v1706_v47 = vpack.c.b16 %v1680_v57, %v1679_v39  ;;  %v3350_v61 = vsel %vm3318_vm10, 1, %v4497_v52 }
 0x1de   : > { %v2565_v14 = vpop.f32.mrf.mxu1  ;;  %3399 = vperm.xlu2 %4451, %v3350_v61   ;;  %v814_v57 = vpack.c.bf16 %v3935_v19, %v3935_v19 }
 0x1df   : > { %v2742_v62 = vadd.f32 %v2741_v44, %v2653_v9  ;;  %v2566_v6 = vadd.f32 %v2565_v14, %v4884_v20  ;;  %v3901_v44 = vld [vmem:[%s4635_s10 + $0x61] sm:$0xff]  ;;  %v3902_v20 = vld [vmem:[%s4635_s10 + $0x69] sm:$0xff] }
 0x1e0   : > { %v2832_v15 = vpop.f32.mrf.mxu0  ;;  %v3934_v14 = vld [vmem:[%s4635_s10 + $0x84] sm:$0xff]  ;;  %v747_v27 = vpack.c.bf16 %v3901_v44, %v3901_v44  ;;  %v748_v11 = vpack.c.bf16 %v3902_v20, %v3902_v20  ;;  %v1681_v20 = vunpack.c.l.b16 %v879_v63  ;;  %v3937_v63 = vld [vmem:[%s4635_s10 + $0x9c] sm:$0xff] }
 0x1e1   : > { %v5206_v37 = vadd.f32 %v2830_v21, %v2742_v62  ;;  %v4000_v62 = vld [vmem:[%s4635_s10 + $0x86] sm:$0xff]  ;;  %v813_v39 = vpack.c.bf16 %v3934_v14, %v3934_v14 }
 0x1e4   : > { %v2654_v4 = vpop.f32.mrf.mxu2 }
 0x1e5   : > { %v2655_v55 = vadd.f32 %v2654_v4, %v2566_v6  ;;  %v2743_v26 = vpop.f32.mrf.mxu3  ;;  %v880_v6 = vpack.c.bf16 %v3968_v23, %v3968_v23  ;;  %v945_v4 = vpack.c.bf16 %v4000_v62, %v4000_v62 }
 0x1e6   : > { %v2568_v21 = vpop.f32.mrf.mxu1 }
 0x1e7   : > { %v2744_v2 = vadd.f32 %v2743_v26, %v2655_v55  ;;  %v2569_v28 = vadd.f32 %v2568_v21, %v4900_v36  ;;  %v946_v55 = vpack.c.bf16 %v4001_v32, %v4001_v32  ;;  %v1490_v21 = vunpack.c.l.b16 %v748_v11 }
 0x1e8   : > { %v2835_v9 = vpop.f32.mrf.mxu0  ;;  %v1682_v12 = vunpack.c.l.b16 %v880_v6  ;;  %v1777_v14 = vunpack.c.l.b16 %v945_v4  ;;  %v3969_v6 = vld [vmem:[%s4635_s10 + $0x95] sm:$0xff] }
 0x1e9   : > { %2883 = vmatmul.bf16.gmra.mxu1 %v1514_v30  ;;  %2972 = vmatmul.bf16.gmra.mxu2 %v1610_v59  ;;  %v5212_v60 = vadd.f32 %v2832_v15, %v2744_v2  ;;  %v3290_v30 = vld [vmem:[%s4570_s9 + $0x60] sm:$0xff]  ;;  %v1489_v59 = vunpack.c.l.b16 %v747_v27  ;;  %v1778_v19 = vunpack.c.l.b16 %v946_v55 }
 0x1ea   : > { %3061 = vmatmul.bf16.gmra.mxu3 %v1706_v47  ;;  %vm3322_vm11 = vcmp.gt.f32.partialorder %v3290_v30, 0.5  ;;  %v1585_v47 = vunpack.c.l.b16 %v813_v39  ;;  %v3291_v39 = vld [vmem:[%s4570_s9 + $0x68] sm:$0xff]  ;;  %v3970_v55 = vld [vmem:[%s4635_s10 + $0x9d] sm:$0xff] }
 0x1eb   : > { %3150 = vmatmul.bf16.gmra.mxu0 %v1802_v22  ;;  %v1586_v22 = vunpack.c.l.b16 %v814_v57  ;;  %v3354_v2 = vsel %vm3322_vm11, 1, %v4497_v52  ;;  %v1515_v32 = vpack.c.b16 %v1490_v21, %v1489_v59  ;;  %v1803_v27 = vpack.c.b16 %v1778_v19, %v1777_v14  ;;  %v4003_v30 = vld [vmem:[%s4635_s10 + $0x9e] sm:$0xff] }
 0x1ec   : > { %v2657_v51 = vpop.f32.mrf.mxu2  ;;  %3411 = vperm.xlu0 %4449, %v3354_v2   ;;  %vm3323_vm12 = vcmp.gt.f32.partialorder %v3291_v39, 0.5  ;;  %v881_v14 = vpack.c.bf16 %v3969_v6, %v3969_v6 }
 0x1ed   : > { %v2658_v15 = vadd.f32 %v2657_v51, %v2569_v28  ;;  %v2746_v41 = vpop.f32.mrf.mxu3  ;;  %v1611_v61 = vpack.c.b16 %v1586_v22, %v1585_v47  ;;  %v1707_v51 = vpack.c.b16 %v1682_v12, %v1681_v20  ;;  %v3355_v59 = vsel %vm3323_vm12, 1, %v4497_v52 }
 0x1ee   : > { %v2570_v13 = vpop.f32.mrf.mxu1  ;;  %3414 = vperm.xlu1 %4450, %v3355_v59   ;;  %v816_v12 = vpack.c.bf16 %v3937_v63, %v3937_v63 }
 0x1ef   : > { %v2747_v36 = vadd.f32 %v2746_v41, %v2658_v15  ;;  %v2571_v24 = vadd.f32 %v2570_v13, %v4908_v58  ;;  %v3903_v41 = vld [vmem:[%s4635_s10 + $0x71] sm:$0xff]  ;;  %v3904_v58 = vld [vmem:[%s4635_s10 + $0x79] sm:$0xff] }
 0x1f0   : > { %v2837_v26 = vpop.f32.mrf.mxu0  ;;  %v3936_v13 = vld [vmem:[%s4635_s10 + $0x94] sm:$0xff]  ;;  %v749_v47 = vpack.c.bf16 %v3903_v41, %v3903_v41  ;;  %v750_v22 = vpack.c.bf16 %v3904_v58, %v3904_v58 }
 0x1f1   : > { %v5224_v44 = vadd.f32 %v2835_v9, %v2747_v36  ;;  %v4002_v36 = vld [vmem:[%s4635_s10 + $0x96] sm:$0xff]  ;;  %v815_v20 = vpack.c.bf16 %v3936_v13, %v3936_v13 }
 0x1f4   : > { %v2659_v28 = vpop.f32.mrf.mxu2 }
 0x1f5   : > { %v2660_v23 = vadd.f32 %v2659_v28, %v2571_v24  ;;  %v2748_v62 = vpop.f32.mrf.mxu3  ;;  %v882_v24 = vpack.c.bf16 %v3970_v55, %v3970_v55  ;;  %v947_v28 = vpack.c.bf16 %v4002_v36, %v4002_v36 }
 0x1f6   : > { %v2573_v9 = vpop.f32.mrf.mxu1 }
 0x1f7   : > { %v2749_v11 = vadd.f32 %v2748_v62, %v2660_v23  ;;  %v2574_v4 = vadd.f32 %v2573_v9, %v4930_v16  ;;  %v948_v23 = vpack.c.bf16 %v4003_v30, %v4003_v30  ;;  %v1587_v9 = vunpack.c.l.b16 %v815_v20  ;;  %v3293_v20 = vld [vmem:[%s4570_s9 + $0x78] sm:$0xff] }
 0x1f8   : > { %v2840_v15 = vpop.f32.mrf.mxu0  ;;  %v1684_v58 = vunpack.c.l.b16 %v882_v24  ;;  %v1779_v39 = vunpack.c.l.b16 %v947_v28  ;;  %v3971_v24 = vld [vmem:[%s4635_s10 + $0xa5] sm:$0xff]  ;;  %vm3325_vm14 = vcmp.gt.f32.partialorder %v3293_v20, 0.5 }
 0x1f9   : > { %2888 = vmatmul.bf16.gmra.mxu1 %v1515_v32  ;;  %2977 = vmatmul.bf16.gmra.mxu2 %v1611_v61  ;;  %v5230_v57 = vadd.f32 %v2837_v26, %v2749_v11  ;;  %v1491_v32 = vunpack.c.l.b16 %v749_v47  ;;  %v1492_v61 = vunpack.c.l.b16 %v750_v22  ;;  %v3289_v11 = vld [vmem:[%s4570_s9 + $0x58] sm:$0xff] }
 0x1fa   : > { %3066 = vmatmul.bf16.gmra.mxu3 %v1707_v51  ;;  %v1588_v51 = vunpack.c.l.b16 %v816_v12  ;;  %vm3321_vm13 = vcmp.gt.f32.partialorder %v3289_v11, 0.5 }
 0x1fb   : > { %3155 = vmatmul.bf16.gmra.mxu0 %v1803_v27  ;;  %v1683_v27 = vunpack.c.l.b16 %v881_v14  ;;  %v3353_v63 = vsel %vm3321_vm13, 1, %v4497_v52  ;;  %v1516_v30 = vpack.c.b16 %v1492_v61, %v1491_v32  ;;  %v3938_v14 = vld [vmem:[%s4635_s10 + $0xa4] sm:$0xff]  ;;  %v4005_v32 = vld [vmem:[%s4635_s10 + $0xae] sm:$0xff]  ;;  %v3357_v61 = vsel %vm3325_vm14, 1, %v4497_v52 }
 0x1fc   : > { %v2662_v21 = vpop.f32.mrf.mxu2  ;;  %3408 = vperm.xlu2 %4451, %v3353_v63   ;;  %3420 = vperm.xlu0 %4449, %v3357_v61  }
 0x1fd   : > { %v2663_v2 = vadd.f32 %v2662_v21, %v2574_v4  ;;  %v2751_v26 = vpop.f32.mrf.mxu3  ;;  %v1780_v4 = vunpack.c.l.b16 %v948_v23  ;;  %v1708_v21 = vpack.c.b16 %v1684_v58, %v1683_v27  ;;  %v3972_v23 = vld [vmem:[%s4635_s10 + $0xad] sm:$0xff]  ;;  %v817_v58 = vpack.c.bf16 %v3938_v14, %v3938_v14 }
 0x1fe   : > { %v2575_v19 = vpop.f32.mrf.mxu1  ;;  %v884_v63 = vpack.c.bf16 %v3972_v23, %v3972_v23 }
 0x1ff   : > { %v2752_v16 = vadd.f32 %v2751_v26, %v2663_v2  ;;  %v2576_v13 = vadd.f32 %v2575_v19, %v4944_v45  ;;  %v1804_v47 = vpack.c.b16 %v1780_v4, %v1779_v39  ;;  %v3905_v2 = vld [vmem:[%s4635_s10 + $0x81] sm:$0xff]  ;;  %v3906_v26 = vld [vmem:[%s4635_s10 + $0x89] sm:$0xff]  ;;  %v883_v4 = vpack.c.bf16 %v3971_v24, %v3971_v24 }
 0x200   : > { %v2842_v62 = vpop.f32.mrf.mxu0  ;;  %v3939_v19 = vld [vmem:[%s4635_s10 + $0xac] sm:$0xff]  ;;  %v752_v27 = vpack.c.bf16 %v3906_v26, %v3906_v26  ;;  %v1686_v26 = vunpack.c.l.b16 %v884_v63 }
 0x201   : > { %v5241_v41 = vadd.f32 %v2840_v15, %v2752_v16  ;;  %v1612_v15 = vpack.c.b16 %v1588_v51, %v1587_v9  ;;  %v4004_v16 = vld [vmem:[%s4635_s10 + $0xa6] sm:$0xff]  ;;  %v751_v51 = vpack.c.bf16 %v3905_v2, %v3905_v2  ;;  %v818_v39 = vpack.c.bf16 %v3939_v19, %v3939_v19 }
 0x204   : > { %v2664_v6 = vpop.f32.mrf.mxu2 }
 0x205   : > { %v2665_v55 = vadd.f32 %v2664_v6, %v2576_v13  ;;  %v2753_v36 = vpop.f32.mrf.mxu3  ;;  %v949_v6 = vpack.c.bf16 %v4004_v16, %v4004_v16 }
 0x206   : > { %v2578_v59 = vpop.f32.mrf.mxu1 }
 0x207   : > { %v2754_v22 = vadd.f32 %v2753_v36, %v2665_v55  ;;  %v2579_v28 = vadd.f32 %v2578_v59, %v4960_v7  ;;  %v950_v55 = vpack.c.bf16 %v4005_v32, %v4005_v32  ;;  %v1589_v59 = vunpack.c.l.b16 %v817_v58  ;;  %v3940_v58 = vld [vmem:[%s4635_s10 + $0xb4] sm:$0xff] }
 0x208   : > { %v2845_v45 = vpop.f32.mrf.mxu0  ;;  %v1781_v20 = vunpack.c.l.b16 %v949_v6  ;;  %v3941_v6 = vld [vmem:[%s4635_s10 + $0xbc] sm:$0xff] }
 0x209   : > { %2893 = vmatmul.bf16.gmra.mxu1 %v1516_v30  ;;  %2982 = vmatmul.bf16.gmra.mxu2 %v1612_v15  ;;  %v5248_v12 = vadd.f32 %v2842_v62, %v2754_v22  ;;  %v1493_v30 = vunpack.c.l.b16 %v751_v51  ;;  %v1494_v15 = vunpack.c.l.b16 %v752_v27  ;;  %v3294_v22 = vld [vmem:[%s4570_s9 + $0x80] sm:$0xff]  ;;  %v1782_v14 = vunpack.c.l.b16 %v950_v55  ;;  %v3973_v55 = vld [vmem:[%s4635_s10 + $0xb5] sm:$0xff] }
 0x20a   : > { %3071 = vmatmul.bf16.gmra.mxu3 %v1708_v21  ;;  %v1590_v21 = vunpack.c.l.b16 %v818_v39  ;;  %vm3326_vm15 = vcmp.gt.f32.partialorder %v3294_v22, 0.5  ;;  %v3292_v39 = vld [vmem:[%s4570_s9 + $0x70] sm:$0xff] }
 0x20b   : > { %3160 = vmatmul.bf16.gmra.mxu0 %v1804_v47  ;;  %v1685_v47 = vunpack.c.l.b16 %v883_v4  ;;  %v3358_v24 = vsel %vm3326_vm15, 1, %v4497_v52  ;;  %v1805_v51 = vpack.c.b16 %v1782_v14, %v1781_v20  ;;  %v3297_v4 = vld [vmem:[%s4570_s9 + $0x98] sm:$0xff]  ;;  %vm3324_vm0 = vcmp.gt.f32.partialorder %v3292_v39, 0.5 }
 0x20c   : > { %v2667_v9 = vpop.f32.mrf.mxu2  ;;  %3423 = vperm.xlu1 %4450, %v3358_v24   ;;  %v1613_v32 = vpack.c.b16 %v1590_v21, %v1589_v59  ;;  %vm3329_vm1 = vcmp.gt.f32.partialorder %v3297_v4, 0.5  ;;  %v4007_v59 = vld [vmem:[%s4635_s10 + $0xbe] sm:$0xff]  ;;  %v3356_v21 = vsel %vm3324_vm0, 1, %v4497_v52 }
 0x20d   : > { %v2668_v11 = vadd.f32 %v2667_v9, %v2579_v28  ;;  %v2756_v62 = vpop.f32.mrf.mxu3  ;;  %v1709_v9 = vpack.c.b16 %v1686_v26, %v1685_v47  ;;  %v3361_v47 = vsel %vm3329_vm1, 1, %v4497_v52  ;;  %v3376_v26 = vpop.permute.xlu0 %3375  ;;  %3417 = vperm.xlu2 %4451, %v3356_v21   ;;  %v5288_v4 = vld [vmem:[%s5521_s3] ss:$0 sm:$0xff] }
 0x20e   : > { %v2580_v13 = vpop.f32.mrf.mxu1  ;;  %vm3470_vm5 = vcmp.eq.s32.totalorder %v3376_v26, 1 }
 0x20f   : > { %v2757_v7 = vadd.f32 %v2756_v62, %v2668_v11  ;;  %v2581_v19 = vadd.f32 %v2580_v13, %v4968_v38  ;;  %v3907_v38 = vld [vmem:[%s4635_s10 + $0x91] sm:$0xff]  ;;  %v3908_v62 = vld [vmem:[%s4635_s10 + $0x99] sm:$0xff] }
 0x210   : > { %v2847_v36 = vpop.f32.mrf.mxu0  ;;  %v3296_v13 = vld [vmem:[%s4570_s9 + $0x90] sm:$0xff]  ;;  %v753_v20 = vpack.c.bf16 %v3907_v38, %v3907_v38  ;;  %v754_v14 = vpack.c.bf16 %v3908_v62, %v3908_v62 }
 0x211   : > { %v5259_v2 = vadd.f32 %v2845_v45, %v2757_v7  ;;  %v1517_v45 = vpack.c.b16 %v1494_v15, %v1493_v30  ;;  %v3974_v7 = vld [vmem:[%s4635_s10 + $0xbd] sm:$0xff]  ;;  %vm3328_vm2 = vcmp.gt.f32.partialorder %v3296_v13, 0.5 }
 0x212   : > { %v4006_v15 = vld [vmem:[%s4635_s10 + $0xb6] sm:$0xff]  ;;  %v3360_v22 = vsel %vm3328_vm2, 1, %v4497_v52  ;;  %v1495_v38 = vunpack.c.l.b16 %v753_v20  ;;  %v1496_v62 = vunpack.c.l.b16 %v754_v14 }
 0x213   : > { %3429 = vperm.xlu0 %4449, %v3360_v22  }
 0x214   : > { %v2669_v28 = vpop.f32.mrf.mxu2  ;;  %3432 = vperm.xlu1 %4450, %v3361_v47  }
 0x215   : > { %v2670_v23 = vadd.f32 %v2669_v28, %v2581_v19  ;;  %v2758_v16 = vpop.f32.mrf.mxu3  ;;  %v819_v19 = vpack.c.bf16 %v3940_v58, %v3940_v58 }
 0x216   : > { %v2859_v61 = vpop.f32.mrf.mxu1 }
 0x217   : > { %v2759_v27 = vadd.f32 %v2758_v16, %v2670_v23  ;;  %v2860_v30 = vadd.f32 %v2859_v61, %v4992_v49  ;;  %v820_v23 = vpack.c.bf16 %v3941_v6, %v3941_v6  ;;  %v885_v16 = vpack.c.bf16 %v3973_v55, %v3973_v55 }
 0x218   : > { %v3126_v11 = vpop.f32.mrf.mxu0  ;;  %v886_v49 = vpack.c.bf16 %v3974_v7, %v3974_v7  ;;  %v952_v61 = vpack.c.bf16 %v4007_v59, %v4007_v59  ;;  %v1591_v58 = vunpack.c.l.b16 %v819_v19  ;;  %v3300_v7 = vld [vmem:[%s4570_s9 + $0xb0] sm:$0xff] }
 0x219   : > { %2898 = vmatmul.bf16.gmra.mxu1 %v1517_v45  ;;  %2987 = vmatmul.bf16.gmra.mxu2 %v1613_v32  ;;  %v5269_v63 = vadd.f32 %v2847_v36, %v2759_v27  ;;  %v951_v32 = vpack.c.bf16 %v4006_v15, %v4006_v15  ;;  %v1592_v13 = vunpack.c.l.b16 %v820_v23  ;;  %v1687_v6 = vunpack.c.l.b16 %v885_v16 }
 0x21a   : > { %3076 = vmatmul.bf16.gmra.mxu3 %v1709_v9  ;;  %v1688_v55 = vunpack.c.l.b16 %v886_v49  ;;  %v1784_v59 = vunpack.c.l.b16 %v952_v61  ;;  %vm3332_vm3 = vcmp.gt.f32.partialorder %v3300_v7, 0.5  ;;  %v3379_v49 = vpop.permute.xlu0 %3378  ;;  %v3909_v61 = vld [vmem:[%s4635_s10 + $0xa1] sm:$0xff]  ;;  %v3943_v7 = vld [vmem:[%s4635_s10 + $0xcc] sm:$0xff] }
 0x21b   : > { %3165 = vmatmul.bf16.gmra.mxu0 %v1805_v51  ;;  %v5283_v51 = vld [vmem:[%s5520_s2] ss:$0 sm:$0xff]  ;;  %v1783_v15 = vunpack.c.l.b16 %v951_v32  ;;  %vm3471_vm6 = vcmp.eq.s32.totalorder %v3379_v49, 1 }
 0x21c   : > { %v2948_v36 = vpop.f32.mrf.mxu2  ;;  %v1710_v23 = vpack.c.b16 %v1688_v55, %v1687_v6  ;;  %v3302_v6 = vld [vmem:[%s4570_s9 + $0xc0] sm:$0xff]  ;;  %v755_v55 = vpack.c.bf16 %v3909_v61, %v3909_v61 }
 0x21d   : > { %v2949_v24 = vadd.f32 %v2948_v36, %v2860_v30  ;;  %v3037_v28 = vpop.f32.mrf.mxu3  ;;  %v3299_v30 = vld [vmem:[%s4570_s9 + $0xa8] sm:$0xff]  ;;  %v1806_v16 = vpack.c.b16 %v1784_v59, %v1783_v15  ;;  %vm3334_vm8 = vcmp.gt.f32.partialorder %v3302_v6, 0.5 }
 0x21e   : > { %v2861_v45 = vpop.f32.mrf.mxu1  ;;  %vm3331_vm4 = vcmp.gt.f32.partialorder %v3299_v30, 0.5  ;;  %v4008_v15 = vld [vmem:[%s4635_s10 + $0xc6] sm:$0xff]  ;;  %v4009_v59 = vld [vmem:[%s4635_s10 + $0xce] sm:$0xff] }
 0x21f   : > { %v3038_v9 = vadd.f32 %v3037_v28, %v2949_v24  ;;  %v2862_v47 = vadd.f32 %v2861_v45, %v4997_v17  ;;  %v3363_v22 = vsel %vm3331_vm4, 1, %v4497_v52  ;;  %v1518_v24 = vpack.c.b16 %v1496_v62, %v1495_v38  ;;  %v3975_v38 = vld [vmem:[%s4635_s10 + $0xc5] sm:$0xff] }
 0x220   : > { %v3128_v27 = vpop.f32.mrf.mxu0  ;;  %v1614_v28 = vpack.c.b16 %v1592_v13, %v1591_v58  ;;  %3438 = vperm.xlu0 %4449, %v3363_v22   ;;  %v3976_v58 = vld [vmem:[%s4635_s10 + $0xcd] sm:$0xff] }
 0x221   : > { %v3127_v39 = vadd.f32 %v3126_v11, %v3038_v9  ;;  %v3364_v11 = vsel %vm3332_vm3, 1, %v4497_v52  ;;  %v3910_v9 = vld [vmem:[%s4635_s10 + $0xa9] sm:$0xff] }
 0x222   : > { %3441 = vperm.xlu1 %4450, %v3364_v11   ;;  %v3303_v13 = vld [vmem:[%s4570_s9 + $0xc8] sm:$0xff]  ;;  %v756_v30 = vpack.c.bf16 %v3910_v9, %v3910_v9  ;;  %v3366_v11 = vsel %vm3334_vm8, 1, %v4497_v52  ;;  %v3382_v9 = vpop.permute.xlu1 %3381 }
 0x223   : > { %v3210_v21 = vmul.f32 %v5283_v51, %v3127_v39  ;;  %v3942_v39 = vld [vmem:[%s4635_s10 + $0xc4] sm:$0xff]  ;;  %vm3335_vm7 = vcmp.gt.f32.partialorder %v3303_v13, 0.5  ;;  %vm3472_vm12 = vcmp.eq.s32.totalorder %v3382_v9, 1 }
 0x224   : > { %v2950_v36 = vpop.f32.mrf.mxu2 }
 0x225   : > { %v2951_v20 = vadd.f32 %v2950_v36, %v2862_v47  ;;  %v3039_v14 = vpop.f32.mrf.mxu3  ;;  %v3246_v19 = vadd.f32 %v5288_v4, %v3210_v21  ;;  %v821_v36 = vpack.c.bf16 %v3942_v39, %v3942_v39  ;;  %v1497_v39 = vunpack.c.l.b16 %v755_v55 }
 0x226   : > { %v2864_v17 = vpop.f32.mrf.mxu1 }
 0x227   : > { %v3040_v26 = vadd.f32 %v3039_v14, %v2951_v20  ;;  %v3502_v45 = vsel %vm3470_vm5, %v3246_v19, 0.0  ;;  %v2865_v21 = vadd.f32 %v2864_v17, %v5006_v50  ;;  %v822_v20 = vpack.c.bf16 %v3943_v7, %v3943_v7 }
 0x228   : > { %v3131_v32 = vpop.f32.mrf.mxu0  ;;  %3534 = vst [vmem:[%s4576_s14] sm:$0xff] %v3502_v45  ;;  %v887_v14 = vpack.c.bf16 %v3975_v38, %v3975_v38  ;;  %v888_v19 = vpack.c.bf16 %v3976_v58, %v3976_v58  ;;  %3447 = vperm.xlu0 %4449, %v3366_v11   ;;  %v1498_v7 = vunpack.c.l.b16 %v756_v30  ;;  %v1593_v38 = vunpack.c.l.b16 %v821_v36 }
 0x229   : > { %v3129_v62 = vadd.f32 %v3128_v27, %v3040_v26  ;;  %2903 = vmatmul.bf16.gmra.mxu1 %v1518_v24  ;;  %2992 = vmatmul.bf16.gmra.mxu2 %v1614_v28  ;;  %v3367_v27 = vsel %vm3335_vm7, 1, %v4497_v52  ;;  %v954_v26 = vpack.c.bf16 %v4009_v59, %v4009_v59 }
 0x22a   : > { %3081 = vmatmul.bf16.gmra.mxu3 %v1710_v23  ;;  %3450 = vperm.xlu1 %4450, %v3367_v27   ;;  %v1689_v58 = vunpack.c.l.b16 %v887_v14  ;;  %v1690_v6 = vunpack.c.l.b16 %v888_v19  ;;  %v3305_v27 = vld [vmem:[%s4570_s9 + $0xd8] sm:$0xff]  ;;  %v1519_v14 = vpack.c.b16 %v1498_v7, %v1497_v39  ;;  %v3385_v39 = vpop.permute.xlu1 %3384 }
 0x22b   : > { %3170 = vmatmul.bf16.gmra.mxu0 %v1806_v16  ;;  %v3211_v47 = vmul.f32 %v5283_v51, %v3129_v62  ;;  %v953_v16 = vpack.c.bf16 %v4008_v15, %v4008_v15  ;;  %v1594_v62 = vunpack.c.l.b16 %v822_v20  ;;  %v1786_v59 = vunpack.c.l.b16 %v954_v26  ;;  %v3944_v7 = vld [vmem:[%s4635_s10 + $0xd4] sm:$0xff] }
 0x22c   : > { %v2953_v22 = vpop.f32.mrf.mxu2  ;;  %vm3337_vm11 = vcmp.gt.f32.partialorder %v3305_v27, 0.5  ;;  %vm3473_vm15 = vcmp.eq.s32.totalorder %v3385_v39, 1 }
 0x22d   : > { %v2954_v24 = vadd.f32 %v2953_v22, %v2865_v21  ;;  %v3042_v28 = vpop.f32.mrf.mxu3  ;;  %v3247_v23 = vadd.f32 %v5288_v4, %v3211_v47  ;;  %v1785_v15 = vunpack.c.l.b16 %v953_v16  ;;  %v3295_v21 = vld [vmem:[%s4570_s9 + $0x88] sm:$0xff]  ;;  %v3306_v47 = vld [vmem:[%s4570_s9 + $0xe0] sm:$0xff]  ;;  %v3369_v22 = vsel %vm3337_vm11, 1, %v4497_v52 }
 0x22e   : > { %v2866_v50 = vpop.f32.mrf.mxu1  ;;  %vm3327_vm9 = vcmp.gt.f32.partialorder %v3295_v21, 0.5  ;;  %vm3338_vm10 = vcmp.gt.f32.partialorder %v3306_v47, 0.5  ;;  %v1615_v19 = vpack.c.b16 %v1594_v62, %v1593_v38  ;;  %v3309_v38 = vld [vmem:[%s4570_s9 + $0xf8] sm:$0xff]  ;;  %v3308_v62 = vld [vmem:[%s4570_s9 + $0xf0] sm:$0xff] }
 0x22f   : > { %v3043_v17 = vadd.f32 %v3042_v28, %v2954_v24  ;;  %v3503_v45 = vsel %vm3471_vm6, %v3247_v23, 0.0  ;;  %v2867_v11 = vadd.f32 %v2866_v50, %v5013_v40  ;;  %v3359_v55 = vsel %vm3327_vm9, 1, %v4497_v52  ;;  %v4011_v21 = vld [vmem:[%s4635_s10 + $0xde] sm:$0xff] }
 0x230   : > { %v3133_v61 = vpop.f32.mrf.mxu0  ;;  %3535 = vst [vmem:[%s4576_s14 + $0x8] sm:$0xff] %v3503_v45  ;;  %v3370_v30 = vsel %vm3338_vm10, 1, %v4497_v52  ;;  %3426 = vperm.xlu2 %4451, %v3359_v55   ;;  %3456 = vperm.xlu0 %4449, %v3369_v22   ;;  %v1711_v28 = vpack.c.b16 %v1690_v6, %v1689_v58  ;;  %v1807_v23 = vpack.c.b16 %v1786_v59, %v1785_v15  ;;  %v3912_v45 = vld [vmem:[%s4635_s10 + $0xb9] sm:$0xff]  ;;  %vm3341_vm13 = vcmp.gt.f32.partialorder %v3309_v38, 0.5 }
 0x231   : > { %v3132_v13 = vadd.f32 %v3131_v32, %v3043_v17  ;;  %v3911_v17 = vld [vmem:[%s4635_s10 + $0xb1] sm:$0xff]  ;;  %v3945_v58 = vld [vmem:[%s4635_s10 + $0xdc] sm:$0xff]  ;;  %vm3340_vm14 = vcmp.gt.f32.partialorder %v3308_v62, 0.5  ;;  %v3373_v47 = vsel %vm3341_vm13, 1, %v4497_v52  ;;  %v758_v55 = vpack.c.bf16 %v3912_v45, %v3912_v45 }
 0x232   : > { %3459 = vperm.xlu1 %4450, %v3370_v30   ;;  %v3978_v59 = vld [vmem:[%s4635_s10 + $0xdd] sm:$0xff]  ;;  %v3372_v27 = vsel %vm3340_vm14, 1, %v4497_v52  ;;  %v823_v30 = vpack.c.bf16 %v3944_v7, %v3944_v7 }
 0x233   : > { %v3212_v49 = vmul.f32 %v5283_v51, %v3132_v13  ;;  %v3977_v13 = vld [vmem:[%s4635_s10 + $0xd5] sm:$0xff]  ;;  %v1500_v45 = vunpack.c.l.b16 %v758_v55 }
 0x234   : > { %v2955_v32 = vpop.f32.mrf.mxu2  ;;  %v1595_v7 = vunpack.c.l.b16 %v823_v30 }
 0x235   : > { %v2956_v36 = vadd.f32 %v2955_v32, %v2867_v11  ;;  %v3044_v40 = vpop.f32.mrf.mxu3  ;;  %v3248_v20 = vadd.f32 %v5288_v4, %v3212_v49  ;;  %v757_v49 = vpack.c.bf16 %v3911_v17, %v3911_v17 }
 0x236   : > { %v2869_v24 = vpop.f32.mrf.mxu1 }
 0x237   : > { %v3045_v16 = vadd.f32 %v3044_v40, %v2956_v36  ;;  %v3504_v26 = vsel %vm3472_vm12, %v3248_v20, 0.0  ;;  %v2870_v6 = vadd.f32 %v2869_v24, %v5032_v29  ;;  %v824_v36 = vpack.c.bf16 %v3945_v58, %v3945_v58  ;;  %v3298_v58 = vld [vmem:[%s4570_s9 + $0xa0] sm:$0xff] }
 0x238   : > { %v3136_v50 = vpop.f32.mrf.mxu0  ;;  %3536 = vst [vmem:[%s4576_s14 + $0x10] sm:$0xff] %v3504_v26  ;;  %v889_v40 = vpack.c.bf16 %v3977_v13, %v3977_v13  ;;  %3465 = vperm.xlu0 %4449, %v3372_v27   ;;  %v956_v24 = vpack.c.bf16 %v4011_v21, %v4011_v21  ;;  %v3388_v26 = vpop.permute.xlu2 %3387  ;;  %v1499_v17 = vunpack.c.l.b16 %v757_v49  ;;  %vm3330_vm0 = vcmp.gt.f32.partialorder %v3298_v58, 0.5 }
 0x239   : > { %v3134_v9 = vadd.f32 %v3133_v61, %v3045_v16  ;;  %2908 = vmatmul.bf16.gmra.mxu1 %v1519_v14  ;;  %2997 = vmatmul.bf16.gmra.mxu2 %v1615_v19  ;;  %v4010_v61 = vld [vmem:[%s4635_s10 + $0xd6] sm:$0xff]  ;;  %v890_v14 = vpack.c.bf16 %v3978_v59, %v3978_v59  ;;  %v1596_v38 = vunpack.c.l.b16 %v824_v36  ;;  %v3362_v39 = vsel %vm3330_vm0, 1, %v4497_v52  ;;  %v3913_v36 = vld [vmem:[%s4635_s10 + $0xc1] sm:$0xff] }
 0x23a   : > { %3086 = vmatmul.bf16.gmra.mxu3 %v1711_v28  ;;  %3468 = vperm.xlu1 %4450, %v3373_v47   ;;  %v955_v19 = vpack.c.bf16 %v4010_v61, %v4010_v61  ;;  %v1691_v62 = vunpack.c.l.b16 %v889_v40  ;;  %vm3474_vm1 = vcmp.eq.s32.totalorder %v3388_v26, 1 }
 0x23b   : > { %3175 = vmatmul.bf16.gmra.mxu0 %v1807_v23  ;;  %v3213_v15 = vmul.f32 %v5283_v51, %v3134_v9  ;;  %v1692_v13 = vunpack.c.l.b16 %v890_v14  ;;  %3435 = vperm.xlu2 %4451, %v3362_v39   ;;  %v1616_v49 = vpack.c.b16 %v1596_v38, %v1595_v7  ;;  %v3914_v14 = vld [vmem:[%s4635_s10 + $0xc9] sm:$0xff] }
 0x23c   : > { %v2958_v11 = vpop.f32.mrf.mxu2  ;;  %v4013_v7 = vld [vmem:[%s4635_s10 + $0xee] sm:$0xff]  ;;  %v760_v58 = vpack.c.bf16 %v3914_v14, %v3914_v14 }
 0x23d   : > { %v2959_v22 = vadd.f32 %v2958_v11, %v2870_v6  ;;  %v3047_v32 = vpop.f32.mrf.mxu3  ;;  %v3249_v29 = vadd.f32 %v5288_v4, %v3213_v15  ;;  %v1787_v6 = vunpack.c.l.b16 %v955_v19  ;;  %v1788_v15 = vunpack.c.l.b16 %v956_v24  ;;  %v3946_v19 = vld [vmem:[%s4635_s10 + $0xe4] sm:$0xff]  ;;  %v3301_v24 = vld [vmem:[%s4570_s9 + $0xb8] sm:$0xff] }
 0x23e   : > { %v2871_v20 = vpop.f32.mrf.mxu1  ;;  %v1520_v11 = vpack.c.b16 %v1500_v45, %v1499_v17  ;;  %v1712_v30 = vpack.c.b16 %v1692_v13, %v1691_v62  ;;  %vm3333_vm2 = vcmp.gt.f32.partialorder %v3301_v24, 0.5  ;;  %v3980_v45 = vld [vmem:[%s4635_s10 + $0xed] sm:$0xff]  ;;  %v759_v62 = vpack.c.bf16 %v3913_v36, %v3913_v36 }
 0x23f   : > { %v3048_v28 = vadd.f32 %v3047_v32, %v2959_v22  ;;  %v3505_v23 = vsel %vm3473_vm15, %v3249_v29, 0.0  ;;  %v2872_v61 = vadd.f32 %v2871_v20, %v5037_v0  ;;  %v1808_v0 = vpack.c.b16 %v1788_v15, %v1787_v6 }
 0x240   : > { %v3138_v16 = vpop.f32.mrf.mxu0  ;;  %3537 = vst [vmem:[%s4576_s14 + $0x18] sm:$0xff] %v3505_v23  ;;  %v3391_v20 = vpop.permute.xlu2 %3390  ;;  %v3979_v23 = vld [vmem:[%s4635_s10 + $0xe5] sm:$0xff]  ;;  %v825_v13 = vpack.c.bf16 %v3946_v19, %v3946_v19 }
 0x241   : > { %v3137_v9 = vadd.f32 %v3136_v50, %v3048_v28  ;;  %v3947_v28 = vld [vmem:[%s4635_s10 + $0xec] sm:$0xff]  ;;  %vm3475_vm3 = vcmp.eq.s32.totalorder %v3391_v20, 1 }
 0x242   : > { %v3304_v20 = vld [vmem:[%s4570_s9 + $0xd0] sm:$0xff] }
 0x243   : > { %v3214_v59 = vmul.f32 %v5283_v51, %v3137_v9  ;;  %v4012_v9 = vld [vmem:[%s4635_s10 + $0xe6] sm:$0xff]  ;;  %vm3336_vm4 = vcmp.gt.f32.partialorder %v3304_v20, 0.5 }
 0x244   : > { %v2960_v21 = vpop.f32.mrf.mxu2 }
 0x245   : > { %v2961_v50 = vadd.f32 %v2960_v21, %v2872_v61  ;;  %v3049_v47 = vpop.f32.mrf.mxu3  ;;  %v3250_v27 = vadd.f32 %v5288_v4, %v3214_v59  ;;  %v826_v61 = vpack.c.bf16 %v3947_v28, %v3947_v28  ;;  %v892_v21 = vpack.c.bf16 %v3980_v45, %v3980_v45 }
 0x246   : > { %v2874_v55 = vpop.f32.mrf.mxu1 }
 0x247   : > { %v3050_v22 = vadd.f32 %v3049_v47, %v2961_v50  ;;  %v3506_v32 = vsel %vm3474_vm1, %v3250_v27, 0.0  ;;  %v2875_v26 = vadd.f32 %v2874_v55, %v5046_v53  ;;  %v891_v53 = vpack.c.bf16 %v3979_v23, %v3979_v23 }
 0x248   : > { %v3141_v29 = vpop.f32.mrf.mxu0  ;;  %3538 = vst [vmem:[%s4576_s14 + $0x20] sm:$0xff] %v3506_v32  ;;  %v957_v50 = vpack.c.bf16 %v4012_v9, %v4012_v9  ;;  %v958_v47 = vpack.c.bf16 %v4013_v7, %v4013_v7  ;;  %v1501_v55 = vunpack.c.l.b16 %v759_v62  ;;  %v1597_v32 = vunpack.c.l.b16 %v825_v13 }
 0x249   : > { %v3139_v40 = vadd.f32 %v3138_v16, %v3050_v22  ;;  %2913 = vmatmul.bf16.gmra.mxu1 %v1520_v11  ;;  %3002 = vmatmul.bf16.gmra.mxu2 %v1616_v49  ;;  %v3365_v16 = vsel %vm3333_vm2, 1, %v4497_v52  ;;  %v3394_v22 = vpop.permute.xlu0 %3393  ;;  %v1598_v36 = vunpack.c.l.b16 %v826_v61  ;;  %v1694_v14 = vunpack.c.l.b16 %v892_v21  ;;  %v3915_v61 = vld [vmem:[%s4635_s10 + $0xd1] sm:$0xff] }
 0x24a   : > { %3091 = vmatmul.bf16.gmra.mxu3 %v1712_v30  ;;  %3444 = vperm.xlu2 %4451, %v3365_v16   ;;  %v1502_v30 = vunpack.c.l.b16 %v760_v58  ;;  %v1789_v19 = vunpack.c.l.b16 %v957_v50  ;;  %v1790_v24 = vunpack.c.l.b16 %v958_v47  ;;  %vm3476_vm5 = vcmp.eq.s32.totalorder %v3394_v22, 1  ;;  %v3948_v21 = vld [vmem:[%s4635_s10 + $0xf4] sm:$0xff]  ;;  %v3949_v50 = vld [vmem:[%s4635_s10 + $0xfc] sm:$0xff] }
 0x24b   : > { %3180 = vmatmul.bf16.gmra.mxu0 %v1808_v0  ;;  %v3215_v17 = vmul.f32 %v5283_v51, %v3139_v40  ;;  %v1693_v40 = vunpack.c.l.b16 %v891_v53  ;;  %v1617_v16 = vpack.c.b16 %v1598_v36, %v1597_v32  ;;  %v3916_v53 = vld [vmem:[%s4635_s10 + $0xd9] sm:$0xff]  ;;  %v761_v32 = vpack.c.bf16 %v3915_v61, %v3915_v61 }
 0x24c   : > { %v2963_v38 = vpop.f32.mrf.mxu2  ;;  %v1521_v7 = vpack.c.b16 %v1502_v30, %v1501_v55  ;;  %v3981_v47 = vld [vmem:[%s4635_s10 + $0xf5] sm:$0xff]  ;;  %v3982_v55 = vld [vmem:[%s4635_s10 + $0xfd] sm:$0xff]  ;;  %v762_v36 = vpack.c.bf16 %v3916_v53, %v3916_v53 }
 0x24d   : > { %v2964_v6 = vadd.f32 %v2963_v38, %v2875_v26  ;;  %v3052_v15 = vpop.f32.mrf.mxu3  ;;  %v3251_v59 = vadd.f32 %v5288_v4, %v3215_v17  ;;  %v3368_v26 = vsel %vm3336_vm4, 1, %v4497_v52  ;;  %v1713_v62 = vpack.c.b16 %v1694_v14, %v1693_v40  ;;  %v4015_v30 = vld [vmem:[%s4635_s10 + $0xfe] sm:$0xff] }
 0x24e   : > { %v2876_v39 = vpop.f32.mrf.mxu1 }
 0x24f   : > { %v3053_v27 = vadd.f32 %v3052_v15, %v2964_v6  ;;  %v3507_v11 = vsel %vm3475_vm3, %v3251_v59, 0.0  ;;  %v2877_v23 = vadd.f32 %v2876_v39, %v5052_v54  ;;  %v1809_v54 = vpack.c.b16 %v1790_v24, %v1789_v19  ;;  %v3397_v59 = vpop.permute.xlu1 %3396  ;;  %v3307_v39 = vld [vmem:[%s4570_s9 + $0xe8] sm:$0xff] }
 0x250   : > { %v3143_v49 = vpop.f32.mrf.mxu0  ;;  %3539 = vst [vmem:[%s4576_s14 + $0x28] sm:$0xff] %v3507_v11  ;;  %vm3339_vm6 = vcmp.gt.f32.partialorder %v3307_v39, 0.5  ;;  %vm3477_vm7 = vcmp.eq.s32.totalorder %v3397_v59, 1  ;;  %v827_v19 = vpack.c.bf16 %v3948_v21, %v3948_v21  ;;  %v828_v24 = vpack.c.bf16 %v3949_v50, %v3949_v50 }
 0x251   : > { %v3142_v0 = vadd.f32 %v3141_v29, %v3053_v27 }
 0x252   : > { %3453 = vperm.xlu2 %4451, %v3368_v26  }
 0x253   : > { %v3216_v28 = vmul.f32 %v5283_v51, %v3142_v0  ;;  %v3371_v0 = vsel %vm3339_vm6, 1, %v4497_v52 }
 0x254   : > { %v2965_v17 = vpop.f32.mrf.mxu2 }
 0x255   : > { %v2966_v29 = vadd.f32 %v2965_v17, %v2877_v23  ;;  %v3054_v45 = vpop.f32.mrf.mxu3  ;;  %v3252_v9 = vadd.f32 %v5288_v4, %v3216_v28  ;;  %v893_v28 = vpack.c.bf16 %v3981_v47, %v3981_v47  ;;  %v894_v23 = vpack.c.bf16 %v3982_v55, %v3982_v55 }
 0x256   : > { %v2879_v38 = vpop.f32.mrf.mxu1  ;;  %v960_v17 = vpack.c.bf16 %v4015_v30, %v4015_v30 }
 0x257   : > { %v3055_v58 = vadd.f32 %v3054_v45, %v2966_v29  ;;  %v3508_v13 = vsel %vm3476_vm5, %v3252_v9, 0.0  ;;  %v2880_v27 = vadd.f32 %v2879_v38, %v5071_v10  ;;  %v1503_v9 = vunpack.c.l.b16 %v761_v32  ;;  %v3403_v32 = vpop.permute.xlu0 %3402 }
 0x258   : > { %v3146_v6 = vpop.f32.mrf.mxu0  ;;  %3540 = vst [vmem:[%s4576_s14 + $0x30] sm:$0xff] %v3508_v13  ;;  %v1504_v38 = vunpack.c.l.b16 %v762_v36  ;;  %v1696_v13 = vunpack.c.l.b16 %v894_v23  ;;  %v1792_v59 = vunpack.c.l.b16 %v960_v17  ;;  %v3917_v36 = vld [vmem:[%s4635_s10 + $0xe1] sm:$0xff]  ;;  %vm3479_vm9 = vcmp.eq.s32.totalorder %v3403_v32, 1 }
 0x259   : > { %v3144_v15 = vadd.f32 %v3143_v49, %v3055_v58  ;;  %2918 = vmatmul.bf16.gmra.mxu1 %v1521_v7  ;;  %3007 = vmatmul.bf16.gmra.mxu2 %v1617_v16  ;;  %v4014_v49 = vld [vmem:[%s4635_s10 + $0xf6] sm:$0xff]  ;;  %v3400_v16 = vpop.permute.xlu2 %3399  ;;  %v1695_v58 = vunpack.c.l.b16 %v893_v28  ;;  %v3984_v28 = vld [vmem:[%s4635_s10 + $0x10d] sm:$0xff] }
 0x25a   : > { %3096 = vmatmul.bf16.gmra.mxu3 %v1713_v62  ;;  %3462 = vperm.xlu2 %4451, %v3371_v0   ;;  %v959_v26 = vpack.c.bf16 %v4014_v49, %v4014_v49  ;;  %v1599_v62 = vunpack.c.l.b16 %v827_v19  ;;  %vm3478_vm8 = vcmp.eq.s32.totalorder %v3400_v16, 1  ;;  %v1522_v47 = vpack.c.b16 %v1504_v38, %v1503_v9  ;;  %v3983_v19 = vld [vmem:[%s4635_s10 + $0x105] sm:$0xff] }
 0x25b   : > { %3185 = vmatmul.bf16.gmra.mxu0 %v1809_v54  ;;  %v3217_v11 = vmul.f32 %v5283_v51, %v3144_v15  ;;  %v1600_v54 = vunpack.c.l.b16 %v828_v24  ;;  %v1714_v55 = vpack.c.b16 %v1696_v13, %v1695_v58  ;;  %v4016_v23 = vld [vmem:[%s4635_s10 + $0x106] sm:$0xff]  ;;  %v896_v58 = vpack.c.bf16 %v3984_v28, %v3984_v28 }
 0x25c   : > { %v2968_v22 = vpop.f32.mrf.mxu2  ;;  %v1791_v15 = vunpack.c.l.b16 %v959_v26  ;;  %v4017_v26 = vld [vmem:[%s4635_s10 + $0x10e] sm:$0xff]  ;;  %v961_v13 = vpack.c.bf16 %v4016_v23, %v4016_v23 }
 0x25d   : > { %v2969_v40 = vadd.f32 %v2968_v22, %v2880_v27  ;;  %v3057_v20 = vpop.f32.mrf.mxu3  ;;  %v3253_v14 = vadd.f32 %v5288_v4, %v3217_v11  ;;  %v1618_v27 = vpack.c.b16 %v1600_v54, %v1599_v62  ;;  %v895_v54 = vpack.c.bf16 %v3983_v19, %v3983_v19 }
 0x25e   : > { %v2881_v10 = vpop.f32.mrf.mxu1  ;;  %v1810_v49 = vpack.c.b16 %v1792_v59, %v1791_v15  ;;  %v962_v15 = vpack.c.bf16 %v4017_v26, %v4017_v26 }
 0x25f   : > { %v3058_v29 = vadd.f32 %v3057_v20, %v2969_v40  ;;  %v3509_v45 = vsel %vm3477_vm7, %v3253_v14, 0.0  ;;  %v2882_v53 = vadd.f32 %v2881_v10, %v5076_v43  ;;  %v3918_v40 = vld [vmem:[%s4635_s10 + $0xe9] sm:$0xff] }
 0x260   : > { %v3148_v52 = vpop.f32.mrf.mxu0  ;;  %3541 = vst [vmem:[%s4576_s14 + $0x38] sm:$0xff] %v3509_v45  ;;  %v3950_v20 = vld [vmem:[%s4635_s10 + $0x104] sm:$0xff]  ;;  %v3951_v14 = vld [vmem:[%s4635_s10 + $0x10c] sm:$0xff]  ;;  %v764_v45 = vpack.c.bf16 %v3918_v40, %v3918_v40 }
 0x261   : > { %v3147_v7 = vadd.f32 %v3146_v6, %v3058_v29  ;;  %v763_v29 = vpack.c.bf16 %v3917_v36, %v3917_v36  ;;  %v829_v16 = vpack.c.bf16 %v3950_v20, %v3950_v20  ;;  %v830_v38 = vpack.c.bf16 %v3951_v14, %v3951_v14  ;;  %v3409_v26 = vpop.permute.xlu2 %3408 }
 0x262   : > { %vm3481_vm11 = vcmp.eq.s32.totalorder %v3409_v26, 1 }
 0x263   : > { %v3218_v61 = vmul.f32 %v5283_v51, %v3147_v7 }
 0x264   : > { %v2970_v39 = vpop.f32.mrf.mxu2 }
 0x265   : > { %v2971_v21 = vadd.f32 %v2970_v39, %v2882_v53  ;;  %v3059_v50 = vpop.f32.mrf.mxu3  ;;  %v3254_v6 = vadd.f32 %v5288_v4, %v3218_v61  ;;  %v1505_v53 = vunpack.c.l.b16 %v763_v29  ;;  %v3920_v29 = vld [vmem:[%s4635_s10 + $0xf9] sm:$0xff] }
 0x266   : > { %v2884_v11 = vpop.f32.mrf.mxu1 }
 0x267   : > { %v3060_v30 = vadd.f32 %v3059_v50, %v2971_v21  ;;  %v3510_v0 = vsel %vm3478_vm8, %v3254_v6, 0.0  ;;  %v2885_v10 = vadd.f32 %v2884_v11, %v5085_v18  ;;  %v3406_v21 = vpop.permute.xlu1 %3405  ;;  %v1506_v50 = vunpack.c.l.b16 %v764_v45  ;;  %v3952_v45 = vld [vmem:[%s4635_s10 + $0x114] sm:$0xff] }
 0x268   : > { %v3151_v43 = vpop.f32.mrf.mxu0  ;;  %3542 = vst [vmem:[%s4576_s14 + $0x40] sm:$0xff] %v3510_v0  ;;  %v1601_v6 = vunpack.c.l.b16 %v829_v16  ;;  %v1698_v11 = vunpack.c.l.b16 %v896_v58  ;;  %vm3480_vm10 = vcmp.eq.s32.totalorder %v3406_v21, 1 }
 0x269   : > { %v3149_v22 = vadd.f32 %v3148_v52, %v3060_v30  ;;  %2923 = vmatmul.bf16.gmra.mxu1 %v1522_v47  ;;  %3012 = vmatmul.bf16.gmra.mxu2 %v1618_v27  ;;  %v1602_v47 = vunpack.c.l.b16 %v830_v38  ;;  %v1697_v27 = vunpack.c.l.b16 %v895_v54  ;;  %v1523_v40 = vpack.c.b16 %v1506_v50, %v1505_v53  ;;  %v3986_v38 = vld [vmem:[%s4635_s10 + $0x11d] sm:$0xff] }
 0x26a   : > { %3101 = vmatmul.bf16.gmra.mxu3 %v1714_v55  ;;  %v1793_v55 = vunpack.c.l.b16 %v961_v13  ;;  %v4019_v54 = vld [vmem:[%s4635_s10 + $0x11e] sm:$0xff]  ;;  %v831_v53 = vpack.c.bf16 %v3952_v45, %v3952_v45 }
 0x26b   : > { %3190 = vmatmul.bf16.gmra.mxu0 %v1810_v49  ;;  %v3219_v24 = vmul.f32 %v5283_v51, %v3149_v22  ;;  %v1794_v49 = vunpack.c.l.b16 %v962_v15  ;;  %v1619_v20 = vpack.c.b16 %v1602_v47, %v1601_v6  ;;  %v1715_v19 = vpack.c.b16 %v1698_v11, %v1697_v27 }
 0x26c   : > { %v2973_v17 = vpop.f32.mrf.mxu2  ;;  %v766_v15 = vpack.c.bf16 %v3920_v29, %v3920_v29  ;;  %v898_v6 = vpack.c.bf16 %v3986_v38, %v3986_v38  ;;  %v964_v27 = vpack.c.bf16 %v4019_v54, %v4019_v54 }
 0x26d   : > { %v2974_v52 = vadd.f32 %v2973_v17, %v2885_v10  ;;  %v3062_v9 = vpop.f32.mrf.mxu3  ;;  %v3255_v7 = vadd.f32 %v5288_v4, %v3219_v24  ;;  %v1811_v24 = vpack.c.b16 %v1794_v49, %v1793_v55  ;;  %v3919_v17 = vld [vmem:[%s4635_s10 + $0xf1] sm:$0xff] }
 0x26e   : > { %v2886_v62 = vpop.f32.mrf.mxu1  ;;  %v765_v13 = vpack.c.bf16 %v3919_v17, %v3919_v17 }
 0x26f   : > { %v3063_v18 = vadd.f32 %v3062_v9, %v2974_v52  ;;  %v3511_v59 = vsel %vm3479_vm9, %v3255_v7, 0.0  ;;  %v2887_v0 = vadd.f32 %v2886_v62, %v5090_v3  ;;  %v3953_v52 = vld [vmem:[%s4635_s10 + $0x11c] sm:$0xff] }
 0x270   : > { %v3153_v61 = vpop.f32.mrf.mxu0  ;;  %3543 = vst [vmem:[%s4576_s14 + $0x48] sm:$0xff] %v3511_v59  ;;  %v3985_v9 = vld [vmem:[%s4635_s10 + $0x115] sm:$0xff]  ;;  %v1507_v49 = vunpack.c.l.b16 %v765_v13 }
 0x271   : > { %v3152_v39 = vadd.f32 %v3151_v43, %v3063_v18  ;;  %v4018_v62 = vld [vmem:[%s4635_s10 + $0x116] sm:$0xff]  ;;  %v897_v50 = vpack.c.bf16 %v3985_v9, %v3985_v9 }
 0x272   : > { %v963_v47 = vpack.c.bf16 %v4018_v62, %v4018_v62 }
 0x273   : > { %v3220_v30 = vmul.f32 %v5283_v51, %v3152_v39  ;;  %v832_v39 = vpack.c.bf16 %v3953_v52, %v3953_v52 }
 0x274   : > { %v2975_v22 = vpop.f32.mrf.mxu2 }
 0x275   : > { %v2976_v32 = vadd.f32 %v2975_v22, %v2887_v0  ;;  %v3064_v36 = vpop.f32.mrf.mxu3  ;;  %v3256_v43 = vadd.f32 %v5288_v4, %v3220_v30  ;;  %v3412_v0 = vpop.permute.xlu0 %3411  ;;  %v1508_v22 = vunpack.c.l.b16 %v766_v15 }
 0x276   : > { %v2889_v14 = vpop.f32.mrf.mxu1  ;;  %vm3482_vm12 = vcmp.eq.s32.totalorder %v3412_v0, 1 }
 0x277   : > { %v3065_v10 = vadd.f32 %v3064_v36, %v2976_v32  ;;  %v3512_v28 = vsel %vm3480_vm10, %v3256_v43, 0.0  ;;  %v2890_v16 = vadd.f32 %v2889_v14, %v5099_v31  ;;  %v1603_v32 = vunpack.c.l.b16 %v831_v53 }
 0x278   : > { %v3156_v3 = vpop.f32.mrf.mxu0  ;;  %3544 = vst [vmem:[%s4576_s14 + $0x50] sm:$0xff] %v3512_v28  ;;  %v1604_v36 = vunpack.c.l.b16 %v832_v39  ;;  %v1699_v43 = vunpack.c.l.b16 %v897_v50  ;;  %v1796_v14 = vunpack.c.l.b16 %v964_v27  ;;  %v3418_v50 = vpop.permute.xlu2 %3417 }
 0x279   : > { %v3154_v23 = vadd.f32 %v3153_v61, %v3065_v10  ;;  %2928 = vmatmul.bf16.gmra.mxu1 %v1523_v40  ;;  %3017 = vmatmul.bf16.gmra.mxu2 %v1619_v20  ;;  %v1700_v40 = vunpack.c.l.b16 %v898_v6  ;;  %v1795_v20 = vunpack.c.l.b16 %v963_v47  ;;  %vm3484_vm14 = vcmp.eq.s32.totalorder %v3418_v50, 1  ;;  %v5441_v50 = vld [vmem:[%s5520_s2] ss:$0 sm:$0xff] }
 0x27a   : > { %3106 = vmatmul.bf16.gmra.mxu3 %v1715_v19  ;;  %v1620_v17 = vpack.c.b16 %v1604_v36, %v1603_v32 }
 0x27b   : > { %3195 = vmatmul.bf16.gmra.mxu0 %v1811_v24  ;;  %v3221_v7 = vmul.f32 %v5283_v51, %v3154_v23  ;;  %v1716_v45 = vpack.c.b16 %v1700_v40, %v1699_v43  ;;  %v1812_v52 = vpack.c.b16 %v1796_v14, %v1795_v20 }
 0x27c   : > { %v2978_v58 = vpop.f32.mrf.mxu2 }
 0x27d   : > { %v2979_v18 = vadd.f32 %v2978_v58, %v2890_v16  ;;  %v3067_v59 = vpop.f32.mrf.mxu3  ;;  %v3257_v61 = vadd.f32 %v5288_v4, %v3221_v7  ;;  %v3421_v32 = vpop.permute.xlu0 %3420 }
 0x27e   : > { %v2891_v21 = vpop.f32.mrf.mxu1  ;;  %vm3485_vm15 = vcmp.eq.s32.totalorder %v3421_v32, 1 }
 0x27f   : > { %v3068_v31 = vadd.f32 %v3067_v59, %v2979_v18  ;;  %v3513_v11 = vsel %vm3481_vm11, %v3257_v61, 0.0  ;;  %v2892_v24 = vadd.f32 %v2891_v21, %v5104_v25  ;;  %v3415_v25 = vpop.permute.xlu1 %3414 }
 0x280   : > { %v3158_v55 = vpop.f32.mrf.mxu0  ;;  %3545 = vst [vmem:[%s4576_s14 + $0x58] sm:$0xff] %v3513_v11  ;;  %vm3483_vm13 = vcmp.eq.s32.totalorder %v3415_v25, 1 }
 0x281   : > { %v3157_v30 = vadd.f32 %v3156_v3, %v3068_v31  ;;  %v1524_v3 = vpack.c.b16 %v1508_v22, %v1507_v49 }
 0x283   : > { %v3222_v19 = vmul.f32 %v5283_v51, %v3157_v30 }
 0x284   : > { %v2980_v10 = vpop.f32.mrf.mxu2 }
 0x285   : > { %v2981_v28 = vadd.f32 %v2980_v10, %v2892_v24  ;;  %v3069_v23 = vpop.f32.mrf.mxu3  ;;  %v3258_v26 = vadd.f32 %v5288_v4, %v3222_v19 }
 0x286   : > { %v2894_v29 = vpop.f32.mrf.mxu1 }
 0x287   : > { %v3070_v9 = vadd.f32 %v3069_v23, %v2981_v28  ;;  %v3514_v7 = vsel %vm3482_vm12, %v3258_v26, 0.0  ;;  %v2895_v54 = vadd.f32 %v2894_v29, %v5118_v1  ;;  %v3424_v26 = vpop.permute.xlu1 %3423 }
 0x288   : > { %v3161_v16 = vpop.f32.mrf.mxu0  ;;  %3546 = vst [vmem:[%s4576_s14 + $0x60] sm:$0xff] %v3514_v7  ;;  %vm3486_vm0 = vcmp.eq.s32.totalorder %v3424_v26, 1 }
 0x289   : > { %v3159_v38 = vadd.f32 %v3158_v55, %v3070_v9  ;;  %2933 = vmatmul.bf16.gmra.mxu1 %v1524_v3  ;;  %3022 = vmatmul.bf16.gmra.mxu2 %v1620_v17 }
 0x28a   : > { %3111 = vmatmul.bf16.gmra.mxu3 %v1716_v45 }
 0x28b   : > { %3200 = vmatmul.bf16.gmra.mxu0 %v1812_v52  ;;  %v3223_v62 = vmul.f32 %v5283_v51, %v3159_v38 }
 0x28c   : > { %v2983_v58 = vpop.f32.mrf.mxu2 }
 0x28d   : > { %v2984_v13 = vadd.f32 %v2983_v58, %v2895_v54  ;;  %v3072_v15 = vpop.f32.mrf.mxu3  ;;  %v3259_v18 = vadd.f32 %v5288_v4, %v3223_v62  ;;  %v3427_v62 = vpop.permute.xlu2 %3426 }
 0x28e   : > { %v2896_v59 = vpop.f32.mrf.mxu1  ;;  %vm3487_vm1 = vcmp.eq.s32.totalorder %v3427_v62, 1 }
 0x28f   : > { %v3073_v61 = vadd.f32 %v3072_v15, %v2984_v13  ;;  %v3515_v53 = vsel %vm3483_vm13, %v3259_v18, 0.0  ;;  %v2897_v47 = vadd.f32 %v2896_v59, %v5124_v33 }
 0x290   : > { %v3163_v39 = vpop.f32.mrf.mxu0  ;;  %3547 = vst [vmem:[%s4576_s14 + $0x68] sm:$0xff] %v3515_v53 }
 0x291   : > { %v3162_v21 = vadd.f32 %v3161_v16, %v3073_v61 }
 0x293   : > { %v3224_v6 = vmul.f32 %v5283_v51, %v3162_v21 }
 0x294   : > { %v2985_v27 = vpop.f32.mrf.mxu2 }
 0x295   : > { %v2986_v1 = vadd.f32 %v2985_v27, %v2897_v47  ;;  %v3074_v31 = vpop.f32.mrf.mxu3  ;;  %v3260_v11 = vadd.f32 %v5288_v4, %v3224_v6 }
 0x296   : > { %v2899_v55 = vpop.f32.mrf.mxu1 }
 0x297   : > { %v3075_v49 = vadd.f32 %v3074_v31, %v2986_v1  ;;  %v3516_v30 = vsel %vm3484_vm14, %v3260_v11, 0.0  ;;  %v2900_v43 = vadd.f32 %v2899_v55, %v5136_v48 }
 0x298   : > { %v3166_v0 = vpop.f32.mrf.mxu0  ;;  %3548 = vst [vmem:[%s4576_s14 + $0x70] sm:$0xff] %v3516_v30 }
 0x299   : > { %v3164_v22 = vadd.f32 %v3163_v39, %v3075_v49 }
 0x29b   : > { %v3225_v36 = vmul.f32 %v5283_v51, %v3164_v22  ;;  %v3433_v22 = vpop.permute.xlu1 %3432 }
 0x29c   : > { %v2988_v40 = vpop.f32.mrf.mxu2  ;;  %vm3489_vm3 = vcmp.eq.s32.totalorder %v3433_v22, 1 }
 0x29d   : > { %v2989_v33 = vadd.f32 %v2988_v40, %v2900_v43  ;;  %v3077_v20 = vpop.f32.mrf.mxu3  ;;  %v3261_v14 = vadd.f32 %v5288_v4, %v3225_v36 }
 0x29e   : > { %v2901_v19 = vpop.f32.mrf.mxu1 }
 0x29f   : > { %v3078_v24 = vadd.f32 %v3077_v20, %v2989_v33  ;;  %v3517_v10 = vsel %vm3485_vm15, %v3261_v14, 0.0  ;;  %v2902_v17 = vadd.f32 %v2901_v19, %v5142_v46 }
 0x2a0   : > { %v3168_v28 = vpop.f32.mrf.mxu0  ;;  %3549 = vst [vmem:[%s4576_s14 + $0x78] sm:$0xff] %v3517_v10 }
 0x2a1   : > { %v3167_v23 = vadd.f32 %v3166_v0, %v3078_v24 }
 0x2a3   : > { %v3226_v3 = vmul.f32 %v5283_v51, %v3167_v23  ;;  %v3436_v23 = vpop.permute.xlu2 %3435 }
 0x2a4   : > { %v2990_v29 = vpop.f32.mrf.mxu2  ;;  %vm3490_vm4 = vcmp.eq.s32.totalorder %v3436_v23, 1 }
 0x2a5   : > { %v2991_v48 = vadd.f32 %v2990_v29, %v2902_v17  ;;  %v3079_v45 = vpop.f32.mrf.mxu3  ;;  %v3262_v52 = vadd.f32 %v5288_v4, %v3226_v3 }
 0x2a6   : > { %v2904_v9 = vpop.f32.mrf.mxu1 }
 0x2a7   : > { %v3080_v7 = vadd.f32 %v3079_v45, %v2991_v48  ;;  %v3518_v16 = vsel %vm3486_vm0, %v3262_v52, 0.0  ;;  %v2905_v58 = vadd.f32 %v2904_v9, %v5152_v8 }
 0x2a8   : > { %v3171_v38 = vpop.f32.mrf.mxu0  ;;  %3550 = vst [vmem:[%s4576_s14 + $0x80] sm:$0xff] %v3518_v16 }
 0x2a9   : > { %v3169_v25 = vadd.f32 %v3168_v28, %v3080_v7 }
 0x2ab   : > { %v3227_v54 = vmul.f32 %v5283_v51, %v3169_v25  ;;  %v3430_v51 = vpop.permute.xlu0 %3429 }
 0x2ac   : > { %v2993_v13 = vpop.f32.mrf.mxu2  ;;  %vm3488_vm2 = vcmp.eq.s32.totalorder %v3430_v51, 1 }
 0x2ad   : > { %v2994_v46 = vadd.f32 %v2993_v13, %v2905_v58  ;;  %v3082_v15 = vpop.f32.mrf.mxu3  ;;  %v3263_v18 = vadd.f32 %v5288_v4, %v3227_v54  ;;  %v5448_v4 = vld [vmem:[%s5521_s3] ss:$0 sm:$0xff] }
 0x2ae   : > { %v2906_v59 = vpop.f32.mrf.mxu1 }
 0x2af   : > { %v3083_v61 = vadd.f32 %v3082_v15, %v2994_v46  ;;  %v3519_v53 = vsel %vm3487_vm1, %v3263_v18, 0.0  ;;  %v2907_v6 = vadd.f32 %v2906_v59, %v5157_v42 }
 0x2b0   : > { %v3173_v39 = vpop.f32.mrf.mxu0  ;;  %3551 = vst [vmem:[%s4576_s14 + $0x88] sm:$0xff] %v3519_v53 }
 0x2b1   : > { %v3172_v21 = vadd.f32 %v3171_v38, %v3083_v61 }
 0x2b3   : > { %v3228_v8 = vmul.f32 %v5441_v50, %v3172_v21  ;;  %v3439_v16 = vpop.permute.xlu0 %3438  ;;  %v3442_v21 = vpop.permute.xlu1 %3441 }
 0x2b4   : > { %v2995_v47 = vpop.f32.mrf.mxu2  ;;  %vm3491_vm5 = vcmp.eq.s32.totalorder %v3439_v16, 1  ;;  %vm3492_vm6 = vcmp.eq.s32.totalorder %v3442_v21, 1 }
 0x2b5   : > { %v3264_v27 = vadd.f32 %v5448_v4, %v3228_v8  ;;  %v2996_v1 = vadd.f32 %v2995_v47, %v2907_v6  ;;  %v3084_v31 = vpop.f32.mrf.mxu3 }
 0x2b6   : > { %v2909_v11 = vpop.f32.mrf.mxu1 }
 0x2b7   : > { %v3520_v55 = vsel %vm3488_vm2, %v3264_v27, 0.0  ;;  %v3085_v49 = vadd.f32 %v3084_v31, %v2996_v1  ;;  %v2910_v32 = vadd.f32 %v2909_v11, %v5168_v56 }
 0x2b8   : > { %v3176_v30 = vpop.f32.mrf.mxu0  ;;  %3552 = vst [vmem:[%s4576_s14 + $0x90] sm:$0xff] %v3520_v55 }
 0x2b9   : > { %v3174_v0 = vadd.f32 %v3173_v39, %v3085_v49 }
 0x2bb   : > { %v3229_v42 = vmul.f32 %v5441_v50, %v3174_v0 }
 0x2bc   : > { %v2998_v36 = vpop.f32.mrf.mxu2 }
 0x2bd   : > { %v3265_v43 = vadd.f32 %v5448_v4, %v3229_v42  ;;  %v2999_v40 = vadd.f32 %v2998_v36, %v2910_v32  ;;  %v3087_v33 = vpop.f32.mrf.mxu3 }
 0x2be   : > { %v2911_v20 = vpop.f32.mrf.mxu1 }
 0x2bf   : > { %v3521_v14 = vsel %vm3489_vm3, %v3265_v43, 0.0  ;;  %v3088_v19 = vadd.f32 %v3087_v33, %v2999_v40  ;;  %v2912_v26 = vadd.f32 %v2911_v20, %v5175_v35 }
 0x2c0   : > { %v3178_v24 = vpop.f32.mrf.mxu0  ;;  %3553 = vst [vmem:[%s4576_s14 + $0x98] sm:$0xff] %v3521_v14 }
 0x2c1   : > { %v3177_v10 = vadd.f32 %v3176_v30, %v3088_v19 }
 0x2c3   : > { %v3230_v28 = vmul.f32 %v5441_v50, %v3177_v10 }
 0x2c4   : > { %v3000_v56 = vpop.f32.mrf.mxu2 }
 0x2c5   : > { %v3266_v3 = vadd.f32 %v5448_v4, %v3230_v28  ;;  %v3001_v17 = vadd.f32 %v3000_v56, %v2912_v26  ;;  %v3089_v29 = vpop.f32.mrf.mxu3 }
 0x2c6   : > { %v2914_v48 = vpop.f32.mrf.mxu1 }
 0x2c7   : > { %v3522_v45 = vsel %vm3490_vm4, %v3266_v3, 0.0  ;;  %v3090_v52 = vadd.f32 %v3089_v29, %v3001_v17  ;;  %v2915_v25 = vadd.f32 %v2914_v48, %v5188_v5 }
 0x2c8   : > { %v3181_v9 = vpop.f32.mrf.mxu0  ;;  %3554 = vst [vmem:[%s4576_s14 + $0xa0] sm:$0xff] %v3522_v45 }
 0x2c9   : > { %v3179_v7 = vadd.f32 %v3178_v24, %v3090_v52 }
 0x2cb   : > { %v3231_v38 = vmul.f32 %v5441_v50, %v3179_v7 }
 0x2cc   : > { %v3003_v35 = vpop.f32.mrf.mxu2 }
 0x2cd   : > { %v3267_v62 = vadd.f32 %v5448_v4, %v3231_v38  ;;  %v3004_v54 = vadd.f32 %v3003_v35, %v2915_v25  ;;  %v3092_v58 = vpop.f32.mrf.mxu3 }
 0x2ce   : > { %v2916_v13 = vpop.f32.mrf.mxu1 }
 0x2cf   : > { %v3523_v46 = vsel %vm3491_vm5, %v3267_v62, 0.0  ;;  %v3093_v15 = vadd.f32 %v3092_v58, %v3004_v54  ;;  %v2917_v53 = vadd.f32 %v2916_v13, %v5194_v34  ;;  %v3445_v34 = vpop.permute.xlu2 %3444 }
 0x2d0   : > { %v3183_v18 = vpop.f32.mrf.mxu0  ;;  %3555 = vst [vmem:[%s4576_s14 + $0xa8] sm:$0xff] %v3523_v46  ;;  %vm3493_vm7 = vcmp.eq.s32.totalorder %v3445_v34, 1 }
 0x2d1   : > { %v3182_v59 = vadd.f32 %v3181_v9, %v3093_v15 }
 0x2d3   : > { %v3232_v61 = vmul.f32 %v5441_v50, %v3182_v59 }
 0x2d4   : > { %v3005_v39 = vpop.f32.mrf.mxu2 }
 0x2d5   : > { %v3268_v5 = vadd.f32 %v5448_v4, %v3232_v61  ;;  %v3006_v8 = vadd.f32 %v3005_v39, %v2917_v53  ;;  %v3094_v51 = vpop.f32.mrf.mxu3 }
 0x2d6   : > { %v2919_v6 = vpop.f32.mrf.mxu1 }
 0x2d7   : > { %v3524_v47 = vsel %vm3492_vm6, %v3268_v5, 0.0  ;;  %v3095_v27 = vadd.f32 %v3094_v51, %v3006_v8  ;;  %v2920_v55 = vadd.f32 %v2919_v6, %v5206_v37  ;;  %v3448_v37 = vpop.permute.xlu0 %3447 }
 0x2d8   : > { %v3186_v1 = vpop.f32.mrf.mxu0  ;;  %3556 = vst [vmem:[%s4576_s14 + $0xb0] sm:$0xff] %v3524_v47  ;;  %vm3494_vm8 = vcmp.eq.s32.totalorder %v3448_v37, 1 }
 0x2d9   : > { %v3184_v31 = vadd.f32 %v3183_v18, %v3095_v27 }
 0x2db   : > { %v3233_v11 = vmul.f32 %v5441_v50, %v3184_v31 }
 0x2dc   : > { %v3008_v49 = vpop.f32.mrf.mxu2 }
 0x2dd   : > { %v3269_v30 = vadd.f32 %v5448_v4, %v3233_v11  ;;  %v3009_v0 = vadd.f32 %v3008_v49, %v2920_v55  ;;  %v3097_v22 = vpop.f32.mrf.mxu3 }
 0x2de   : > { %v2921_v42 = vpop.f32.mrf.mxu1 }
 0x2df   : > { %v3525_v32 = vsel %vm3493_vm7, %v3269_v30, 0.0  ;;  %v3098_v36 = vadd.f32 %v3097_v22, %v3009_v0  ;;  %v2922_v20 = vadd.f32 %v2921_v42, %v5212_v60  ;;  %v3451_v60 = vpop.permute.xlu1 %3450 }
 0x2e0   : > { %v3188_v43 = vpop.f32.mrf.mxu0  ;;  %3557 = vst [vmem:[%s4576_s14 + $0xb8] sm:$0xff] %v3525_v32  ;;  %vm3495_vm9 = vcmp.eq.s32.totalorder %v3451_v60, 1 }
 0x2e1   : > { %v3187_v40 = vadd.f32 %v3186_v1, %v3098_v36 }
 0x2e3   : > { %v3234_v33 = vmul.f32 %v5441_v50, %v3187_v40 }
 0x2e4   : > { %v3010_v14 = vpop.f32.mrf.mxu2 }
 0x2e5   : > { %v3270_v19 = vadd.f32 %v5448_v4, %v3234_v33  ;;  %v3011_v24 = vadd.f32 %v3010_v14, %v2922_v20  ;;  %v3099_v10 = vpop.f32.mrf.mxu3 }
 0x2e6   : > { %v2924_v28 = vpop.f32.mrf.mxu1 }
 0x2e7   : > { %v3526_v23 = vsel %vm3494_vm8, %v3270_v19, 0.0  ;;  %v3100_v26 = vadd.f32 %v3099_v10, %v3011_v24  ;;  %v2925_v29 = vadd.f32 %v2924_v28, %v5224_v44  ;;  %v3454_v44 = vpop.permute.xlu2 %3453 }
 0x2e8   : > { %v3191_v56 = vpop.f32.mrf.mxu0  ;;  %3558 = vst [vmem:[%s4576_s14 + $0xc0] sm:$0xff] %v3526_v23  ;;  %vm3496_vm10 = vcmp.eq.s32.totalorder %v3454_v44, 1 }
 0x2e9   : > { %v3189_v3 = vadd.f32 %v3188_v43, %v3100_v26 }
 0x2eb   : > { %v3235_v17 = vmul.f32 %v5441_v50, %v3189_v3 }
 0x2ec   : > { %v3013_v48 = vpop.f32.mrf.mxu2 }
 0x2ed   : > { %v3271_v45 = vadd.f32 %v5448_v4, %v3235_v17  ;;  %v3014_v52 = vadd.f32 %v3013_v48, %v2925_v29  ;;  %v3102_v9 = vpop.f32.mrf.mxu3 }
 0x2ee   : > { %v2926_v7 = vpop.f32.mrf.mxu1 }
 0x2ef   : > { %v3527_v16 = vsel %vm3495_vm9, %v3271_v45, 0.0  ;;  %v3103_v38 = vadd.f32 %v3102_v9, %v3014_v52  ;;  %v2927_v54 = vadd.f32 %v2926_v7, %v5230_v57  ;;  %v3457_v57 = vpop.permute.xlu0 %3456  ;;  %v3463_v33 = vpop.permute.xlu2 %3462 }
 0x2f0   : > { %3559 = vst [vmem:[%s4576_s14 + $0xc8] sm:$0xff] %v3527_v16  ;;  %v3193_v25 = vpop.f32.mrf.mxu0  ;;  %vm3497_vm11 = vcmp.eq.s32.totalorder %v3457_v57, 1  ;;  %vm3499_vm13 = vcmp.eq.s32.totalorder %v3463_v33, 1 }
 0x2f1   : > { %v3192_v35 = vadd.f32 %v3191_v56, %v3103_v38 }
 0x2f3   : > { %v3236_v62 = vmul.f32 %v5441_v50, %v3192_v35 }
 0x2f4   : > { %v3015_v58 = vpop.f32.mrf.mxu2 }
 0x2f5   : > { %v3272_v13 = vadd.f32 %v5448_v4, %v3236_v62  ;;  %v3016_v46 = vadd.f32 %v3015_v58, %v2927_v54  ;;  %v3104_v15 = vpop.f32.mrf.mxu3 }
 0x2f6   : > { %v2929_v18 = vpop.f32.mrf.mxu1 }
 0x2f7   : > { %v3528_v59 = vsel %vm3496_vm10, %v3272_v13, 0.0  ;;  %v3105_v61 = vadd.f32 %v3104_v15, %v3016_v46  ;;  %v2930_v5 = vadd.f32 %v2929_v18, %v5241_v41  ;;  %v3460_v41 = vpop.permute.xlu1 %3459  ;;  %v3466_v3 = vpop.permute.xlu0 %3465 }
 0x2f8   : > { %3560 = vst [vmem:[%s4576_s14 + $0xd0] sm:$0xff] %v3528_v59  ;;  %v3196_v39 = vpop.f32.mrf.mxu0  ;;  %vm3498_vm12 = vcmp.eq.s32.totalorder %v3460_v41, 1  ;;  %vm3500_vm14 = vcmp.eq.s32.totalorder %v3466_v3, 1 }
 0x2f9   : > { %v3194_v53 = vadd.f32 %v3193_v25, %v3105_v61 }
 0x2fb   : > { %v3237_v21 = vmul.f32 %v5441_v50, %v3194_v53 }
 0x2fc   : > { %v3018_v8 = vpop.f32.mrf.mxu2 }
 0x2fd   : > { %v3273_v51 = vadd.f32 %v5448_v4, %v3237_v21  ;;  %v3019_v6 = vadd.f32 %v3018_v8, %v2930_v5  ;;  %v3107_v47 = vpop.f32.mrf.mxu3 }
 0x2fe   : > { %v2931_v27 = vpop.f32.mrf.mxu1 }
 0x2ff   : > { %v3529_v1 = vsel %vm3497_vm11, %v3273_v51, 0.0  ;;  %v3108_v31 = vadd.f32 %v3107_v47, %v3019_v6  ;;  %v2932_v49 = vadd.f32 %v2931_v27, %v5248_v12  ;;  %v3469_v38 = vpop.permute.xlu1 %3468 }
 0x300   : > { %3561 = vst [vmem:[%s4576_s14 + $0xd8] sm:$0xff] %v3529_v1  ;;  %v3198_v34 = vpop.f32.mrf.mxu0  ;;  %vm3501_vm15 = vcmp.eq.s32.totalorder %v3469_v38, 1 }
 0x301   : > { %v3197_v11 = vadd.f32 %v3196_v39, %v3108_v31 }
 0x303   : > { %v3238_v55 = vmul.f32 %v5441_v50, %v3197_v11 }
 0x304   : > { %v3020_v30 = vpop.f32.mrf.mxu2 }
 0x305   : > { %v3274_v0 = vadd.f32 %v5448_v4, %v3238_v55  ;;  %v3021_v22 = vadd.f32 %v3020_v30, %v2932_v49  ;;  %v3109_v42 = vpop.f32.mrf.mxu3 }
 0x306   : > { %v2934_v32 = vpop.f32.mrf.mxu1 }
 0x307   : > { %v3530_v36 = vsel %vm3498_vm12, %v3274_v0, 0.0  ;;  %v3110_v43 = vadd.f32 %v3109_v42, %v3021_v22  ;;  %v2935_v14 = vadd.f32 %v2934_v32, %v5259_v2 }
 0x308   : > { %3562 = vst [vmem:[%s4576_s14 + $0xe0] sm:$0xff] %v3530_v36  ;;  %v3201_v10 = vpop.f32.mrf.mxu0 }
 0x309   : > { %v3199_v40 = vadd.f32 %v3198_v34, %v3110_v43 }
 0x30b   : > { %v3239_v20 = vmul.f32 %v5441_v50, %v3199_v40 }
 0x30c   : > { %v3023_v12 = vpop.f32.mrf.mxu2 }
 0x30d   : > { %v3275_v37 = vadd.f32 %v5448_v4, %v3239_v20  ;;  %v3024_v19 = vadd.f32 %v3023_v12, %v2935_v14  ;;  %v3112_v24 = vpop.f32.mrf.mxu3 }
 0x30e   : > { %v2936_v26 = vpop.f32.mrf.mxu1 }
 0x30f   : > { %v3531_v28 = vsel %vm3499_vm13, %v3275_v37, 0.0  ;;  %v3113_v23 = vadd.f32 %v3112_v24, %v3024_v19  ;;  %v2937_v29 = vadd.f32 %v2936_v26, %v5269_v63 }
 0x310   : > { %3563 = vst [vmem:[%s4576_s14 + $0xe8] sm:$0xff] %v3531_v28  ;;  %v3203_v7 = vpop.f32.mrf.mxu0 }
 0x311   : > { %v3202_v56 = vadd.f32 %v3201_v10, %v3113_v23 }
 0x313   : > { %v3240_v17 = vmul.f32 %v5441_v50, %v3202_v56 }
 0x314   : > { %v3025_v2 = vpop.f32.mrf.mxu2 }
 0x315   : > { %v3276_v48 = vadd.f32 %v5448_v4, %v3240_v17  ;;  %v3026_v60 = vadd.f32 %v3025_v2, %v2937_v29  ;;  %v3114_v45 = vpop.f32.mrf.mxu3 }
 0x317   : > { %v3532_v52 = vsel %vm3500_vm14, %v3276_v48, 0.0  ;;  %v3115_v9 = vadd.f32 %v3114_v45, %v3026_v60 }
 0x318   : > { %3564 = vst [vmem:[%s4576_s14 + $0xf0] sm:$0xff] %v3532_v52 }
 0x319   : > { %v3204_v16 = vadd.f32 %v3203_v7, %v3115_v9 }
 0x31b   : > { %v3241_v25 = vmul.f32 %v5441_v50, %v3204_v16 }
 0x31d   : > { %v3277_v35 = vadd.f32 %v5448_v4, %v3241_v25 }
 0x31f   : > { %v3533_v62 = vsel %vm3501_vm15, %v3277_v35, 0.0 }
 0x320   : > { %3565 = vst [vmem:[%s4576_s14 + $0xf8] sm:$0xff] %v3533_v62 }
 0x321 PF: > { %s15_s22 = sadd.s32 1, %s4494_s22   ;;  %s5525_s18 = smov %s4486_s20 }
 0x322   : > { %p12_p10 = scmp.ge.s32.totalorder %s15_s22, 18   ;;  %s5526_s19 = smov %s4490_s21 }
 0x323   : > { %s5527_s20 = smov %s5530_s23  ;;  %s5528_s21 = smov %s5534_s24 }
 0x324   :  { %14 = sbr.rel (!%p12_p10) target bundleno = 3 (0x3), region = 99 }

// kernel: hm_decoder_pallas.12
= control target key start
LH: loop header
LB: loop body
LE: loop exit
PB: predicated region body
PF: predicated region fallthrough
CT: control target
= control target key end

     0   :  { %s4560_s18 = smov 0   ;;  %s4562_s19 = smov 0   ;;  %s5554_s0 = inlined_call_operand.vmem [shape: f32[2,2048,128], index: 0, kind: input, shape index: {}]   ;;  %s5555_s1 = inlined_call_operand.vmem [shape: bf16[1152,128], index: 1, kind: input, shape index: {}]   ;;  %s5556_s2 = inlined_call_operand.vmem [shape: f32[1,128], index: 2, kind: input, shape index: {}]   ;;  %s5557_s3 = inlined_call_operand.vmem [shape: f32[1,128], index: 3, kind: input, shape index: {}]   ;;  %s5558_s4 = inlined_call_operand.vmem [shape: f32[2048,1], index: 4, kind: input, shape index: {}]   ;;  %s5559_s5 = inlined_call_operand.vmem [shape: f32[2,2048,128], index: 5, kind: output, shape index: {}]  }
   0x1   :  { %s4564_s20 = smov 0   ;;  %s4566_s21 = smov 0  }
   0x2   :  { %s4568_s22 = smov 0  }
   0x3 LB: > { %s27_s23 = sadd.s32 1, %s4518_s20  ;;  %s34_s24 = sadd.s32 1, %s4522_s21  ;;  %s4526_s22 = sphi %s4568_s22, %s15_s22   ;;  %s4522_s21 = sphi %s4566_s21, %s5564_s21   ;;  %s4518_s20 = sphi %s4564_s20, %s5563_s20   ;;  %s4514_s19 = sphi %s4562_s19, %s5562_s19   ;;  %s4510_s18 = sphi %s4560_s18, %s5561_s18  }
   0x4   : > { %p28_p0 = scmp.ge.s32.totalorder %s27_s23, 8  ;;  %p3779_p1 = scmp.ge.s32.totalorder %s4526_s22, 1 }
   0x5   : > { %p246_p2 = scmp.lt.s32.totalorder %s4526_s22, 17 }
   0x6   : > { %s5566_s23 = smov (%p28_p0, %s27_s23), 0  ;;  %s5568_s24 = smov (!%p28_p0, %s34_s24), %s4522_s21 }
   0x7   : > { %p247_p3 = pnand %p3779_p1, %p246_p2  ;;  %p36_p4 = scmp.ge.s32.totalorder %s5568_s24, 2 }
   0x8   : > { %p296_p5 = scmp.lt.s32.totalorder (!%p247_p3), %s4514_s19, 1  ;;  %s3782_s25 = sshll.u32 (!%p247_p3), %s4510_s18, 5 }
   0x9   : > { %s5570_s24 = smov (%p36_p4, %s5568_s24), 0  ;;  %250 = sbr.rel (%p247_p3) target bundleno = 803 (0x323), region = 40 }
   0xa   : > { %p312_p6 = scmp.lt.s32.totalorder (!%p247_p3), %s3782_s25, 255  ;;  %p330_p7 = scmp.eq.s32.totalorder (!%p247_p3), %s4510_s18, 0 }
   0xb   : > { %p331_p8 = scmp.eq.s32.totalorder (!%p247_p3), %s4510_s18, 7 }
   0xd   : > { %p4610_p9 = por (!%p247_p3), %p331_p8, %p330_p7 }
   0xe   : > { %s5572_s19 = smov (!%p296_p5, %s4514_s19), 1  ;;  %s5574_s25 = smov (!%p312_p6, %s3782_s25), 255  ;;  %v4528_v0 = vmov (%p4610_p9), 0.0  }
   0xf   : > { %s4342_s26 = sshll.u32 %s5572_s19, 11  ;;  %s3785_s27 = sshll.u32 %s5572_s19, 8 }
  0x10   : > { %s4597_s30 = scalar_lea.vmem %s5554_s0, %s4342_s26  ;;  %s3783_s6 = sshll.u32 %s5574_s25, 3 }
  0x11   : > { %s4602_s9 = scalar_lea.vmem %s5558_s4, %s3783_s6  ;;  %s326_s10 = sadd.s32 %s3785_s27, %s5574_s25 }
  0x12   : > { %s3786_s11 = sshll.u32 %s326_s10, 3  ;;  %335 = sbr.rel (!%p4610_p9) target bundleno = 52 (0x34), region = 44 }
  0x13   : > { %s4608_s14 = scalar_lea.vmem %s5559_s5, %s3786_s11 }
  0x14   : > { %336 = vst [vmem:[%s4608_s14] sm:$0xff] (%p4610_p9), %v4528_v0 }
  0x15   : > { %337 = vst [vmem:[%s4608_s14 + $0x8] sm:$0xff] (%p4610_p9), %v4528_v0 }
  0x16   : > { %338 = vst [vmem:[%s4608_s14 + $0x10] sm:$0xff] (%p4610_p9), %v4528_v0 }
  0x17   : > { %339 = vst [vmem:[%s4608_s14 + $0x18] sm:$0xff] %v4528_v0 }
  0x18   : > { %340 = vst [vmem:[%s4608_s14 + $0x20] sm:$0xff] %v4528_v0 }
  0x19   : > { %341 = vst [vmem:[%s4608_s14 + $0x28] sm:$0xff] %v4528_v0 }
  0x1a   : > { %342 = vst [vmem:[%s4608_s14 + $0x30] sm:$0xff] %v4528_v0 }
  0x1b   : > { %343 = vst [vmem:[%s4608_s14 + $0x38] sm:$0xff] %v4528_v0 }
  0x1c   : > { %344 = vst [vmem:[%s4608_s14 + $0x40] sm:$0xff] %v4528_v0 }
  0x1d   : > { %345 = vst [vmem:[%s4608_s14 + $0x48] sm:$0xff] %v4528_v0 }
  0x1e   : > { %346 = vst [vmem:[%s4608_s14 + $0x50] sm:$0xff] %v4528_v0 }
  0x1f   : > { %347 = vst [vmem:[%s4608_s14 + $0x58] sm:$0xff] %v4528_v0 }
  0x20   : > { %348 = vst [vmem:[%s4608_s14 + $0x60] sm:$0xff] %v4528_v0 }
  0x21   : > { %349 = vst [vmem:[%s4608_s14 + $0x68] sm:$0xff] %v4528_v0 }
  0x22   : > { %350 = vst [vmem:[%s4608_s14 + $0x70] sm:$0xff] %v4528_v0 }
  0x23   : > { %351 = vst [vmem:[%s4608_s14 + $0x78] sm:$0xff] %v4528_v0 }
  0x24   : > { %352 = vst [vmem:[%s4608_s14 + $0x80] sm:$0xff] %v4528_v0 }
  0x25   : > { %353 = vst [vmem:[%s4608_s14 + $0x88] sm:$0xff] %v4528_v0 }
  0x26   : > { %354 = vst [vmem:[%s4608_s14 + $0x90] sm:$0xff] %v4528_v0 }
  0x27   : > { %355 = vst [vmem:[%s4608_s14 + $0x98] sm:$0xff] %v4528_v0 }
  0x28   : > { %356 = vst [vmem:[%s4608_s14 + $0xa0] sm:$0xff] %v4528_v0 }
  0x29   : > { %357 = vst [vmem:[%s4608_s14 + $0xa8] sm:$0xff] %v4528_v0 }
  0x2a   : > { %358 = vst [vmem:[%s4608_s14 + $0xb0] sm:$0xff] %v4528_v0 }
  0x2b   : > { %359 = vst [vmem:[%s4608_s14 + $0xb8] sm:$0xff] %v4528_v0 }
  0x2c   : > { %360 = vst [vmem:[%s4608_s14 + $0xc0] sm:$0xff] %v4528_v0 }
  0x2d   : > { %361 = vst [vmem:[%s4608_s14 + $0xc8] sm:$0xff] %v4528_v0 }
  0x2e   : > { %362 = vst [vmem:[%s4608_s14 + $0xd0] sm:$0xff] %v4528_v0 }
  0x2f   : > { %363 = vst [vmem:[%s4608_s14 + $0xd8] sm:$0xff] %v4528_v0 }
  0x30   : > { %364 = vst [vmem:[%s4608_s14 + $0xe0] sm:$0xff] %v4528_v0 }
  0x31   : > { %365 = vst [vmem:[%s4608_s14 + $0xe8] sm:$0xff] %v4528_v0 }
  0x32   : > { %366 = vst [vmem:[%s4608_s14 + $0xf0] sm:$0xff] %v4528_v0 }
  0x33   : > { %367 = vst [vmem:[%s4608_s14 + $0xf8] sm:$0xff] %v4528_v0 }
  0x34 PF: > { %370 = sbr.rel (%p4610_p9) target bundleno = 803 (0x323), region = 48  ;;  %s3787_s6 = sshll.u32 (!%p4610_p9), %s4510_s18, 8 }
  0x35   : > { %s4667_s10 = scalar_lea.vmem (!%p4610_p9), %s4597_s30, %s3787_s6 }
  0x39   : > { %v4350_v1 = vld [vmem:[%s5555_s1 + $0x38] sm:$0xff]  ;;  %v4349_v2 = vld [vmem:[%s5555_s1 + $0x30] sm:$0xff]  ;;  %v4348_v3 = vld [vmem:[%s5555_s1 + $0x28] sm:$0xff] }
  0x3a   : > { %4415 = vmatpush.bf16.msra.mxu1 %v4350_v1  ;;  %4416 = vmatpush.bf16.msra.mxu2 %v4350_v1  ;;  %v4347_v4 = vld [vmem:[%s5555_s1 + $0x20] sm:$0xff]  ;;  %v4346_v5 = vld [vmem:[%s5555_s1 + $0x18] sm:$0xff]  ;;  %v4345_v6 = vld [vmem:[%s5555_s1 + $0x10] sm:$0xff] }
  0x3b   : > { %4417 = vmatpush.bf16.msra.mxu3 %v4350_v1  ;;  %2405 = vmatpush.bf16.msra.mxu0 %v4350_v1  ;;  %v3797_v7 = vld [vmem:[%s4667_s10 + $0x1a] sm:$0xff]  ;;  %v3798_v8 = vld [vmem:[%s4667_s10 + $0x22] sm:$0xff]  ;;  %v4365_v41 = vld [vmem:[%s5555_s1 + $0xb0] sm:$0xff] }
  0x3c   : > { %v3805_v9 = vld [vmem:[%s4667_s10 + $0x5a] sm:$0xff]  ;;  %v3806_v10 = vld [vmem:[%s4667_s10 + $0x62] sm:$0xff]  ;;  %v414_v15 = vpack.c.bf16 %v3797_v7, %v3797_v7  ;;  %v415_v16 = vpack.c.bf16 %v3798_v8, %v3798_v8  ;;  %v4373_v42 = vld [vmem:[%s5555_s1 + $0xf0] sm:$0xff] }
  0x3d   : > { %v3813_v11 = vld [vmem:[%s4667_s10 + $0x9a] sm:$0xff]  ;;  %v3814_v12 = vld [vmem:[%s4667_s10 + $0xa2] sm:$0xff]  ;;  %v422_v17 = vpack.c.bf16 %v3805_v9, %v3805_v9  ;;  %v423_v18 = vpack.c.bf16 %v3806_v10, %v3806_v10  ;;  %v4357_v43 = vld [vmem:[%s5555_s1 + $0x70] sm:$0xff] }
  0x3e   : > { %4418 = vmatpush.bf16.msra.mxu1 %v4349_v2  ;;  %4419 = vmatpush.bf16.msra.mxu2 %v4349_v2  ;;  %v3789_v13 = vld [vmem:[%s4667_s10 - $0x26] sm:$0xff]  ;;  %v3790_v14 = vld [vmem:[%s4667_s10 - $0x1e] sm:$0xff]  ;;  %v430_v19 = vpack.c.bf16 %v3813_v11, %v3813_v11  ;;  %v431_v21 = vpack.c.bf16 %v3814_v12, %v3814_v12  ;;  %v1005_v24 = vunpack.c.l.b16 %v414_v15  ;;  %v1006_v25 = vunpack.c.l.b16 %v415_v16  ;;  %v3799_v44 = vld [vmem:[%s4667_s10 + $0x2a] sm:$0xff] }
  0x3f   : > { %4420 = vmatpush.bf16.msra.mxu3 %v4349_v2  ;;  %2406 = vmatpush.bf16.msra.mxu0 %v4349_v2  ;;  %v4344_v20 = vld [vmem:[%s5555_s1 + $0x8] sm:$0xff]  ;;  %v406_v22 = vpack.c.bf16 %v3789_v13, %v3789_v13  ;;  %v407_v23 = vpack.c.bf16 %v3790_v14, %v3790_v14  ;;  %v1013_v26 = vunpack.c.l.b16 %v422_v17  ;;  %v1014_v27 = vunpack.c.l.b16 %v423_v18  ;;  %v4343_v28 = vld [vmem:[%s5555_s1] sm:$0xff]  ;;  %v4366_v33 = vld [vmem:[%s5555_s1 + $0xb8] sm:$0xff] }
  0x40   : > { %v1021_v29 = vunpack.c.l.b16 %v430_v19  ;;  %v1022_v30 = vunpack.c.l.b16 %v431_v21  ;;  %v4374_v34 = vld [vmem:[%s5555_s1 + $0xf8] sm:$0xff]  ;;  %v1033_v35 = vpack.c.b16 %v1006_v25, %v1005_v24  ;;  %v3807_v46 = vld [vmem:[%s4667_s10 + $0x6a] sm:$0xff]  ;;  %v416_v55 = vpack.c.bf16 %v3799_v44, %v3799_v44  ;;  %v4363_v1 = vld [vmem:[%s5555_s1 + $0xa0] sm:$0xff] }
  0x41   : > { %v997_v31 = vunpack.c.l.b16 %v406_v22  ;;  %v998_v32 = vunpack.c.l.b16 %v407_v23  ;;  %v1037_v36 = vpack.c.b16 %v1014_v27, %v1013_v26  ;;  %v4358_v39 = vld [vmem:[%s5555_s1 + $0x78] sm:$0xff]  ;;  %v3815_v48 = vld [vmem:[%s4667_s10 + $0xaa] sm:$0xff]  ;;  %v424_v57 = vpack.c.bf16 %v3807_v46, %v3807_v46  ;;  %v4371_v2 = vld [vmem:[%s5555_s1 + $0xe0] sm:$0xff] }
  0x42   : > { %4421 = vmatpush.bf16.msra.mxu1 %v4348_v3  ;;  %4422 = vmatpush.bf16.msra.mxu2 %v4348_v3  ;;  %v1041_v37 = vpack.c.b16 %v1022_v30, %v1021_v29  ;;  %v4382_v40 = vld [vmem:[%s5555_s1 + $0x138] sm:$0xff]  ;;  %v3791_v50 = vld [vmem:[%s4667_s10 - $0x16] sm:$0xff]  ;;  %v432_v59 = vpack.c.bf16 %v3815_v48, %v3815_v48  ;;  %v4355_v11 = vld [vmem:[%s5555_s1 + $0x60] sm:$0xff] }
  0x43   : > { %4423 = vmatpush.bf16.msra.mxu3 %v4348_v3  ;;  %2407 = vmatpush.bf16.msra.mxu0 %v4348_v3  ;;  %v1029_v38 = vpack.c.b16 %v998_v32, %v997_v31  ;;  %v3800_v45 = vld [vmem:[%s4667_s10 + $0x32] sm:$0xff]  ;;  %v4364_v53 = vld [vmem:[%s5555_s1 + $0xa8] sm:$0xff]  ;;  %v408_v61 = vpack.c.bf16 %v3791_v50, %v3791_v50  ;;  %v1007_v3 = vunpack.c.l.b16 %v416_v55  ;;  %v4379_v12 = vld [vmem:[%s5555_s1 + $0x120] sm:$0xff] }
  0x44   : > { %v3808_v47 = vld [vmem:[%s4667_s10 + $0x72] sm:$0xff]  ;;  %v4372_v54 = vld [vmem:[%s5555_s1 + $0xe8] sm:$0xff]  ;;  %v417_v56 = vpack.c.bf16 %v3800_v45, %v3800_v45  ;;  %v1023_v7 = vunpack.c.l.b16 %v432_v59  ;;  %v3801_v21 = vld [vmem:[%s4667_s10 + $0x3a] sm:$0xff] }
  0x45   : > { %v3816_v49 = vld [vmem:[%s4667_s10 + $0xb2] sm:$0xff]  ;;  %v425_v58 = vpack.c.bf16 %v3808_v47, %v3808_v47  ;;  %v4356_v63 = vld [vmem:[%s5555_s1 + $0x68] sm:$0xff]  ;;  %v999_v9 = vunpack.c.l.b16 %v408_v61  ;;  %v3809_v25 = vld [vmem:[%s4667_s10 + $0x7a] sm:$0xff] }
  0x46   : > { %4424 = vmatpush.bf16.msra.mxu1 %v4347_v4  ;;  %4425 = vmatpush.bf16.msra.mxu2 %v4347_v4  ;;  %v3792_v51 = vld [vmem:[%s4667_s10 - $0xe] sm:$0xff]  ;;  %v433_v60 = vpack.c.bf16 %v3816_v49, %v3816_v49  ;;  %v4380_v0 = vld [vmem:[%s5555_s1 + $0x128] sm:$0xff]  ;;  %v3817_v27 = vld [vmem:[%s4667_s10 + $0xba] sm:$0xff] }
  0x47   : > { %4426 = vmatpush.bf16.msra.mxu3 %v4347_v4  ;;  %2408 = vmatpush.bf16.msra.mxu0 %v4347_v4  ;;  %v4381_v52 = vld [vmem:[%s5555_s1 + $0x130] sm:$0xff]  ;;  %v409_v62 = vpack.c.bf16 %v3792_v51, %v3792_v51  ;;  %v1008_v4 = vunpack.c.l.b16 %v417_v56  ;;  %v4362_v13 = vld [vmem:[%s5555_s1 + $0x98] sm:$0xff]  ;;  %v3802_v24 = vld [vmem:[%s4667_s10 + $0x42] sm:$0xff] }
  0x48   : > { %v1024_v8 = vunpack.c.l.b16 %v433_v60  ;;  %v4370_v14 = vld [vmem:[%s5555_s1 + $0xd8] sm:$0xff]  ;;  %v4361_v22 = vld [vmem:[%s5555_s1 + $0x90] sm:$0xff]  ;;  %v3810_v26 = vld [vmem:[%s4667_s10 + $0x82] sm:$0xff] }
  0x49   : > { %v1000_v10 = vunpack.c.l.b16 %v409_v62  ;;  %v1034_v15 = vpack.c.b16 %v1008_v4, %v1007_v3  ;;  %v4354_v19 = vld [vmem:[%s5555_s1 + $0x58] sm:$0xff]  ;;  %v4369_v23 = vld [vmem:[%s5555_s1 + $0xd0] sm:$0xff]  ;;  %v3794_v30 = vld [vmem:[%s4667_s10 + $0x2] sm:$0xff] }
  0x4a   : > { %4427 = vmatpush.bf16.msra.mxu1 %v4346_v5  ;;  %4428 = vmatpush.bf16.msra.mxu2 %v4346_v5  ;;  %v1042_v17 = vpack.c.b16 %v1024_v8, %v1023_v7  ;;  %v3793_v29 = vld [vmem:[%s4667_s10 - $0x6] sm:$0xff]  ;;  %v4353_v31 = vld [vmem:[%s5555_s1 + $0x50] sm:$0xff]  ;;  %v4376_v44 = vld [vmem:[%s5555_s1 + $0x108] sm:$0xff] }
  0x4b   : > { %4429 = vmatpush.bf16.msra.mxu3 %v4346_v5  ;;  %2409 = vmatpush.bf16.msra.mxu0 %v4346_v5  ;;  %v1015_v5 = vunpack.c.l.b16 %v424_v57  ;;  %v1030_v18 = vpack.c.b16 %v1000_v10, %v999_v9  ;;  %v4377_v32 = vld [vmem:[%s5555_s1 + $0x110] sm:$0xff]  ;;  %v4359_v45 = vld [vmem:[%s5555_s1 + $0x80] sm:$0xff]  ;;  %v4398_v3 = vld [vmem:[%s5555_s1 + $0x1b8] sm:$0xff] }
  0x4c   : > { %v4367_v46 = vld [vmem:[%s5555_s1 + $0xc0] sm:$0xff]  ;;  %v3803_v61 = vld [vmem:[%s4667_s10 + $0x4a] sm:$0xff]  ;;  %v3804_v62 = vld [vmem:[%s4667_s10 + $0x52] sm:$0xff] }
  0x4d   : > { %v4351_v55 = vld [vmem:[%s5555_s1 + $0x40] sm:$0xff]  ;;  %v4406_v4 = vld [vmem:[%s5555_s1 + $0x1f8] sm:$0xff]  ;;  %v420_v9 = vpack.c.bf16 %v3803_v61, %v3803_v61  ;;  %v421_v10 = vpack.c.bf16 %v3804_v62, %v3804_v62  ;;  %v3890_v61 = vld [vmem:[%s4667_s10 + $0xf] sm:$0xff] }
  0x4e   : > { %4430 = vmatpush.bf16.msra.mxu1 %v4345_v6  ;;  %4431 = vmatpush.bf16.msra.mxu2 %v4345_v6  ;;  %v4375_v56 = vld [vmem:[%s5555_s1 + $0x100] sm:$0xff]  ;;  %v3796_v7 = vld [vmem:[%s4667_s10 + $0x12] sm:$0xff] }
  0x4f   : > { %4432 = vmatpush.bf16.msra.mxu3 %v4345_v6  ;;  %2410 = vmatpush.bf16.msra.mxu0 %v4345_v6  ;;  %v1016_v6 = vunpack.c.l.b16 %v425_v58  ;;  %v4414_v8 = vld [vmem:[%s5555_s1 + $0x238] sm:$0xff] }
  0x50   : > { %v3891_v62 = vld [vmem:[%s4667_s10 + $0x17] sm:$0xff] }
  0x51   : > { %v1038_v16 = vpack.c.b16 %v1016_v6, %v1015_v5  ;;  %v4390_v5 = vld [vmem:[%s5555_s1 + $0x178] sm:$0xff]  ;;  %v3795_v6 = vld [vmem:[%s4667_s10 + $0xa] sm:$0xff] }
  0x52   : > { %4433 = vmatpush.bf16.msra.mxu1 %v4344_v20  ;;  %4434 = vmatpush.bf16.msra.mxu2 %v4344_v20 }
  0x53   : > { %4435 = vmatpush.bf16.msra.mxu3 %v4344_v20  ;;  %2411 = vmatpush.bf16.msra.mxu0 %v4344_v20  ;;  %v4378_v20 = vld [vmem:[%s5555_s1 + $0x118] sm:$0xff] }
  0x56   : > { %4436 = vmatpush.bf16.msra.mxu1 %v4343_v28  ;;  %4437 = vmatpush.bf16.msra.mxu2 %v4343_v28 }
  0x57   : > { %4438 = vmatpush.bf16.msra.mxu3 %v4343_v28  ;;  %2412 = vmatpush.bf16.msra.mxu0 %v4343_v28  ;;  %v3818_v28 = vld [vmem:[%s4667_s10 + $0xc2] sm:$0xff] }
  0x59   : > { %2433 = vmatmul.bf16.vlgmr.msra.gmra.mxu1 %v1033_v35  ;;  %2453 = vmatmul.bf16.vlgmr.msra.gmra.mxu2 %v1037_v36  ;;  %v418_v35 = vpack.c.bf16 %v3801_v21, %v3801_v21  ;;  %v419_v36 = vpack.c.bf16 %v3802_v24, %v3802_v24 }
  0x5a   : > { %2583 = vmatpush.bf16.msrb.mxu2 %v4366_v33  ;;  %2473 = vmatmul.bf16.vlgmr.msra.gmra.mxu3 %v1041_v37  ;;  %v4360_v33 = vld [vmem:[%s5555_s1 + $0x88] sm:$0xff]  ;;  %v426_v37 = vpack.c.bf16 %v3809_v25, %v3809_v25 }
  0x5b   : > { %2672 = vmatpush.bf16.msrb.mxu3 %v4374_v34  ;;  %2413 = vmatmul.bf16.vlgmr.msra.gmra.mxu0 %v1029_v38  ;;  %v4368_v34 = vld [vmem:[%s5555_s1 + $0xc8] sm:$0xff]  ;;  %v427_v38 = vpack.c.bf16 %v3810_v26, %v3810_v26  ;;  %v1009_v47 = vunpack.c.l.b16 %v418_v35  ;;  %v1010_v48 = vunpack.c.l.b16 %v419_v36  ;;  %v637_v35 = vld [vmem:[%s4667_s10] sm:$0xff] }
  0x5c   : > { %2494 = vmatpush.bf16.msrb.mxu1 %v4358_v39  ;;  %2761 = vmatpush.bf16.msrb.mxu0 %v4382_v40  ;;  %v434_v39 = vpack.c.bf16 %v3817_v27, %v3817_v27  ;;  %v435_v40 = vpack.c.bf16 %v3818_v28, %v3818_v28  ;;  %v1017_v49 = vunpack.c.l.b16 %v426_v37  ;;  %v638_v36 = vld [vmem:[%s4667_s10 + $0x8] sm:$0xff] }
  0x5d   : > { %v1018_v50 = vunpack.c.l.b16 %v427_v38  ;;  %v1035_v57 = vpack.c.b16 %v1010_v48, %v1009_v47 }
  0x5e   : > { %2584 = vmatpush.bf16.msrb.mxu2 %v4365_v41  ;;  %v410_v41 = vpack.c.bf16 %v3793_v29, %v3793_v29  ;;  %v1025_v51 = vunpack.c.l.b16 %v434_v39  ;;  %v3822_v29 = vld [vmem:[%s4667_s10 - $0x25] sm:$0xff] }
  0x5f   : > { %2673 = vmatpush.bf16.msrb.mxu3 %v4373_v42  ;;  %v411_v42 = vpack.c.bf16 %v3794_v30, %v3794_v30  ;;  %v1039_v58 = vpack.c.b16 %v1018_v50, %v1017_v49  ;;  %v3823_v30 = vld [vmem:[%s4667_s10 - $0x1d] sm:$0xff]  ;;  %v472_v37 = vpack.c.bf16 %v3822_v29, %v3822_v29 }
  0x60   : > { %2495 = vmatpush.bf16.msrb.mxu1 %v4357_v43  ;;  %2762 = vmatpush.bf16.msrb.mxu0 %v4381_v52  ;;  %v4352_v43 = vld [vmem:[%s5555_s1 + $0x48] sm:$0xff]  ;;  %v1026_v52 = vunpack.c.l.b16 %v435_v40  ;;  %v473_v38 = vpack.c.bf16 %v3823_v30, %v3823_v30  ;;  %v3892_v29 = vld [vmem:[%s4667_s10 + $0x1f] sm:$0xff] }
  0x61   : > { %v3893_v30 = vld [vmem:[%s4667_s10 + $0x27] sm:$0xff] }
  0x62   : > { %2585 = vmatpush.bf16.msrb.mxu2 %v4364_v53  ;;  %v1001_v53 = vunpack.c.l.b16 %v410_v41  ;;  %v1043_v59 = vpack.c.b16 %v1026_v52, %v1025_v51 }
  0x63   : > { %2674 = vmatpush.bf16.msrb.mxu3 %v4372_v54  ;;  %v1002_v54 = vunpack.c.l.b16 %v411_v42 }
  0x64   : > { %2496 = vmatpush.bf16.msrb.mxu1 %v4356_v63  ;;  %2763 = vmatpush.bf16.msrb.mxu0 %v4380_v0  ;;  %v3811_v63 = vld [vmem:[%s4667_s10 + $0x8a] sm:$0xff]  ;;  %v3812_v0 = vld [vmem:[%s4667_s10 + $0x92] sm:$0xff] }
  0x65   : > { %v1031_v60 = vpack.c.b16 %v1002_v54, %v1001_v53 }
  0x66   : > { %2586 = vmatpush.bf16.msrb.mxu2 %v4363_v1  ;;  %v3819_v1 = vld [vmem:[%s4667_s10 + $0xca] sm:$0xff] }
  0x67   : > { %2675 = vmatpush.bf16.msrb.mxu3 %v4371_v2  ;;  %v3820_v2 = vld [vmem:[%s4667_s10 + $0xd2] sm:$0xff] }
  0x68   : > { %2497 = vmatpush.bf16.msrb.mxu1 %v4355_v11  ;;  %2764 = vmatpush.bf16.msrb.mxu0 %v4379_v12  ;;  %v428_v11 = vpack.c.bf16 %v3811_v63, %v3811_v63  ;;  %v429_v12 = vpack.c.bf16 %v3812_v0, %v3812_v0  ;;  %v4397_v63 = vld [vmem:[%s5555_s1 + $0x1b0] sm:$0xff] }
  0x69   : > { %2438 = vmatmul.bf16.gmra.mxu1 %v1034_v15  ;;  %2458 = vmatmul.bf16.gmra.mxu2 %v1038_v16  ;;  %v412_v15 = vpack.c.bf16 %v3795_v6, %v3795_v6  ;;  %v413_v16 = vpack.c.bf16 %v3796_v7, %v3796_v7  ;;  %v4405_v0 = vld [vmem:[%s5555_s1 + $0x1f0] sm:$0xff] }
  0x6a   : > { %2587 = vmatpush.bf16.msrb.mxu2 %v4362_v13  ;;  %2478 = vmatmul.bf16.gmra.mxu3 %v1042_v17  ;;  %v436_v13 = vpack.c.bf16 %v3819_v1, %v3819_v1  ;;  %v1011_v17 = vunpack.c.l.b16 %v420_v9  ;;  %v4389_v1 = vld [vmem:[%s5555_s1 + $0x170] sm:$0xff]  ;;  %v606_v9 = vpack.c.bf16 %v3890_v61, %v3890_v61 }
  0x6b   : > { %2676 = vmatpush.bf16.msrb.mxu3 %v4370_v14  ;;  %2418 = vmatmul.bf16.gmra.mxu0 %v1030_v18  ;;  %v437_v14 = vpack.c.bf16 %v3820_v2, %v3820_v2  ;;  %v1012_v18 = vunpack.c.l.b16 %v421_v10  ;;  %v1004_v24 = vunpack.c.l.b16 %v413_v16  ;;  %v639_v2 = vld [vmem:[%s4667_s10 + $0x10] sm:$0xff]  ;;  %v607_v10 = vpack.c.bf16 %v3891_v62, %v3891_v62  ;;  %v644_v62 = vld [vmem:[%s4667_s10 + $0x38] sm:$0xff] }
  0x6c   : > { %2498 = vmatpush.bf16.msrb.mxu1 %v4354_v19  ;;  %2765 = vmatpush.bf16.msrb.mxu0 %v4378_v20  ;;  %v1019_v19 = vunpack.c.l.b16 %v428_v11  ;;  %v1020_v20 = vunpack.c.l.b16 %v429_v12  ;;  %v1027_v21 = vunpack.c.l.b16 %v436_v13  ;;  %v671_v11 = vpack.c.bf16 %v639_v2, %v639_v2  ;;  %v643_v61 = vld [vmem:[%s4667_s10 + $0x30] sm:$0xff] }
  0x6d   : > { %v1036_v25 = vpack.c.b16 %v1012_v18, %v1011_v17  ;;  %v1287_v17 = vunpack.c.l.b16 %v606_v9  ;;  %v1288_v18 = vunpack.c.l.b16 %v607_v10 }
  0x6e   : > { %2588 = vmatpush.bf16.msrb.mxu2 %v4361_v22  ;;  %v1028_v22 = vunpack.c.l.b16 %v437_v14  ;;  %v1040_v26 = vpack.c.b16 %v1020_v20, %v1019_v19  ;;  %v1383_v19 = vunpack.c.l.b16 %v671_v11 }
  0x6f   : > { %2677 = vmatpush.bf16.msrb.mxu3 %v4369_v23  ;;  %v1003_v23 = vunpack.c.l.b16 %v412_v15 }
  0x70   : > { %2499 = vmatpush.bf16.msrb.mxu1 %v4353_v31  ;;  %2766 = vmatpush.bf16.msrb.mxu0 %v4377_v32  ;;  %v1044_v27 = vpack.c.b16 %v1028_v22, %v1027_v21  ;;  %v3855_v31 = vld [vmem:[%s4667_s10 - $0x24] sm:$0xff]  ;;  %v3856_v32 = vld [vmem:[%s4667_s10 - $0x1c] sm:$0xff] }
  0x71   : > { %v1032_v28 = vpack.c.b16 %v1004_v24, %v1003_v23  ;;  %v538_v39 = vpack.c.bf16 %v3855_v31, %v3855_v31  ;;  %v539_v40 = vpack.c.bf16 %v3856_v32, %v3856_v32  ;;  %v1318_v23 = vpack.c.b16 %v1288_v18, %v1287_v17  ;;  %v641_v31 = vld [vmem:[%s4667_s10 + $0x20] sm:$0xff]  ;;  %v642_v32 = vld [vmem:[%s4667_s10 + $0x28] sm:$0xff] }
  0x72   : > { %2589 = vmatpush.bf16.msrb.mxu2 %v4360_v33  ;;  %v3888_v33 = vld [vmem:[%s4667_s10 - $0x1] sm:$0xff] }
  0x73   : > { %2678 = vmatpush.bf16.msrb.mxu3 %v4368_v34  ;;  %v3889_v34 = vld [vmem:[%s4667_s10 + $0x7] sm:$0xff]  ;;  %v604_v41 = vpack.c.bf16 %v3888_v33, %v3888_v33  ;;  %v1189_v47 = vunpack.c.l.b16 %v538_v39  ;;  %v1190_v48 = vunpack.c.l.b16 %v539_v40  ;;  %v673_v39 = vpack.c.bf16 %v641_v31, %v641_v31 }
  0x74   : > { %2500 = vmatpush.bf16.msrb.mxu1 %v4352_v43  ;;  %2767 = vmatpush.bf16.msrb.mxu0 %v4376_v44  ;;  %v605_v42 = vpack.c.bf16 %v3889_v34, %v3889_v34  ;;  %v669_v43 = vpack.c.bf16 %v637_v35, %v637_v35  ;;  %v670_v44 = vpack.c.bf16 %v638_v36, %v638_v36 }
  0x75   : > { %v1285_v49 = vunpack.c.l.b16 %v604_v41  ;;  %v1221_v54 = vpack.c.b16 %v1190_v48, %v1189_v47  ;;  %v674_v40 = vpack.c.bf16 %v642_v32, %v642_v32  ;;  %v1385_v47 = vunpack.c.l.b16 %v673_v39 }
  0x76   : > { %2590 = vmatpush.bf16.msrb.mxu2 %v4359_v45  ;;  %v1093_v45 = vunpack.c.l.b16 %v472_v37  ;;  %v1286_v50 = vunpack.c.l.b16 %v605_v42  ;;  %v1381_v51 = vunpack.c.l.b16 %v669_v43  ;;  %v1382_v52 = vunpack.c.l.b16 %v670_v44 }
  0x77   : > { %2679 = vmatpush.bf16.msrb.mxu3 %v4367_v46  ;;  %v1094_v46 = vunpack.c.l.b16 %v473_v38  ;;  %v608_v37 = vpack.c.bf16 %v3892_v29, %v3892_v29  ;;  %v609_v38 = vpack.c.bf16 %v3893_v30, %v3893_v30  ;;  %v1386_v48 = vunpack.c.l.b16 %v674_v40 }
  0x78   : > { %2501 = vmatpush.bf16.msrb.mxu1 %v4351_v55  ;;  %2768 = vmatpush.bf16.msrb.mxu0 %v4375_v56  ;;  %v1317_v55 = vpack.c.b16 %v1286_v50, %v1285_v49  ;;  %v1413_v56 = vpack.c.b16 %v1382_v52, %v1381_v51 }
  0x79   : > { %2443 = vmatmul.bf16.gmra.mxu1 %v1035_v57  ;;  %2463 = vmatmul.bf16.gmra.mxu2 %v1039_v58  ;;  %v1125_v53 = vpack.c.b16 %v1094_v46, %v1093_v45  ;;  %v3824_v57 = vld [vmem:[%s4667_s10 - $0x15] sm:$0xff]  ;;  %v3825_v58 = vld [vmem:[%s4667_s10 - $0xd] sm:$0xff]  ;;  %v1289_v45 = vunpack.c.l.b16 %v608_v37  ;;  %v1290_v46 = vunpack.c.l.b16 %v609_v38  ;;  %v1415_v52 = vpack.c.b16 %v1386_v48, %v1385_v47 }
  0x7a   : > { %2483 = vmatmul.bf16.gmra.mxu3 %v1043_v59  ;;  %2939 = vmatpush.bf16.msra.mxu2 %v4398_v3  ;;  %v3857_v59 = vld [vmem:[%s4667_s10 - $0x14] sm:$0xff]  ;;  %v640_v3 = vld [vmem:[%s4667_s10 + $0x18] sm:$0xff]  ;;  %v475_v6 = vpack.c.bf16 %v3825_v58, %v3825_v58 }
  0x7b   : > { %2423 = vmatmul.bf16.gmra.mxu0 %v1031_v60  ;;  %3028 = vmatpush.bf16.msra.mxu3 %v4406_v4  ;;  %v3858_v60 = vld [vmem:[%s4667_s10 - $0xc] sm:$0xff]  ;;  %v540_v7 = vpack.c.bf16 %v3857_v59, %v3857_v59  ;;  %v672_v12 = vpack.c.bf16 %v640_v3, %v640_v3  ;;  %v1319_v51 = vpack.c.b16 %v1290_v46, %v1289_v45  ;;  %v4396_v58 = vld [vmem:[%s5555_s1 + $0x1a8] sm:$0xff] }
  0x7c   : > { %2850 = vmatpush.bf16.msra.mxu1 %v4390_v5  ;;  %3117 = vmatpush.bf16.msra.mxu0 %v4414_v8  ;;  %v4413_v4 = vld [vmem:[%s5555_s1 + $0x230] sm:$0xff]  ;;  %v474_v5 = vpack.c.bf16 %v3824_v57, %v3824_v57  ;;  %v541_v8 = vpack.c.bf16 %v3858_v60, %v3858_v60  ;;  %v1096_v14 = vunpack.c.l.b16 %v475_v6  ;;  %v4404_v59 = vld [vmem:[%s5555_s1 + $0x1e8] sm:$0xff]  ;;  %v675_v6 = vpack.c.bf16 %v643_v61, %v643_v61 }
  0x7d   : > { %v1191_v15 = vunpack.c.l.b16 %v540_v7  ;;  %v1384_v20 = vunpack.c.l.b16 %v672_v12  ;;  %v3894_v57 = vld [vmem:[%s4667_s10 + $0x2f] sm:$0xff]  ;;  %v3895_v60 = vld [vmem:[%s4667_s10 + $0x37] sm:$0xff]  ;;  %v676_v7 = vpack.c.bf16 %v644_v62, %v644_v62 }
  0x7e   : > { %2940 = vmatpush.bf16.msra.mxu2 %v4397_v63  ;;  %v1095_v13 = vunpack.c.l.b16 %v474_v5  ;;  %v1192_v16 = vunpack.c.l.b16 %v541_v8  ;;  %v4388_v3 = vld [vmem:[%s5555_s1 + $0x168] sm:$0xff]  ;;  %v611_v5 = vpack.c.bf16 %v3895_v60, %v3895_v60  ;;  %v648_v60 = vld [vmem:[%s4667_s10 + $0x58] sm:$0xff] }
  0x7f   : > { %3029 = vmatpush.bf16.msra.mxu3 %v4405_v0  ;;  %v1414_v24 = vpack.c.b16 %v1384_v20, %v1383_v19  ;;  %v4412_v8 = vld [vmem:[%s5555_s1 + $0x228] sm:$0xff] }
  0x80   : > { %2851 = vmatpush.bf16.msra.mxu1 %v4389_v1  ;;  %3118 = vmatpush.bf16.msra.mxu0 %v4413_v4  ;;  %v1126_v21 = vpack.c.b16 %v1096_v14, %v1095_v13  ;;  %v1222_v22 = vpack.c.b16 %v1192_v16, %v1191_v15  ;;  %v610_v4 = vpack.c.bf16 %v3894_v57, %v3894_v57  ;;  %v1292_v14 = vunpack.c.l.b16 %v611_v5  ;;  %v4403_v57 = vld [vmem:[%s5555_s1 + $0x1e0] sm:$0xff] }
  0x81   : > { %v1387_v15 = vunpack.c.l.b16 %v675_v6  ;;  %v1388_v16 = vunpack.c.l.b16 %v676_v7 }
  0x82   : > { %2941 = vmatpush.bf16.msra.mxu2 %v4396_v58  ;;  %v1291_v13 = vunpack.c.l.b16 %v610_v4  ;;  %v3899_v58 = vld [vmem:[%s4667_s10 + $0x57] sm:$0xff] }
  0x83   : > { %3030 = vmatpush.bf16.msra.mxu3 %v4404_v59  ;;  %v1416_v20 = vpack.c.b16 %v1388_v16, %v1387_v15  ;;  %v647_v59 = vld [vmem:[%s4667_s10 + $0x50] sm:$0xff]  ;;  %v615_v6 = vpack.c.bf16 %v3899_v58, %v3899_v58 }
  0x84   : > { %2852 = vmatpush.bf16.msra.mxu1 %v4388_v3  ;;  %3119 = vmatpush.bf16.msra.mxu0 %v4412_v8  ;;  %v1320_v19 = vpack.c.b16 %v1292_v14, %v1291_v13  ;;  %v4387_v3 = vld [vmem:[%s5555_s1 + $0x160] sm:$0xff]  ;;  %v679_v7 = vpack.c.bf16 %v647_v59, %v647_v59  ;;  %v680_v8 = vpack.c.bf16 %v648_v60, %v648_v60 }
  0x85   : > { %v1296_v16 = vunpack.c.l.b16 %v615_v6  ;;  %v3869_v6 = vld [vmem:[%s4667_s10 + $0x4c] sm:$0xff] }
  0x87   : > { %3031 = vmatpush.bf16.msra.mxu3 %v4403_v57 }
  0x88   : > { %2853 = vmatpush.bf16.msra.mxu1 %v4387_v3  ;;  %v3836_v3 = vld [vmem:[%s4667_s10 + $0x4b] sm:$0xff] }
  0x89   : > { %2448 = vmatmul.bf16.gmra.mxu1 %v1036_v25  ;;  %2468 = vmatmul.bf16.gmra.mxu2 %v1040_v26  ;;  %v3826_v25 = vld [vmem:[%s4667_s10 - $0x5] sm:$0xff]  ;;  %v3827_v26 = vld [vmem:[%s4667_s10 + $0x3] sm:$0xff] }
  0x8a   : > { %2488 = vmatmul.bf16.gmra.mxu3 %v1044_v27  ;;  %v3859_v27 = vld [vmem:[%s4667_s10 - $0x4] sm:$0xff]  ;;  %v476_v33 = vpack.c.bf16 %v3826_v25, %v3826_v25  ;;  %v477_v34 = vpack.c.bf16 %v3827_v26, %v3827_v26  ;;  %v3897_v26 = vld [vmem:[%s4667_s10 + $0x47] sm:$0xff] }
  0x8b   : > { %2428 = vmatmul.bf16.gmra.mxu0 %v1032_v28  ;;  %v3860_v28 = vld [vmem:[%s4667_s10 + $0x4] sm:$0xff]  ;;  %v542_v35 = vpack.c.bf16 %v3859_v27, %v3859_v27 }
  0x8c   : > { %v543_v36 = vpack.c.bf16 %v3860_v28, %v3860_v28  ;;  %v1097_v41 = vunpack.c.l.b16 %v476_v33  ;;  %v1098_v42 = vunpack.c.l.b16 %v477_v34  ;;  %v3896_v25 = vld [vmem:[%s4667_s10 + $0x3f] sm:$0xff]  ;;  %v646_v28 = vld [vmem:[%s4667_s10 + $0x48] sm:$0xff]  ;;  %v613_v34 = vpack.c.bf16 %v3897_v26, %v3897_v26 }
  0x8d   : > { %v1193_v43 = vunpack.c.l.b16 %v542_v35  ;;  %v645_v27 = vld [vmem:[%s4667_s10 + $0x40] sm:$0xff]  ;;  %v612_v33 = vpack.c.bf16 %v3896_v25, %v3896_v25 }
  0x8e   : > { %v1194_v44 = vunpack.c.l.b16 %v543_v36  ;;  %v1127_v49 = vpack.c.b16 %v1098_v42, %v1097_v41  ;;  %v677_v35 = vpack.c.bf16 %v645_v27, %v645_v27  ;;  %v678_v36 = vpack.c.bf16 %v646_v28, %v646_v28  ;;  %v3834_v27 = vld [vmem:[%s4667_s10 + $0x3b] sm:$0xff]  ;;  %v3835_v28 = vld [vmem:[%s4667_s10 + $0x43] sm:$0xff] }
  0x8f   : > { %v1293_v41 = vunpack.c.l.b16 %v612_v33  ;;  %v1294_v42 = vunpack.c.l.b16 %v613_v34  ;;  %v649_v33 = vld [vmem:[%s4667_s10 + $0x60] sm:$0xff]  ;;  %v650_v34 = vld [vmem:[%s4667_s10 + $0x68] sm:$0xff] }
  0x90   : > { %v1223_v50 = vpack.c.b16 %v1194_v44, %v1193_v43  ;;  %v1389_v43 = vunpack.c.l.b16 %v677_v35  ;;  %v1390_v44 = vunpack.c.l.b16 %v678_v36 }
  0x91   : > { %v1321_v48 = vpack.c.b16 %v1294_v42, %v1293_v41 }
  0x99   : > { %2502 = vmatmul.bf16.vlgmr.msrb.gmra.mxu1 %v1125_v53  ;;  %2591 = vmatmul.bf16.vlgmr.msrb.gmra.mxu2 %v1221_v54  ;;  %v3828_v53 = vld [vmem:[%s4667_s10 + $0xb] sm:$0xff]  ;;  %v3829_v54 = vld [vmem:[%s4667_s10 + $0x13] sm:$0xff] }
  0x9a   : > { %2680 = vmatmul.bf16.vlgmr.msrb.gmra.mxu3 %v1317_v55  ;;  %v3861_v55 = vld [vmem:[%s4667_s10 + $0xc] sm:$0xff]  ;;  %v478_v63 = vpack.c.bf16 %v3828_v53, %v3828_v53  ;;  %v479_v0 = vpack.c.bf16 %v3829_v54, %v3829_v54  ;;  %v3866_v54 = vld [vmem:[%s4667_s10 + $0x34] sm:$0xff] }
  0x9b   : > { %2769 = vmatmul.bf16.vlgmr.msrb.gmra.mxu0 %v1413_v56  ;;  %v3862_v56 = vld [vmem:[%s4667_s10 + $0x14] sm:$0xff]  ;;  %v544_v1 = vpack.c.bf16 %v3861_v55, %v3861_v55  ;;  %v3865_v53 = vld [vmem:[%s4667_s10 + $0x2c] sm:$0xff] }
  0x9c   : > { %v545_v2 = vpack.c.bf16 %v3862_v56, %v3862_v56  ;;  %v1099_v9 = vunpack.c.l.b16 %v478_v63  ;;  %v1100_v10 = vunpack.c.l.b16 %v479_v0  ;;  %v3898_v55 = vld [vmem:[%s4667_s10 + $0x4f] sm:$0xff]  ;;  %v4395_v56 = vld [vmem:[%s5555_s1 + $0x1a0] sm:$0xff] }
  0x9d   : > { %v1195_v11 = vunpack.c.l.b16 %v544_v1  ;;  %2942 = vmatpush.bf16.msra.mxu2 %v4395_v56  ;;  %v548_v1 = vpack.c.bf16 %v3865_v53, %v3865_v53  ;;  %v614_v5 = vpack.c.bf16 %v3898_v55, %v3898_v55 }
  0x9e   : > { %v1196_v12 = vunpack.c.l.b16 %v545_v2  ;;  %v1128_v17 = vpack.c.b16 %v1100_v10, %v1099_v9  ;;  %v549_v2 = vpack.c.bf16 %v3866_v54, %v3866_v54  ;;  %v4411_v10 = vld [vmem:[%s5555_s1 + $0x220] sm:$0xff] }
  0x9f   : > { %v1199_v13 = vunpack.c.l.b16 %v548_v1  ;;  %3120 = vmatpush.bf16.msra.mxu0 %v4411_v10  ;;  %v1295_v15 = vunpack.c.l.b16 %v614_v5  ;;  %v3837_v5 = vld [vmem:[%s4667_s10 + $0x53] sm:$0xff] }
  0xa0   : > { %v1224_v18 = vpack.c.b16 %v1196_v12, %v1195_v11  ;;  %v1200_v14 = vunpack.c.l.b16 %v549_v2  ;;  %v4394_v10 = vld [vmem:[%s5555_s1 + $0x198] sm:$0xff] }
  0xa1   : > { %2943 = vmatpush.bf16.msra.mxu2 %v4394_v10 }
  0xa9   : > { %2507 = vmatmul.bf16.gmra.mxu1 %v1126_v21  ;;  %2596 = vmatmul.bf16.gmra.mxu2 %v1222_v22  ;;  %v3830_v21 = vld [vmem:[%s4667_s10 + $0x1b] sm:$0xff]  ;;  %v3831_v22 = vld [vmem:[%s4667_s10 + $0x23] sm:$0xff] }
  0xaa   : > { %2685 = vmatmul.bf16.gmra.mxu3 %v1318_v23  ;;  %v3863_v23 = vld [vmem:[%s4667_s10 + $0x1c] sm:$0xff]  ;;  %v480_v29 = vpack.c.bf16 %v3830_v21, %v3830_v21  ;;  %v481_v30 = vpack.c.bf16 %v3831_v22, %v3831_v22  ;;  %v1226_v22 = vpack.c.b16 %v1200_v14, %v1199_v13  ;;  %v651_v13 = vld [vmem:[%s4667_s10 + $0x70] sm:$0xff] }
  0xab   : > { %2774 = vmatmul.bf16.gmra.mxu0 %v1414_v24  ;;  %v3864_v24 = vld [vmem:[%s4667_s10 + $0x24] sm:$0xff]  ;;  %v546_v31 = vpack.c.bf16 %v3863_v23, %v3863_v23  ;;  %v652_v14 = vld [vmem:[%s4667_s10 + $0x78] sm:$0xff] }
  0xac   : > { %v547_v32 = vpack.c.bf16 %v3864_v24, %v3864_v24  ;;  %v1101_v37 = vunpack.c.l.b16 %v480_v29  ;;  %v1102_v38 = vunpack.c.l.b16 %v481_v30  ;;  %v1322_v24 = vpack.c.b16 %v1296_v16, %v1295_v15  ;;  %v3867_v29 = vld [vmem:[%s4667_s10 + $0x3c] sm:$0xff]  ;;  %v3868_v30 = vld [vmem:[%s4667_s10 + $0x44] sm:$0xff] }
  0xad   : > { %v1197_v39 = vunpack.c.l.b16 %v546_v31  ;;  %v3900_v31 = vld [vmem:[%s4667_s10 + $0x5f] sm:$0xff] }
  0xae   : > { %v1198_v40 = vunpack.c.l.b16 %v547_v32  ;;  %v1129_v45 = vpack.c.b16 %v1102_v38, %v1101_v37  ;;  %v3901_v32 = vld [vmem:[%s4667_s10 + $0x67] sm:$0xff]  ;;  %v484_v37 = vpack.c.bf16 %v3834_v27, %v3834_v27  ;;  %v485_v38 = vpack.c.bf16 %v3835_v28, %v3835_v28 }
  0xaf   : > { %v616_v42 = vpack.c.bf16 %v3900_v31, %v3900_v31  ;;  %v683_v28 = vpack.c.bf16 %v651_v13, %v651_v13  ;;  %v4386_v31 = vld [vmem:[%s5555_s1 + $0x158] sm:$0xff] }
  0xb0   : > { %v1225_v46 = vpack.c.b16 %v1198_v40, %v1197_v39  ;;  %v550_v39 = vpack.c.bf16 %v3867_v29, %v3867_v29  ;;  %v551_v40 = vpack.c.bf16 %v3868_v30, %v3868_v30  ;;  %v684_v29 = vpack.c.bf16 %v652_v14, %v652_v14  ;;  %2854 = vmatpush.bf16.msra.mxu1 %v4386_v31 }
  0xb1   : > { %v1297_v53 = vunpack.c.l.b16 %v616_v42  ;;  %v1395_v42 = vunpack.c.l.b16 %v683_v28 }
  0xb9   : > { %2512 = vmatmul.bf16.gmra.mxu1 %v1127_v49  ;;  %2601 = vmatmul.bf16.gmra.mxu2 %v1223_v50  ;;  %v1417_v49 = vpack.c.b16 %v1390_v44, %v1389_v43  ;;  %v617_v43 = vpack.c.bf16 %v3901_v32, %v3901_v32  ;;  %v681_v44 = vpack.c.bf16 %v649_v33, %v649_v33  ;;  %v4410_v32 = vld [vmem:[%s5555_s1 + $0x218] sm:$0xff] }
  0xba   : > { %2690 = vmatmul.bf16.gmra.mxu3 %v1319_v51  ;;  %v3832_v51 = vld [vmem:[%s4667_s10 + $0x2b] sm:$0xff]  ;;  %3121 = vmatpush.bf16.msra.mxu0 %v4410_v32 }
  0xbb   : > { %2779 = vmatmul.bf16.gmra.mxu0 %v1415_v52  ;;  %v3833_v52 = vld [vmem:[%s4667_s10 + $0x33] sm:$0xff]  ;;  %v482_v63 = vpack.c.bf16 %v3832_v51, %v3832_v51  ;;  %v1201_v51 = vunpack.c.l.b16 %v550_v39  ;;  %v1298_v54 = vunpack.c.l.b16 %v617_v43  ;;  %v1393_v55 = vunpack.c.l.b16 %v681_v44 }
  0xbc   : > { %v483_v0 = vpack.c.bf16 %v3833_v52, %v3833_v52  ;;  %v1202_v52 = vunpack.c.l.b16 %v551_v40  ;;  %v1396_v43 = vunpack.c.l.b16 %v684_v29 }
  0xbd   : > { %v1103_v11 = vunpack.c.l.b16 %v482_v63 }
  0xbe   : > { %v1104_v12 = vunpack.c.l.b16 %v483_v0  ;;  %v1227_v60 = vpack.c.b16 %v1202_v52, %v1201_v51  ;;  %v1323_v0 = vpack.c.b16 %v1298_v54, %v1297_v53  ;;  %v1420_v53 = vpack.c.b16 %v1396_v43, %v1395_v42 }
  0xc0   : > { %v1130_v21 = vpack.c.b16 %v1104_v12, %v1103_v11  ;;  %v4402_v11 = vld [vmem:[%s5555_s1 + $0x1d8] sm:$0xff] }
  0xc1   : > { %v3903_v12 = vld [vmem:[%s4667_s10 + $0x77] sm:$0xff]  ;;  %3032 = vmatpush.bf16.msra.mxu3 %v4402_v11 }
  0xc2   : > { %v619_v27 = vpack.c.bf16 %v3903_v12, %v3903_v12 }
  0xc4   : > { %v1300_v40 = vunpack.c.l.b16 %v619_v27 }
  0xc9   : > { %2517 = vmatmul.bf16.gmra.mxu1 %v1128_v17  ;;  %2606 = vmatmul.bf16.gmra.mxu2 %v1224_v18  ;;  %v1391_v17 = vunpack.c.l.b16 %v679_v7  ;;  %v1392_v18 = vunpack.c.l.b16 %v680_v8  ;;  %v3870_v7 = vld [vmem:[%s4667_s10 + $0x54] sm:$0xff] }
  0xca   : > { %2695 = vmatmul.bf16.gmra.mxu3 %v1320_v19  ;;  %v3902_v8 = vld [vmem:[%s4667_s10 + $0x6f] sm:$0xff] }
  0xcb   : > { %2784 = vmatmul.bf16.gmra.mxu0 %v1416_v20  ;;  %v1418_v25 = vpack.c.b16 %v1392_v18, %v1391_v17  ;;  %v486_v17 = vpack.c.bf16 %v3836_v3, %v3836_v3  ;;  %v487_v18 = vpack.c.bf16 %v3837_v5, %v3837_v5  ;;  %v653_v3 = vld [vmem:[%s4667_s10 + $0x80] sm:$0xff]  ;;  %v654_v5 = vld [vmem:[%s4667_s10 + $0x88] sm:$0xff] }
  0xcd   : > { %v1107_v33 = vunpack.c.l.b16 %v486_v17 }
  0xd6   : > { %v4882_v47 = vpop.f32.mrf.mxu1 }
  0xd8   : > { %v4884_v50 = vpop.f32.mrf.mxu0 }
  0xd9   : > { %2522 = vmatmul.bf16.gmra.mxu1 %v1129_v45  ;;  %2611 = vmatmul.bf16.gmra.mxu2 %v1225_v46  ;;  %v682_v45 = vpack.c.bf16 %v650_v34, %v650_v34  ;;  %v1108_v34 = vunpack.c.l.b16 %v487_v18  ;;  %v685_v18 = vpack.c.bf16 %v653_v3, %v653_v3  ;;  %v3907_v3 = vld [vmem:[%s4667_s10 + $0x97] sm:$0xff] }
  0xda   : > { %2700 = vmatmul.bf16.gmra.mxu3 %v1321_v48  ;;  %v1105_v48 = vunpack.c.l.b16 %v484_v37 }
  0xdb   : > { %2789 = vmatmul.bf16.gmra.mxu0 %v1417_v49  ;;  %v1106_v49 = vunpack.c.l.b16 %v485_v38  ;;  %v1394_v56 = vunpack.c.l.b16 %v682_v45 }
  0xdc   : > { %v4900_v61 = vpop.f32.mrf.mxu2 }
  0xdd   : > { %v4902_v62 = vpop.f32.mrf.mxu3  ;;  %v1131_v59 = vpack.c.b16 %v1106_v49, %v1105_v48  ;;  %v1419_v1 = vpack.c.b16 %v1394_v56, %v1393_v55  ;;  %v1132_v48 = vpack.c.b16 %v1108_v34, %v1107_v33  ;;  %v3838_v55 = vld [vmem:[%s4667_s10 + $0x5b] sm:$0xff]  ;;  %v3839_v56 = vld [vmem:[%s4667_s10 + $0x63] sm:$0xff]  ;;  %v1397_v33 = vunpack.c.l.b16 %v685_v18 }
  0xde   : > { %v4907_v4 = vpop.f32.mrf.mxu1  ;;  %v489_v10 = vpack.c.bf16 %v3839_v56, %v3839_v56  ;;  %v3873_v56 = vld [vmem:[%s4667_s10 + $0x6c] sm:$0xff] }
  0xe0   : > { %v4909_v9 = vpop.f32.mrf.mxu0  ;;  %v1110_v27 = vunpack.c.l.b16 %v489_v10 }
  0xe4   : > { %v4914_v19 = vpop.f32.mrf.mxu2 }
  0xe5   : > { %v4916_v20 = vpop.f32.mrf.mxu3 }
  0xe6   : > { %v4918_v23 = vpop.f32.mrf.mxu1 }
  0xe8   : > { %v4920_v26 = vpop.f32.mrf.mxu0 }
  0xe9   : > { %2527 = vmatmul.bf16.gmra.mxu1 %v1130_v21  ;;  %2616 = vmatmul.bf16.gmra.mxu2 %v1226_v22  ;;  %v552_v21 = vpack.c.bf16 %v3869_v6, %v3869_v6  ;;  %v553_v22 = vpack.c.bf16 %v3870_v7, %v3870_v7 }
  0xea   : > { %2705 = vmatmul.bf16.gmra.mxu3 %v1322_v24 }
  0xeb   : > { %2794 = vmatmul.bf16.gmra.mxu0 %v1418_v25  ;;  %v618_v25 = vpack.c.bf16 %v3902_v8, %v3902_v8  ;;  %v1203_v37 = vunpack.c.l.b16 %v552_v21  ;;  %v1204_v38 = vunpack.c.l.b16 %v553_v22  ;;  %v488_v8 = vpack.c.bf16 %v3838_v55, %v3838_v55  ;;  %v3841_v55 = vld [vmem:[%s4667_s10 + $0x73] sm:$0xff] }
  0xec   : > { %v4930_v35 = vpop.f32.mrf.mxu2  ;;  %v686_v21 = vpack.c.bf16 %v654_v5, %v654_v5  ;;  %v656_v5 = vld [vmem:[%s4667_s10 + $0x98] sm:$0xff] }
  0xed   : > { %v4932_v36 = vpop.f32.mrf.mxu3  ;;  %v1299_v39 = vunpack.c.l.b16 %v618_v25  ;;  %v1228_v49 = vpack.c.b16 %v1204_v38, %v1203_v37  ;;  %v1109_v25 = vunpack.c.l.b16 %v488_v8 }
  0xee   : > { %v4934_v41 = vpop.f32.mrf.mxu1  ;;  %v1398_v34 = vunpack.c.l.b16 %v686_v21 }
  0xef   : > { %v1324_v52 = vpack.c.b16 %v1300_v40, %v1299_v39  ;;  %v1133_v39 = vpack.c.b16 %v1110_v27, %v1109_v25  ;;  %v623_v27 = vpack.c.bf16 %v3907_v3, %v3907_v3 }
  0xf0   : > { %v4936_v46 = vpop.f32.mrf.mxu0 }
  0xf4   : > { %v4938_v57 = vpop.f32.mrf.mxu2 }
  0xf5   : > { %v4940_v58 = vpop.f32.mrf.mxu3 }
  0xf6   : > { %v4942_v63 = vpop.f32.mrf.mxu1 }
  0xf8   : > { %v4944_v2 = vpop.f32.mrf.mxu0 }
  0xf9   : > { %2532 = vmatmul.bf16.gmra.mxu1 %v1131_v59  ;;  %2621 = vmatmul.bf16.gmra.mxu2 %v1227_v60  ;;  %v3871_v59 = vld [vmem:[%s4667_s10 + $0x5c] sm:$0xff]  ;;  %v3872_v60 = vld [vmem:[%s4667_s10 + $0x64] sm:$0xff] }
  0xfa   : > { %2710 = vmatmul.bf16.gmra.mxu3 %v1323_v0  ;;  %v3904_v0 = vld [vmem:[%s4667_s10 + $0x7f] sm:$0xff]  ;;  %v554_v11 = vpack.c.bf16 %v3871_v59, %v3871_v59  ;;  %v555_v12 = vpack.c.bf16 %v3872_v60, %v3872_v60  ;;  %v3874_v59 = vld [vmem:[%s4667_s10 + $0x74] sm:$0xff] }
  0xfb   : > { %2799 = vmatmul.bf16.gmra.mxu0 %v1419_v1  ;;  %v3905_v1 = vld [vmem:[%s4667_s10 + $0x87] sm:$0xff]  ;;  %v620_v14 = vpack.c.bf16 %v3904_v0, %v3904_v0  ;;  %v3906_v60 = vld [vmem:[%s4667_s10 + $0x8f] sm:$0xff]  ;;  %v557_v18 = vpack.c.bf16 %v3874_v59, %v3874_v59 }
  0xfc   : > { %v4960_v15 = vpop.f32.mrf.mxu2  ;;  %v621_v17 = vpack.c.bf16 %v3905_v1, %v3905_v1  ;;  %v1205_v28 = vunpack.c.l.b16 %v554_v11  ;;  %v1206_v29 = vunpack.c.l.b16 %v555_v12  ;;  %v4393_v0 = vld [vmem:[%s5555_s1 + $0x190] sm:$0xff]  ;;  %v622_v25 = vpack.c.bf16 %v3906_v60, %v3906_v60 }
  0xfd   : > { %v4962_v16 = vpop.f32.mrf.mxu3  ;;  %v1301_v31 = vunpack.c.l.b16 %v620_v14  ;;  %v4401_v1 = vld [vmem:[%s5555_s1 + $0x1d0] sm:$0xff]  ;;  %2944 = vmatpush.bf16.msra.mxu2 %v4393_v0  ;;  %v491_v14 = vpack.c.bf16 %v3841_v55, %v3841_v55  ;;  %v1304_v55 = vunpack.c.l.b16 %v623_v27  ;;  %v3909_v27 = vld [vmem:[%s4667_s10 + $0xa7] sm:$0xff] }
  0xfe   : > { %v4964_v24 = vpop.f32.mrf.mxu1  ;;  %v1302_v32 = vunpack.c.l.b16 %v621_v17  ;;  %v1229_v40 = vpack.c.b16 %v1206_v29, %v1205_v28  ;;  %3033 = vmatpush.bf16.msra.mxu3 %v4401_v1  ;;  %v556_v17 = vpack.c.bf16 %v3873_v56, %v3873_v56  ;;  %v688_v29 = vpack.c.bf16 %v656_v5, %v656_v5 }
 0x100   : > { %v4966_v30 = vpop.f32.mrf.mxu0  ;;  %v1325_v43 = vpack.c.b16 %v1302_v32, %v1301_v31  ;;  %v1400_v56 = vunpack.c.l.b16 %v688_v29  ;;  %v658_v29 = vld [vmem:[%s4667_s10 + $0xa8] sm:$0xff] }
 0x104   : > { %v4974_v44 = vpop.f32.mrf.mxu2 }
 0x105   : > { %v4976_v45 = vpop.f32.mrf.mxu3 }
 0x106   : > { %v4978_v51 = vpop.f32.mrf.mxu1 }
 0x108   : > { %v4980_v54 = vpop.f32.mrf.mxu0 }
 0x109   : > { %2537 = vmatmul.bf16.gmra.mxu1 %v1132_v48  ;;  %2626 = vmatmul.bf16.gmra.mxu2 %v1228_v49  ;;  %v1421_v48 = vpack.c.b16 %v1398_v34, %v1397_v33  ;;  %v4385_v34 = vld [vmem:[%s5555_s1 + $0x150] sm:$0xff] }
 0x10a   : > { %2715 = vmatmul.bf16.gmra.mxu3 %v1324_v52  ;;  %2855 = vmatpush.bf16.msra.mxu1 %v4385_v34 }
 0x10b   : > { %2804 = vmatmul.bf16.gmra.mxu0 %v1420_v53  ;;  %v3840_v53 = vld [vmem:[%s4667_s10 + $0x6b] sm:$0xff] }
 0x10c   : > { %v4990_v6 = vpop.f32.mrf.mxu2  ;;  %v490_v10 = vpack.c.bf16 %v3840_v53, %v3840_v53  ;;  %v1303_v53 = vunpack.c.l.b16 %v622_v25  ;;  %v3908_v25 = vld [vmem:[%s4667_s10 + $0x9f] sm:$0xff] }
 0x10d   : > { %v4992_v7 = vpop.f32.mrf.mxu3 }
 0x10e   : > { %v4994_v13 = vpop.f32.mrf.mxu1  ;;  %v1326_v5 = vpack.c.b16 %v1304_v55, %v1303_v53  ;;  %v625_v53 = vpack.c.bf16 %v3909_v27, %v3909_v27  ;;  %v690_v55 = vpack.c.bf16 %v658_v29, %v658_v29 }
 0x110   : > { %v4996_v22 = vpop.f32.mrf.mxu0 }
 0x114   : > { %v4998_v37 = vpop.f32.mrf.mxu2 }
 0x115   : > { %v5000_v38 = vpop.f32.mrf.mxu3 }
 0x116   : > { %v2503_v42 = vpop.f32.mrf.mxu1 }
 0x117   : > { %v2504_v49 = vadd.f32 %v2503_v42, %v4884_v50  ;;  %v655_v50 = vld [vmem:[%s4667_s10 + $0x90] sm:$0xff]  ;;  %v1112_v42 = vunpack.c.l.b16 %v491_v14  ;;  %v3843_v14 = vld [vmem:[%s4667_s10 + $0x83] sm:$0xff] }
 0x118   : > { %v2770_v52 = vpop.f32.mrf.mxu0  ;;  %v687_v28 = vpack.c.bf16 %v655_v50, %v655_v50 }
 0x119   : > { %2542 = vmatmul.bf16.gmra.mxu1 %v1133_v39  ;;  %2631 = vmatmul.bf16.gmra.mxu2 %v1229_v40  ;;  %v4409_v39 = vld [vmem:[%s5555_s1 + $0x210] sm:$0xff]  ;;  %v1111_v40 = vunpack.c.l.b16 %v490_v10 }
 0x11a   : > { %2720 = vmatmul.bf16.gmra.mxu3 %v1325_v43  ;;  %v1207_v43 = vunpack.c.l.b16 %v556_v17  ;;  %3122 = vmatpush.bf16.msra.mxu0 %v4409_v39 }
 0x11b   : > { %2809 = vmatmul.bf16.gmra.mxu0 %v1421_v48  ;;  %v1208_v48 = vunpack.c.l.b16 %v557_v18  ;;  %v1134_v1 = vpack.c.b16 %v1112_v42, %v1111_v40  ;;  %v3875_v18 = vld [vmem:[%s4667_s10 + $0x7c] sm:$0xff] }
 0x11c   : > { %v2592_v8 = vpop.f32.mrf.mxu2  ;;  %v558_v40 = vpack.c.bf16 %v3875_v18, %v3875_v18 }
 0x11d   : > { %v2593_v11 = vadd.f32 %v2592_v8, %v2504_v49  ;;  %v2681_v12 = vpop.f32.mrf.mxu3  ;;  %v1230_v3 = vpack.c.b16 %v1208_v48, %v1207_v43  ;;  %v624_v48 = vpack.c.bf16 %v3908_v25, %v3908_v25 }
 0x11e   : > { %v2505_v21 = vpop.f32.mrf.mxu1 }
 0x11f   : > { %v2682_v31 = vadd.f32 %v2681_v12, %v2593_v11  ;;  %v2506_v32 = vadd.f32 %v2505_v21, %v4909_v9  ;;  %v1399_v9 = vunpack.c.l.b16 %v687_v28  ;;  %v3842_v12 = vld [vmem:[%s4667_s10 + $0x7b] sm:$0xff]  ;;  %v3876_v21 = vld [vmem:[%s4667_s10 + $0x84] sm:$0xff] }
 0x120   : > { %v2772_v33 = vpop.f32.mrf.mxu0  ;;  %v657_v28 = vld [vmem:[%s4667_s10 + $0xa0] sm:$0xff]  ;;  %v559_v42 = vpack.c.bf16 %v3876_v21, %v3876_v21 }
 0x121   : > { %v5024_v49 = vadd.f32 %v2770_v52, %v2682_v31  ;;  %v1422_v52 = vpack.c.b16 %v1400_v56, %v1399_v9 }
 0x124   : > { %v2594_v59 = vpop.f32.mrf.mxu2 }
 0x125   : > { %v2595_v60 = vadd.f32 %v2594_v59, %v2506_v32  ;;  %v2683_v0 = vpop.f32.mrf.mxu3  ;;  %v492_v32 = vpack.c.bf16 %v3842_v12, %v3842_v12 }
 0x126   : > { %v2508_v50 = vpop.f32.mrf.mxu1 }
 0x127   : > { %v2684_v8 = vadd.f32 %v2683_v0, %v2595_v60  ;;  %v2509_v10 = vadd.f32 %v2508_v50, %v4920_v26  ;;  %v493_v26 = vpack.c.bf16 %v3843_v14, %v3843_v14  ;;  %v1113_v60 = vunpack.c.l.b16 %v492_v32  ;;  %v3844_v32 = vld [vmem:[%s4667_s10 + $0x8b] sm:$0xff] }
 0x128   : > { %v2775_v11 = vpop.f32.mrf.mxu0 }
 0x129   : > { %2547 = vmatmul.bf16.gmra.mxu1 %v1134_v1  ;;  %2636 = vmatmul.bf16.gmra.mxu2 %v1230_v3  ;;  %v5029_v17 = vadd.f32 %v2772_v33, %v2684_v8  ;;  %v689_v33 = vpack.c.bf16 %v657_v28, %v657_v28  ;;  %v1114_v0 = vunpack.c.l.b16 %v493_v26  ;;  %v1209_v1 = vunpack.c.l.b16 %v558_v40  ;;  %v3878_v26 = vld [vmem:[%s4667_s10 + $0x94] sm:$0xff] }
 0x12a   : > { %2725 = vmatmul.bf16.gmra.mxu3 %v1326_v5  ;;  %v1210_v3 = vunpack.c.l.b16 %v559_v42  ;;  %v1305_v5 = vunpack.c.l.b16 %v624_v48  ;;  %v3910_v42 = vld [vmem:[%s4667_s10 + $0xaf] sm:$0xff]  ;;  %v3911_v48 = vld [vmem:[%s4667_s10 + $0xb7] sm:$0xff] }
 0x12b   : > { %2814 = vmatmul.bf16.gmra.mxu0 %v1422_v52  ;;  %v1306_v52 = vunpack.c.l.b16 %v625_v53  ;;  %v1401_v8 = vunpack.c.l.b16 %v689_v33  ;;  %v1135_v21 = vpack.c.b16 %v1114_v0, %v1113_v60  ;;  %v659_v53 = vld [vmem:[%s4667_s10 + $0xb0] sm:$0xff]  ;;  %v660_v33 = vld [vmem:[%s4667_s10 + $0xb8] sm:$0xff] }
 0x12c   : > { %v2597_v31 = vpop.f32.mrf.mxu2 }
 0x12d   : > { %v2598_v34 = vadd.f32 %v2597_v31, %v2509_v10  ;;  %v2686_v39 = vpop.f32.mrf.mxu3  ;;  %v1402_v10 = vunpack.c.l.b16 %v690_v55  ;;  %v1327_v27 = vpack.c.b16 %v1306_v52, %v1305_v5  ;;  %v626_v5 = vpack.c.bf16 %v3910_v42, %v3910_v42 }
 0x12e   : > { %v2510_v43 = vpop.f32.mrf.mxu1  ;;  %v627_v52 = vpack.c.bf16 %v3911_v48, %v3911_v48 }
 0x12f   : > { %v2687_v9 = vadd.f32 %v2686_v39, %v2598_v34  ;;  %v2511_v56 = vadd.f32 %v2510_v43, %v4936_v46  ;;  %v1231_v46 = vpack.c.b16 %v1210_v3, %v1209_v1  ;;  %v1423_v28 = vpack.c.b16 %v1402_v10, %v1401_v8  ;;  %v3845_v34 = vld [vmem:[%s4667_s10 + $0x93] sm:$0xff]  ;;  %v4392_v43 = vld [vmem:[%s5555_s1 + $0x188] sm:$0xff] }
 0x130   : > { %v2777_v59 = vpop.f32.mrf.mxu0  ;;  %v3877_v39 = vld [vmem:[%s4667_s10 + $0x8c] sm:$0xff]  ;;  %2945 = vmatpush.bf16.msra.mxu2 %v4392_v43  ;;  %v495_v60 = vpack.c.bf16 %v3845_v34, %v3845_v34  ;;  %v561_v1 = vpack.c.bf16 %v3878_v26, %v3878_v26  ;;  %v691_v8 = vpack.c.bf16 %v659_v53, %v659_v53  ;;  %v692_v10 = vpack.c.bf16 %v660_v33, %v660_v33 }
 0x131   : > { %v5038_v50 = vadd.f32 %v2775_v11, %v2687_v9  ;;  %v494_v9 = vpack.c.bf16 %v3844_v32, %v3844_v32  ;;  %v560_v0 = vpack.c.bf16 %v3877_v39, %v3877_v39  ;;  %v1307_v32 = vunpack.c.l.b16 %v626_v5  ;;  %v3912_v5 = vld [vmem:[%s4667_s10 + $0xbf] sm:$0xff] }
 0x132   : > { %v1308_v34 = vunpack.c.l.b16 %v627_v52  ;;  %v1404_v39 = vunpack.c.l.b16 %v692_v10  ;;  %v3913_v52 = vld [vmem:[%s4667_s10 + $0xc7] sm:$0xff] }
 0x133   : > { %v662_v10 = vld [vmem:[%s4667_s10 + $0xc8] sm:$0xff] }
 0x134   : > { %v2599_v12 = vpop.f32.mrf.mxu2  ;;  %v1328_v33 = vpack.c.b16 %v1308_v34, %v1307_v32  ;;  %v629_v32 = vpack.c.bf16 %v3913_v52, %v3913_v52  ;;  %v694_v34 = vpack.c.bf16 %v662_v10, %v662_v10 }
 0x135   : > { %v2600_v14 = vadd.f32 %v2599_v12, %v2511_v56  ;;  %v2688_v18 = vpop.f32.mrf.mxu3 }
 0x136   : > { %v2513_v25 = vpop.f32.mrf.mxu1 }
 0x137   : > { %v2689_v11 = vadd.f32 %v2688_v18, %v2600_v14  ;;  %v2514_v29 = vadd.f32 %v2513_v25, %v4944_v2  ;;  %v4400_v2 = vld [vmem:[%s5555_s1 + $0x1c8] sm:$0xff]  ;;  %v1115_v25 = vunpack.c.l.b16 %v494_v9 }
 0x138   : > { %v2780_v31 = vpop.f32.mrf.mxu0  ;;  %3034 = vmatpush.bf16.msra.mxu3 %v4400_v2 }
 0x139   : > { %2552 = vmatmul.bf16.gmra.mxu1 %v1135_v21  ;;  %2641 = vmatmul.bf16.gmra.mxu2 %v1231_v46  ;;  %v5045_v40 = vadd.f32 %v2777_v59, %v2689_v11  ;;  %v4384_v21 = vld [vmem:[%s5555_s1 + $0x148] sm:$0xff]  ;;  %v1212_v11 = vunpack.c.l.b16 %v561_v1  ;;  %v3879_v1 = vld [vmem:[%s4667_s10 + $0x9c] sm:$0xff] }
 0x13a   : > { %2730 = vmatmul.bf16.gmra.mxu3 %v1327_v27  ;;  %v4408_v46 = vld [vmem:[%s5555_s1 + $0x208] sm:$0xff]  ;;  %v1116_v27 = vunpack.c.l.b16 %v495_v60  ;;  %2856 = vmatpush.bf16.msra.mxu1 %v4384_v21 }
 0x13b   : > { %2819 = vmatmul.bf16.gmra.mxu0 %v1423_v28  ;;  %v1211_v28 = vunpack.c.l.b16 %v560_v0  ;;  %v3847_v60 = vld [vmem:[%s4667_s10 + $0xa3] sm:$0xff] }
 0x13c   : > { %v2602_v55 = vpop.f32.mrf.mxu2  ;;  %3123 = vmatpush.bf16.msra.mxu0 %v4408_v46  ;;  %v1136_v2 = vpack.c.b16 %v1116_v27, %v1115_v25  ;;  %v562_v25 = vpack.c.bf16 %v3879_v1, %v3879_v1 }
 0x13d   : > { %v2603_v56 = vadd.f32 %v2602_v55, %v2514_v29  ;;  %v2691_v59 = vpop.f32.mrf.mxu3  ;;  %v1232_v48 = vpack.c.b16 %v1212_v11, %v1211_v28  ;;  %v628_v11 = vpack.c.bf16 %v3912_v5, %v3912_v5 }
 0x13e   : > { %v2515_v3 = vpop.f32.mrf.mxu1 }
 0x13f   : > { %v2692_v12 = vadd.f32 %v2691_v59, %v2603_v56  ;;  %v2516_v14 = vadd.f32 %v2515_v3, %v4966_v30  ;;  %v1403_v30 = vunpack.c.l.b16 %v691_v8  ;;  %v3846_v59 = vld [vmem:[%s4667_s10 + $0x9b] sm:$0xff]  ;;  %v3880_v3 = vld [vmem:[%s4667_s10 + $0xa4] sm:$0xff] }
 0x140   : > { %v2782_v18 = vpop.f32.mrf.mxu0  ;;  %v661_v8 = vld [vmem:[%s4667_s10 + $0xc0] sm:$0xff]  ;;  %v563_v27 = vpack.c.bf16 %v3880_v3, %v3880_v3 }
 0x141   : > { %v5064_v29 = vadd.f32 %v2780_v31, %v2692_v12  ;;  %v1424_v31 = vpack.c.b16 %v1404_v39, %v1403_v30 }
 0x144   : > { %v2604_v26 = vpop.f32.mrf.mxu2 }
 0x145   : > { %v2605_v42 = vadd.f32 %v2604_v26, %v2516_v14  ;;  %v2693_v43 = vpop.f32.mrf.mxu3  ;;  %v496_v14 = vpack.c.bf16 %v3846_v59, %v3846_v59 }
 0x146   : > { %v2518_v53 = vpop.f32.mrf.mxu1 }
 0x147   : > { %v2694_v55 = vadd.f32 %v2693_v43, %v2605_v42  ;;  %v2519_v9 = vadd.f32 %v2518_v53, %v4980_v54  ;;  %v497_v54 = vpack.c.bf16 %v3847_v60, %v3847_v60  ;;  %v1117_v42 = vunpack.c.l.b16 %v496_v14  ;;  %v3849_v14 = vld [vmem:[%s4667_s10 + $0xb3] sm:$0xff] }
 0x148   : > { %v2785_v56 = vpop.f32.mrf.mxu0 }
 0x149   : > { %2557 = vmatmul.bf16.gmra.mxu1 %v1136_v2  ;;  %2646 = vmatmul.bf16.gmra.mxu2 %v1232_v48  ;;  %v5069_v0 = vadd.f32 %v2782_v18, %v2694_v55  ;;  %v693_v18 = vpack.c.bf16 %v661_v8, %v661_v8  ;;  %v1118_v43 = vunpack.c.l.b16 %v497_v54  ;;  %v1213_v2 = vunpack.c.l.b16 %v562_v25  ;;  %v3914_v25 = vld [vmem:[%s4667_s10 + $0xcf] sm:$0xff] }
 0x14a   : > { %2735 = vmatmul.bf16.gmra.mxu3 %v1328_v33  ;;  %v1214_v48 = vunpack.c.l.b16 %v563_v27  ;;  %v1309_v33 = vunpack.c.l.b16 %v628_v11  ;;  %v4391_v27 = vld [vmem:[%s5555_s1 + $0x180] sm:$0xff] }
 0x14b   : > { %2824 = vmatmul.bf16.gmra.mxu0 %v1424_v31  ;;  %v1310_v31 = vunpack.c.l.b16 %v629_v32  ;;  %v1405_v55 = vunpack.c.l.b16 %v693_v18  ;;  %v1137_v3 = vpack.c.b16 %v1118_v43, %v1117_v42  ;;  %v3915_v32 = vld [vmem:[%s4667_s10 + $0xd7] sm:$0xff]  ;;  %2946 = vmatpush.bf16.msra.mxu2 %v4391_v27  ;;  %v499_v43 = vpack.c.bf16 %v3849_v14, %v3849_v14 }
 0x14c   : > { %v2607_v12 = vpop.f32.mrf.mxu2  ;;  %v663_v18 = vld [vmem:[%s4667_s10 + $0xd0] sm:$0xff] }
 0x14d   : > { %v2608_v21 = vadd.f32 %v2607_v12, %v2519_v9  ;;  %v2696_v46 = vpop.f32.mrf.mxu3  ;;  %v1406_v9 = vunpack.c.l.b16 %v694_v34  ;;  %v1329_v52 = vpack.c.b16 %v1310_v31, %v1309_v33  ;;  %v3848_v12 = vld [vmem:[%s4667_s10 + $0xab] sm:$0xff]  ;;  %v664_v34 = vld [vmem:[%s4667_s10 + $0xd8] sm:$0xff]  ;;  %v630_v31 = vpack.c.bf16 %v3914_v25, %v3914_v25 }
 0x14e   : > { %v2520_v28 = vpop.f32.mrf.mxu1 }
 0x14f   : > { %v2697_v30 = vadd.f32 %v2696_v46, %v2608_v21  ;;  %v2521_v39 = vadd.f32 %v2520_v28, %v4996_v22  ;;  %v1233_v22 = vpack.c.b16 %v1214_v48, %v1213_v2  ;;  %v1425_v8 = vpack.c.b16 %v1406_v9, %v1405_v55  ;;  %v3881_v21 = vld [vmem:[%s4667_s10 + $0xac] sm:$0xff]  ;;  %v3882_v46 = vld [vmem:[%s4667_s10 + $0xb4] sm:$0xff]  ;;  %v4399_v28 = vld [vmem:[%s5555_s1 + $0x1c0] sm:$0xff] }
 0x150   : > { %v2787_v26 = vpop.f32.mrf.mxu0  ;;  %3035 = vmatpush.bf16.msra.mxu3 %v4399_v28  ;;  %v564_v2 = vpack.c.bf16 %v3881_v21, %v3881_v21  ;;  %v565_v48 = vpack.c.bf16 %v3882_v46, %v3882_v46  ;;  %v631_v55 = vpack.c.bf16 %v3915_v32, %v3915_v32  ;;  %v695_v9 = vpack.c.bf16 %v663_v18, %v663_v18 }
 0x151   : > { %v5078_v53 = vadd.f32 %v2785_v56, %v2697_v30 }
 0x152   : > { %v1312_v14 = vunpack.c.l.b16 %v631_v55  ;;  %v1407_v21 = vunpack.c.l.b16 %v695_v9  ;;  %v3917_v55 = vld [vmem:[%s4667_s10 + $0xe7] sm:$0xff] }
 0x153   : > { %v665_v9 = vld [vmem:[%s4667_s10 + $0xe0] sm:$0xff] }
 0x154   : > { %v2609_v59 = vpop.f32.mrf.mxu2 }
 0x155   : > { %v2610_v60 = vadd.f32 %v2609_v59, %v2521_v39  ;;  %v2698_v1 = vpop.f32.mrf.mxu3  ;;  %v498_v39 = vpack.c.bf16 %v3848_v12, %v3848_v12  ;;  %v696_v59 = vpack.c.bf16 %v664_v34, %v664_v34  ;;  %v1311_v12 = vunpack.c.l.b16 %v630_v31 }
 0x156   : > { %v2523_v5 = vpop.f32.mrf.mxu1 }
 0x157   : > { %v2699_v10 = vadd.f32 %v2698_v1, %v2610_v60  ;;  %v2524_v11 = vadd.f32 %v2523_v5, %v4882_v47  ;;  %v4383_v47 = vld [vmem:[%s5555_s1 + $0x140] sm:$0xff]  ;;  %v1120_v5 = vunpack.c.l.b16 %v499_v43  ;;  %v1408_v46 = vunpack.c.l.b16 %v696_v59  ;;  %v666_v59 = vld [vmem:[%s4667_s10 + $0xe8] sm:$0xff] }
 0x158   : > { %v2790_v56 = vpop.f32.mrf.mxu0  ;;  %2857 = vmatpush.bf16.msra.mxu1 %v4383_v47 }
 0x159   : > { %2562 = vmatmul.bf16.gmra.mxu1 %v1137_v3  ;;  %2651 = vmatmul.bf16.gmra.mxu2 %v1233_v22  ;;  %v5084_v54 = vadd.f32 %v2787_v26, %v2699_v10  ;;  %v4407_v3 = vld [vmem:[%s5555_s1 + $0x200] sm:$0xff]  ;;  %v1119_v22 = vunpack.c.l.b16 %v498_v39 }
 0x15a   : > { %2740 = vmatmul.bf16.gmra.mxu3 %v1329_v52  ;;  %v1215_v52 = vunpack.c.l.b16 %v564_v2  ;;  %3124 = vmatpush.bf16.msra.mxu0 %v4407_v3  ;;  %v3883_v2 = vld [vmem:[%s4667_s10 + $0xbc] sm:$0xff] }
 0x15b   : > { %2829 = vmatmul.bf16.gmra.mxu0 %v1425_v8  ;;  %v1216_v8 = vunpack.c.l.b16 %v565_v48  ;;  %v1138_v32 = vpack.c.b16 %v1120_v5, %v1119_v22  ;;  %v3884_v48 = vld [vmem:[%s4667_s10 + $0xc4] sm:$0xff] }
 0x15c   : > { %v2612_v30 = vpop.f32.mrf.mxu2 }
 0x15d   : > { %v2613_v26 = vadd.f32 %v2612_v30, %v2524_v11  ;;  %v2701_v42 = vpop.f32.mrf.mxu3  ;;  %v1234_v18 = vpack.c.b16 %v1216_v8, %v1215_v52  ;;  %v1426_v30 = vpack.c.b16 %v1408_v46, %v1407_v21  ;;  %v566_v52 = vpack.c.bf16 %v3883_v2, %v3883_v2 }
 0x15e   : > { %v2525_v33 = vpop.f32.mrf.mxu1  ;;  %v567_v8 = vpack.c.bf16 %v3884_v48, %v3884_v48  ;;  %v697_v21 = vpack.c.bf16 %v665_v9, %v665_v9  ;;  %v698_v46 = vpack.c.bf16 %v666_v59, %v666_v59 }
 0x15f   : > { %v2702_v60 = vadd.f32 %v2701_v42, %v2613_v26  ;;  %v2526_v25 = vadd.f32 %v2525_v33, %v4907_v4  ;;  %v3850_v42 = vld [vmem:[%s4667_s10 + $0xbb] sm:$0xff]  ;;  %v3851_v4 = vld [vmem:[%s4667_s10 + $0xc3] sm:$0xff] }
 0x160   : > { %v2792_v1 = vpop.f32.mrf.mxu0  ;;  %v3916_v33 = vld [vmem:[%s4667_s10 + $0xdf] sm:$0xff]  ;;  %v500_v47 = vpack.c.bf16 %v3850_v42, %v3850_v42  ;;  %v501_v5 = vpack.c.bf16 %v3851_v4, %v3851_v4 }
 0x161   : > { %v5103_v10 = vadd.f32 %v2790_v56, %v2702_v60  ;;  %v1330_v56 = vpack.c.b16 %v1312_v14, %v1311_v12  ;;  %v633_v14 = vpack.c.bf16 %v3917_v55, %v3917_v55 }
 0x164   : > { %v2614_v27 = vpop.f32.mrf.mxu2 }
 0x165   : > { %v2615_v28 = vadd.f32 %v2614_v27, %v2526_v25  ;;  %v2703_v11 = vpop.f32.mrf.mxu3 }
 0x166   : > { %v2528_v34 = vpop.f32.mrf.mxu1 }
 0x167   : > { %v2704_v39 = vadd.f32 %v2703_v11, %v2615_v28  ;;  %v2529_v31 = vadd.f32 %v2528_v34, %v4918_v23  ;;  %v1121_v28 = vunpack.c.l.b16 %v500_v47  ;;  %v1122_v11 = vunpack.c.l.b16 %v501_v5  ;;  %v3852_v47 = vld [vmem:[%s4667_s10 + $0xcb] sm:$0xff]  ;;  %v3886_v5 = vld [vmem:[%s4667_s10 + $0xd4] sm:$0xff] }
 0x168   : > { %v2795_v26 = vpop.f32.mrf.mxu0  ;;  %v1217_v23 = vunpack.c.l.b16 %v566_v52  ;;  %v3918_v52 = vld [vmem:[%s4667_s10 + $0xef] sm:$0xff] }
 0x169   : > { %2567 = vmatmul.bf16.gmra.mxu1 %v1138_v32  ;;  %2656 = vmatmul.bf16.gmra.mxu2 %v1234_v18  ;;  %v5108_v43 = vadd.f32 %v2792_v1, %v2704_v39  ;;  %v632_v1 = vpack.c.bf16 %v3916_v33, %v3916_v33  ;;  %v1218_v32 = vunpack.c.l.b16 %v567_v8  ;;  %v1410_v39 = vunpack.c.l.b16 %v698_v46 }
 0x16a   : > { %2745 = vmatmul.bf16.gmra.mxu3 %v1330_v56  ;;  %v1314_v56 = vunpack.c.l.b16 %v633_v14  ;;  %v1139_v33 = vpack.c.b16 %v1122_v11, %v1121_v28  ;;  %v668_v14 = vld [vmem:[%s4667_s10 + $0xf8] sm:$0xff]  ;;  %v502_v46 = vpack.c.bf16 %v3852_v47, %v3852_v47 }
 0x16b   : > { %2834 = vmatmul.bf16.gmra.mxu0 %v1426_v30  ;;  %v1313_v34 = vunpack.c.l.b16 %v632_v1  ;;  %v1409_v30 = vunpack.c.l.b16 %v697_v21  ;;  %v667_v1 = vld [vmem:[%s4667_s10 + $0xf0] sm:$0xff] }
 0x16c   : > { %v2617_v60 = vpop.f32.mrf.mxu2 }
 0x16d   : > { %v2618_v3 = vadd.f32 %v2617_v60, %v2529_v31  ;;  %v2706_v22 = vpop.f32.mrf.mxu3  ;;  %v1235_v31 = vpack.c.b16 %v1218_v32, %v1217_v23  ;;  %v1427_v9 = vpack.c.b16 %v1410_v39, %v1409_v30  ;;  %v569_v32 = vpack.c.bf16 %v3886_v5, %v3886_v5 }
 0x16e   : > { %v2530_v12 = vpop.f32.mrf.mxu1  ;;  %v699_v30 = vpack.c.bf16 %v667_v1, %v667_v1  ;;  %v700_v39 = vpack.c.bf16 %v668_v14, %v668_v14 }
 0x16f   : > { %v2707_v25 = vadd.f32 %v2706_v22, %v2618_v3  ;;  %v2531_v42 = vadd.f32 %v2530_v12, %v4934_v41  ;;  %v3853_v41 = vld [vmem:[%s4667_s10 + $0xd3] sm:$0xff] }
 0x170   : > { %v2797_v27 = vpop.f32.mrf.mxu0  ;;  %v3885_v22 = vld [vmem:[%s4667_s10 + $0xcc] sm:$0xff]  ;;  %v3919_v12 = vld [vmem:[%s4667_s10 + $0xf7] sm:$0xff]  ;;  %v503_v11 = vpack.c.bf16 %v3853_v41, %v3853_v41 }
 0x171   : > { %v5117_v18 = vadd.f32 %v2795_v26, %v2707_v25  ;;  %v1331_v26 = vpack.c.b16 %v1314_v56, %v1313_v34  ;;  %v568_v23 = vpack.c.bf16 %v3885_v22, %v3885_v22  ;;  %v635_v56 = vpack.c.bf16 %v3919_v12, %v3919_v12 }
 0x174   : > { %v2619_v4 = vpop.f32.mrf.mxu2 }
 0x175   : > { %v2620_v2 = vadd.f32 %v2619_v4, %v2531_v42  ;;  %v2708_v48 = vpop.f32.mrf.mxu3 }
 0x176   : > { %v2533_v55 = vpop.f32.mrf.mxu1 }
 0x177   : > { %v2709_v59 = vadd.f32 %v2708_v48, %v2620_v2  ;;  %v2534_v8 = vadd.f32 %v2533_v55, %v4942_v63  ;;  %v1123_v2 = vunpack.c.l.b16 %v502_v46  ;;  %v1124_v48 = vunpack.c.l.b16 %v503_v11  ;;  %v3921_v46 = vld [vmem:[%s4667_s10 + $0x1] sm:$0xff]  ;;  %v3955_v11 = vld [vmem:[%s4667_s10 + $0x2c] sm:$0xff] }
 0x178   : > { %v2800_v60 = vpop.f32.mrf.mxu0  ;;  %v1219_v63 = vunpack.c.l.b16 %v568_v23  ;;  %v3987_v23 = vld [vmem:[%s4667_s10 + $0x25] sm:$0xff] }
 0x179   : > { %2572 = vmatmul.bf16.gmra.mxu1 %v1139_v33  ;;  %2661 = vmatmul.bf16.gmra.mxu2 %v1235_v31  ;;  %v5122_v3 = vadd.f32 %v2797_v27, %v2709_v59  ;;  %v634_v27 = vpack.c.bf16 %v3918_v52, %v3918_v52  ;;  %v1220_v33 = vunpack.c.l.b16 %v569_v32  ;;  %v1412_v59 = vunpack.c.l.b16 %v700_v39 }
 0x17a   : > { %2750 = vmatmul.bf16.gmra.mxu3 %v1331_v26  ;;  %v1316_v26 = vunpack.c.l.b16 %v635_v56  ;;  %v1140_v52 = vpack.c.b16 %v1124_v48, %v1123_v2  ;;  %v4021_v56 = vld [vmem:[%s4667_s10 + $0x2e] sm:$0xff]  ;;  %v735_v39 = vpack.c.bf16 %v3921_v46, %v3921_v46 }
 0x17b   : > { %2839 = vmatmul.bf16.gmra.mxu0 %v1427_v9  ;;  %v1315_v55 = vunpack.c.l.b16 %v634_v27  ;;  %v1411_v9 = vunpack.c.l.b16 %v699_v30  ;;  %v4020_v27 = vld [vmem:[%s4667_s10 + $0x26] sm:$0xff] }
 0x17c   : > { %v2622_v21 = vpop.f32.mrf.mxu2 }
 0x17d   : > { %v2623_v25 = vadd.f32 %v2622_v21, %v2534_v8  ;;  %v2711_v28 = vpop.f32.mrf.mxu3  ;;  %v1236_v8 = vpack.c.b16 %v1220_v33, %v1219_v63  ;;  %v1428_v1 = vpack.c.b16 %v1412_v59, %v1411_v9  ;;  %v802_v33 = vpack.c.bf16 %v3955_v11, %v3955_v11 }
 0x17e   : > { %v2535_v34 = vpop.f32.mrf.mxu1  ;;  %v933_v9 = vpack.c.bf16 %v4020_v27, %v4020_v27  ;;  %v934_v59 = vpack.c.bf16 %v4021_v56, %v4021_v56 }
 0x17f   : > { %v2712_v42 = vadd.f32 %v2711_v28, %v2623_v25  ;;  %v2536_v47 = vadd.f32 %v2535_v34, %v4964_v24  ;;  %v3922_v24 = vld [vmem:[%s4667_s10 + $0x9] sm:$0xff] }
 0x180   : > { %v2802_v4 = vpop.f32.mrf.mxu0  ;;  %v3954_v28 = vld [vmem:[%s4667_s10 + $0x24] sm:$0xff]  ;;  %v3988_v34 = vld [vmem:[%s4667_s10 + $0x2d] sm:$0xff]  ;;  %v736_v48 = vpack.c.bf16 %v3922_v24, %v3922_v24  ;;  %v1766_v46 = vunpack.c.l.b16 %v934_v59  ;;  %v4022_v59 = vld [vmem:[%s4667_s10 + $0x36] sm:$0xff] }
 0x181   : > { %v5131_v31 = vadd.f32 %v2800_v60, %v2712_v42  ;;  %v1332_v60 = vpack.c.b16 %v1316_v26, %v1315_v55  ;;  %v801_v63 = vpack.c.bf16 %v3954_v28, %v3954_v28  ;;  %v868_v26 = vpack.c.bf16 %v3988_v34, %v3988_v34  ;;  %v3310_v28 = vld [vmem:[%s4602_s9] sm:$0xff] }
 0x182   : > { %vm3342_vm0 = vcmp.gt.f32.partialorder %v3310_v28, 0.5 }
 0x184   : > { %v2624_v41 = vpop.f32.mrf.mxu2 }
 0x185   : > { %v2625_v22 = vadd.f32 %v2624_v41, %v2536_v47  ;;  %v2713_v5 = vpop.f32.mrf.mxu3 }
 0x186   : > { %v2538_v12 = vpop.f32.mrf.mxu1 }
 0x187   : > { %v2714_v14 = vadd.f32 %v2713_v5, %v2625_v22  ;;  %v2539_v32 = vadd.f32 %v2538_v12, %v4978_v51  ;;  %v1477_v22 = vunpack.c.l.b16 %v735_v39  ;;  %v4529_v51 = vmov 0  }
 0x188   : > { %v2805_v21 = vpop.f32.mrf.mxu0  ;;  %4481 = vset.pattern.permute.xlu0 %v4529_v51  ;;  %4482 = vset.pattern.permute.xlu1 %v4529_v51  ;;  %v1478_v5 = vunpack.c.l.b16 %v736_v48  ;;  %v3924_v48 = vld [vmem:[%s4667_s10 + $0x19] sm:$0xff] }
 0x189   : > { %2577 = vmatmul.bf16.gmra.mxu1 %v1140_v52  ;;  %2666 = vmatmul.bf16.gmra.mxu2 %v1236_v8  ;;  %v5136_v25 = vadd.f32 %v2802_v4, %v2714_v14  ;;  %v867_v4 = vpack.c.bf16 %v3987_v23, %v3987_v23  ;;  %v1573_v52 = vunpack.c.l.b16 %v801_v63  ;;  %v1574_v8 = vunpack.c.l.b16 %v802_v33  ;;  %v3956_v63 = vld [vmem:[%s4667_s10 + $0x34] sm:$0xff] }
 0x18a   : > { %2755 = vmatmul.bf16.gmra.mxu3 %v1332_v60  ;;  %4483 = vset.pattern.permute.xlu2 %v4529_v51  ;;  %v1765_v14 = vunpack.c.l.b16 %v933_v9  ;;  %v1509_v34 = vpack.c.b16 %v1478_v5, %v1477_v22  ;;  %v3311_v22 = vld [vmem:[%s4602_s9 + $0x8] sm:$0xff] }
 0x18b   : > { %2844 = vmatmul.bf16.gmra.mxu0 %v1428_v1  ;;  %v1669_v60 = vunpack.c.l.b16 %v867_v4  ;;  %v1670_v1 = vunpack.c.l.b16 %v868_v26  ;;  %v1605_v27 = vpack.c.b16 %v1574_v8, %v1573_v52  ;;  %v3989_v4 = vld [vmem:[%s4667_s10 + $0x35] sm:$0xff]  ;;  %v3990_v26 = vld [vmem:[%s4667_s10 + $0x3d] sm:$0xff]  ;;  %v738_v8 = vpack.c.bf16 %v3924_v48, %v3924_v48 }
 0x18c   : > { %v2627_v30 = vpop.f32.mrf.mxu2  ;;  %v1797_v39 = vpack.c.b16 %v1766_v46, %v1765_v14  ;;  %vm3343_vm1 = vcmp.gt.f32.partialorder %v3311_v22, 0.5  ;;  %v803_v14 = vpack.c.bf16 %v3956_v63, %v3956_v63  ;;  %v869_v28 = vpack.c.bf16 %v3989_v4, %v3989_v4  ;;  %v3312_v4 = vld [vmem:[%s4602_s9 + $0x10] sm:$0xff] }
 0x18d   : > { %v2628_v42 = vadd.f32 %v2627_v30, %v2539_v32  ;;  %v2716_v2 = vpop.f32.mrf.mxu3  ;;  %v1701_v30 = vpack.c.b16 %v1670_v1, %v1669_v60  ;;  %vm3344_vm2 = vcmp.gt.f32.partialorder %v3312_v4, 0.5 }
 0x18e   : > { %v2540_v55 = vpop.f32.mrf.mxu1 }
 0x18f   : > { %v2717_v47 = vadd.f32 %v2716_v2, %v2628_v42  ;;  %v2541_v24 = vadd.f32 %v2540_v55, %v4994_v13  ;;  %v3923_v2 = vld [vmem:[%s4667_s10 + $0x11] sm:$0xff]  ;;  %v3957_v55 = vld [vmem:[%s4667_s10 + $0x3c] sm:$0xff] }
 0x190   : > { %v2807_v41 = vpop.f32.mrf.mxu0  ;;  %v737_v52 = vpack.c.bf16 %v3923_v2, %v3923_v2  ;;  %v804_v46 = vpack.c.bf16 %v3957_v55, %v3957_v55 }
 0x191   : > { %v5148_v12 = vadd.f32 %v2805_v21, %v2717_v47  ;;  %v3374_v21 = vsel %vm3342_vm0, 1, %v4529_v51  ;;  %v4023_v47 = vld [vmem:[%s4667_s10 + $0x3e] sm:$0xff] }
 0x192   : > { %3407 = vperm.xlu0 %4481, %v3374_v21   ;;  %v1480_v21 = vunpack.c.l.b16 %v738_v8 }
 0x194   : > { %v2629_v11 = vpop.f32.mrf.mxu2 }
 0x195   : > { %v2630_v23 = vadd.f32 %v2629_v11, %v2541_v24  ;;  %v2718_v32 = vpop.f32.mrf.mxu3  ;;  %v870_v11 = vpack.c.bf16 %v3990_v26, %v3990_v26 }
 0x196   : > { %v2543_v56 = vpop.f32.mrf.mxu1 }
 0x197   : > { %v2719_v13 = vadd.f32 %v2718_v32, %v2630_v23  ;;  %v2544_v9 = vadd.f32 %v2543_v56, %v4900_v61  ;;  %v935_v23 = vpack.c.bf16 %v4022_v59, %v4022_v59  ;;  %v936_v32 = vpack.c.bf16 %v4023_v47, %v4023_v47 }
 0x198   : > { %v2810_v42 = vpop.f32.mrf.mxu0  ;;  %v1575_v56 = vunpack.c.l.b16 %v803_v14  ;;  %v1672_v2 = vunpack.c.l.b16 %v870_v11  ;;  %v3926_v14 = vld [vmem:[%s4667_s10 + $0x29] sm:$0xff] }
 0x199   : > { %2858 = vmatmul.bf16.vlgmr.msra.gmra.mxu1 %v1509_v34  ;;  %2947 = vmatmul.bf16.vlgmr.msra.gmra.mxu2 %v1605_v27  ;;  %v5156_v33 = vadd.f32 %v2807_v41, %v2719_v13  ;;  %v3375_v41 = vsel %vm3343_vm1, 1, %v4529_v51  ;;  %v1479_v27 = vunpack.c.l.b16 %v737_v52  ;;  %v1671_v13 = vunpack.c.l.b16 %v869_v28  ;;  %v3991_v28 = vld [vmem:[%s4667_s10 + $0x45] sm:$0xff]  ;;  %v3992_v11 = vld [vmem:[%s4667_s10 + $0x4d] sm:$0xff] }
 0x19a   : > { %3036 = vmatmul.bf16.vlgmr.msra.gmra.mxu3 %v1701_v30  ;;  %3410 = vperm.xlu0 %4481, %v3375_v41   ;;  %v1576_v30 = vunpack.c.l.b16 %v804_v46  ;;  %v1767_v48 = vunpack.c.l.b16 %v935_v23  ;;  %v1768_v63 = vunpack.c.l.b16 %v936_v32  ;;  %v3958_v46 = vld [vmem:[%s4667_s10 + $0x44] sm:$0xff]  ;;  %v871_v4 = vpack.c.bf16 %v3991_v28, %v3991_v28 }
 0x19b   : > { %3125 = vmatmul.bf16.vlgmr.msra.gmra.mxu0 %v1797_v39  ;;  %v1510_v47 = vpack.c.b16 %v1480_v21, %v1479_v27  ;;  %v1702_v52 = vpack.c.b16 %v1672_v2, %v1671_v13  ;;  %v4024_v32 = vld [vmem:[%s4667_s10 + $0x46] sm:$0xff]  ;;  %v3313_v27 = vld [vmem:[%s4602_s9 + $0x18] sm:$0xff] }
 0x19c   : > { %v2632_v5 = vpop.f32.mrf.mxu2  ;;  %v1606_v22 = vpack.c.b16 %v1576_v30, %v1575_v56  ;;  %v1798_v8 = vpack.c.b16 %v1768_v63, %v1767_v48  ;;  %v740_v30 = vpack.c.bf16 %v3926_v14, %v3926_v14  ;;  %vm3345_vm3 = vcmp.gt.f32.partialorder %v3313_v27, 0.5 }
 0x19d   : > { %v2633_v60 = vadd.f32 %v2632_v5, %v2544_v9  ;;  %v2721_v1 = vpop.f32.mrf.mxu3  ;;  %v805_v48 = vpack.c.bf16 %v3958_v46, %v3958_v46 }
 0x19e   : > { %v2545_v24 = vpop.f32.mrf.mxu1 }
 0x19f   : > { %v2722_v61 = vadd.f32 %v2721_v1, %v2633_v60  ;;  %v2546_v55 = vadd.f32 %v2545_v24, %v4914_v19  ;;  %v3925_v1 = vld [vmem:[%s4667_s10 + $0x21] sm:$0xff]  ;;  %v3959_v24 = vld [vmem:[%s4667_s10 + $0x4c] sm:$0xff] }
 0x1a0   : > { %v2812_v34 = vpop.f32.mrf.mxu0  ;;  %v739_v56 = vpack.c.bf16 %v3925_v1, %v3925_v1  ;;  %v806_v63 = vpack.c.bf16 %v3959_v24, %v3959_v24 }
 0x1a1   : > { %v5166_v39 = vadd.f32 %v2810_v42, %v2722_v61  ;;  %v3376_v42 = vsel %vm3344_vm2, 1, %v4529_v51  ;;  %v4025_v61 = vld [vmem:[%s4667_s10 + $0x4e] sm:$0xff] }
 0x1a2   : > { %3413 = vperm.xlu1 %4482, %v3376_v42   ;;  %v1482_v42 = vunpack.c.l.b16 %v740_v30 }
 0x1a4   : > { %v2634_v26 = vpop.f32.mrf.mxu2 }
 0x1a5   : > { %v2635_v9 = vadd.f32 %v2634_v26, %v2546_v55  ;;  %v2723_v59 = vpop.f32.mrf.mxu3  ;;  %v872_v26 = vpack.c.bf16 %v3992_v11, %v3992_v11 }
 0x1a6   : > { %v2548_v5 = vpop.f32.mrf.mxu1 }
 0x1a7   : > { %v2724_v19 = vadd.f32 %v2723_v59, %v2635_v9  ;;  %v2549_v23 = vadd.f32 %v2548_v5, %v4930_v35  ;;  %v937_v9 = vpack.c.bf16 %v4024_v32, %v4024_v32  ;;  %v938_v59 = vpack.c.bf16 %v4025_v61, %v4025_v61 }
 0x1a8   : > { %v2815_v60 = vpop.f32.mrf.mxu0  ;;  %v1577_v5 = vunpack.c.l.b16 %v805_v48  ;;  %v1674_v1 = vunpack.c.l.b16 %v872_v26  ;;  %v3960_v48 = vld [vmem:[%s4667_s10 + $0x54] sm:$0xff] }
 0x1a9   : > { %2863 = vmatmul.bf16.gmra.mxu1 %v1510_v47  ;;  %2952 = vmatmul.bf16.gmra.mxu2 %v1606_v22  ;;  %v5174_v41 = vadd.f32 %v2812_v34, %v2724_v19  ;;  %v3377_v34 = vsel %vm3345_vm3, 1, %v4529_v51  ;;  %v1481_v22 = vunpack.c.l.b16 %v739_v56  ;;  %v1673_v19 = vunpack.c.l.b16 %v871_v4  ;;  %v3994_v4 = vld [vmem:[%s4667_s10 + $0x5d] sm:$0xff] }
 0x1aa   : > { %3041 = vmatmul.bf16.gmra.mxu3 %v1702_v52  ;;  %3416 = vperm.xlu1 %4482, %v3377_v34   ;;  %v1578_v52 = vunpack.c.l.b16 %v806_v63  ;;  %v1769_v14 = vunpack.c.l.b16 %v937_v9  ;;  %v1770_v46 = vunpack.c.l.b16 %v938_v59  ;;  %v3961_v63 = vld [vmem:[%s4667_s10 + $0x5c] sm:$0xff] }
 0x1ab   : > { %3130 = vmatmul.bf16.gmra.mxu0 %v1798_v8  ;;  %v1511_v32 = vpack.c.b16 %v1482_v42, %v1481_v22  ;;  %v3993_v34 = vld [vmem:[%s4667_s10 + $0x55] sm:$0xff]  ;;  %v4027_v9 = vld [vmem:[%s4667_s10 + $0x5e] sm:$0xff] }
 0x1ac   : > { %v2637_v21 = vpop.f32.mrf.mxu2  ;;  %v1607_v61 = vpack.c.b16 %v1578_v52, %v1577_v5  ;;  %v4026_v26 = vld [vmem:[%s4667_s10 + $0x56] sm:$0xff]  ;;  %v807_v52 = vpack.c.bf16 %v3960_v48, %v3960_v48 }
 0x1ad   : > { %v2638_v13 = vadd.f32 %v2637_v21, %v2549_v23  ;;  %v2726_v2 = vpop.f32.mrf.mxu3  ;;  %v1799_v21 = vpack.c.b16 %v1770_v46, %v1769_v14  ;;  %v874_v14 = vpack.c.bf16 %v3994_v4, %v3994_v4  ;;  %v939_v46 = vpack.c.bf16 %v4026_v26, %v4026_v26  ;;  %v3316_v48 = vld [vmem:[%s4602_s9 + $0x30] sm:$0xff] }
 0x1ae   : > { %v2550_v55 = vpop.f32.mrf.mxu1  ;;  %vm3348_vm4 = vcmp.gt.f32.partialorder %v3316_v48, 0.5 }
 0x1af   : > { %v2727_v35 = vadd.f32 %v2726_v2, %v2638_v13  ;;  %v2551_v24 = vadd.f32 %v2550_v55, %v4938_v57  ;;  %v3927_v13 = vld [vmem:[%s4667_s10 + $0x31] sm:$0xff]  ;;  %v3928_v57 = vld [vmem:[%s4667_s10 + $0x39] sm:$0xff] }
 0x1b0   : > { %v2817_v47 = vpop.f32.mrf.mxu0  ;;  %v742_v5 = vpack.c.bf16 %v3928_v57, %v3928_v57 }
 0x1b1   : > { %v5184_v8 = vadd.f32 %v2815_v60, %v2727_v35  ;;  %v1703_v60 = vpack.c.b16 %v1674_v1, %v1673_v19  ;;  %v741_v35 = vpack.c.bf16 %v3927_v13, %v3927_v13  ;;  %v808_v19 = vpack.c.bf16 %v3961_v63, %v3961_v63 }
 0x1b4   : > { %v2639_v28 = vpop.f32.mrf.mxu2 }
 0x1b5   : > { %v2640_v11 = vadd.f32 %v2639_v28, %v2551_v24  ;;  %v2728_v23 = vpop.f32.mrf.mxu3  ;;  %v940_v24 = vpack.c.bf16 %v4027_v9, %v4027_v9 }
 0x1b6   : > { %v2553_v27 = vpop.f32.mrf.mxu1 }
 0x1b7   : > { %v2729_v56 = vadd.f32 %v2728_v23, %v2640_v11  ;;  %v2554_v55 = vadd.f32 %v2553_v27, %v4960_v15  ;;  %v1483_v23 = vunpack.c.l.b16 %v741_v35  ;;  %v1484_v15 = vunpack.c.l.b16 %v742_v5  ;;  %v3930_v5 = vld [vmem:[%s4667_s10 + $0x49] sm:$0xff] }
 0x1b8   : > { %v2820_v30 = vpop.f32.mrf.mxu0  ;;  %v1772_v13 = vunpack.c.l.b16 %v940_v24 }
 0x1b9   : > { %2868 = vmatmul.bf16.gmra.mxu1 %v1511_v32  ;;  %2957 = vmatmul.bf16.gmra.mxu2 %v1607_v61  ;;  %v5189_v2 = vadd.f32 %v2817_v47, %v2729_v56  ;;  %v873_v47 = vpack.c.bf16 %v3993_v34, %v3993_v34  ;;  %v1579_v32 = vunpack.c.l.b16 %v807_v52  ;;  %v1580_v61 = vunpack.c.l.b16 %v808_v19  ;;  %v3962_v52 = vld [vmem:[%s4667_s10 + $0x64] sm:$0xff]  ;;  %v3963_v19 = vld [vmem:[%s4667_s10 + $0x6c] sm:$0xff] }
 0x1ba   : > { %3046 = vmatmul.bf16.gmra.mxu3 %v1703_v60  ;;  %v1771_v56 = vunpack.c.l.b16 %v939_v46  ;;  %v1512_v4 = vpack.c.b16 %v1484_v15, %v1483_v23  ;;  %v4028_v46 = vld [vmem:[%s4667_s10 + $0x66] sm:$0xff]  ;;  %v744_v23 = vpack.c.bf16 %v3930_v5, %v3930_v5  ;;  %v4029_v15 = vld [vmem:[%s4667_s10 + $0x6e] sm:$0xff] }
 0x1bb   : > { %3135 = vmatmul.bf16.gmra.mxu0 %v1799_v21  ;;  %v1675_v60 = vunpack.c.l.b16 %v873_v47  ;;  %v1676_v21 = vunpack.c.l.b16 %v874_v14  ;;  %v1608_v26 = vpack.c.b16 %v1580_v61, %v1579_v32  ;;  %v3995_v47 = vld [vmem:[%s4667_s10 + $0x65] sm:$0xff]  ;;  %v3996_v14 = vld [vmem:[%s4667_s10 + $0x6d] sm:$0xff]  ;;  %v3317_v61 = vld [vmem:[%s4602_s9 + $0x38] sm:$0xff] }
 0x1bc   : > { %v2642_v59 = vpop.f32.mrf.mxu2  ;;  %v1800_v35 = vpack.c.b16 %v1772_v13, %v1771_v56  ;;  %v3314_v32 = vld [vmem:[%s4602_s9 + $0x20] sm:$0xff]  ;;  %v810_v56 = vpack.c.bf16 %v3963_v19, %v3963_v19  ;;  %vm3349_vm6 = vcmp.gt.f32.partialorder %v3317_v61, 0.5 }
 0x1bd   : > { %v2643_v22 = vadd.f32 %v2642_v59, %v2554_v55  ;;  %v2731_v42 = vpop.f32.mrf.mxu3  ;;  %v1704_v59 = vpack.c.b16 %v1676_v21, %v1675_v60  ;;  %v809_v21 = vpack.c.bf16 %v3962_v52, %v3962_v52  ;;  %vm3346_vm5 = vcmp.gt.f32.partialorder %v3314_v32, 0.5 }
 0x1be   : > { %v2555_v1 = vpop.f32.mrf.mxu1  ;;  %v3378_v48 = vsel %vm3346_vm5, 1, %v4529_v51 }
 0x1bf   : > { %v2732_v28 = vadd.f32 %v2731_v42, %v2643_v22  ;;  %v2556_v57 = vadd.f32 %v2555_v1, %v4974_v44  ;;  %v3929_v42 = vld [vmem:[%s4667_s10 + $0x41] sm:$0xff]  ;;  %3419 = vperm.xlu2 %4483, %v3378_v48  }
 0x1c0   : > { %v2822_v11 = vpop.f32.mrf.mxu0 }
 0x1c1   : > { %v5198_v27 = vadd.f32 %v2820_v30, %v2732_v28  ;;  %v3380_v30 = vsel %vm3348_vm4, 1, %v4529_v51  ;;  %v743_v28 = vpack.c.bf16 %v3929_v42, %v3929_v42 }
 0x1c2   : > { %3425 = vperm.xlu0 %4481, %v3380_v30  }
 0x1c4   : > { %v2644_v63 = vpop.f32.mrf.mxu2 }
 0x1c5   : > { %v2645_v34 = vadd.f32 %v2644_v63, %v2556_v57  ;;  %v2733_v55 = vpop.f32.mrf.mxu3  ;;  %v875_v57 = vpack.c.bf16 %v3995_v47, %v3995_v47  ;;  %v3381_v63 = vsel %vm3349_vm6, 1, %v4529_v51 }
 0x1c6   : > { %v2558_v9 = vpop.f32.mrf.mxu1  ;;  %3428 = vperm.xlu1 %4482, %v3381_v63   ;;  %v3965_v63 = vld [vmem:[%s4667_s10 + $0x7c] sm:$0xff] }
 0x1c7   : > { %v2734_v44 = vadd.f32 %v2733_v55, %v2645_v34  ;;  %v2559_v24 = vadd.f32 %v2558_v9, %v4990_v6  ;;  %v876_v55 = vpack.c.bf16 %v3996_v14, %v3996_v14  ;;  %v941_v6 = vpack.c.bf16 %v4028_v46, %v4028_v46  ;;  %v3315_v14 = vld [vmem:[%s4602_s9 + $0x28] sm:$0xff] }
 0x1c8   : > { %v2825_v22 = vpop.f32.mrf.mxu0  ;;  %v1485_v9 = vunpack.c.l.b16 %v743_v28  ;;  %v1677_v5 = vunpack.c.l.b16 %v875_v57  ;;  %vm3347_vm7 = vcmp.gt.f32.partialorder %v3315_v14, 0.5  ;;  %v3964_v57 = vld [vmem:[%s4667_s10 + $0x74] sm:$0xff] }
 0x1c9   : > { %2873 = vmatmul.bf16.gmra.mxu1 %v1512_v4  ;;  %2962 = vmatmul.bf16.gmra.mxu2 %v1608_v26  ;;  %v5207_v1 = vadd.f32 %v2822_v11, %v2734_v44  ;;  %v942_v4 = vpack.c.bf16 %v4029_v15, %v4029_v15  ;;  %v1582_v44 = vunpack.c.l.b16 %v810_v56  ;;  %v1678_v52 = vunpack.c.l.b16 %v876_v55  ;;  %v3998_v55 = vld [vmem:[%s4667_s10 + $0x7d] sm:$0xff] }
 0x1ca   : > { %3051 = vmatmul.bf16.gmra.mxu3 %v1704_v59  ;;  %v1486_v59 = vunpack.c.l.b16 %v744_v23  ;;  %v1773_v19 = vunpack.c.l.b16 %v941_v6 }
 0x1cb   : > { %3140 = vmatmul.bf16.gmra.mxu0 %v1800_v35  ;;  %v1581_v35 = vunpack.c.l.b16 %v809_v21  ;;  %v1774_v47 = vunpack.c.l.b16 %v942_v4  ;;  %v4030_v4 = vld [vmem:[%s4667_s10 + $0x76] sm:$0xff] }
 0x1cc   : > { %v2647_v60 = vpop.f32.mrf.mxu2  ;;  %v1513_v28 = vpack.c.b16 %v1486_v59, %v1485_v9  ;;  %v3319_v9 = vld [vmem:[%s4602_s9 + $0x48] sm:$0xff] }
 0x1cd   : > { %v2648_v13 = vadd.f32 %v2647_v60, %v2559_v24  ;;  %v2736_v11 = vpop.f32.mrf.mxu3  ;;  %v1609_v23 = vpack.c.b16 %v1582_v44, %v1581_v35  ;;  %v1705_v60 = vpack.c.b16 %v1678_v52, %v1677_v5  ;;  %v1801_v21 = vpack.c.b16 %v1774_v47, %v1773_v19 }
 0x1ce   : > { %v2560_v34 = vpop.f32.mrf.mxu1  ;;  %vm3351_vm8 = vcmp.gt.f32.partialorder %v3319_v9, 0.5  ;;  %v811_v19 = vpack.c.bf16 %v3964_v57, %v3964_v57  ;;  %v812_v47 = vpack.c.bf16 %v3965_v63, %v3965_v63 }
 0x1cf   : > { %v2737_v26 = vadd.f32 %v2736_v11, %v2648_v13  ;;  %v2561_v24 = vadd.f32 %v2560_v34, %v4998_v37  ;;  %v3931_v13 = vld [vmem:[%s4667_s10 + $0x51] sm:$0xff]  ;;  %v3932_v11 = vld [vmem:[%s4667_s10 + $0x59] sm:$0xff] }
 0x1d0   : > { %v2827_v30 = vpop.f32.mrf.mxu0  ;;  %v3997_v34 = vld [vmem:[%s4667_s10 + $0x75] sm:$0xff]  ;;  %v745_v35 = vpack.c.bf16 %v3931_v13, %v3931_v13  ;;  %v746_v44 = vpack.c.bf16 %v3932_v11, %v3932_v11 }
 0x1d1   : > { %v5218_v42 = vadd.f32 %v2825_v22, %v2737_v26  ;;  %v3379_v22 = vsel %vm3347_vm7, 1, %v4529_v51  ;;  %v4031_v26 = vld [vmem:[%s4667_s10 + $0x7e] sm:$0xff]  ;;  %v877_v14 = vpack.c.bf16 %v3997_v34, %v3997_v34  ;;  %v3320_v34 = vld [vmem:[%s4602_s9 + $0x50] sm:$0xff] }
 0x1d2   : > { %3422 = vperm.xlu2 %4483, %v3379_v22   ;;  %v1488_v22 = vunpack.c.l.b16 %v746_v44  ;;  %vm3352_vm9 = vcmp.gt.f32.partialorder %v3320_v34, 0.5 }
 0x1d4   : > { %v2649_v46 = vpop.f32.mrf.mxu2 }
 0x1d5   : > { %v2650_v15 = vadd.f32 %v2649_v46, %v2561_v24  ;;  %v2738_v32 = vpop.f32.mrf.mxu3  ;;  %v878_v46 = vpack.c.bf16 %v3998_v55, %v3998_v55 }
 0x1d6   : > { %v2563_v61 = vpop.f32.mrf.mxu1 }
 0x1d7   : > { %v2739_v37 = vadd.f32 %v2738_v32, %v2650_v15  ;;  %v2564_v6 = vadd.f32 %v2563_v61, %v4902_v62  ;;  %v943_v15 = vpack.c.bf16 %v4030_v4, %v4030_v4  ;;  %v944_v32 = vpack.c.bf16 %v4031_v26, %v4031_v26 }
 0x1d8   : > { %v2830_v56 = vpop.f32.mrf.mxu0  ;;  %v1583_v61 = vunpack.c.l.b16 %v811_v19  ;;  %v1680_v13 = vunpack.c.l.b16 %v878_v46  ;;  %v3934_v19 = vld [vmem:[%s4667_s10 + $0x69] sm:$0xff] }
 0x1d9   : > { %2878 = vmatmul.bf16.gmra.mxu1 %v1513_v28  ;;  %2967 = vmatmul.bf16.gmra.mxu2 %v1609_v23  ;;  %v5226_v48 = vadd.f32 %v2827_v30, %v2739_v37  ;;  %v3383_v30 = vsel %vm3351_vm8, 1, %v4529_v51  ;;  %v1487_v23 = vunpack.c.l.b16 %v745_v35  ;;  %v1679_v37 = vunpack.c.l.b16 %v877_v14  ;;  %v3999_v14 = vld [vmem:[%s4667_s10 + $0x85] sm:$0xff]  ;;  %v4000_v46 = vld [vmem:[%s4667_s10 + $0x8d] sm:$0xff] }
 0x1da   : > { %3056 = vmatmul.bf16.gmra.mxu3 %v1705_v60  ;;  %3434 = vperm.xlu0 %4481, %v3383_v30   ;;  %v1584_v60 = vunpack.c.l.b16 %v812_v47  ;;  %v1775_v11 = vunpack.c.l.b16 %v943_v15  ;;  %v1776_v57 = vunpack.c.l.b16 %v944_v32  ;;  %v3966_v47 = vld [vmem:[%s4667_s10 + $0x84] sm:$0xff]  ;;  %v879_v34 = vpack.c.bf16 %v3999_v14, %v3999_v14 }
 0x1db   : > { %3145 = vmatmul.bf16.gmra.mxu0 %v1801_v21  ;;  %v1514_v26 = vpack.c.b16 %v1488_v22, %v1487_v23  ;;  %v1706_v35 = vpack.c.b16 %v1680_v13, %v1679_v37  ;;  %v4032_v32 = vld [vmem:[%s4667_s10 + $0x86] sm:$0xff] }
 0x1dc   : > { %v2652_v59 = vpop.f32.mrf.mxu2  ;;  %v1610_v9 = vpack.c.b16 %v1584_v60, %v1583_v61  ;;  %v1802_v44 = vpack.c.b16 %v1776_v57, %v1775_v11  ;;  %v3318_v23 = vld [vmem:[%s4602_s9 + $0x40] sm:$0xff]  ;;  %v748_v60 = vpack.c.bf16 %v3934_v19, %v3934_v19  ;;  %v813_v11 = vpack.c.bf16 %v3966_v47, %v3966_v47 }
 0x1dd   : > { %v2653_v5 = vadd.f32 %v2652_v59, %v2564_v6  ;;  %v2741_v52 = vpop.f32.mrf.mxu3  ;;  %vm3350_vm10 = vcmp.gt.f32.partialorder %v3318_v23, 0.5  ;;  %v3322_v14 = vld [vmem:[%s4602_s9 + $0x60] sm:$0xff] }
 0x1de   : > { %v2565_v24 = vpop.f32.mrf.mxu1  ;;  %vm3354_vm11 = vcmp.gt.f32.partialorder %v3322_v14, 0.5 }
 0x1df   : > { %v2742_v62 = vadd.f32 %v2741_v52, %v2653_v5  ;;  %v2566_v63 = vadd.f32 %v2565_v24, %v4916_v20  ;;  %v3933_v52 = vld [vmem:[%s4667_s10 + $0x61] sm:$0xff]  ;;  %v3967_v24 = vld [vmem:[%s4667_s10 + $0x8c] sm:$0xff] }
 0x1e0   : > { %v2832_v28 = vpop.f32.mrf.mxu0  ;;  %v747_v61 = vpack.c.bf16 %v3933_v52, %v3933_v52  ;;  %v814_v57 = vpack.c.bf16 %v3967_v24, %v3967_v24 }
 0x1e1   : > { %v5236_v21 = vadd.f32 %v2830_v56, %v2742_v62  ;;  %v3384_v56 = vsel %vm3352_vm9, 1, %v4529_v51  ;;  %v4033_v62 = vld [vmem:[%s4667_s10 + $0x8e] sm:$0xff] }
 0x1e2   : > { %3437 = vperm.xlu1 %4482, %v3384_v56   ;;  %v1490_v56 = vunpack.c.l.b16 %v748_v60 }
 0x1e4   : > { %v2654_v55 = vpop.f32.mrf.mxu2 }
 0x1e5   : > { %v2655_v6 = vadd.f32 %v2654_v55, %v2566_v63  ;;  %v2743_v4 = vpop.f32.mrf.mxu3  ;;  %v880_v55 = vpack.c.bf16 %v4000_v46, %v4000_v46 }
 0x1e6   : > { %v2568_v59 = vpop.f32.mrf.mxu1 }
 0x1e7   : > { %v2744_v20 = vadd.f32 %v2743_v4, %v2655_v6  ;;  %v2569_v15 = vadd.f32 %v2568_v59, %v4932_v36  ;;  %v945_v6 = vpack.c.bf16 %v4032_v32, %v4032_v32  ;;  %v946_v4 = vpack.c.bf16 %v4033_v62, %v4033_v62 }
 0x1e8   : > { %v2835_v5 = vpop.f32.mrf.mxu0  ;;  %v1585_v59 = vunpack.c.l.b16 %v813_v11  ;;  %v1682_v52 = vunpack.c.l.b16 %v880_v55  ;;  %v3936_v11 = vld [vmem:[%s4667_s10 + $0x79] sm:$0xff] }
 0x1e9   : > { %2883 = vmatmul.bf16.gmra.mxu1 %v1514_v26  ;;  %2972 = vmatmul.bf16.gmra.mxu2 %v1610_v9  ;;  %v5244_v30 = vadd.f32 %v2832_v28, %v2744_v20  ;;  %v3382_v28 = vsel %vm3350_vm10, 1, %v4529_v51  ;;  %v1489_v9 = vunpack.c.l.b16 %v747_v61  ;;  %v1681_v20 = vunpack.c.l.b16 %v879_v34  ;;  %v4001_v34 = vld [vmem:[%s4667_s10 + $0x95] sm:$0xff]  ;;  %v4002_v55 = vld [vmem:[%s4667_s10 + $0x9d] sm:$0xff] }
 0x1ea   : > { %3061 = vmatmul.bf16.gmra.mxu3 %v1706_v35  ;;  %3431 = vperm.xlu2 %4483, %v3382_v28   ;;  %v1586_v35 = vunpack.c.l.b16 %v814_v57  ;;  %v1777_v19 = vunpack.c.l.b16 %v945_v6  ;;  %v1778_v47 = vunpack.c.l.b16 %v946_v4  ;;  %v3968_v57 = vld [vmem:[%s4667_s10 + $0x94] sm:$0xff]  ;;  %v881_v14 = vpack.c.bf16 %v4001_v34, %v4001_v34 }
 0x1eb   : > { %3150 = vmatmul.bf16.gmra.mxu0 %v1802_v44  ;;  %v1515_v62 = vpack.c.b16 %v1490_v56, %v1489_v9  ;;  %v1707_v61 = vpack.c.b16 %v1682_v52, %v1681_v20  ;;  %v4034_v4 = vld [vmem:[%s4667_s10 + $0x96] sm:$0xff]  ;;  %v3323_v9 = vld [vmem:[%s4602_s9 + $0x68] sm:$0xff] }
 0x1ec   : > { %v2657_v22 = vpop.f32.mrf.mxu2  ;;  %v1611_v23 = vpack.c.b16 %v1586_v35, %v1585_v59  ;;  %v1803_v60 = vpack.c.b16 %v1778_v47, %v1777_v19  ;;  %v750_v35 = vpack.c.bf16 %v3936_v11, %v3936_v11  ;;  %vm3355_vm12 = vcmp.gt.f32.partialorder %v3323_v9, 0.5  ;;  %v3321_v34 = vld [vmem:[%s4602_s9 + $0x58] sm:$0xff] }
 0x1ed   : > { %v2658_v37 = vadd.f32 %v2657_v22, %v2569_v15  ;;  %v2746_v13 = vpop.f32.mrf.mxu3  ;;  %v815_v19 = vpack.c.bf16 %v3968_v57, %v3968_v57  ;;  %vm3353_vm13 = vcmp.gt.f32.partialorder %v3321_v34, 0.5 }
 0x1ee   : > { %v2570_v63 = vpop.f32.mrf.mxu1 }
 0x1ef   : > { %v2747_v36 = vadd.f32 %v2746_v13, %v2658_v37  ;;  %v2571_v24 = vadd.f32 %v2570_v63, %v4940_v58  ;;  %v3935_v13 = vld [vmem:[%s4667_s10 + $0x71] sm:$0xff]  ;;  %v3969_v63 = vld [vmem:[%s4667_s10 + $0x9c] sm:$0xff] }
 0x1f0   : > { %v2837_v26 = vpop.f32.mrf.mxu0  ;;  %v749_v59 = vpack.c.bf16 %v3935_v13, %v3935_v13  ;;  %v816_v47 = vpack.c.bf16 %v3969_v63, %v3969_v63 }
 0x1f1   : > { %v5254_v44 = vadd.f32 %v2835_v5, %v2747_v36  ;;  %v3386_v5 = vsel %vm3354_vm11, 1, %v4529_v51  ;;  %v4035_v36 = vld [vmem:[%s4667_s10 + $0x9e] sm:$0xff] }
 0x1f2   : > { %3443 = vperm.xlu0 %4481, %v3386_v5   ;;  %v1492_v5 = vunpack.c.l.b16 %v750_v35 }
 0x1f4   : > { %v2659_v46 = vpop.f32.mrf.mxu2 }
 0x1f5   : > { %v2660_v15 = vadd.f32 %v2659_v46, %v2571_v24  ;;  %v2748_v32 = vpop.f32.mrf.mxu3  ;;  %v882_v46 = vpack.c.bf16 %v4002_v55, %v4002_v55 }
 0x1f6   : > { %v2573_v22 = vpop.f32.mrf.mxu1 }
 0x1f7   : > { %v2749_v58 = vadd.f32 %v2748_v32, %v2660_v15  ;;  %v2574_v6 = vadd.f32 %v2573_v22, %v4962_v16  ;;  %v947_v15 = vpack.c.bf16 %v4034_v4, %v4034_v4  ;;  %v948_v32 = vpack.c.bf16 %v4035_v36, %v4035_v36 }
 0x1f8   : > { %v2840_v37 = vpop.f32.mrf.mxu0  ;;  %v1587_v22 = vunpack.c.l.b16 %v815_v19  ;;  %v1684_v13 = vunpack.c.l.b16 %v882_v46  ;;  %v3938_v19 = vld [vmem:[%s4667_s10 + $0x89] sm:$0xff] }
 0x1f9   : > { %2888 = vmatmul.bf16.gmra.mxu1 %v1515_v62  ;;  %2977 = vmatmul.bf16.gmra.mxu2 %v1611_v23  ;;  %v5262_v28 = vadd.f32 %v2837_v26, %v2749_v58  ;;  %v3387_v26 = vsel %vm3355_vm12, 1, %v4529_v51  ;;  %v1491_v23 = vunpack.c.l.b16 %v749_v59  ;;  %v1683_v58 = vunpack.c.l.b16 %v881_v14  ;;  %v4003_v14 = vld [vmem:[%s4667_s10 + $0xa5] sm:$0xff]  ;;  %v4004_v46 = vld [vmem:[%s4667_s10 + $0xad] sm:$0xff] }
 0x1fa   : > { %3066 = vmatmul.bf16.gmra.mxu3 %v1707_v61  ;;  %3446 = vperm.xlu1 %4482, %v3387_v26   ;;  %v1588_v61 = vunpack.c.l.b16 %v816_v47  ;;  %v1779_v11 = vunpack.c.l.b16 %v947_v15  ;;  %v1780_v57 = vunpack.c.l.b16 %v948_v32  ;;  %v3970_v47 = vld [vmem:[%s4667_s10 + $0xa4] sm:$0xff]  ;;  %v883_v34 = vpack.c.bf16 %v4003_v14, %v4003_v14 }
 0x1fb   : > { %3155 = vmatmul.bf16.gmra.mxu0 %v1803_v60  ;;  %v1516_v36 = vpack.c.b16 %v1492_v5, %v1491_v23  ;;  %v1708_v59 = vpack.c.b16 %v1684_v13, %v1683_v58  ;;  %v4036_v32 = vld [vmem:[%s4667_s10 + $0xa6] sm:$0xff]  ;;  %v3325_v23 = vld [vmem:[%s4602_s9 + $0x78] sm:$0xff] }
 0x1fc   : > { %v2662_v56 = vpop.f32.mrf.mxu2  ;;  %v1612_v9 = vpack.c.b16 %v1588_v61, %v1587_v22  ;;  %v1804_v35 = vpack.c.b16 %v1780_v57, %v1779_v11  ;;  %v752_v61 = vpack.c.bf16 %v3938_v19, %v3938_v19  ;;  %vm3357_vm14 = vcmp.gt.f32.partialorder %v3325_v23, 0.5  ;;  %v3326_v14 = vld [vmem:[%s4602_s9 + $0x80] sm:$0xff] }
 0x1fd   : > { %v2663_v20 = vadd.f32 %v2662_v56, %v2574_v6  ;;  %v2751_v52 = vpop.f32.mrf.mxu3  ;;  %v817_v11 = vpack.c.bf16 %v3970_v47, %v3970_v47  ;;  %vm3358_vm15 = vcmp.gt.f32.partialorder %v3326_v14, 0.5 }
 0x1fe   : > { %v2575_v24 = vpop.f32.mrf.mxu1 }
 0x1ff   : > { %v2752_v16 = vadd.f32 %v2751_v52, %v2663_v20  ;;  %v2576_v63 = vadd.f32 %v2575_v24, %v4976_v45  ;;  %v3937_v52 = vld [vmem:[%s4667_s10 + $0x81] sm:$0xff]  ;;  %v3971_v24 = vld [vmem:[%s4667_s10 + $0xac] sm:$0xff] }
 0x200   : > { %v2842_v62 = vpop.f32.mrf.mxu0  ;;  %v751_v22 = vpack.c.bf16 %v3937_v52, %v3937_v52  ;;  %v818_v57 = vpack.c.bf16 %v3971_v24, %v3971_v24 }
 0x201   : > { %v5272_v60 = vadd.f32 %v2840_v37, %v2752_v16  ;;  %v3385_v37 = vsel %vm3353_vm13, 1, %v4529_v51  ;;  %v4037_v16 = vld [vmem:[%s4667_s10 + $0xae] sm:$0xff] }
 0x202   : > { %3440 = vperm.xlu2 %4483, %v3385_v37   ;;  %v1494_v37 = vunpack.c.l.b16 %v752_v61 }
 0x204   : > { %v2664_v55 = vpop.f32.mrf.mxu2  ;;  %v3408_v14 = vpop.permute.xlu0 %3407 }
 0x205   : > { %v2665_v6 = vadd.f32 %v2664_v55, %v2576_v63  ;;  %v2753_v4 = vpop.f32.mrf.mxu3  ;;  %v884_v55 = vpack.c.bf16 %v4004_v46, %v4004_v46  ;;  %vm3502_vm5 = vcmp.eq.s32.totalorder %v3408_v14, 1  ;;  %v3974_v14 = vld [vmem:[%s4667_s10 + $0xc4] sm:$0xff] }
 0x206   : > { %v2578_v56 = vpop.f32.mrf.mxu1 }
 0x207   : > { %v2754_v45 = vadd.f32 %v2753_v4, %v2665_v6  ;;  %v2579_v15 = vadd.f32 %v2578_v56, %v4992_v7  ;;  %v949_v6 = vpack.c.bf16 %v4036_v32, %v4036_v32  ;;  %v950_v4 = vpack.c.bf16 %v4037_v16, %v4037_v16 }
 0x208   : > { %v2845_v20 = vpop.f32.mrf.mxu0  ;;  %v1589_v56 = vunpack.c.l.b16 %v817_v11  ;;  %v1686_v52 = vunpack.c.l.b16 %v884_v55  ;;  %v3940_v11 = vld [vmem:[%s4667_s10 + $0x99] sm:$0xff] }
 0x209   : > { %2893 = vmatmul.bf16.gmra.mxu1 %v1516_v36  ;;  %2982 = vmatmul.bf16.gmra.mxu2 %v1612_v9  ;;  %v5280_v26 = vadd.f32 %v2842_v62, %v2754_v45  ;;  %v3389_v62 = vsel %vm3357_vm14, 1, %v4529_v51  ;;  %v1493_v9 = vunpack.c.l.b16 %v751_v22  ;;  %v1685_v45 = vunpack.c.l.b16 %v883_v34  ;;  %v4006_v55 = vld [vmem:[%s4667_s10 + $0xbd] sm:$0xff] }
 0x20a   : > { %3071 = vmatmul.bf16.gmra.mxu3 %v1708_v59  ;;  %3452 = vperm.xlu0 %4481, %v3389_v62   ;;  %v1590_v59 = vunpack.c.l.b16 %v818_v57  ;;  %v1781_v19 = vunpack.c.l.b16 %v949_v6  ;;  %v1782_v47 = vunpack.c.l.b16 %v950_v4  ;;  %v3972_v57 = vld [vmem:[%s4667_s10 + $0xb4] sm:$0xff]  ;;  %v3973_v62 = vld [vmem:[%s4667_s10 + $0xbc] sm:$0xff] }
 0x20b   : > { %3160 = vmatmul.bf16.gmra.mxu0 %v1804_v35  ;;  %v1517_v16 = vpack.c.b16 %v1494_v37, %v1493_v9  ;;  %v1709_v22 = vpack.c.b16 %v1686_v52, %v1685_v45  ;;  %v4038_v6 = vld [vmem:[%s4667_s10 + $0xb6] sm:$0xff]  ;;  %v4039_v4 = vld [vmem:[%s4667_s10 + $0xbe] sm:$0xff]  ;;  %v754_v37 = vpack.c.bf16 %v3940_v11, %v3940_v11 }
 0x20c   : > { %v2667_v5 = vpop.f32.mrf.mxu2  ;;  %v1613_v23 = vpack.c.b16 %v1590_v59, %v1589_v56  ;;  %v1805_v61 = vpack.c.b16 %v1782_v47, %v1781_v19  ;;  %v819_v56 = vpack.c.bf16 %v3972_v57, %v3972_v57  ;;  %v3324_v59 = vld [vmem:[%s4602_s9 + $0x70] sm:$0xff]  ;;  %v3329_v45 = vld [vmem:[%s4602_s9 + $0x98] sm:$0xff]  ;;  %v820_v47 = vpack.c.bf16 %v3973_v62, %v3973_v62 }
 0x20d   : > { %v2668_v58 = vadd.f32 %v2667_v5, %v2579_v15  ;;  %v2756_v13 = vpop.f32.mrf.mxu3  ;;  %v3328_v52 = vld [vmem:[%s4602_s9 + $0x90] sm:$0xff]  ;;  %vm3356_vm0 = vcmp.gt.f32.partialorder %v3324_v59, 0.5  ;;  %vm3361_vm1 = vcmp.gt.f32.partialorder %v3329_v45, 0.5  ;;  %v1496_v11 = vunpack.c.l.b16 %v754_v37 }
 0x20e   : > { %v2580_v63 = vpop.f32.mrf.mxu1  ;;  %vm3360_vm2 = vcmp.gt.f32.partialorder %v3328_v52, 0.5  ;;  %v1591_v57 = vunpack.c.l.b16 %v819_v56  ;;  %v1592_v62 = vunpack.c.l.b16 %v820_v47 }
 0x20f   : > { %v2757_v7 = vadd.f32 %v2756_v13, %v2668_v58  ;;  %v2581_v24 = vadd.f32 %v2580_v63, %v5000_v38  ;;  %v3939_v13 = vld [vmem:[%s4667_s10 + $0x91] sm:$0xff] }
 0x210   : > { %v2847_v36 = vpop.f32.mrf.mxu0  ;;  %v4005_v63 = vld [vmem:[%s4667_s10 + $0xb5] sm:$0xff]  ;;  %v753_v9 = vpack.c.bf16 %v3939_v13, %v3939_v13  ;;  %v1614_v56 = vpack.c.b16 %v1592_v62, %v1591_v57  ;;  %v3975_v62 = vld [vmem:[%s4667_s10 + $0xcc] sm:$0xff] }
 0x211   : > { %v5290_v35 = vadd.f32 %v2845_v20, %v2757_v7  ;;  %v3390_v20 = vsel %vm3358_vm15, 1, %v4529_v51 }
 0x212   : > { %3455 = vperm.xlu1 %4482, %v3390_v20   ;;  %v952_v20 = vpack.c.bf16 %v4039_v4, %v4039_v4  ;;  %v1495_v13 = vunpack.c.l.b16 %v753_v9 }
 0x214   : > { %v2669_v46 = vpop.f32.mrf.mxu2  ;;  %v1784_v59 = vunpack.c.l.b16 %v952_v20  ;;  %v1518_v37 = vpack.c.b16 %v1496_v11, %v1495_v13  ;;  %v3942_v13 = vld [vmem:[%s4667_s10 + $0xa9] sm:$0xff] }
 0x215   : > { %v2670_v15 = vadd.f32 %v2669_v46, %v2581_v24  ;;  %v2758_v32 = vpop.f32.mrf.mxu3  ;;  %v885_v46 = vpack.c.bf16 %v4005_v63, %v4005_v63 }
 0x216   : > { %v2859_v5 = vpop.f32.mrf.mxu1 }
 0x217   : > { %v2759_v38 = vadd.f32 %v2758_v32, %v2670_v15  ;;  %v2860_v7 = vadd.f32 %v2859_v5, %v5024_v49  ;;  %v3388_v15 = vsel %vm3356_vm0, 1, %v4529_v51  ;;  %v3393_v32 = vsel %vm3361_vm1, 1, %v4529_v51 }
 0x218   : > { %v3126_v58 = vpop.f32.mrf.mxu0  ;;  %3449 = vperm.xlu2 %4483, %v3388_v15   ;;  %v3392_v5 = vsel %vm3360_vm2, 1, %v4529_v51 }
 0x219   : > { %2898 = vmatmul.bf16.gmra.mxu1 %v1517_v16  ;;  %2987 = vmatmul.bf16.gmra.mxu2 %v1613_v23  ;;  %v5300_v34 = vadd.f32 %v2847_v36, %v2759_v38  ;;  %v886_v16 = vpack.c.bf16 %v4006_v55, %v4006_v55  ;;  %v951_v23 = vpack.c.bf16 %v4038_v6, %v4038_v6  ;;  %v5320_v55 = vld [vmem:[%s5557_s3] ss:$0 sm:$0xff]  ;;  %v1687_v6 = vunpack.c.l.b16 %v885_v46 }
 0x21a   : > { %3076 = vmatmul.bf16.gmra.mxu3 %v1709_v22  ;;  %3464 = vperm.xlu1 %4482, %v3393_v32  }
 0x21b   : > { %3165 = vmatmul.bf16.gmra.mxu0 %v1805_v61  ;;  %v5315_v61 = vld [vmem:[%s5556_s2] ss:$0 sm:$0xff]  ;;  %3461 = vperm.xlu0 %4481, %v3392_v5   ;;  %v1688_v4 = vunpack.c.l.b16 %v886_v16  ;;  %v3411_v5 = vpop.permute.xlu0 %3410 }
 0x21c   : > { %v2948_v19 = vpop.f32.mrf.mxu2  ;;  %vm3503_vm6 = vcmp.eq.s32.totalorder %v3411_v5, 1 }
 0x21d   : > { %v2949_v36 = vadd.f32 %v2948_v19, %v2860_v7  ;;  %v3037_v24 = vpop.f32.mrf.mxu3  ;;  %v1783_v7 = vunpack.c.l.b16 %v951_v23  ;;  %v3332_v19 = vld [vmem:[%s4602_s9 + $0xb0] sm:$0xff] }
 0x21e   : > { %v2861_v49 = vpop.f32.mrf.mxu1  ;;  %vm3364_vm3 = vcmp.gt.f32.partialorder %v3332_v19, 0.5  ;;  %v3335_v19 = vld [vmem:[%s4602_s9 + $0xc8] sm:$0xff] }
 0x21f   : > { %v3038_v22 = vadd.f32 %v3037_v24, %v2949_v36  ;;  %v2862_v52 = vadd.f32 %v2861_v49, %v5029_v17  ;;  %v3331_v36 = vld [vmem:[%s4602_s9 + $0xa8] sm:$0xff]  ;;  %v3396_v46 = vsel %vm3364_vm3, 1, %v4529_v51  ;;  %v1710_v17 = vpack.c.b16 %v1688_v4, %v1687_v6 }
 0x220   : > { %v3128_v38 = vpop.f32.mrf.mxu0  ;;  %vm3363_vm4 = vcmp.gt.f32.partialorder %v3331_v36, 0.5  ;;  %v1806_v49 = vpack.c.b16 %v1784_v59, %v1783_v7  ;;  %v4008_v6 = vld [vmem:[%s4667_s10 + $0xcd] sm:$0xff]  ;;  %v3334_v36 = vld [vmem:[%s4602_s9 + $0xc0] sm:$0xff]  ;;  %vm3367_vm7 = vcmp.gt.f32.partialorder %v3335_v19, 0.5 }
 0x221   : > { %v3127_v63 = vadd.f32 %v3126_v58, %v3038_v22  ;;  %v3395_v15 = vsel %vm3363_vm4, 1, %v4529_v51  ;;  %v3941_v22 = vld [vmem:[%s4667_s10 + $0xa1] sm:$0xff]  ;;  %vm3366_vm8 = vcmp.gt.f32.partialorder %v3334_v36, 0.5 }
 0x222   : > { %3473 = vperm.xlu1 %4482, %v3396_v46   ;;  %v4040_v4 = vld [vmem:[%s4667_s10 + $0xc6] sm:$0xff]  ;;  %v3414_v46 = vpop.permute.xlu1 %3413 }
 0x223   : > { %v3210_v45 = vmul.f32 %v5315_v61, %v3127_v63  ;;  %3470 = vperm.xlu0 %4481, %v3395_v15   ;;  %v4007_v63 = vld [vmem:[%s4667_s10 + $0xc5] sm:$0xff]  ;;  %vm3504_vm12 = vcmp.eq.s32.totalorder %v3414_v46, 1 }
 0x224   : > { %v2950_v9 = vpop.f32.mrf.mxu2  ;;  %v887_v15 = vpack.c.bf16 %v4007_v63, %v4007_v63 }
 0x225   : > { %v2951_v58 = vadd.f32 %v2950_v9, %v2862_v52  ;;  %v3039_v47 = vpop.f32.mrf.mxu3  ;;  %v3246_v24 = vadd.f32 %v5320_v55, %v3210_v45  ;;  %v756_v45 = vpack.c.bf16 %v3942_v13, %v3942_v13  ;;  %v4041_v52 = vld [vmem:[%s4667_s10 + $0xce] sm:$0xff] }
 0x226   : > { %v2864_v32 = vpop.f32.mrf.mxu1 }
 0x227   : > { %v3040_v16 = vadd.f32 %v3039_v47, %v2951_v58  ;;  %v3278_v23 = vmax.f32 %v3246_v24, 0.0  ;;  %v2865_v59 = vadd.f32 %v2864_v32, %v5038_v50  ;;  %v953_v50 = vpack.c.bf16 %v4040_v4, %v4040_v4 }
 0x228   : > { %v3131_v20 = vpop.f32.mrf.mxu0  ;;  %v954_v32 = vpack.c.bf16 %v4041_v52, %v4041_v52 }
 0x229   : > { %v3129_v11 = vadd.f32 %v3128_v38, %v3040_v16  ;;  %v3534_v57 = vsel %vm3502_vm5, %v3278_v23, 0.0  ;;  %2903 = vmatmul.bf16.gmra.mxu1 %v1518_v37  ;;  %2992 = vmatmul.bf16.gmra.mxu2 %v1614_v56  ;;  %v755_v38 = vpack.c.bf16 %v3941_v22, %v3941_v22  ;;  %v821_v37 = vpack.c.bf16 %v3974_v14, %v3974_v14 }
 0x22a   : > { %3566 = vst [vmem:[%s4608_s14] sm:$0xff] %v3534_v57  ;;  %3081 = vmatmul.bf16.gmra.mxu3 %v1710_v17  ;;  %v822_v56 = vpack.c.bf16 %v3975_v62, %v3975_v62  ;;  %v888_v17 = vpack.c.bf16 %v4008_v6, %v4008_v6  ;;  %v3399_v16 = vsel %vm3367_vm7, 1, %v4529_v51  ;;  %v3398_v23 = vsel %vm3366_vm8, 1, %v4529_v51 }
 0x22b   : > { %3170 = vmatmul.bf16.gmra.mxu0 %v1806_v49  ;;  %v3211_v7 = vmul.f32 %v5315_v61, %v3129_v11  ;;  %v1497_v57 = vunpack.c.l.b16 %v755_v38  ;;  %v1498_v14 = vunpack.c.l.b16 %v756_v45  ;;  %3482 = vperm.xlu1 %4482, %v3399_v16   ;;  %v1593_v62 = vunpack.c.l.b16 %v821_v37  ;;  %v3327_v45 = vld [vmem:[%s4602_s9 + $0x88] sm:$0xff] }
 0x22c   : > { %v2953_v9 = vpop.f32.mrf.mxu2  ;;  %3479 = vperm.xlu0 %4481, %v3398_v23   ;;  %v1594_v63 = vunpack.c.l.b16 %v822_v56  ;;  %v1785_v52 = vunpack.c.l.b16 %v953_v50  ;;  %v1786_v19 = vunpack.c.l.b16 %v954_v32  ;;  %vm3359_vm9 = vcmp.gt.f32.partialorder %v3327_v45, 0.5  ;;  %v3340_v45 = vld [vmem:[%s4602_s9 + $0xf0] sm:$0xff] }
 0x22d   : > { %v2954_v58 = vadd.f32 %v2953_v9, %v2865_v59  ;;  %v3042_v47 = vpop.f32.mrf.mxu3  ;;  %v3247_v24 = vadd.f32 %v5320_v55, %v3211_v7  ;;  %v1689_v7 = vunpack.c.l.b16 %v887_v15  ;;  %v1690_v59 = vunpack.c.l.b16 %v888_v17 }
 0x22e   : > { %v2866_v49 = vpop.f32.mrf.mxu1  ;;  %v1519_v9 = vpack.c.b16 %v1498_v14, %v1497_v57  ;;  %v1615_v16 = vpack.c.b16 %v1594_v63, %v1593_v62  ;;  %v3391_v56 = vsel %vm3359_vm9, 1, %v4529_v51  ;;  %v3943_v57 = vld [vmem:[%s4667_s10 + $0xb1] sm:$0xff]  ;;  %v3944_v14 = vld [vmem:[%s4667_s10 + $0xb9] sm:$0xff]  ;;  %vm3372_vm15 = vcmp.gt.f32.partialorder %v3340_v45, 0.5 }
 0x22f   : > { %v3043_v22 = vadd.f32 %v3042_v47, %v2954_v58  ;;  %v3279_v13 = vmax.f32 %v3247_v24, 0.0  ;;  %v2867_v38 = vadd.f32 %v2866_v49, %v5045_v40  ;;  %v3338_v58 = vld [vmem:[%s4602_s9 + $0xe0] sm:$0xff]  ;;  %v3337_v47 = vld [vmem:[%s4602_s9 + $0xd8] sm:$0xff]  ;;  %v1711_v17 = vpack.c.b16 %v1690_v59, %v1689_v7  ;;  %3458 = vperm.xlu2 %4483, %v3391_v56  }
 0x230   : > { %v3133_v11 = vpop.f32.mrf.mxu0  ;;  %vm3370_vm10 = vcmp.gt.f32.partialorder %v3338_v58, 0.5  ;;  %vm3369_vm11 = vcmp.gt.f32.partialorder %v3337_v47, 0.5  ;;  %v1807_v49 = vpack.c.b16 %v1786_v19, %v1785_v52  ;;  %v3976_v63 = vld [vmem:[%s4667_s10 + $0xd4] sm:$0xff]  ;;  %v4010_v7 = vld [vmem:[%s4667_s10 + $0xdd] sm:$0xff] }
 0x231   : > { %v3132_v6 = vadd.f32 %v3131_v20, %v3043_v22  ;;  %v3535_v4 = vsel %vm3503_vm6, %v3279_v13, 0.0  ;;  %v3402_v15 = vsel %vm3370_vm10, 1, %v4529_v51  ;;  %v3401_v50 = vsel %vm3369_vm11, 1, %v4529_v51  ;;  %v3417_v13 = vpop.permute.xlu1 %3416  ;;  %v4042_v59 = vld [vmem:[%s4667_s10 + $0xd6] sm:$0xff]  ;;  %v3330_v45 = vld [vmem:[%s4602_s9 + $0xa0] sm:$0xff] }
 0x232   : > { %3567 = vst [vmem:[%s4608_s14 + $0x8] sm:$0xff] %v3535_v4  ;;  %vm3505_vm13 = vcmp.eq.s32.totalorder %v3417_v13, 1  ;;  %v4009_v4 = vld [vmem:[%s4667_s10 + $0xd5] sm:$0xff]  ;;  %v823_v47 = vpack.c.bf16 %v3976_v63, %v3976_v63  ;;  %v890_v56 = vpack.c.bf16 %v4010_v7, %v4010_v7  ;;  %vm3362_vm0 = vcmp.gt.f32.partialorder %v3330_v45, 0.5 }
 0x233   : > { %v3212_v36 = vmul.f32 %v5315_v61, %v3132_v6  ;;  %3491 = vperm.xlu1 %4482, %v3402_v15   ;;  %v3977_v6 = vld [vmem:[%s4667_s10 + $0xdc] sm:$0xff] }
 0x234   : > { %v2955_v24 = vpop.f32.mrf.mxu2  ;;  %3488 = vperm.xlu0 %4481, %v3401_v50   ;;  %v3404_v50 = vsel %vm3372_vm15, 1, %v4529_v51 }
 0x235   : > { %v2956_v20 = vadd.f32 %v2955_v24, %v2867_v38  ;;  %v3044_v5 = vpop.f32.mrf.mxu3  ;;  %v3248_v37 = vadd.f32 %v5320_v55, %v3212_v36  ;;  %v758_v36 = vpack.c.bf16 %v3944_v14, %v3944_v14  ;;  %v4043_v38 = vld [vmem:[%s4667_s10 + $0xde] sm:$0xff]  ;;  %v824_v24 = vpack.c.bf16 %v3977_v6, %v3977_v6 }
 0x236   : > { %v2869_v40 = vpop.f32.mrf.mxu1  ;;  %v1595_v6 = vunpack.c.l.b16 %v823_v47  ;;  %v3394_v47 = vsel %vm3362_vm0, 1, %v4529_v51 }
 0x237   : > { %v3045_v32 = vadd.f32 %v3044_v5, %v2956_v20  ;;  %v3280_v23 = vmax.f32 %v3248_v37, 0.0  ;;  %v2870_v19 = vadd.f32 %v2869_v40, %v5064_v29  ;;  %v889_v37 = vpack.c.bf16 %v4009_v4, %v4009_v4  ;;  %3467 = vperm.xlu2 %4483, %v3394_v47  }
 0x238   : > { %v3136_v22 = vpop.f32.mrf.mxu0  ;;  %v955_v29 = vpack.c.bf16 %v4042_v59, %v4042_v59  ;;  %v956_v40 = vpack.c.bf16 %v4043_v38, %v4043_v38  ;;  %v1596_v4 = vunpack.c.l.b16 %v824_v24  ;;  %v1692_v59 = vunpack.c.l.b16 %v890_v56 }
 0x239   : > { %v3134_v46 = vadd.f32 %v3133_v11, %v3045_v32  ;;  %v3536_v62 = vsel %vm3504_vm12, %v3280_v23, 0.0  ;;  %2908 = vmatmul.bf16.gmra.mxu1 %v1519_v9  ;;  %2997 = vmatmul.bf16.gmra.mxu2 %v1615_v16  ;;  %v757_v11 = vpack.c.bf16 %v3943_v57, %v3943_v57  ;;  %v3341_v9 = vld [vmem:[%s4602_s9 + $0xf8] sm:$0xff]  ;;  %v1691_v7 = vunpack.c.l.b16 %v889_v37 }
 0x23a   : > { %3568 = vst [vmem:[%s4608_s14 + $0x10] sm:$0xff] %v3536_v62  ;;  %3086 = vmatmul.bf16.gmra.mxu3 %v1711_v17  ;;  %vm3373_vm14 = vcmp.gt.f32.partialorder %v3341_v9, 0.5  ;;  %v3420_v17 = vpop.permute.xlu2 %3419  ;;  %v1616_v13 = vpack.c.b16 %v1596_v4, %v1595_v6  ;;  %v3333_v6 = vld [vmem:[%s4602_s9 + $0xb8] sm:$0xff] }
 0x23b   : > { %3175 = vmatmul.bf16.gmra.mxu0 %v1807_v49  ;;  %v3213_v52 = vmul.f32 %v5315_v61, %v3134_v46  ;;  %v3405_v49 = vsel %vm3373_vm14, 1, %v4529_v51  ;;  %v1499_v14 = vunpack.c.l.b16 %v757_v11  ;;  %v1500_v46 = vunpack.c.l.b16 %v758_v36 }
 0x23c   : > { %v2958_v58 = vpop.f32.mrf.mxu2  ;;  %3500 = vperm.xlu1 %4482, %v3405_v49   ;;  %3497 = vperm.xlu0 %4481, %v3404_v50   ;;  %vm3506_vm1 = vcmp.eq.s32.totalorder %v3420_v17, 1  ;;  %v3945_v49 = vld [vmem:[%s4667_s10 + $0xc1] sm:$0xff]  ;;  %v3946_v50 = vld [vmem:[%s4667_s10 + $0xc9] sm:$0xff]  ;;  %vm3365_vm3 = vcmp.gt.f32.partialorder %v3333_v6, 0.5 }
 0x23d   : > { %v2959_v16 = vadd.f32 %v2958_v58, %v2870_v19  ;;  %v3047_v20 = vpop.f32.mrf.mxu3  ;;  %v3249_v5 = vadd.f32 %v5320_v55, %v3213_v52  ;;  %v1787_v52 = vunpack.c.l.b16 %v955_v29  ;;  %v1788_v19 = vunpack.c.l.b16 %v956_v40  ;;  %v3978_v17 = vld [vmem:[%s4667_s10 + $0xe4] sm:$0xff] }
 0x23e   : > { %v2871_v15 = vpop.f32.mrf.mxu1 }
 0x23f   : > { %v3048_v32 = vadd.f32 %v3047_v20, %v2959_v16  ;;  %v3281_v23 = vmax.f32 %v3249_v5, 0.0  ;;  %v2872_v9 = vadd.f32 %v2871_v15, %v5069_v0  ;;  %v1520_v16 = vpack.c.b16 %v1500_v46, %v1499_v14  ;;  %v4012_v14 = vld [vmem:[%s4667_s10 + $0xed] sm:$0xff] }
 0x240   : > { %v3138_v57 = vpop.f32.mrf.mxu0  ;;  %v1712_v20 = vpack.c.b16 %v1692_v59, %v1691_v7  ;;  %v1808_v5 = vpack.c.b16 %v1788_v19, %v1787_v52  ;;  %v759_v7 = vpack.c.bf16 %v3945_v49, %v3945_v49  ;;  %v760_v59 = vpack.c.bf16 %v3946_v50, %v3946_v50 }
 0x241   : > { %v3137_v62 = vadd.f32 %v3136_v22, %v3048_v32  ;;  %v3537_v63 = vsel %vm3505_vm13, %v3281_v23, 0.0  ;;  %v3979_v32 = vld [vmem:[%s4667_s10 + $0xec] sm:$0xff]  ;;  %v825_v52 = vpack.c.bf16 %v3978_v17, %v3978_v17 }
 0x242   : > { %3569 = vst [vmem:[%s4608_s14 + $0x18] sm:$0xff] %v3537_v63  ;;  %v3423_v15 = vpop.permute.xlu2 %3422  ;;  %v4011_v23 = vld [vmem:[%s4667_s10 + $0xe5] sm:$0xff]  ;;  %v4045_v63 = vld [vmem:[%s4667_s10 + $0xee] sm:$0xff]  ;;  %v826_v45 = vpack.c.bf16 %v3979_v32, %v3979_v32 }
 0x243   : > { %v3214_v38 = vmul.f32 %v5315_v61, %v3137_v62  ;;  %vm3507_vm2 = vcmp.eq.s32.totalorder %v3423_v15, 1 }
 0x244   : > { %v2960_v58 = vpop.f32.mrf.mxu2 }
 0x245   : > { %v2961_v11 = vadd.f32 %v2960_v58, %v2872_v9  ;;  %v3049_v36 = vpop.f32.mrf.mxu3  ;;  %v3250_v22 = vadd.f32 %v5320_v55, %v3214_v38  ;;  %v3397_v58 = vsel %vm3365_vm3, 1, %v4529_v51 }
 0x246   : > { %v2874_v24 = vpop.f32.mrf.mxu1  ;;  %3476 = vperm.xlu2 %4483, %v3397_v58  }
 0x247   : > { %v3050_v0 = vadd.f32 %v3049_v36, %v2961_v11  ;;  %v3282_v37 = vmax.f32 %v3250_v22, 0.0  ;;  %v2875_v62 = vadd.f32 %v2874_v24, %v5078_v53  ;;  %v891_v11 = vpack.c.bf16 %v4011_v23, %v4011_v23 }
 0x248   : > { %v3141_v56 = vpop.f32.mrf.mxu0  ;;  %v892_v53 = vpack.c.bf16 %v4012_v14, %v4012_v14  ;;  %v958_v22 = vpack.c.bf16 %v4045_v63, %v4045_v63 }
 0x249   : > { %v3139_v29 = vadd.f32 %v3138_v57, %v3050_v0  ;;  %v3538_v40 = vsel %vm3506_vm1, %v3282_v37, 0.0  ;;  %2913 = vmatmul.bf16.gmra.mxu1 %v1520_v16  ;;  %3002 = vmatmul.bf16.gmra.mxu2 %v1616_v13  ;;  %v4044_v57 = vld [vmem:[%s4667_s10 + $0xe6] sm:$0xff]  ;;  %v1693_v49 = vunpack.c.l.b16 %v891_v11  ;;  %v3947_v11 = vld [vmem:[%s4667_s10 + $0xd1] sm:$0xff] }
 0x24a   : > { %3570 = vst [vmem:[%s4608_s14 + $0x20] sm:$0xff] %v3538_v40  ;;  %3091 = vmatmul.bf16.gmra.mxu3 %v1712_v20  ;;  %v957_v36 = vpack.c.bf16 %v4044_v57, %v4044_v57  ;;  %v1501_v20 = vunpack.c.l.b16 %v759_v7  ;;  %v1598_v40 = vunpack.c.l.b16 %v826_v45  ;;  %v1694_v50 = vunpack.c.l.b16 %v892_v53  ;;  %v3429_v45 = vpop.permute.xlu1 %3428  ;;  %v3948_v53 = vld [vmem:[%s4667_s10 + $0xd9] sm:$0xff] }
 0x24b   : > { %3180 = vmatmul.bf16.gmra.mxu0 %v1808_v5  ;;  %v3215_v46 = vmul.f32 %v5315_v61, %v3139_v29  ;;  %v1502_v5 = vunpack.c.l.b16 %v760_v59  ;;  %v1597_v29 = vunpack.c.l.b16 %v825_v52  ;;  %v1790_v32 = vunpack.c.l.b16 %v958_v22  ;;  %v3981_v22 = vld [vmem:[%s4667_s10 + $0xfc] sm:$0xff] }
 0x24c   : > { %v2963_v4 = vpop.f32.mrf.mxu2  ;;  %v1789_v17 = vunpack.c.l.b16 %v957_v36  ;;  %v1713_v52 = vpack.c.b16 %v1694_v50, %v1693_v49  ;;  %v3980_v36 = vld [vmem:[%s4667_s10 + $0xf4] sm:$0xff]  ;;  %vm3509_vm6 = vcmp.eq.s32.totalorder %v3429_v45, 1  ;;  %v762_v49 = vpack.c.bf16 %v3948_v53, %v3948_v53 }
 0x24d   : > { %v2964_v19 = vadd.f32 %v2963_v4, %v2875_v62  ;;  %v3052_v38 = vpop.f32.mrf.mxu3  ;;  %v3251_v9 = vadd.f32 %v5320_v55, %v3215_v46  ;;  %v3426_v46 = vpop.permute.xlu0 %3425  ;;  %v3336_v62 = vld [vmem:[%s4602_s9 + $0xd0] sm:$0xff]  ;;  %v1521_v63 = vpack.c.b16 %v1502_v5, %v1501_v20  ;;  %v1617_v4 = vpack.c.b16 %v1598_v40, %v1597_v29 }
 0x24e   : > { %v2876_v16 = vpop.f32.mrf.mxu1  ;;  %vm3368_vm4 = vcmp.gt.f32.partialorder %v3336_v62, 0.5  ;;  %vm3508_vm5 = vcmp.eq.s32.totalorder %v3426_v46, 1  ;;  %v761_v40 = vpack.c.bf16 %v3947_v11, %v3947_v11  ;;  %v827_v50 = vpack.c.bf16 %v3980_v36, %v3980_v36 }
 0x24f   : > { %v3053_v13 = vadd.f32 %v3052_v38, %v2964_v19  ;;  %v3283_v47 = vmax.f32 %v3251_v9, 0.0  ;;  %v2877_v14 = vadd.f32 %v2876_v16, %v5084_v54  ;;  %v3400_v7 = vsel %vm3368_vm4, 1, %v4529_v51 }
 0x250   : > { %v3143_v24 = vpop.f32.mrf.mxu0  ;;  %v1809_v54 = vpack.c.b16 %v1790_v32, %v1789_v17  ;;  %3485 = vperm.xlu2 %4483, %v3400_v7   ;;  %v1503_v7 = vunpack.c.l.b16 %v761_v40 }
 0x251   : > { %v3142_v0 = vadd.f32 %v3141_v56, %v3053_v13  ;;  %v3539_v37 = vsel %vm3507_vm2, %v3283_v47, 0.0  ;;  %v4013_v13 = vld [vmem:[%s4667_s10 + $0xf5] sm:$0xff]  ;;  %v4014_v47 = vld [vmem:[%s4667_s10 + $0xfd] sm:$0xff] }
 0x252   : > { %3571 = vst [vmem:[%s4608_s14 + $0x28] sm:$0xff] %v3539_v37  ;;  %v3339_v37 = vld [vmem:[%s4602_s9 + $0xe8] sm:$0xff] }
 0x253   : > { %v3216_v23 = vmul.f32 %v5315_v61, %v3142_v0  ;;  %v4047_v0 = vld [vmem:[%s4667_s10 + $0xfe] sm:$0xff]  ;;  %vm3371_vm7 = vcmp.gt.f32.partialorder %v3339_v37, 0.5 }
 0x254   : > { %v2965_v57 = vpop.f32.mrf.mxu2  ;;  %v3403_v46 = vsel %vm3371_vm7, 1, %v4529_v51 }
 0x255   : > { %v2966_v6 = vadd.f32 %v2965_v57, %v2877_v14  ;;  %v3054_v56 = vpop.f32.mrf.mxu3  ;;  %v3252_v15 = vadd.f32 %v5320_v55, %v3216_v23  ;;  %v828_v14 = vpack.c.bf16 %v3981_v22, %v3981_v22  ;;  %v893_v57 = vpack.c.bf16 %v4013_v13, %v4013_v13  ;;  %v3432_v22 = vpop.permute.xlu2 %3431 }
 0x256   : > { %v2879_v59 = vpop.f32.mrf.mxu1  ;;  %vm3510_vm8 = vcmp.eq.s32.totalorder %v3432_v22, 1 }
 0x257   : > { %v3055_v19 = vadd.f32 %v3054_v56, %v2966_v6  ;;  %v3284_v38 = vmax.f32 %v3252_v15, 0.0  ;;  %v2880_v5 = vadd.f32 %v2879_v59, %v5103_v10  ;;  %v894_v10 = vpack.c.bf16 %v4014_v47, %v4014_v47 }
 0x258   : > { %v3146_v9 = vpop.f32.mrf.mxu0  ;;  %v960_v6 = vpack.c.bf16 %v4047_v0, %v4047_v0  ;;  %3494 = vperm.xlu2 %4483, %v3403_v46   ;;  %v1504_v59 = vunpack.c.l.b16 %v762_v49  ;;  %v3983_v46 = vld [vmem:[%s4667_s10 + $0x10c] sm:$0xff] }
 0x259   : > { %v3144_v58 = vadd.f32 %v3143_v24, %v3055_v19  ;;  %v3540_v16 = vsel %vm3508_vm5, %v3284_v38, 0.0  ;;  %2918 = vmatmul.bf16.gmra.mxu1 %v1521_v63  ;;  %3007 = vmatmul.bf16.gmra.mxu2 %v1617_v4  ;;  %v4046_v24 = vld [vmem:[%s4667_s10 + $0xf6] sm:$0xff]  ;;  %v1599_v19 = vunpack.c.l.b16 %v827_v50  ;;  %v1600_v38 = vunpack.c.l.b16 %v828_v14  ;;  %v3982_v14 = vld [vmem:[%s4667_s10 + $0x104] sm:$0xff] }
 0x25a   : > { %3572 = vst [vmem:[%s4608_s14 + $0x30] sm:$0xff] %v3540_v16  ;;  %3096 = vmatmul.bf16.gmra.mxu3 %v1713_v52  ;;  %v959_v63 = vpack.c.bf16 %v4046_v24, %v4046_v24  ;;  %v1696_v51 = vunpack.c.l.b16 %v894_v10  ;;  %v1792_v11 = vunpack.c.l.b16 %v960_v6  ;;  %v1522_v45 = vpack.c.b16 %v1504_v59, %v1503_v7  ;;  %v4048_v6 = vld [vmem:[%s4667_s10 + $0x106] sm:$0xff] }
 0x25b   : > { %3185 = vmatmul.bf16.gmra.mxu0 %v1809_v54  ;;  %v3217_v20 = vmul.f32 %v5315_v61, %v3144_v58  ;;  %v1695_v58 = vunpack.c.l.b16 %v893_v57 }
 0x25c   : > { %v2968_v29 = vpop.f32.mrf.mxu2  ;;  %v1791_v16 = vunpack.c.l.b16 %v959_v63  ;;  %v4016_v63 = vld [vmem:[%s4667_s10 + $0x10d] sm:$0xff] }
 0x25d   : > { %v2969_v17 = vadd.f32 %v2968_v29, %v2880_v5  ;;  %v3057_v32 = vpop.f32.mrf.mxu3  ;;  %v3253_v23 = vadd.f32 %v5320_v55, %v3217_v20  ;;  %v1618_v5 = vpack.c.b16 %v1600_v38, %v1599_v19  ;;  %v1714_v0 = vpack.c.b16 %v1696_v51, %v1695_v58 }
 0x25e   : > { %v2881_v62 = vpop.f32.mrf.mxu1  ;;  %v1810_v37 = vpack.c.b16 %v1792_v11, %v1791_v16  ;;  %v829_v19 = vpack.c.bf16 %v3982_v14, %v3982_v14  ;;  %v830_v38 = vpack.c.bf16 %v3983_v46, %v3983_v46  ;;  %v896_v16 = vpack.c.bf16 %v4016_v63, %v4016_v63 }
 0x25f   : > { %v3058_v56 = vadd.f32 %v3057_v32, %v2969_v17  ;;  %v3285_v15 = vmax.f32 %v3253_v23, 0.0  ;;  %v2882_v36 = vadd.f32 %v2881_v62, %v5108_v43  ;;  %v3435_v17 = vpop.permute.xlu0 %3434  ;;  %v3949_v32 = vld [vmem:[%s4667_s10 + $0xe1] sm:$0xff]  ;;  %v3950_v23 = vld [vmem:[%s4667_s10 + $0xe9] sm:$0xff]  ;;  %v961_v11 = vpack.c.bf16 %v4048_v6, %v4048_v6 }
 0x260   : > { %v3148_v4 = vpop.f32.mrf.mxu0  ;;  %v4015_v62 = vld [vmem:[%s4667_s10 + $0x105] sm:$0xff]  ;;  %vm3511_vm9 = vcmp.eq.s32.totalorder %v3435_v17, 1  ;;  %v764_v7 = vpack.c.bf16 %v3950_v23, %v3950_v23 }
 0x261   : > { %v3147_v52 = vadd.f32 %v3146_v9, %v3058_v56  ;;  %v3541_v54 = vsel %vm3509_vm6, %v3285_v15, 0.0  ;;  %v4049_v56 = vld [vmem:[%s4667_s10 + $0x10e] sm:$0xff]  ;;  %v895_v51 = vpack.c.bf16 %v4015_v62, %v4015_v62 }
 0x262   : > { %3573 = vst [vmem:[%s4608_s14 + $0x38] sm:$0xff] %v3541_v54 }
 0x263   : > { %v3218_v53 = vmul.f32 %v5315_v61, %v3147_v52 }
 0x264   : > { %v2970_v13 = vpop.f32.mrf.mxu2 }
 0x265   : > { %v2971_v47 = vadd.f32 %v2970_v13, %v2882_v36  ;;  %v3059_v20 = vpop.f32.mrf.mxu3  ;;  %v3254_v9 = vadd.f32 %v5320_v55, %v3218_v53  ;;  %v962_v53 = vpack.c.bf16 %v4049_v56, %v4049_v56 }
 0x266   : > { %v2884_v24 = vpop.f32.mrf.mxu1 }
 0x267   : > { %v3060_v29 = vadd.f32 %v3059_v20, %v2971_v47  ;;  %v3286_v43 = vmax.f32 %v3254_v9, 0.0  ;;  %v2885_v10 = vadd.f32 %v2884_v24, %v5117_v18  ;;  %v1506_v47 = vunpack.c.l.b16 %v764_v7  ;;  %v3951_v7 = vld [vmem:[%s4667_s10 + $0xf1] sm:$0xff] }
 0x268   : > { %v3151_v40 = vpop.f32.mrf.mxu0  ;;  %v1697_v24 = vunpack.c.l.b16 %v895_v51  ;;  %v4018_v51 = vld [vmem:[%s4667_s10 + $0x11d] sm:$0xff] }
 0x269   : > { %v3149_v49 = vadd.f32 %v3148_v4, %v3060_v29  ;;  %v3542_v50 = vsel %vm3510_vm8, %v3286_v43, 0.0  ;;  %2923 = vmatmul.bf16.gmra.mxu1 %v1522_v45  ;;  %3012 = vmatmul.bf16.gmra.mxu2 %v1618_v5  ;;  %v763_v4 = vpack.c.bf16 %v3949_v32, %v3949_v32  ;;  %v1601_v45 = vunpack.c.l.b16 %v829_v19  ;;  %v4017_v19 = vld [vmem:[%s4667_s10 + $0x115] sm:$0xff] }
 0x26a   : > { %3574 = vst [vmem:[%s4608_s14 + $0x40] sm:$0xff] %v3542_v50  ;;  %3101 = vmatmul.bf16.gmra.mxu3 %v1714_v0  ;;  %v1602_v5 = vunpack.c.l.b16 %v830_v38  ;;  %v1698_v0 = vunpack.c.l.b16 %v896_v16  ;;  %v1794_v29 = vunpack.c.l.b16 %v962_v53  ;;  %v3438_v50 = vpop.permute.xlu1 %3437  ;;  %v4050_v16 = vld [vmem:[%s4667_s10 + $0x116] sm:$0xff] }
 0x26b   : > { %3190 = vmatmul.bf16.gmra.mxu0 %v1810_v37  ;;  %v3219_v57 = vmul.f32 %v5315_v61, %v3149_v49  ;;  %v1505_v13 = vunpack.c.l.b16 %v763_v4  ;;  %v1793_v37 = vunpack.c.l.b16 %v961_v11  ;;  %vm3512_vm10 = vcmp.eq.s32.totalorder %v3438_v50, 1  ;;  %v3441_v4 = vpop.permute.xlu2 %3440  ;;  %v4051_v11 = vld [vmem:[%s4667_s10 + $0x11e] sm:$0xff] }
 0x26c   : > { %v2973_v15 = vpop.f32.mrf.mxu2  ;;  %v1619_v46 = vpack.c.b16 %v1602_v5, %v1601_v45  ;;  %vm3513_vm11 = vcmp.eq.s32.totalorder %v3441_v4, 1  ;;  %v897_v5 = vpack.c.bf16 %v4017_v19, %v4017_v19 }
 0x26d   : > { %v2974_v59 = vadd.f32 %v2973_v15, %v2885_v10  ;;  %v3062_v52 = vpop.f32.mrf.mxu3  ;;  %v3255_v54 = vadd.f32 %v5320_v55, %v3219_v57  ;;  %v1523_v17 = vpack.c.b16 %v1506_v47, %v1505_v13  ;;  %v1715_v57 = vpack.c.b16 %v1698_v0, %v1697_v24 }
 0x26e   : > { %v2886_v58 = vpop.f32.mrf.mxu1  ;;  %v1811_v10 = vpack.c.b16 %v1794_v29, %v1793_v37  ;;  %v898_v24 = vpack.c.bf16 %v4018_v51, %v4018_v51  ;;  %v963_v0 = vpack.c.bf16 %v4050_v16, %v4050_v16  ;;  %v964_v37 = vpack.c.bf16 %v4051_v11, %v4051_v11 }
 0x26f   : > { %v3063_v18 = vadd.f32 %v3062_v52, %v2974_v59  ;;  %v3287_v36 = vmax.f32 %v3255_v54, 0.0  ;;  %v2887_v49 = vadd.f32 %v2886_v58, %v5122_v3  ;;  %v3952_v59 = vld [vmem:[%s4667_s10 + $0xf9] sm:$0xff] }
 0x270   : > { %v3153_v22 = vpop.f32.mrf.mxu0  ;;  %v3984_v52 = vld [vmem:[%s4667_s10 + $0x114] sm:$0xff]  ;;  %v3985_v54 = vld [vmem:[%s4667_s10 + $0x11c] sm:$0xff] }
 0x271   : > { %v3152_v20 = vadd.f32 %v3151_v40, %v3063_v18  ;;  %v3543_v9 = vsel %vm3511_vm9, %v3287_v36, 0.0  ;;  %v765_v18 = vpack.c.bf16 %v3951_v7, %v3951_v7  ;;  %v766_v36 = vpack.c.bf16 %v3952_v59, %v3952_v59 }
 0x272   : > { %3575 = vst [vmem:[%s4608_s14 + $0x48] sm:$0xff] %v3543_v9  ;;  %v832_v9 = vpack.c.bf16 %v3985_v54, %v3985_v54 }
 0x273   : > { %v3220_v43 = vmul.f32 %v5315_v61, %v3152_v20  ;;  %v831_v20 = vpack.c.bf16 %v3984_v52, %v3984_v52  ;;  %v1508_v50 = vunpack.c.l.b16 %v766_v36 }
 0x274   : > { %v2975_v32 = vpop.f32.mrf.mxu2 }
 0x275   : > { %v2976_v23 = vadd.f32 %v2975_v32, %v2887_v49  ;;  %v3064_v14 = vpop.f32.mrf.mxu3  ;;  %v3256_v40 = vadd.f32 %v5320_v55, %v3220_v43  ;;  %v1507_v49 = vunpack.c.l.b16 %v765_v18  ;;  %v3447_v18 = vpop.permute.xlu1 %3446 }
 0x276   : > { %v2889_v62 = vpop.f32.mrf.mxu1  ;;  %vm3515_vm13 = vcmp.eq.s32.totalorder %v3447_v18, 1 }
 0x277   : > { %v3065_v63 = vadd.f32 %v3064_v14, %v2976_v23  ;;  %v3288_v3 = vmax.f32 %v3256_v40, 0.0  ;;  %v2890_v58 = vadd.f32 %v2889_v62, %v5131_v31  ;;  %v1603_v14 = vunpack.c.l.b16 %v831_v20 }
 0x278   : > { %v3156_v6 = vpop.f32.mrf.mxu0  ;;  %v1604_v40 = vunpack.c.l.b16 %v832_v9  ;;  %v1795_v62 = vunpack.c.l.b16 %v963_v0  ;;  %v1524_v4 = vpack.c.b16 %v1508_v50, %v1507_v49 }
 0x279   : > { %v3154_v56 = vadd.f32 %v3153_v22, %v3065_v63  ;;  %v3544_v15 = vsel %vm3512_vm10, %v3288_v3, 0.0  ;;  %2928 = vmatmul.bf16.gmra.mxu1 %v1523_v17  ;;  %3017 = vmatmul.bf16.gmra.mxu2 %v1619_v46  ;;  %v1699_v17 = vunpack.c.l.b16 %v897_v5  ;;  %v1700_v46 = vunpack.c.l.b16 %v898_v24  ;;  %v3444_v3 = vpop.permute.xlu0 %3443 }
 0x27a   : > { %3576 = vst [vmem:[%s4608_s14 + $0x50] sm:$0xff] %v3544_v15  ;;  %3106 = vmatmul.bf16.gmra.mxu3 %v1715_v57  ;;  %v1796_v57 = vunpack.c.l.b16 %v964_v37  ;;  %v1620_v59 = vpack.c.b16 %v1604_v40, %v1603_v14  ;;  %vm3514_vm12 = vcmp.eq.s32.totalorder %v3444_v3, 1 }
 0x27b   : > { %3195 = vmatmul.bf16.gmra.mxu0 %v1811_v10  ;;  %v3221_v38 = vmul.f32 %v5315_v61, %v3154_v56  ;;  %v1716_v54 = vpack.c.b16 %v1700_v46, %v1699_v17 }
 0x27c   : > { %v2978_v53 = vpop.f32.mrf.mxu2  ;;  %v1812_v19 = vpack.c.b16 %v1796_v57, %v1795_v62 }
 0x27d   : > { %v2979_v22 = vadd.f32 %v2978_v53, %v2890_v58  ;;  %v3067_v13 = vpop.f32.mrf.mxu3  ;;  %v3257_v47 = vadd.f32 %v5320_v55, %v3221_v38 }
 0x27e   : > { %v2891_v45 = vpop.f32.mrf.mxu1 }
 0x27f   : > { %v3068_v31 = vadd.f32 %v3067_v13, %v2979_v22  ;;  %v3289_v29 = vmax.f32 %v3257_v47, 0.0  ;;  %v2892_v63 = vadd.f32 %v2891_v45, %v5136_v25 }
 0x280   : > { %v3158_v43 = vpop.f32.mrf.mxu0 }
 0x281   : > { %v3157_v32 = vadd.f32 %v3156_v6, %v3068_v31  ;;  %v3545_v23 = vsel %vm3513_vm11, %v3289_v29, 0.0 }
 0x282   : > { %3577 = vst [vmem:[%s4608_s14 + $0x58] sm:$0xff] %v3545_v23 }
 0x283   : > { %v3222_v10 = vmul.f32 %v5315_v61, %v3157_v32 }
 0x284   : > { %v2980_v56 = vpop.f32.mrf.mxu2 }
 0x285   : > { %v2981_v15 = vadd.f32 %v2980_v56, %v2892_v63  ;;  %v3069_v7 = vpop.f32.mrf.mxu3  ;;  %v3258_v6 = vadd.f32 %v5320_v55, %v3222_v10 }
 0x286   : > { %v2894_v52 = vpop.f32.mrf.mxu1 }
 0x287   : > { %v3070_v38 = vadd.f32 %v3069_v7, %v2981_v15  ;;  %v3290_v58 = vmax.f32 %v3258_v6, 0.0  ;;  %v2895_v53 = vadd.f32 %v2894_v52, %v5148_v12  ;;  %v3450_v12 = vpop.permute.xlu2 %3449 }
 0x288   : > { %v3161_v51 = vpop.f32.mrf.mxu0  ;;  %vm3516_vm14 = vcmp.eq.s32.totalorder %v3450_v12, 1 }
 0x289   : > { %v3159_v16 = vadd.f32 %v3158_v43, %v3070_v38  ;;  %v3546_v11 = vsel %vm3514_vm12, %v3290_v58, 0.0  ;;  %2933 = vmatmul.bf16.gmra.mxu1 %v1524_v4  ;;  %3022 = vmatmul.bf16.gmra.mxu2 %v1620_v59 }
 0x28a   : > { %3578 = vst [vmem:[%s4608_s14 + $0x60] sm:$0xff] %v3546_v11  ;;  %3111 = vmatmul.bf16.gmra.mxu3 %v1716_v54 }
 0x28b   : > { %3200 = vmatmul.bf16.gmra.mxu0 %v1812_v19  ;;  %v3223_v25 = vmul.f32 %v5315_v61, %v3159_v16 }
 0x28c   : > { %v2983_v36 = vpop.f32.mrf.mxu2 }
 0x28d   : > { %v2984_v22 = vadd.f32 %v2983_v36, %v2895_v53  ;;  %v3072_v13 = vpop.f32.mrf.mxu3  ;;  %v3259_v47 = vadd.f32 %v5320_v55, %v3223_v25 }
 0x28e   : > { %v2896_v20 = vpop.f32.mrf.mxu1 }
 0x28f   : > { %v3073_v9 = vadd.f32 %v3072_v13, %v2984_v22  ;;  %v3291_v45 = vmax.f32 %v3259_v47, 0.0  ;;  %v2897_v31 = vadd.f32 %v2896_v20, %v5156_v33  ;;  %v3453_v33 = vpop.permute.xlu0 %3452  ;;  %v3459_v47 = vpop.permute.xlu2 %3458 }
 0x290   : > { %v3163_v5 = vpop.f32.mrf.mxu0  ;;  %vm3517_vm15 = vcmp.eq.s32.totalorder %v3453_v33, 1  ;;  %vm3519_vm1 = vcmp.eq.s32.totalorder %v3459_v47, 1 }
 0x291   : > { %v3162_v24 = vadd.f32 %v3161_v51, %v3073_v9  ;;  %v3547_v0 = vsel %vm3515_vm13, %v3291_v45, 0.0  ;;  %v5480_v45 = vld [vmem:[%s5557_s3] ss:$0 sm:$0xff] }
 0x292   : > { %3579 = vst [vmem:[%s4608_s14 + $0x68] sm:$0xff] %v3547_v0 }
 0x293   : > { %v3224_v37 = vmul.f32 %v5315_v61, %v3162_v24 }
 0x294   : > { %v2985_v29 = vpop.f32.mrf.mxu2 }
 0x295   : > { %v2986_v43 = vadd.f32 %v2985_v29, %v2897_v31  ;;  %v3074_v49 = vpop.f32.mrf.mxu3  ;;  %v3260_v50 = vadd.f32 %v5320_v55, %v3224_v37 }
 0x296   : > { %v2899_v32 = vpop.f32.mrf.mxu1 }
 0x297   : > { %v3075_v23 = vadd.f32 %v3074_v49, %v2986_v43  ;;  %v3292_v14 = vmax.f32 %v3260_v50, 0.0  ;;  %v2900_v57 = vadd.f32 %v2899_v32, %v5166_v39  ;;  %v3456_v39 = vpop.permute.xlu1 %3455  ;;  %v3462_v50 = vpop.permute.xlu0 %3461 }
 0x298   : > { %v3166_v40 = vpop.f32.mrf.mxu0  ;;  %vm3518_vm0 = vcmp.eq.s32.totalorder %v3456_v39, 1  ;;  %vm3520_vm2 = vcmp.eq.s32.totalorder %v3462_v50, 1 }
 0x299   : > { %v3164_v17 = vadd.f32 %v3163_v5, %v3075_v23  ;;  %v3548_v46 = vsel %vm3516_vm14, %v3292_v14, 0.0 }
 0x29a   : > { %3580 = vst [vmem:[%s4608_s14 + $0x70] sm:$0xff] %v3548_v46 }
 0x29b   : > { %v3225_v62 = vmul.f32 %v5315_v61, %v3164_v17 }
 0x29c   : > { %v2988_v10 = vpop.f32.mrf.mxu2 }
 0x29d   : > { %v2989_v63 = vadd.f32 %v2988_v10, %v2900_v57  ;;  %v3077_v3 = vpop.f32.mrf.mxu3  ;;  %v3261_v56 = vadd.f32 %v5320_v55, %v3225_v62 }
 0x29e   : > { %v2901_v15 = vpop.f32.mrf.mxu1 }
 0x29f   : > { %v3078_v7 = vadd.f32 %v3077_v3, %v2989_v63  ;;  %v3293_v6 = vmax.f32 %v3261_v56, 0.0  ;;  %v2902_v19 = vadd.f32 %v2901_v15, %v5174_v41  ;;  %v3465_v3 = vpop.permute.xlu1 %3464 }
 0x2a0   : > { %v3168_v4 = vpop.f32.mrf.mxu0  ;;  %vm3521_vm3 = vcmp.eq.s32.totalorder %v3465_v3, 1 }
 0x2a1   : > { %v3167_v59 = vadd.f32 %v3166_v40, %v3078_v7  ;;  %v3549_v52 = vsel %vm3517_vm15, %v3293_v6, 0.0 }
 0x2a2   : > { %3581 = vst [vmem:[%s4608_s14 + $0x78] sm:$0xff] %v3549_v52 }
 0x2a3   : > { %v3226_v54 = vmul.f32 %v5315_v61, %v3167_v59  ;;  %v5473_v61 = vld [vmem:[%s5556_s2] ss:$0 sm:$0xff] }
 0x2a4   : > { %v2990_v38 = vpop.f32.mrf.mxu2 }
 0x2a5   : > { %v2991_v58 = vadd.f32 %v2990_v38, %v2902_v19  ;;  %v3079_v51 = vpop.f32.mrf.mxu3  ;;  %v3262_v16 = vadd.f32 %v5320_v55, %v3226_v54 }
 0x2a6   : > { %v2904_v11 = vpop.f32.mrf.mxu1 }
 0x2a7   : > { %v3080_v25 = vadd.f32 %v3079_v51, %v2991_v58  ;;  %v3294_v53 = vmax.f32 %v3262_v16, 0.0  ;;  %v2905_v13 = vadd.f32 %v2904_v11, %v5184_v8  ;;  %v3468_v58 = vpop.permute.xlu2 %3467 }
 0x2a8   : > { %v3171_v18 = vpop.f32.mrf.mxu0  ;;  %vm3522_vm4 = vcmp.eq.s32.totalorder %v3468_v58, 1 }
 0x2a9   : > { %v3169_v36 = vadd.f32 %v3168_v4, %v3080_v25  ;;  %v3550_v22 = vsel %vm3518_vm0, %v3294_v53, 0.0 }
 0x2aa   : > { %3582 = vst [vmem:[%s4608_s14 + $0x80] sm:$0xff] %v3550_v22 }
 0x2ab   : > { %v3227_v41 = vmul.f32 %v5473_v61, %v3169_v36 }
 0x2ac   : > { %v2993_v55 = vpop.f32.mrf.mxu2 }
 0x2ad   : > { %v2994_v20 = vadd.f32 %v2993_v55, %v2905_v13  ;;  %v3082_v9 = vpop.f32.mrf.mxu3  ;;  %v3263_v5 = vadd.f32 %v5480_v45, %v3227_v41  ;;  %v3471_v55 = vpop.permute.xlu0 %3470 }
 0x2ae   : > { %v2906_v24 = vpop.f32.mrf.mxu1  ;;  %vm3523_vm5 = vcmp.eq.s32.totalorder %v3471_v55, 1 }
 0x2af   : > { %v3083_v0 = vadd.f32 %v3082_v9, %v2994_v20  ;;  %v3295_v37 = vmax.f32 %v3263_v5, 0.0  ;;  %v2907_v43 = vadd.f32 %v2906_v24, %v5189_v2 }
 0x2b0   : > { %v3173_v31 = vpop.f32.mrf.mxu0 }
 0x2b1   : > { %v3172_v12 = vadd.f32 %v3171_v18, %v3083_v0  ;;  %v3551_v29 = vsel %vm3519_vm1, %v3295_v37, 0.0 }
 0x2b2   : > { %3583 = vst [vmem:[%s4608_s14 + $0x88] sm:$0xff] %v3551_v29 }
 0x2b3   : > { %v3228_v8 = vmul.f32 %v5473_v61, %v3172_v12 }
 0x2b4   : > { %v2995_v49 = vpop.f32.mrf.mxu2 }
 0x2b5   : > { %v3264_v32 = vadd.f32 %v5480_v45, %v3228_v8  ;;  %v2996_v23 = vadd.f32 %v2995_v49, %v2907_v43  ;;  %v3084_v14 = vpop.f32.mrf.mxu3 }
 0x2b6   : > { %v2909_v40 = vpop.f32.mrf.mxu1 }
 0x2b7   : > { %v3296_v17 = vmax.f32 %v3264_v32, 0.0  ;;  %v3085_v46 = vadd.f32 %v3084_v14, %v2996_v23  ;;  %v2910_v63 = vadd.f32 %v2909_v40, %v5198_v27  ;;  %v3474_v14 = vpop.permute.xlu1 %3473 }
 0x2b8   : > { %v3176_v62 = vpop.f32.mrf.mxu0  ;;  %vm3524_vm6 = vcmp.eq.s32.totalorder %v3474_v14, 1 }
 0x2b9   : > { %v3552_v57 = vsel %vm3520_vm2, %v3296_v17, 0.0  ;;  %v3174_v33 = vadd.f32 %v3173_v31, %v3085_v46 }
 0x2ba   : > { %3584 = vst [vmem:[%s4608_s14 + $0x90] sm:$0xff] %v3552_v57 }
 0x2bb   : > { %v3229_v10 = vmul.f32 %v5473_v61, %v3174_v33 }
 0x2bc   : > { %v2998_v2 = vpop.f32.mrf.mxu2 }
 0x2bd   : > { %v3265_v56 = vadd.f32 %v5480_v45, %v3229_v10  ;;  %v2999_v15 = vadd.f32 %v2998_v2, %v2910_v63  ;;  %v3087_v7 = vpop.f32.mrf.mxu3 }
 0x2be   : > { %v2911_v6 = vpop.f32.mrf.mxu1 }
 0x2bf   : > { %v3297_v4 = vmax.f32 %v3265_v56, 0.0  ;;  %v3088_v59 = vadd.f32 %v3087_v7, %v2999_v15  ;;  %v2912_v38 = vadd.f32 %v2911_v6, %v5207_v1  ;;  %v3477_v15 = vpop.permute.xlu2 %3476  ;;  %v3483_v55 = vpop.permute.xlu1 %3482 }
 0x2c0   : > { %v3178_v52 = vpop.f32.mrf.mxu0  ;;  %vm3525_vm7 = vcmp.eq.s32.totalorder %v3477_v15, 1  ;;  %vm3527_vm9 = vcmp.eq.s32.totalorder %v3483_v55, 1 }
 0x2c1   : > { %v3553_v54 = vsel %vm3521_vm3, %v3297_v4, 0.0  ;;  %v3177_v19 = vadd.f32 %v3176_v62, %v3088_v59 }
 0x2c2   : > { %3585 = vst [vmem:[%s4608_s14 + $0x98] sm:$0xff] %v3553_v54 }
 0x2c3   : > { %v3230_v39 = vmul.f32 %v5473_v61, %v3177_v19 }
 0x2c4   : > { %v3000_v27 = vpop.f32.mrf.mxu2 }
 0x2c5   : > { %v3266_v51 = vadd.f32 %v5480_v45, %v3230_v39  ;;  %v3001_v16 = vadd.f32 %v3000_v27, %v2912_v38  ;;  %v3089_v11 = vpop.f32.mrf.mxu3 }
 0x2c6   : > { %v2914_v25 = vpop.f32.mrf.mxu1 }
 0x2c7   : > { %v3298_v53 = vmax.f32 %v3266_v51, 0.0  ;;  %v3090_v18 = vadd.f32 %v3089_v11, %v3001_v16  ;;  %v2915_v47 = vadd.f32 %v2914_v25, %v5218_v42  ;;  %v3480_v51 = vpop.permute.xlu0 %3479 }
 0x2c8   : > { %v3181_v36 = vpop.f32.mrf.mxu0  ;;  %vm3526_vm8 = vcmp.eq.s32.totalorder %v3480_v51, 1 }
 0x2c9   : > { %v3554_v22 = vsel %vm3522_vm4, %v3298_v53, 0.0  ;;  %v3179_v41 = vadd.f32 %v3178_v52, %v3090_v18 }
 0x2ca   : > { %3586 = vst [vmem:[%s4608_s14 + $0xa0] sm:$0xff] %v3554_v22 }
 0x2cb   : > { %v3231_v13 = vmul.f32 %v5473_v61, %v3179_v41 }
 0x2cc   : > { %v3003_v1 = vpop.f32.mrf.mxu2 }
 0x2cd   : > { %v3267_v20 = vadd.f32 %v5480_v45, %v3231_v13  ;;  %v3004_v9 = vadd.f32 %v3003_v1, %v2915_v47  ;;  %v3092_v5 = vpop.f32.mrf.mxu3 }
 0x2ce   : > { %v2916_v24 = vpop.f32.mrf.mxu1 }
 0x2cf   : > { %v3299_v0 = vmax.f32 %v3267_v20, 0.0  ;;  %v3093_v37 = vadd.f32 %v3092_v5, %v3004_v9  ;;  %v2917_v43 = vadd.f32 %v2916_v24, %v5226_v48 }
 0x2d0   : > { %v3183_v31 = vpop.f32.mrf.mxu0 }
 0x2d1   : > { %v3555_v12 = vsel %vm3523_vm5, %v3299_v0, 0.0  ;;  %v3182_v29 = vadd.f32 %v3181_v36, %v3093_v37 }
 0x2d2   : > { %3587 = vst [vmem:[%s4608_s14 + $0xa8] sm:$0xff] %v3555_v12 }
 0x2d3   : > { %v3232_v8 = vmul.f32 %v5473_v61, %v3182_v29 }
 0x2d4   : > { %v3005_v42 = vpop.f32.mrf.mxu2 }
 0x2d5   : > { %v3268_v49 = vadd.f32 %v5480_v45, %v3232_v8  ;;  %v3006_v50 = vadd.f32 %v3005_v42, %v2917_v43  ;;  %v3094_v32 = vpop.f32.mrf.mxu3  ;;  %v3486_v42 = vpop.permute.xlu2 %3485 }
 0x2d6   : > { %v2919_v23 = vpop.f32.mrf.mxu1  ;;  %vm3528_vm10 = vcmp.eq.s32.totalorder %v3486_v42, 1 }
 0x2d7   : > { %v3300_v40 = vmax.f32 %v3268_v49, 0.0  ;;  %v3095_v17 = vadd.f32 %v3094_v32, %v3006_v50  ;;  %v2920_v10 = vadd.f32 %v2919_v23, %v5236_v21 }
 0x2d8   : > { %v3186_v46 = vpop.f32.mrf.mxu0 }
 0x2d9   : > { %v3556_v62 = vsel %vm3524_vm6, %v3300_v40, 0.0  ;;  %v3184_v57 = vadd.f32 %v3183_v31, %v3095_v17 }
 0x2da   : > { %3588 = vst [vmem:[%s4608_s14 + $0xb0] sm:$0xff] %v3556_v62 }
 0x2db   : > { %v3233_v33 = vmul.f32 %v5473_v61, %v3184_v57 }
 0x2dc   : > { %v3008_v48 = vpop.f32.mrf.mxu2 }
 0x2dd   : > { %v3269_v63 = vadd.f32 %v5480_v45, %v3233_v33  ;;  %v3009_v2 = vadd.f32 %v3008_v48, %v2920_v10  ;;  %v3097_v3 = vpop.f32.mrf.mxu3  ;;  %v3489_v10 = vpop.permute.xlu0 %3488 }
 0x2de   : > { %v2921_v56 = vpop.f32.mrf.mxu1  ;;  %vm3529_vm11 = vcmp.eq.s32.totalorder %v3489_v10, 1  ;;  %v3495_v51 = vpop.permute.xlu2 %3494 }
 0x2df   : > { %v3301_v7 = vmax.f32 %v3269_v63, 0.0  ;;  %v3098_v6 = vadd.f32 %v3097_v3, %v3009_v2  ;;  %v2922_v19 = vadd.f32 %v2921_v56, %v5244_v30  ;;  %vm3531_vm13 = vcmp.eq.s32.totalorder %v3495_v51, 1 }
 0x2e0   : > { %v3188_v4 = vpop.f32.mrf.mxu0 }
 0x2e1   : > { %v3557_v59 = vsel %vm3525_vm7, %v3301_v7, 0.0  ;;  %v3187_v52 = vadd.f32 %v3186_v46, %v3098_v6 }
 0x2e2   : > { %3589 = vst [vmem:[%s4608_s14 + $0xb8] sm:$0xff] %v3557_v59 }
 0x2e3   : > { %v3234_v54 = vmul.f32 %v5473_v61, %v3187_v52 }
 0x2e4   : > { %v3010_v21 = vpop.f32.mrf.mxu2 }
 0x2e5   : > { %v3270_v39 = vadd.f32 %v5480_v45, %v3234_v54  ;;  %v3011_v38 = vadd.f32 %v3010_v21, %v2922_v19  ;;  %v3099_v27 = vpop.f32.mrf.mxu3  ;;  %v3492_v54 = vpop.permute.xlu1 %3491 }
 0x2e6   : > { %v2924_v58 = vpop.f32.mrf.mxu1  ;;  %vm3530_vm12 = vcmp.eq.s32.totalorder %v3492_v54, 1 }
 0x2e7   : > { %v3302_v16 = vmax.f32 %v3270_v39, 0.0  ;;  %v3100_v11 = vadd.f32 %v3099_v27, %v3011_v38  ;;  %v2925_v22 = vadd.f32 %v2924_v58, %v5254_v44 }
 0x2e8   : > { %v3191_v25 = vpop.f32.mrf.mxu0 }
 0x2e9   : > { %v3558_v53 = vsel %vm3526_vm8, %v3302_v16, 0.0  ;;  %v3189_v18 = vadd.f32 %v3188_v4, %v3100_v11 }
 0x2ea   : > { %3590 = vst [vmem:[%s4608_s14 + $0xc0] sm:$0xff] %v3558_v53 }
 0x2eb   : > { %v3235_v36 = vmul.f32 %v5473_v61, %v3189_v18 }
 0x2ec   : > { %v3013_v30 = vpop.f32.mrf.mxu2 }
 0x2ed   : > { %v3271_v41 = vadd.f32 %v5480_v45, %v3235_v36  ;;  %v3014_v13 = vadd.f32 %v3013_v30, %v2925_v22  ;;  %v3102_v47 = vpop.f32.mrf.mxu3 }
 0x2ee   : > { %v2926_v1 = vpop.f32.mrf.mxu1 }
 0x2ef   : > { %v3303_v20 = vmax.f32 %v3271_v41, 0.0  ;;  %v3103_v9 = vadd.f32 %v3102_v47, %v3014_v13  ;;  %v2927_v31 = vadd.f32 %v2926_v1, %v5262_v28  ;;  %v3498_v1 = vpop.permute.xlu0 %3497 }
 0x2f0   : > { %v3193_v5 = vpop.f32.mrf.mxu0  ;;  %vm3532_vm14 = vcmp.eq.s32.totalorder %v3498_v1, 1 }
 0x2f1   : > { %v3559_v24 = vsel %vm3527_vm9, %v3303_v20, 0.0  ;;  %v3192_v0 = vadd.f32 %v3191_v25, %v3103_v9 }
 0x2f2   : > { %3591 = vst [vmem:[%s4608_s14 + $0xc8] sm:$0xff] %v3559_v24 }
 0x2f3   : > { %v3236_v37 = vmul.f32 %v5473_v61, %v3192_v0 }
 0x2f4   : > { %v3015_v44 = vpop.f32.mrf.mxu2 }
 0x2f5   : > { %v3272_v12 = vadd.f32 %v5480_v45, %v3236_v37  ;;  %v3016_v29 = vadd.f32 %v3015_v44, %v2927_v31  ;;  %v3104_v8 = vpop.f32.mrf.mxu3 }
 0x2f6   : > { %v2929_v43 = vpop.f32.mrf.mxu1 }
 0x2f7   : > { %v3304_v49 = vmax.f32 %v3272_v12, 0.0  ;;  %v3105_v50 = vadd.f32 %v3104_v8, %v3016_v29  ;;  %v2930_v17 = vadd.f32 %v2929_v43, %v5272_v60  ;;  %v3501_v12 = vpop.permute.xlu1 %3500 }
 0x2f8   : > { %v3196_v14 = vpop.f32.mrf.mxu0  ;;  %vm3533_vm15 = vcmp.eq.s32.totalorder %v3501_v12, 1 }
 0x2f9   : > { %v3560_v32 = vsel %vm3528_vm10, %v3304_v49, 0.0  ;;  %v3194_v23 = vadd.f32 %v3193_v5, %v3105_v50 }
 0x2fa   : > { %3592 = vst [vmem:[%s4608_s14 + $0xd0] sm:$0xff] %v3560_v32 }
 0x2fb   : > { %v3237_v40 = vmul.f32 %v5473_v61, %v3194_v23 }
 0x2fc   : > { %v3018_v28 = vpop.f32.mrf.mxu2 }
 0x2fd   : > { %v3273_v46 = vadd.f32 %v5480_v45, %v3237_v40  ;;  %v3019_v62 = vadd.f32 %v3018_v28, %v2930_v17  ;;  %v3107_v57 = vpop.f32.mrf.mxu3 }
 0x2fe   : > { %v2931_v33 = vpop.f32.mrf.mxu1 }
 0x2ff   : > { %v3305_v48 = vmax.f32 %v3273_v46, 0.0  ;;  %v3108_v63 = vadd.f32 %v3107_v57, %v3019_v62  ;;  %v2932_v15 = vadd.f32 %v2931_v33, %v5280_v26 }
 0x300   : > { %v3198_v7 = vpop.f32.mrf.mxu0 }
 0x301   : > { %v3561_v2 = vsel %vm3529_vm11, %v3305_v48, 0.0  ;;  %v3197_v3 = vadd.f32 %v3196_v14, %v3108_v63 }
 0x302   : > { %3593 = vst [vmem:[%s4608_s14 + $0xd8] sm:$0xff] %v3561_v2 }
 0x303   : > { %v3238_v56 = vmul.f32 %v5473_v61, %v3197_v3 }
 0x304   : > { %v3020_v60 = vpop.f32.mrf.mxu2 }
 0x305   : > { %v3274_v6 = vadd.f32 %v5480_v45, %v3238_v56  ;;  %v3021_v4 = vadd.f32 %v3020_v60, %v2932_v15  ;;  %v3109_v59 = vpop.f32.mrf.mxu3 }
 0x306   : > { %v2934_v52 = vpop.f32.mrf.mxu1 }
 0x307   : > { %v3306_v19 = vmax.f32 %v3274_v6, 0.0  ;;  %v3110_v21 = vadd.f32 %v3109_v59, %v3021_v4  ;;  %v2935_v58 = vadd.f32 %v2934_v52, %v5290_v35 }
 0x308   : > { %v3201_v53 = vpop.f32.mrf.mxu0 }
 0x309   : > { %v3562_v39 = vsel %vm3530_vm12, %v3306_v19, 0.0  ;;  %v3199_v38 = vadd.f32 %v3198_v7, %v3110_v21 }
 0x30a   : > { %3594 = vst [vmem:[%s4608_s14 + $0xe0] sm:$0xff] %v3562_v39 }
 0x30b   : > { %v3239_v27 = vmul.f32 %v5473_v61, %v3199_v38 }
 0x30c   : > { %v3023_v26 = vpop.f32.mrf.mxu2 }
 0x30d   : > { %v3275_v16 = vadd.f32 %v5480_v45, %v3239_v27  ;;  %v3024_v11 = vadd.f32 %v3023_v26, %v2935_v58  ;;  %v3112_v25 = vpop.f32.mrf.mxu3 }
 0x30e   : > { %v2936_v22 = vpop.f32.mrf.mxu1 }
 0x30f   : > { %v3307_v18 = vmax.f32 %v3275_v16, 0.0  ;;  %v3113_v36 = vadd.f32 %v3112_v25, %v3024_v11  ;;  %v2937_v47 = vadd.f32 %v2936_v22, %v5300_v34 }
 0x310   : > { %v3203_v0 = vpop.f32.mrf.mxu0 }
 0x311   : > { %v3563_v30 = vsel %vm3531_vm13, %v3307_v18, 0.0  ;;  %v3202_v41 = vadd.f32 %v3201_v53, %v3113_v36 }
 0x312   : > { %3595 = vst [vmem:[%s4608_s14 + $0xe8] sm:$0xff] %v3563_v30 }
 0x313   : > { %v3240_v13 = vmul.f32 %v5473_v61, %v3202_v41 }
 0x314   : > { %v3025_v35 = vpop.f32.mrf.mxu2 }
 0x315   : > { %v3276_v55 = vadd.f32 %v5480_v45, %v3240_v13  ;;  %v3026_v20 = vadd.f32 %v3025_v35, %v2937_v47  ;;  %v3114_v9 = vpop.f32.mrf.mxu3 }
 0x317   : > { %v3308_v5 = vmax.f32 %v3276_v55, 0.0  ;;  %v3115_v24 = vadd.f32 %v3114_v9, %v3026_v20 }
 0x319   : > { %v3564_v37 = vsel %vm3532_vm14, %v3308_v5, 0.0  ;;  %v3204_v31 = vadd.f32 %v3203_v0, %v3115_v24 }
 0x31a   : > { %3596 = vst [vmem:[%s4608_s14 + $0xf0] sm:$0xff] %v3564_v37 }
 0x31b   : > { %v3241_v44 = vmul.f32 %v5473_v61, %v3204_v31 }
 0x31d   : > { %v3277_v29 = vadd.f32 %v5480_v45, %v3241_v44 }
 0x31f   : > { %v3309_v34 = vmax.f32 %v3277_v29, 0.0 }
 0x321   : > { %v3565_v8 = vsel %vm3533_vm15, %v3309_v34, 0.0 }
 0x322   : > { %3597 = vst [vmem:[%s4608_s14 + $0xf8] sm:$0xff] %v3565_v8 }
 0x323 PF: > { %s15_s22 = sadd.s32 1, %s4526_s22   ;;  %s5561_s18 = smov %s4518_s20 }
 0x324   : > { %p12_p10 = scmp.ge.s32.totalorder %s15_s22, 18   ;;  %s5562_s19 = smov %s4522_s21 }
 0x325   : > { %s5563_s20 = smov %s5566_s23  ;;  %s5564_s21 = smov %s5570_s24 }
 0x326   :  { %14 = sbr.rel (!%p12_p10) target bundleno = 3 (0x3), region = 99 }

</bundles_post_ra>
